<compile_context>
chip_gen: v5e
topology: v5e:2x2
jax: 0.10.0
libtpu: 0.0.40
codegen_flags: <defaults>
</compile_context>

<pallas_src>
import numpy as np

import jax
import jax.numpy as jnp
from jax.experimental import pallas as pl
from jax.experimental.pallas import tpu as pltpu


_STAGES = [          # (Hin, Win, Cin, Cout) for the three Conv+BN+MaxPool stages
    (60, 9, 1, 32),
    (30, 5, 32, 64),
    (15, 3, 64, 64),
]
_HID = 16            # GRU hidden size
_T = 16              # GRU sequence length (from view(B, 16, 64))


# -----------------------------------------------------------------------------
# Fused kernel
# -----------------------------------------------------------------------------
def _fused_kernel(x_ref,
                  w1_ref, s1_ref, pe1_ref, po1_ref,
                  w2_ref, s2_ref, pe2_ref, po2_ref,
                  w3_ref, s3_ref, pe3_ref, po3_ref,
                  wi0_ref, bi0_ref,
                  wh0_ref, bh0_ref, wi1_ref, bi1_ref, wh1_ref, bh1_ref,
                  wcls_ref, bcls_ref,
                  feat_ref, out_ref):
    batch = x_ref.shape[0] // _STAGES[0][0]

    def conv_bn_pool(x, wmat, shift, pe, po, hin, win_cin, cout, wpool):
        # x     : [batch*hin, win*cin]      layout [H, W*C], batch stacked on rows
        # wmat  : [2*win*cin, 2*wpool*cout] bf16, BN scale folded, cols = [even w | odd w]
        # shift : [1, 2*wpool*cout]         BN shift (+conv bias) per column
        # pe/po : [batch*hpool, batch*hout] 0/1 row-selection matrices (H maxpool)
        zrow = jnp.zeros((1, win_cin), jnp.float32)
        rows = []
        for b in range(batch):
            xb = x[b * hin:(b + 1) * hin, :]
            rows.append(jnp.concatenate(
                [jnp.concatenate([zrow, xb], axis=0),     # tap dh = 0 (input row h_out-1)
                 jnp.concatenate([xb, zrow], axis=0)],    # tap dh = 1 (input row h_out)
                axis=1))
        xmat = jnp.concatenate(rows, axis=0)              # [batch*(hin+1), 2*win*cin]
        y = jnp.dot(xmat.astype(jnp.bfloat16), wmat,
                    preferred_element_type=jnp.float32) + shift
        half = wpool * cout
        zw = jnp.maximum(y[:, :half], y[:, half:])        # maxpool along W (lane halves)
        return jnp.maximum(                               # maxpool along H (row selection)
            jnp.dot(pe, zw, preferred_element_type=jnp.float32),
            jnp.dot(po, zw, preferred_element_type=jnp.float32))

    x = x_ref[...]
    r = conv_bn_pool(x, w1_ref[...], s1_ref[...], pe1_ref[...], po1_ref[...],
                     60, 9 * 1, 32, 5)       # [B*30, 5*32]
    r = conv_bn_pool(r, w2_ref[...], s2_ref[...], pe2_ref[...], po2_ref[...],
                     30, 5 * 32, 64, 3)      # [B*15, 3*64]
    r = conv_bn_pool(r, w3_ref[...], s3_ref[...], pe3_ref[...], po3_ref[...],
                     15, 3 * 64, 64, 2)      # [B*8,  2*64]

    # Flatten each batch element's [8, 128] block to a single 1024-wide lane row.
    flat = jnp.concatenate(
        [jnp.concatenate([r[b * 8 + h:b * 8 + h + 1, :] for h in range(8)], axis=1)
         for b in range(batch)], axis=0)                  # [B, 1024]

    # GRU layer-0 input projection for ALL timesteps at once
    # (torch's view(B,16,64) channel permutation is folded into wi0_ref).
    gin = jnp.dot(flat.astype(jnp.bfloat16), wi0_ref[...],
                  preferred_element_type=jnp.float32) + bi0_ref[...]   # [B, T*3H]

    wh0 = wh0_ref[...]
    bh0 = bh0_ref[...]
    wi1 = wi1_ref[...]
    bi1 = bi1_ref[...]
    wh1 = wh1_ref[...]
    bh1 = bh1_ref[...]
    hdim = _HID

    def gru_update(gi, gh, h):               # PyTorch gate order (r, z, n)
        rg = jax.nn.sigmoid(gi[:, 0:hdim] + gh[:, 0:hdim])
        zg = jax.nn.sigmoid(gi[:, hdim:2 * hdim] + gh[:, hdim:2 * hdim])
        ng = jnp.tanh(gi[:, 2 * hdim:3 * hdim] + rg * gh[:, 2 * hdim:3 * hdim])
        return (1.0 - zg) * ng + zg * h

    h0 = jnp.zeros((batch, hdim), jnp.float32)
    h1 = jnp.zeros((batch, hdim), jnp.float32)
    outs = []
    for t in range(_T):                      # T = 16, fully unrolled recurrence
        gi0 = gin[:, t * 3 * hdim:(t + 1) * 3 * hdim]
        gh0 = jnp.dot(h0, wh0, preferred_element_type=jnp.float32) + bh0
        h0 = gru_update(gi0, gh0, h0)
        gi1 = jnp.dot(h0, wi1, preferred_element_type=jnp.float32) + bi1
        gh1 = jnp.dot(h1, wh1, preferred_element_type=jnp.float32) + bh1
        h1 = gru_update(gi1, gh1, h1)
        outs.append(h1)

    feat = jnp.concatenate(outs, axis=1)     # [B, 256]  lane-dense store
    feat_ref[...] = feat
    out_ref[...] = (jnp.dot(feat, wcls_ref[...], preferred_element_type=jnp.float32)
                    + bcls_ref[...])


# -----------------------------------------------------------------------------
# Wrapper
# -----------------------------------------------------------------------------
@jax.jit
def my_single_model_forward(x_nchw, kp):
    """x_nchw: [B, 1, 60, 9] float32.  Returns (feature [B,256], logits [B,C])."""
    B = x_nchw.shape[0]
    x2d = x_nchw.reshape(B * 60, 9).astype(jnp.float32)   # free reshape, layout [B*H, W]

    args = [x2d,
            kp["w1"], kp["s1"], kp["pe1"], kp["po1"],
            kp["w2"], kp["s2"], kp["pe2"], kp["po2"],
            kp["w3"], kp["s3"], kp["pe3"], kp["po3"],
            kp["wi0_big"], kp["bi0_row"],
            kp["wh0"], kp["bh0"], kp["wi1"], kp["bi1"], kp["wh1"], kp["bh1"],
            kp["wcls"], kp["bcls"]]
    num_classes = kp["wcls"].shape[1]

    def full(shape):
        return pl.BlockSpec(shape, lambda i, _n=len(shape): (0,) * _n)

    feat, logits = pl.pallas_call(
        _fused_kernel,
        out_shape=(jax.ShapeDtypeStruct((B, _T * _HID), jnp.float32),
                   jax.ShapeDtypeStruct((B, num_classes), jnp.float32)),
        grid_spec=pltpu.PrefetchScalarGridSpec(
            num_scalar_prefetch=0,
            grid=(1,),
            in_specs=[full(a.shape) for a in args],
            out_specs=[full((B, _T * _HID)), full((B, num_classes))],
        ),
        compiler_params=pltpu.CompilerParams(dimension_semantics=("arbitrary",)),
    )(*args)
    return feat, logits


# -----------------------------------------------------------------------------
# Host-side parameter construction (done once, outside the kernel / jit)
# -----------------------------------------------------------------------------
def _conv_stage_operands(wc, scale, shift, hin, win, cin, cout, batch):
    """wc: [2,2,cin,cout]; returns (wmat, shift_row, p_even, p_odd)."""
    hout, wout = hin + 1, win + 1
    hpool, wpool = hout // 2, wout // 2
    wmat = np.zeros((2 * win * cin, 2 * wpool * cout), np.float32)
    for dh in range(2):
        for w_out in range(wout):
            parity, q = w_out % 2, w_out // 2
            col0 = parity * wpool * cout + q * cout
            for dw in range(2):
                w_in = w_out - 1 + dw                # padding=1 folded in (missing tap = 0)
                if 0 <= w_in < win:
                    row0 = dh * win * cin + w_in * cin
                    wmat[row0:row0 + cin, col0:col0 + cout] += wc[dh, dw] * scale[None, :]
    shift_row = np.tile(shift, 2 * wpool)[None, :].astype(np.float32)
    pe = np.zeros((batch * hpool, batch * hout), np.float32)
    po = np.zeros_like(pe)
    for b in range(batch):
        for p in range(hpool):
            pe[b * hpool + p, b * hout + 2 * p] = 1.0
            po[b * hpool + p, b * hout + 2 * p + 1] = 1.0
    return wmat, shift_row, pe, po


def build_kernel_params(raw, batch, mm_dtype=jnp.bfloat16):
    pn = {k: np.asarray(v) for k, v in raw.items()}
    eps = 1e-5
    kp = {}
    for idx, (hin, win, cin, cout) in enumerate(_STAGES, start=1):
        scale = pn[f"bn_gamma{idx}"] / np.sqrt(pn[f"bn_var{idx}"] + eps)
        shift = pn[f"bn_beta{idx}"] + (pn[f"conv_b{idx}"] - pn[f"bn_mean{idx}"]) * scale
        wmat, srow, pe, po = _conv_stage_operands(
            pn[f"conv_w{idx}"], scale, shift, hin, win, cin, cout, batch)
        kp[f"w{idx}"] = jnp.asarray(wmat, mm_dtype)
        kp[f"s{idx}"] = jnp.asarray(srow)
        kp[f"pe{idx}"] = jnp.asarray(pe)
        kp[f"po{idx}"] = jnp.asarray(po)

    # GRU layer-0 input weights, expanded so that one [B,1024]@[1024,768] matmul
    # implements torch's view(B,16,64) followed by x_t @ Wi0 for every t.
    wi0 = pn["gru_wi0"]                                     # [64, 3H], gate order (r,z,n)
    big = np.zeros((8 * 2 * 64, _T * 3 * _HID), np.float32)
    for h in range(8):
        for w in range(2):
            for c in range(64):
                t = c // 4
                f = (c % 4) * 16 + h * 2 + w
                big[h * 128 + w * 64 + c, t * 3 * _HID:(t + 1) * 3 * _HID] = wi0[f]
    kp["wi0_big"] = jnp.asarray(big, mm_dtype)
    kp["bi0_row"] = jnp.asarray(np.tile(pn["gru_bi0"], _T)[None, :].astype(np.float32))
    kp["wh0"] = jnp.asarray(pn["gru_wh0"])
    kp["bh0"] = jnp.asarray(pn["gru_bh0"][None, :])
    kp["wi1"] = jnp.asarray(pn["gru_wi1"])
    kp["bi1"] = jnp.asarray(pn["gru_bi1"][None, :])
    kp["wh1"] = jnp.asarray(pn["gru_wh1"])
    kp["bh1"] = jnp.asarray(pn["gru_bh1"][None, :])
    kp["wcls"] = jnp.asarray(pn["cls_w"])
    kp["bcls"] = jnp.asarray(pn["cls_b"][None, :])
    return kp


def init_params(key, num_classes=27):
    keys = iter(jax.random.split(key, 40))

    def nrm(shape, s=0.1):
        return s * jax.random.normal(next(keys), shape, dtype=jnp.float32)

    p = {}
    for idx, (_, _, cin, cout) in enumerate(_STAGES, start=1):
        p[f"conv_w{idx}"] = nrm((2, 2, cin, cout))
        p[f"conv_b{idx}"] = nrm((cout,))
        p[f"bn_gamma{idx}"] = 1.0 + nrm((cout,))
        p[f"bn_beta{idx}"] = nrm((cout,))
        p[f"bn_mean{idx}"] = nrm((cout,))
        p[f"bn_var{idx}"] = 1.0 + 0.1 * jnp.abs(
            jax.random.normal(next(keys), (cout,), jnp.float32))
    for layer, fin in ((0, 64), (1, _HID)):
        p[f"gru_wi{layer}"] = nrm((fin, 3 * _HID))
        p[f"gru_wh{layer}"] = nrm((_HID, 3 * _HID))
        p[f"gru_bi{layer}"] = nrm((3 * _HID,))
        p[f"gru_bh{layer}"] = nrm((3 * _HID,))
    p["cls_w"] = nrm((_T * _HID, num_classes))
    p["cls_b"] = nrm((num_classes,))
    return p


if __name__ == "__main__":
    root = jax.random.PRNGKey(0)
    pkey, xkey = jax.random.split(root)

    B = 2
    num_classes = 27
    raw_params = init_params(pkey, num_classes=num_classes)
    kparams = build_kernel_params(raw_params, batch=B)

    # PyTorch-style input: [bsz, 1, 60, 9] (NCHW), bsz = 2
    x = jax.random.normal(xkey, (B, 1, 60, 9), dtype=jnp.float32)

    feature, logits = my_single_model_forward(x, kparams)
    feature, logits = jax.block_until_ready((feature, logits))

    assert feature.shape == (B, 256), feature.shape
    assert logits.shape == (B, num_classes), logits.shape
    assert bool(jnp.all(jnp.isfinite(feature))) and bool(jnp.all(jnp.isfinite(logits)))
    print("KERNEL_OK")
</pallas_src>

<mosaic_0001>
module attributes {stable_mosaic.version = 11 : i64} {
  func.func @_fused_kernel(%arg0: i32, %arg1: memref<120x9xf32, #tpu.memory_space<vmem>>, %arg2: memref<18x320xbf16, #tpu.memory_space<vmem>>, %arg3: memref<1x320xf32, #tpu.memory_space<vmem>>, %arg4: memref<60x122xf32, #tpu.memory_space<vmem>>, %arg5: memref<60x122xf32, #tpu.memory_space<vmem>>, %arg6: memref<320x384xbf16, #tpu.memory_space<vmem>>, %arg7: memref<1x384xf32, #tpu.memory_space<vmem>>, %arg8: memref<30x62xf32, #tpu.memory_space<vmem>>, %arg9: memref<30x62xf32, #tpu.memory_space<vmem>>, %arg10: memref<384x256xbf16, #tpu.memory_space<vmem>>, %arg11: memref<1x256xf32, #tpu.memory_space<vmem>>, %arg12: memref<16x32xf32, #tpu.memory_space<vmem>>, %arg13: memref<16x32xf32, #tpu.memory_space<vmem>>, %arg14: memref<1024x768xbf16, #tpu.memory_space<vmem>>, %arg15: memref<1x768xf32, #tpu.memory_space<vmem>>, %arg16: memref<16x48xf32, #tpu.memory_space<vmem>>, %arg17: memref<1x48xf32, #tpu.memory_space<vmem>>, %arg18: memref<16x48xf32, #tpu.memory_space<vmem>>, %arg19: memref<1x48xf32, #tpu.memory_space<vmem>>, %arg20: memref<16x48xf32, #tpu.memory_space<vmem>>, %arg21: memref<1x48xf32, #tpu.memory_space<vmem>>, %arg22: memref<256x27xf32, #tpu.memory_space<vmem>>, %arg23: memref<1x27xf32, #tpu.memory_space<vmem>>, %arg24: memref<2x256xf32, #tpu.memory_space<vmem>>, %arg25: memref<2x27xf32, #tpu.memory_space<vmem>>) attributes {dimension_semantics = [#tpu.dimension_semantics<arbitrary>], iteration_bounds = array<i64: 1>, scalar_prefetch = 0 : i64, scratch_operands = 0 : i64, tpu.core_type = #tpu.core_type<tc>, window_params = [{pipeline_mode = #tpu.pipeline_mode<synchronous>, transform_indices = @transform_0, window_bounds = array<i64: 120, 9>}, {pipeline_mode = #tpu.pipeline_mode<synchronous>, transform_indices = @transform_1, window_bounds = array<i64: 18, 320>}, {pipeline_mode = #tpu.pipeline_mode<synchronous>, transform_indices = @transform_2, window_bounds = array<i64: 1, 320>}, {pipeline_mode = #tpu.pipeline_mode<synchronous>, transform_indices = @transform_3, window_bounds = array<i64: 60, 122>}, {pipeline_mode = #tpu.pipeline_mode<synchronous>, transform_indices = @transform_4, window_bounds = array<i64: 60, 122>}, {pipeline_mode = #tpu.pipeline_mode<synchronous>, transform_indices = @transform_5, window_bounds = array<i64: 320, 384>}, {pipeline_mode = #tpu.pipeline_mode<synchronous>, transform_indices = @transform_6, window_bounds = array<i64: 1, 384>}, {pipeline_mode = #tpu.pipeline_mode<synchronous>, transform_indices = @transform_7, window_bounds = array<i64: 30, 62>}, {pipeline_mode = #tpu.pipeline_mode<synchronous>, transform_indices = @transform_8, window_bounds = array<i64: 30, 62>}, {pipeline_mode = #tpu.pipeline_mode<synchronous>, transform_indices = @transform_9, window_bounds = array<i64: 384, 256>}, {pipeline_mode = #tpu.pipeline_mode<synchronous>, transform_indices = @transform_10, window_bounds = array<i64: 1, 256>}, {pipeline_mode = #tpu.pipeline_mode<synchronous>, transform_indices = @transform_11, window_bounds = array<i64: 16, 32>}, {pipeline_mode = #tpu.pipeline_mode<synchronous>, transform_indices = @transform_12, window_bounds = array<i64: 16, 32>}, {pipeline_mode = #tpu.pipeline_mode<synchronous>, transform_indices = @transform_13, window_bounds = array<i64: 1024, 768>}, {pipeline_mode = #tpu.pipeline_mode<synchronous>, transform_indices = @transform_14, window_bounds = array<i64: 1, 768>}, {pipeline_mode = #tpu.pipeline_mode<synchronous>, transform_indices = @transform_15, window_bounds = array<i64: 16, 48>}, {pipeline_mode = #tpu.pipeline_mode<synchronous>, transform_indices = @transform_16, window_bounds = array<i64: 1, 48>}, {pipeline_mode = #tpu.pipeline_mode<synchronous>, transform_indices = @transform_17, window_bounds = array<i64: 16, 48>}, {pipeline_mode = #tpu.pipeline_mode<synchronous>, transform_indices = @transform_18, window_bounds = array<i64: 1, 48>}, {pipeline_mode = #tpu.pipeline_mode<synchronous>, transform_indices = @transform_19, window_bounds = array<i64: 16, 48>}, {pipeline_mode = #tpu.pipeline_mode<synchronous>, transform_indices = @transform_20, window_bounds = array<i64: 1, 48>}, {pipeline_mode = #tpu.pipeline_mode<synchronous>, transform_indices = @transform_21, window_bounds = array<i64: 256, 27>}, {pipeline_mode = #tpu.pipeline_mode<synchronous>, transform_indices = @transform_22, window_bounds = array<i64: 1, 27>}, {pipeline_mode = #tpu.pipeline_mode<synchronous>, transform_indices = @transform_23, window_bounds = array<i64: 2, 256>}, {pipeline_mode = #tpu.pipeline_mode<synchronous>, transform_indices = @transform_24, window_bounds = array<i64: 2, 27>}]} {
    %c0 = arith.constant 0 : index
    %c0_0 = arith.constant 0 : index
    %0 = vector.load %arg1[%c0, %c0_0] : memref<120x9xf32, #tpu.memory_space<vmem>>, vector<120x9xf32>
    %c0_1 = arith.constant 0 : index
    %c0_2 = arith.constant 0 : index
    %1 = vector.load %arg2[%c0_1, %c0_2] : memref<18x320xbf16, #tpu.memory_space<vmem>>, vector<18x320xbf16>
    %c0_3 = arith.constant 0 : index
    %c0_4 = arith.constant 0 : index
    %2 = vector.load %arg3[%c0_3, %c0_4] : memref<1x320xf32, #tpu.memory_space<vmem>>, vector<1x320xf32>
    %c0_5 = arith.constant 0 : index
    %c0_6 = arith.constant 0 : index
    %3 = vector.load %arg4[%c0_5, %c0_6] : memref<60x122xf32, #tpu.memory_space<vmem>>, vector<60x122xf32>
    %c0_7 = arith.constant 0 : index
    %c0_8 = arith.constant 0 : index
    %4 = vector.load %arg5[%c0_7, %c0_8] : memref<60x122xf32, #tpu.memory_space<vmem>>, vector<60x122xf32>
    %cst = arith.constant 0.000000e+00 : f32
    %5 = vector.broadcast %cst : f32 to vector<1x9xf32>
    %6 = vector.extract_strided_slice %0 {offsets = [0, 0], sizes = [60, 9], strides = [1, 1]} : vector<120x9xf32> to vector<60x9xf32>
    %7 = tpu.concatenate %5, %6 in 0 : vector<1x9xf32>, vector<60x9xf32> -> vector<61x9xf32>
    %8 = tpu.concatenate %6, %5 in 0 : vector<60x9xf32>, vector<1x9xf32> -> vector<61x9xf32>
    %9 = tpu.concatenate %7, %8 in 1 : vector<61x9xf32>, vector<61x9xf32> -> vector<61x18xf32>
    %10 = vector.extract_strided_slice %0 {offsets = [60, 0], sizes = [60, 9], strides = [1, 1]} : vector<120x9xf32> to vector<60x9xf32>
    %11 = tpu.concatenate %5, %10 in 0 : vector<1x9xf32>, vector<60x9xf32> -> vector<61x9xf32>
    %12 = tpu.concatenate %10, %5 in 0 : vector<60x9xf32>, vector<1x9xf32> -> vector<61x9xf32>
    %13 = tpu.concatenate %11, %12 in 1 : vector<61x9xf32>, vector<61x9xf32> -> vector<61x18xf32>
    %14 = tpu.concatenate %9, %13 in 0 : vector<61x18xf32>, vector<61x18xf32> -> vector<122x18xf32>
    %15 = arith.truncf %14 : vector<122x18xf32> to vector<122x18xbf16>
    %cst_9 = arith.constant dense<0.000000e+00> : vector<122x320xf32>
    %16 = tpu.matmul %15, %1, %cst_9 {dimension_numbers = #tpu.dot_dimension_numbers<[1], [0], [0], [1], [0, 0, 1, 1], [], []>} : vector<122x18xbf16>, vector<18x320xbf16>, vector<122x320xf32> -> vector<122x320xf32>
    %17 = vector.broadcast %2 : vector<1x320xf32> to vector<122x320xf32>
    %18 = arith.addf %16, %17 : vector<122x320xf32>
    %19 = vector.extract_strided_slice %18 {offsets = [0, 0], sizes = [122, 160], strides = [1, 1]} : vector<122x320xf32> to vector<122x160xf32>
    %20 = vector.extract_strided_slice %18 {offsets = [0, 160], sizes = [122, 160], strides = [1, 1]} : vector<122x320xf32> to vector<122x160xf32>
    %21 = arith.maximumf %19, %20 : vector<122x160xf32>
    %cst_10 = arith.constant dense<0.000000e+00> : vector<60x160xf32>
    %22 = tpu.matmul %3, %21, %cst_10 {dimension_numbers = #tpu.dot_dimension_numbers<[1], [0], [0], [1], [0, 0, 1, 1], [], []>} : vector<60x122xf32>, vector<122x160xf32>, vector<60x160xf32> -> vector<60x160xf32>
    %cst_11 = arith.constant dense<0.000000e+00> : vector<60x160xf32>
    %23 = tpu.matmul %4, %21, %cst_11 {dimension_numbers = #tpu.dot_dimension_numbers<[1], [0], [0], [1], [0, 0, 1, 1], [], []>} : vector<60x122xf32>, vector<122x160xf32>, vector<60x160xf32> -> vector<60x160xf32>
    %24 = arith.maximumf %22, %23 : vector<60x160xf32>
    %c0_12 = arith.constant 0 : index
    %c0_13 = arith.constant 0 : index
    %25 = vector.load %arg6[%c0_12, %c0_13] : memref<320x384xbf16, #tpu.memory_space<vmem>>, vector<320x384xbf16>
    %c0_14 = arith.constant 0 : index
    %c0_15 = arith.constant 0 : index
    %26 = vector.load %arg7[%c0_14, %c0_15] : memref<1x384xf32, #tpu.memory_space<vmem>>, vector<1x384xf32>
    %c0_16 = arith.constant 0 : index
    %c0_17 = arith.constant 0 : index
    %27 = vector.load %arg8[%c0_16, %c0_17] : memref<30x62xf32, #tpu.memory_space<vmem>>, vector<30x62xf32>
    %c0_18 = arith.constant 0 : index
    %c0_19 = arith.constant 0 : index
    %28 = vector.load %arg9[%c0_18, %c0_19] : memref<30x62xf32, #tpu.memory_space<vmem>>, vector<30x62xf32>
    %cst_20 = arith.constant 0.000000e+00 : f32
    %29 = vector.broadcast %cst_20 : f32 to vector<1x160xf32>
    %30 = vector.extract_strided_slice %24 {offsets = [0, 0], sizes = [30, 160], strides = [1, 1]} : vector<60x160xf32> to vector<30x160xf32>
    %31 = tpu.concatenate %29, %30 in 0 : vector<1x160xf32>, vector<30x160xf32> -> vector<31x160xf32>
    %32 = tpu.concatenate %30, %29 in 0 : vector<30x160xf32>, vector<1x160xf32> -> vector<31x160xf32>
    %33 = tpu.concatenate %31, %32 in 1 : vector<31x160xf32>, vector<31x160xf32> -> vector<31x320xf32>
    %34 = vector.extract_strided_slice %24 {offsets = [30, 0], sizes = [30, 160], strides = [1, 1]} : vector<60x160xf32> to vector<30x160xf32>
    %35 = tpu.concatenate %29, %34 in 0 : vector<1x160xf32>, vector<30x160xf32> -> vector<31x160xf32>
    %36 = tpu.concatenate %34, %29 in 0 : vector<30x160xf32>, vector<1x160xf32> -> vector<31x160xf32>
    %37 = tpu.concatenate %35, %36 in 1 : vector<31x160xf32>, vector<31x160xf32> -> vector<31x320xf32>
    %38 = tpu.concatenate %33, %37 in 0 : vector<31x320xf32>, vector<31x320xf32> -> vector<62x320xf32>
    %39 = arith.truncf %38 : vector<62x320xf32> to vector<62x320xbf16>
    %cst_21 = arith.constant dense<0.000000e+00> : vector<62x384xf32>
    %40 = tpu.matmul %39, %25, %cst_21 {dimension_numbers = #tpu.dot_dimension_numbers<[1], [0], [0], [1], [0, 0, 1, 1], [], []>} : vector<62x320xbf16>, vector<320x384xbf16>, vector<62x384xf32> -> vector<62x384xf32>
    %41 = vector.broadcast %26 : vector<1x384xf32> to vector<62x384xf32>
    %42 = arith.addf %40, %41 : vector<62x384xf32>
    %43 = vector.extract_strided_slice %42 {offsets = [0, 0], sizes = [62, 192], strides = [1, 1]} : vector<62x384xf32> to vector<62x192xf32>
    %44 = vector.extract_strided_slice %42 {offsets = [0, 192], sizes = [62, 192], strides = [1, 1]} : vector<62x384xf32> to vector<62x192xf32>
    %45 = arith.maximumf %43, %44 : vector<62x192xf32>
    %cst_22 = arith.constant dense<0.000000e+00> : vector<30x192xf32>
    %46 = tpu.matmul %27, %45, %cst_22 {dimension_numbers = #tpu.dot_dimension_numbers<[1], [0], [0], [1], [0, 0, 1, 1], [], []>} : vector<30x62xf32>, vector<62x192xf32>, vector<30x192xf32> -> vector<30x192xf32>
    %cst_23 = arith.constant dense<0.000000e+00> : vector<30x192xf32>
    %47 = tpu.matmul %28, %45, %cst_23 {dimension_numbers = #tpu.dot_dimension_numbers<[1], [0], [0], [1], [0, 0, 1, 1], [], []>} : vector<30x62xf32>, vector<62x192xf32>, vector<30x192xf32> -> vector<30x192xf32>
    %48 = arith.maximumf %46, %47 : vector<30x192xf32>
    %c0_24 = arith.constant 0 : index
    %c0_25 = arith.constant 0 : index
    %49 = vector.load %arg10[%c0_24, %c0_25] : memref<384x256xbf16, #tpu.memory_space<vmem>>, vector<384x256xbf16>
    %c0_26 = arith.constant 0 : index
    %c0_27 = arith.constant 0 : index
    %50 = vector.load %arg11[%c0_26, %c0_27] : memref<1x256xf32, #tpu.memory_space<vmem>>, vector<1x256xf32>
    %c0_28 = arith.constant 0 : index
    %c0_29 = arith.constant 0 : index
    %51 = vector.load %arg12[%c0_28, %c0_29] : memref<16x32xf32, #tpu.memory_space<vmem>>, vector<16x32xf32>
    %c0_30 = arith.constant 0 : index
    %c0_31 = arith.constant 0 : index
    %52 = vector.load %arg13[%c0_30, %c0_31] : memref<16x32xf32, #tpu.memory_space<vmem>>, vector<16x32xf32>
    %cst_32 = arith.constant 0.000000e+00 : f32
    %53 = vector.broadcast %cst_32 : f32 to vector<1x192xf32>
    %54 = vector.extract_strided_slice %48 {offsets = [0, 0], sizes = [15, 192], strides = [1, 1]} : vector<30x192xf32> to vector<15x192xf32>
    %55 = tpu.concatenate %53, %54 in 0 : vector<1x192xf32>, vector<15x192xf32> -> vector<16x192xf32>
    %56 = tpu.concatenate %54, %53 in 0 : vector<15x192xf32>, vector<1x192xf32> -> vector<16x192xf32>
    %57 = tpu.concatenate %55, %56 in 1 : vector<16x192xf32>, vector<16x192xf32> -> vector<16x384xf32>
    %58 = vector.extract_strided_slice %48 {offsets = [15, 0], sizes = [15, 192], strides = [1, 1]} : vector<30x192xf32> to vector<15x192xf32>
    %59 = tpu.concatenate %53, %58 in 0 : vector<1x192xf32>, vector<15x192xf32> -> vector<16x192xf32>
    %60 = tpu.concatenate %58, %53 in 0 : vector<15x192xf32>, vector<1x192xf32> -> vector<16x192xf32>
    %61 = tpu.concatenate %59, %60 in 1 : vector<16x192xf32>, vector<16x192xf32> -> vector<16x384xf32>
    %62 = tpu.concatenate %57, %61 in 0 : vector<16x384xf32>, vector<16x384xf32> -> vector<32x384xf32>
    %63 = arith.truncf %62 : vector<32x384xf32> to vector<32x384xbf16>
    %cst_33 = arith.constant dense<0.000000e+00> : vector<32x256xf32>
    %64 = tpu.matmul %63, %49, %cst_33 {dimension_numbers = #tpu.dot_dimension_numbers<[1], [0], [0], [1], [0, 0, 1, 1], [], []>} : vector<32x384xbf16>, vector<384x256xbf16>, vector<32x256xf32> -> vector<32x256xf32>
    %65 = vector.broadcast %50 : vector<1x256xf32> to vector<32x256xf32>
    %66 = arith.addf %64, %65 : vector<32x256xf32>
    %67 = vector.extract_strided_slice %66 {offsets = [0, 0], sizes = [32, 128], strides = [1, 1]} : vector<32x256xf32> to vector<32x128xf32>
    %68 = vector.extract_strided_slice %66 {offsets = [0, 128], sizes = [32, 128], strides = [1, 1]} : vector<32x256xf32> to vector<32x128xf32>
    %69 = arith.maximumf %67, %68 : vector<32x128xf32>
    %cst_34 = arith.constant dense<0.000000e+00> : vector<16x128xf32>
    %70 = tpu.matmul %51, %69, %cst_34 {dimension_numbers = #tpu.dot_dimension_numbers<[1], [0], [0], [1], [0, 0, 1, 1], [], []>} : vector<16x32xf32>, vector<32x128xf32>, vector<16x128xf32> -> vector<16x128xf32>
    %cst_35 = arith.constant dense<0.000000e+00> : vector<16x128xf32>
    %71 = tpu.matmul %52, %69, %cst_35 {dimension_numbers = #tpu.dot_dimension_numbers<[1], [0], [0], [1], [0, 0, 1, 1], [], []>} : vector<16x32xf32>, vector<32x128xf32>, vector<16x128xf32> -> vector<16x128xf32>
    %72 = arith.maximumf %70, %71 : vector<16x128xf32>
    %73 = vector.extract_strided_slice %72 {offsets = [0, 0], sizes = [1, 128], strides = [1, 1]} : vector<16x128xf32> to vector<1x128xf32>
    %74 = vector.extract_strided_slice %72 {offsets = [1, 0], sizes = [1, 128], strides = [1, 1]} : vector<16x128xf32> to vector<1x128xf32>
    %75 = vector.extract_strided_slice %72 {offsets = [2, 0], sizes = [1, 128], strides = [1, 1]} : vector<16x128xf32> to vector<1x128xf32>
    %76 = vector.extract_strided_slice %72 {offsets = [3, 0], sizes = [1, 128], strides = [1, 1]} : vector<16x128xf32> to vector<1x128xf32>
    %77 = vector.extract_strided_slice %72 {offsets = [4, 0], sizes = [1, 128], strides = [1, 1]} : vector<16x128xf32> to vector<1x128xf32>
    %78 = vector.extract_strided_slice %72 {offsets = [5, 0], sizes = [1, 128], strides = [1, 1]} : vector<16x128xf32> to vector<1x128xf32>
    %79 = vector.extract_strided_slice %72 {offsets = [6, 0], sizes = [1, 128], strides = [1, 1]} : vector<16x128xf32> to vector<1x128xf32>
    %80 = vector.extract_strided_slice %72 {offsets = [7, 0], sizes = [1, 128], strides = [1, 1]} : vector<16x128xf32> to vector<1x128xf32>
    %81 = tpu.concatenate %73, %74, %75, %76, %77, %78, %79, %80 in 1 : vector<1x128xf32>, vector<1x128xf32>, vector<1x128xf32>, vector<1x128xf32>, vector<1x128xf32>, vector<1x128xf32>, vector<1x128xf32>, vector<1x128xf32> -> vector<1x1024xf32>
    %82 = vector.extract_strided_slice %72 {offsets = [8, 0], sizes = [1, 128], strides = [1, 1]} : vector<16x128xf32> to vector<1x128xf32>
    %83 = vector.extract_strided_slice %72 {offsets = [9, 0], sizes = [1, 128], strides = [1, 1]} : vector<16x128xf32> to vector<1x128xf32>
    %84 = vector.extract_strided_slice %72 {offsets = [10, 0], sizes = [1, 128], strides = [1, 1]} : vector<16x128xf32> to vector<1x128xf32>
    %85 = vector.extract_strided_slice %72 {offsets = [11, 0], sizes = [1, 128], strides = [1, 1]} : vector<16x128xf32> to vector<1x128xf32>
    %86 = vector.extract_strided_slice %72 {offsets = [12, 0], sizes = [1, 128], strides = [1, 1]} : vector<16x128xf32> to vector<1x128xf32>
    %87 = vector.extract_strided_slice %72 {offsets = [13, 0], sizes = [1, 128], strides = [1, 1]} : vector<16x128xf32> to vector<1x128xf32>
    %88 = vector.extract_strided_slice %72 {offsets = [14, 0], sizes = [1, 128], strides = [1, 1]} : vector<16x128xf32> to vector<1x128xf32>
    %89 = vector.extract_strided_slice %72 {offsets = [15, 0], sizes = [1, 128], strides = [1, 1]} : vector<16x128xf32> to vector<1x128xf32>
    %90 = tpu.concatenate %82, %83, %84, %85, %86, %87, %88, %89 in 1 : vector<1x128xf32>, vector<1x128xf32>, vector<1x128xf32>, vector<1x128xf32>, vector<1x128xf32>, vector<1x128xf32>, vector<1x128xf32>, vector<1x128xf32> -> vector<1x1024xf32>
    %91 = tpu.concatenate %81, %90 in 0 : vector<1x1024xf32>, vector<1x1024xf32> -> vector<2x1024xf32>
    %92 = arith.truncf %91 : vector<2x1024xf32> to vector<2x1024xbf16>
    %c0_36 = arith.constant 0 : index
    %c0_37 = arith.constant 0 : index
    %93 = vector.load %arg14[%c0_36, %c0_37] : memref<1024x768xbf16, #tpu.memory_space<vmem>>, vector<1024x768xbf16>
    %cst_38 = arith.constant dense<0.000000e+00> : vector<2x768xf32>
    %94 = tpu.matmul %92, %93, %cst_38 {dimension_numbers = #tpu.dot_dimension_numbers<[1], [0], [0], [1], [0, 0, 1, 1], [], []>} : vector<2x1024xbf16>, vector<1024x768xbf16>, vector<2x768xf32> -> vector<2x768xf32>
    %c0_39 = arith.constant 0 : index
    %c0_40 = arith.constant 0 : index
    %95 = vector.load %arg15[%c0_39, %c0_40] : memref<1x768xf32, #tpu.memory_space<vmem>>, vector<1x768xf32>
    %96 = vector.broadcast %95 : vector<1x768xf32> to vector<2x768xf32>
    %97 = arith.addf %94, %96 : vector<2x768xf32>
    %c0_41 = arith.constant 0 : index
    %c0_42 = arith.constant 0 : index
    %98 = vector.load %arg16[%c0_41, %c0_42] : memref<16x48xf32, #tpu.memory_space<vmem>>, vector<16x48xf32>
    %c0_43 = arith.constant 0 : index
    %c0_44 = arith.constant 0 : index
    %99 = vector.load %arg17[%c0_43, %c0_44] : memref<1x48xf32, #tpu.memory_space<vmem>>, vector<1x48xf32>
    %c0_45 = arith.constant 0 : index
    %c0_46 = arith.constant 0 : index
    %100 = vector.load %arg18[%c0_45, %c0_46] : memref<16x48xf32, #tpu.memory_space<vmem>>, vector<16x48xf32>
    %c0_47 = arith.constant 0 : index
    %c0_48 = arith.constant 0 : index
    %101 = vector.load %arg19[%c0_47, %c0_48] : memref<1x48xf32, #tpu.memory_space<vmem>>, vector<1x48xf32>
    %c0_49 = arith.constant 0 : index
    %c0_50 = arith.constant 0 : index
    %102 = vector.load %arg20[%c0_49, %c0_50] : memref<16x48xf32, #tpu.memory_space<vmem>>, vector<16x48xf32>
    %c0_51 = arith.constant 0 : index
    %c0_52 = arith.constant 0 : index
    %103 = vector.load %arg21[%c0_51, %c0_52] : memref<1x48xf32, #tpu.memory_space<vmem>>, vector<1x48xf32>
    %cst_53 = arith.constant 0.000000e+00 : f32
    %104 = vector.broadcast %cst_53 : f32 to vector<2x16xf32>
    %cst_54 = arith.constant 0.000000e+00 : f32
    %105 = vector.broadcast %cst_54 : f32 to vector<2x16xf32>
    %106 = vector.extract_strided_slice %97 {offsets = [0, 0], sizes = [2, 48], strides = [1, 1]} : vector<2x768xf32> to vector<2x48xf32>
    %cst_55 = arith.constant dense<0.000000e+00> : vector<2x48xf32>
    %107 = tpu.matmul %104, %98, %cst_55 {dimension_numbers = #tpu.dot_dimension_numbers<[1], [0], [0], [1], [0, 0, 1, 1], [], []>} : vector<2x16xf32>, vector<16x48xf32>, vector<2x48xf32> -> vector<2x48xf32>
    %108 = vector.broadcast %99 : vector<1x48xf32> to vector<2x48xf32>
    %109 = arith.addf %107, %108 : vector<2x48xf32>
    %110 = vector.extract_strided_slice %106 {offsets = [0, 0], sizes = [2, 16], strides = [1, 1]} : vector<2x48xf32> to vector<2x16xf32>
    %111 = vector.extract_strided_slice %109 {offsets = [0, 0], sizes = [2, 16], strides = [1, 1]} : vector<2x48xf32> to vector<2x16xf32>
    %112 = arith.addf %110, %111 : vector<2x16xf32>
    %113 = arith.negf %112 : vector<2x16xf32>
    %114 = math.exp %113 : vector<2x16xf32>
    %cst_56 = arith.constant 1.000000e+00 : f32
    %115 = vector.broadcast %cst_56 : f32 to vector<2x16xf32>
    %116 = arith.addf %115, %114 : vector<2x16xf32>
    %117 = arith.divf %115, %116 : vector<2x16xf32>
    %118 = vector.extract_strided_slice %106 {offsets = [0, 16], sizes = [2, 16], strides = [1, 1]} : vector<2x48xf32> to vector<2x16xf32>
    %119 = vector.extract_strided_slice %109 {offsets = [0, 16], sizes = [2, 16], strides = [1, 1]} : vector<2x48xf32> to vector<2x16xf32>
    %120 = arith.addf %118, %119 : vector<2x16xf32>
    %121 = arith.negf %120 : vector<2x16xf32>
    %122 = math.exp %121 : vector<2x16xf32>
    %cst_57 = arith.constant 1.000000e+00 : f32
    %123 = vector.broadcast %cst_57 : f32 to vector<2x16xf32>
    %124 = arith.addf %123, %122 : vector<2x16xf32>
    %125 = arith.divf %123, %124 : vector<2x16xf32>
    %126 = vector.extract_strided_slice %106 {offsets = [0, 32], sizes = [2, 16], strides = [1, 1]} : vector<2x48xf32> to vector<2x16xf32>
    %127 = vector.extract_strided_slice %109 {offsets = [0, 32], sizes = [2, 16], strides = [1, 1]} : vector<2x48xf32> to vector<2x16xf32>
    %128 = arith.mulf %117, %127 : vector<2x16xf32>
    %129 = arith.addf %126, %128 : vector<2x16xf32>
    %130 = math.tanh %129 : vector<2x16xf32>
    %cst_58 = arith.constant 1.000000e+00 : f32
    %131 = vector.broadcast %cst_58 : f32 to vector<2x16xf32>
    %132 = arith.subf %131, %125 : vector<2x16xf32>
    %133 = arith.mulf %132, %130 : vector<2x16xf32>
    %134 = arith.mulf %125, %104 : vector<2x16xf32>
    %135 = arith.addf %133, %134 : vector<2x16xf32>
    %cst_59 = arith.constant dense<0.000000e+00> : vector<2x48xf32>
    %136 = tpu.matmul %135, %100, %cst_59 {dimension_numbers = #tpu.dot_dimension_numbers<[1], [0], [0], [1], [0, 0, 1, 1], [], []>} : vector<2x16xf32>, vector<16x48xf32>, vector<2x48xf32> -> vector<2x48xf32>
    %137 = vector.broadcast %101 : vector<1x48xf32> to vector<2x48xf32>
    %138 = arith.addf %136, %137 : vector<2x48xf32>
    %cst_60 = arith.constant dense<0.000000e+00> : vector<2x48xf32>
    %139 = tpu.matmul %105, %102, %cst_60 {dimension_numbers = #tpu.dot_dimension_numbers<[1], [0], [0], [1], [0, 0, 1, 1], [], []>} : vector<2x16xf32>, vector<16x48xf32>, vector<2x48xf32> -> vector<2x48xf32>
    %140 = vector.broadcast %103 : vector<1x48xf32> to vector<2x48xf32>
    %141 = arith.addf %139, %140 : vector<2x48xf32>
    %142 = vector.extract_strided_slice %138 {offsets = [0, 0], sizes = [2, 16], strides = [1, 1]} : vector<2x48xf32> to vector<2x16xf32>
    %143 = vector.extract_strided_slice %141 {offsets = [0, 0], sizes = [2, 16], strides = [1, 1]} : vector<2x48xf32> to vector<2x16xf32>
    %144 = arith.addf %142, %143 : vector<2x16xf32>
    %145 = arith.negf %144 : vector<2x16xf32>
    %146 = math.exp %145 : vector<2x16xf32>
    %cst_61 = arith.constant 1.000000e+00 : f32
    %147 = vector.broadcast %cst_61 : f32 to vector<2x16xf32>
    %148 = arith.addf %147, %146 : vector<2x16xf32>
    %149 = arith.divf %147, %148 : vector<2x16xf32>
    %150 = vector.extract_strided_slice %138 {offsets = [0, 16], sizes = [2, 16], strides = [1, 1]} : vector<2x48xf32> to vector<2x16xf32>
    %151 = vector.extract_strided_slice %141 {offsets = [0, 16], sizes = [2, 16], strides = [1, 1]} : vector<2x48xf32> to vector<2x16xf32>
    %152 = arith.addf %150, %151 : vector<2x16xf32>
    %153 = arith.negf %152 : vector<2x16xf32>
    %154 = math.exp %153 : vector<2x16xf32>
    %cst_62 = arith.constant 1.000000e+00 : f32
    %155 = vector.broadcast %cst_62 : f32 to vector<2x16xf32>
    %156 = arith.addf %155, %154 : vector<2x16xf32>
    %157 = arith.divf %155, %156 : vector<2x16xf32>
    %158 = vector.extract_strided_slice %138 {offsets = [0, 32], sizes = [2, 16], strides = [1, 1]} : vector<2x48xf32> to vector<2x16xf32>
    %159 = vector.extract_strided_slice %141 {offsets = [0, 32], sizes = [2, 16], strides = [1, 1]} : vector<2x48xf32> to vector<2x16xf32>
    %160 = arith.mulf %149, %159 : vector<2x16xf32>
    %161 = arith.addf %158, %160 : vector<2x16xf32>
    %162 = math.tanh %161 : vector<2x16xf32>
    %cst_63 = arith.constant 1.000000e+00 : f32
    %163 = vector.broadcast %cst_63 : f32 to vector<2x16xf32>
    %164 = arith.subf %163, %157 : vector<2x16xf32>
    %165 = arith.mulf %164, %162 : vector<2x16xf32>
    %166 = arith.mulf %157, %105 : vector<2x16xf32>
    %167 = arith.addf %165, %166 : vector<2x16xf32>
    %168 = vector.extract_strided_slice %97 {offsets = [0, 48], sizes = [2, 48], strides = [1, 1]} : vector<2x768xf32> to vector<2x48xf32>
    %cst_64 = arith.constant dense<0.000000e+00> : vector<2x48xf32>
    %169 = tpu.matmul %135, %98, %cst_64 {dimension_numbers = #tpu.dot_dimension_numbers<[1], [0], [0], [1], [0, 0, 1, 1], [], []>} : vector<2x16xf32>, vector<16x48xf32>, vector<2x48xf32> -> vector<2x48xf32>
    %170 = vector.broadcast %99 : vector<1x48xf32> to vector<2x48xf32>
    %171 = arith.addf %169, %170 : vector<2x48xf32>
    %172 = vector.extract_strided_slice %168 {offsets = [0, 0], sizes = [2, 16], strides = [1, 1]} : vector<2x48xf32> to vector<2x16xf32>
    %173 = vector.extract_strided_slice %171 {offsets = [0, 0], sizes = [2, 16], strides = [1, 1]} : vector<2x48xf32> to vector<2x16xf32>
    %174 = arith.addf %172, %173 : vector<2x16xf32>
    %175 = arith.negf %174 : vector<2x16xf32>
    %176 = math.exp %175 : vector<2x16xf32>
    %cst_65 = arith.constant 1.000000e+00 : f32
    %177 = vector.broadcast %cst_65 : f32 to vector<2x16xf32>
    %178 = arith.addf %177, %176 : vector<2x16xf32>
    %179 = arith.divf %177, %178 : vector<2x16xf32>
    %180 = vector.extract_strided_slice %168 {offsets = [0, 16], sizes = [2, 16], strides = [1, 1]} : vector<2x48xf32> to vector<2x16xf32>
    %181 = vector.extract_strided_slice %171 {offsets = [0, 16], sizes = [2, 16], strides = [1, 1]} : vector<2x48xf32> to vector<2x16xf32>
    %182 = arith.addf %180, %181 : vector<2x16xf32>
    %183 = arith.negf %182 : vector<2x16xf32>
    %184 = math.exp %183 : vector<2x16xf32>
    %cst_66 = arith.constant 1.000000e+00 : f32
    %185 = vector.broadcast %cst_66 : f32 to vector<2x16xf32>
    %186 = arith.addf %185, %184 : vector<2x16xf32>
    %187 = arith.divf %185, %186 : vector<2x16xf32>
    %188 = vector.extract_strided_slice %168 {offsets = [0, 32], sizes = [2, 16], strides = [1, 1]} : vector<2x48xf32> to vector<2x16xf32>
    %189 = vector.extract_strided_slice %171 {offsets = [0, 32], sizes = [2, 16], strides = [1, 1]} : vector<2x48xf32> to vector<2x16xf32>
    %190 = arith.mulf %179, %189 : vector<2x16xf32>
    %191 = arith.addf %188, %190 : vector<2x16xf32>
    %192 = math.tanh %191 : vector<2x16xf32>
    %cst_67 = arith.constant 1.000000e+00 : f32
    %193 = vector.broadcast %cst_67 : f32 to vector<2x16xf32>
    %194 = arith.subf %193, %187 : vector<2x16xf32>
    %195 = arith.mulf %194, %192 : vector<2x16xf32>
    %196 = arith.mulf %187, %135 : vector<2x16xf32>
    %197 = arith.addf %195, %196 : vector<2x16xf32>
    %cst_68 = arith.constant dense<0.000000e+00> : vector<2x48xf32>
    %198 = tpu.matmul %197, %100, %cst_68 {dimension_numbers = #tpu.dot_dimension_numbers<[1], [0], [0], [1], [0, 0, 1, 1], [], []>} : vector<2x16xf32>, vector<16x48xf32>, vector<2x48xf32> -> vector<2x48xf32>
    %199 = vector.broadcast %101 : vector<1x48xf32> to vector<2x48xf32>
    %200 = arith.addf %198, %199 : vector<2x48xf32>
    %cst_69 = arith.constant dense<0.000000e+00> : vector<2x48xf32>
    %201 = tpu.matmul %167, %102, %cst_69 {dimension_numbers = #tpu.dot_dimension_numbers<[1], [0], [0], [1], [0, 0, 1, 1], [], []>} : vector<2x16xf32>, vector<16x48xf32>, vector<2x48xf32> -> vector<2x48xf32>
    %202 = vector.broadcast %103 : vector<1x48xf32> to vector<2x48xf32>
    %203 = arith.addf %201, %202 : vector<2x48xf32>
    %204 = vector.extract_strided_slice %200 {offsets = [0, 0], sizes = [2, 16], strides = [1, 1]} : vector<2x48xf32> to vector<2x16xf32>
    %205 = vector.extract_strided_slice %203 {offsets = [0, 0], sizes = [2, 16], strides = [1, 1]} : vector<2x48xf32> to vector<2x16xf32>
    %206 = arith.addf %204, %205 : vector<2x16xf32>
    %207 = arith.negf %206 : vector<2x16xf32>
    %208 = math.exp %207 : vector<2x16xf32>
    %cst_70 = arith.constant 1.000000e+00 : f32
    %209 = vector.broadcast %cst_70 : f32 to vector<2x16xf32>
    %210 = arith.addf %209, %208 : vector<2x16xf32>
    %211 = arith.divf %209, %210 : vector<2x16xf32>
    %212 = vector.extract_strided_slice %200 {offsets = [0, 16], sizes = [2, 16], strides = [1, 1]} : vector<2x48xf32> to vector<2x16xf32>
    %213 = vector.extract_strided_slice %203 {offsets = [0, 16], sizes = [2, 16], strides = [1, 1]} : vector<2x48xf32> to vector<2x16xf32>
    %214 = arith.addf %212, %213 : vector<2x16xf32>
    %215 = arith.negf %214 : vector<2x16xf32>
    %216 = math.exp %215 : vector<2x16xf32>
    %cst_71 = arith.constant 1.000000e+00 : f32
    %217 = vector.broadcast %cst_71 : f32 to vector<2x16xf32>
    %218 = arith.addf %217, %216 : vector<2x16xf32>
    %219 = arith.divf %217, %218 : vector<2x16xf32>
    %220 = vector.extract_strided_slice %200 {offsets = [0, 32], sizes = [2, 16], strides = [1, 1]} : vector<2x48xf32> to vector<2x16xf32>
    %221 = vector.extract_strided_slice %203 {offsets = [0, 32], sizes = [2, 16], strides = [1, 1]} : vector<2x48xf32> to vector<2x16xf32>
    %222 = arith.mulf %211, %221 : vector<2x16xf32>
    %223 = arith.addf %220, %222 : vector<2x16xf32>
    %224 = math.tanh %223 : vector<2x16xf32>
    %cst_72 = arith.constant 1.000000e+00 : f32
    %225 = vector.broadcast %cst_72 : f32 to vector<2x16xf32>
    %226 = arith.subf %225, %219 : vector<2x16xf32>
    %227 = arith.mulf %226, %224 : vector<2x16xf32>
    %228 = arith.mulf %219, %167 : vector<2x16xf32>
    %229 = arith.addf %227, %228 : vector<2x16xf32>
    %230 = vector.extract_strided_slice %97 {offsets = [0, 96], sizes = [2, 48], strides = [1, 1]} : vector<2x768xf32> to vector<2x48xf32>
    %cst_73 = arith.constant dense<0.000000e+00> : vector<2x48xf32>
    %231 = tpu.matmul %197, %98, %cst_73 {dimension_numbers = #tpu.dot_dimension_numbers<[1], [0], [0], [1], [0, 0, 1, 1], [], []>} : vector<2x16xf32>, vector<16x48xf32>, vector<2x48xf32> -> vector<2x48xf32>
    %232 = vector.broadcast %99 : vector<1x48xf32> to vector<2x48xf32>
    %233 = arith.addf %231, %232 : vector<2x48xf32>
    %234 = vector.extract_strided_slice %230 {offsets = [0, 0], sizes = [2, 16], strides = [1, 1]} : vector<2x48xf32> to vector<2x16xf32>
    %235 = vector.extract_strided_slice %233 {offsets = [0, 0], sizes = [2, 16], strides = [1, 1]} : vector<2x48xf32> to vector<2x16xf32>
    %236 = arith.addf %234, %235 : vector<2x16xf32>
    %237 = arith.negf %236 : vector<2x16xf32>
    %238 = math.exp %237 : vector<2x16xf32>
    %cst_74 = arith.constant 1.000000e+00 : f32
    %239 = vector.broadcast %cst_74 : f32 to vector<2x16xf32>
    %240 = arith.addf %239, %238 : vector<2x16xf32>
    %241 = arith.divf %239, %240 : vector<2x16xf32>
    %242 = vector.extract_strided_slice %230 {offsets = [0, 16], sizes = [2, 16], strides = [1, 1]} : vector<2x48xf32> to vector<2x16xf32>
    %243 = vector.extract_strided_slice %233 {offsets = [0, 16], sizes = [2, 16], strides = [1, 1]} : vector<2x48xf32> to vector<2x16xf32>
    %244 = arith.addf %242, %243 : vector<2x16xf32>
    %245 = arith.negf %244 : vector<2x16xf32>
    %246 = math.exp %245 : vector<2x16xf32>
    %cst_75 = arith.constant 1.000000e+00 : f32
    %247 = vector.broadcast %cst_75 : f32 to vector<2x16xf32>
    %248 = arith.addf %247, %246 : vector<2x16xf32>
    %249 = arith.divf %247, %248 : vector<2x16xf32>
    %250 = vector.extract_strided_slice %230 {offsets = [0, 32], sizes = [2, 16], strides = [1, 1]} : vector<2x48xf32> to vector<2x16xf32>
    %251 = vector.extract_strided_slice %233 {offsets = [0, 32], sizes = [2, 16], strides = [1, 1]} : vector<2x48xf32> to vector<2x16xf32>
    %252 = arith.mulf %241, %251 : vector<2x16xf32>
    %253 = arith.addf %250, %252 : vector<2x16xf32>
    %254 = math.tanh %253 : vector<2x16xf32>
    %cst_76 = arith.constant 1.000000e+00 : f32
    %255 = vector.broadcast %cst_76 : f32 to vector<2x16xf32>
    %256 = arith.subf %255, %249 : vector<2x16xf32>
    %257 = arith.mulf %256, %254 : vector<2x16xf32>
    %258 = arith.mulf %249, %197 : vector<2x16xf32>
    %259 = arith.addf %257, %258 : vector<2x16xf32>
    %cst_77 = arith.constant dense<0.000000e+00> : vector<2x48xf32>
    %260 = tpu.matmul %259, %100, %cst_77 {dimension_numbers = #tpu.dot_dimension_numbers<[1], [0], [0], [1], [0, 0, 1, 1], [], []>} : vector<2x16xf32>, vector<16x48xf32>, vector<2x48xf32> -> vector<2x48xf32>
    %261 = vector.broadcast %101 : vector<1x48xf32> to vector<2x48xf32>
    %262 = arith.addf %260, %261 : vector<2x48xf32>
    %cst_78 = arith.constant dense<0.000000e+00> : vector<2x48xf32>
    %263 = tpu.matmul %229, %102, %cst_78 {dimension_numbers = #tpu.dot_dimension_numbers<[1], [0], [0], [1], [0, 0, 1, 1], [], []>} : vector<2x16xf32>, vector<16x48xf32>, vector<2x48xf32> -> vector<2x48xf32>
    %264 = vector.broadcast %103 : vector<1x48xf32> to vector<2x48xf32>
    %265 = arith.addf %263, %264 : vector<2x48xf32>
    %266 = vector.extract_strided_slice %262 {offsets = [0, 0], sizes = [2, 16], strides = [1, 1]} : vector<2x48xf32> to vector<2x16xf32>
    %267 = vector.extract_strided_slice %265 {offsets = [0, 0], sizes = [2, 16], strides = [1, 1]} : vector<2x48xf32> to vector<2x16xf32>
    %268 = arith.addf %266, %267 : vector<2x16xf32>
    %269 = arith.negf %268 : vector<2x16xf32>
    %270 = math.exp %269 : vector<2x16xf32>
    %cst_79 = arith.constant 1.000000e+00 : f32
    %271 = vector.broadcast %cst_79 : f32 to vector<2x16xf32>
    %272 = arith.addf %271, %270 : vector<2x16xf32>
    %273 = arith.divf %271, %272 : vector<2x16xf32>
    %274 = vector.extract_strided_slice %262 {offsets = [0, 16], sizes = [2, 16], strides = [1, 1]} : vector<2x48xf32> to vector<2x16xf32>
    %275 = vector.extract_strided_slice %265 {offsets = [0, 16], sizes = [2, 16], strides = [1, 1]} : vector<2x48xf32> to vector<2x16xf32>
    %276 = arith.addf %274, %275 : vector<2x16xf32>
    %277 = arith.negf %276 : vector<2x16xf32>
    %278 = math.exp %277 : vector<2x16xf32>
    %cst_80 = arith.constant 1.000000e+00 : f32
    %279 = vector.broadcast %cst_80 : f32 to vector<2x16xf32>
    %280 = arith.addf %279, %278 : vector<2x16xf32>
    %281 = arith.divf %279, %280 : vector<2x16xf32>
    %282 = vector.extract_strided_slice %262 {offsets = [0, 32], sizes = [2, 16], strides = [1, 1]} : vector<2x48xf32> to vector<2x16xf32>
    %283 = vector.extract_strided_slice %265 {offsets = [0, 32], sizes = [2, 16], strides = [1, 1]} : vector<2x48xf32> to vector<2x16xf32>
    %284 = arith.mulf %273, %283 : vector<2x16xf32>
    %285 = arith.addf %282, %284 : vector<2x16xf32>
    %286 = math.tanh %285 : vector<2x16xf32>
    %cst_81 = arith.constant 1.000000e+00 : f32
    %287 = vector.broadcast %cst_81 : f32 to vector<2x16xf32>
    %288 = arith.subf %287, %281 : vector<2x16xf32>
    %289 = arith.mulf %288, %286 : vector<2x16xf32>
    %290 = arith.mulf %281, %229 : vector<2x16xf32>
    %291 = arith.addf %289, %290 : vector<2x16xf32>
    %292 = vector.extract_strided_slice %97 {offsets = [0, 144], sizes = [2, 48], strides = [1, 1]} : vector<2x768xf32> to vector<2x48xf32>
    %cst_82 = arith.constant dense<0.000000e+00> : vector<2x48xf32>
    %293 = tpu.matmul %259, %98, %cst_82 {dimension_numbers = #tpu.dot_dimension_numbers<[1], [0], [0], [1], [0, 0, 1, 1], [], []>} : vector<2x16xf32>, vector<16x48xf32>, vector<2x48xf32> -> vector<2x48xf32>
    %294 = vector.broadcast %99 : vector<1x48xf32> to vector<2x48xf32>
    %295 = arith.addf %293, %294 : vector<2x48xf32>
    %296 = vector.extract_strided_slice %292 {offsets = [0, 0], sizes = [2, 16], strides = [1, 1]} : vector<2x48xf32> to vector<2x16xf32>
    %297 = vector.extract_strided_slice %295 {offsets = [0, 0], sizes = [2, 16], strides = [1, 1]} : vector<2x48xf32> to vector<2x16xf32>
    %298 = arith.addf %296, %297 : vector<2x16xf32>
    %299 = arith.negf %298 : vector<2x16xf32>
    %300 = math.exp %299 : vector<2x16xf32>
    %cst_83 = arith.constant 1.000000e+00 : f32
    %301 = vector.broadcast %cst_83 : f32 to vector<2x16xf32>
    %302 = arith.addf %301, %300 : vector<2x16xf32>
    %303 = arith.divf %301, %302 : vector<2x16xf32>
    %304 = vector.extract_strided_slice %292 {offsets = [0, 16], sizes = [2, 16], strides = [1, 1]} : vector<2x48xf32> to vector<2x16xf32>
    %305 = vector.extract_strided_slice %295 {offsets = [0, 16], sizes = [2, 16], strides = [1, 1]} : vector<2x48xf32> to vector<2x16xf32>
    %306 = arith.addf %304, %305 : vector<2x16xf32>
    %307 = arith.negf %306 : vector<2x16xf32>
    %308 = math.exp %307 : vector<2x16xf32>
    %cst_84 = arith.constant 1.000000e+00 : f32
    %309 = vector.broadcast %cst_84 : f32 to vector<2x16xf32>
    %310 = arith.addf %309, %308 : vector<2x16xf32>
    %311 = arith.divf %309, %310 : vector<2x16xf32>
    %312 = vector.extract_strided_slice %292 {offsets = [0, 32], sizes = [2, 16], strides = [1, 1]} : vector<2x48xf32> to vector<2x16xf32>
    %313 = vector.extract_strided_slice %295 {offsets = [0, 32], sizes = [2, 16], strides = [1, 1]} : vector<2x48xf32> to vector<2x16xf32>
    %314 = arith.mulf %303, %313 : vector<2x16xf32>
    %315 = arith.addf %312, %314 : vector<2x16xf32>
    %316 = math.tanh %315 : vector<2x16xf32>
    %cst_85 = arith.constant 1.000000e+00 : f32
    %317 = vector.broadcast %cst_85 : f32 to vector<2x16xf32>
    %318 = arith.subf %317, %311 : vector<2x16xf32>
    %319 = arith.mulf %318, %316 : vector<2x16xf32>
    %320 = arith.mulf %311, %259 : vector<2x16xf32>
    %321 = arith.addf %319, %320 : vector<2x16xf32>
    %cst_86 = arith.constant dense<0.000000e+00> : vector<2x48xf32>
    %322 = tpu.matmul %321, %100, %cst_86 {dimension_numbers = #tpu.dot_dimension_numbers<[1], [0], [0], [1], [0, 0, 1, 1], [], []>} : vector<2x16xf32>, vector<16x48xf32>, vector<2x48xf32> -> vector<2x48xf32>
    %323 = vector.broadcast %101 : vector<1x48xf32> to vector<2x48xf32>
    %324 = arith.addf %322, %323 : vector<2x48xf32>
    %cst_87 = arith.constant dense<0.000000e+00> : vector<2x48xf32>
    %325 = tpu.matmul %291, %102, %cst_87 {dimension_numbers = #tpu.dot_dimension_numbers<[1], [0], [0], [1], [0, 0, 1, 1], [], []>} : vector<2x16xf32>, vector<16x48xf32>, vector<2x48xf32> -> vector<2x48xf32>
    %326 = vector.broadcast %103 : vector<1x48xf32> to vector<2x48xf32>
    %327 = arith.addf %325, %326 : vector<2x48xf32>
    %328 = vector.extract_strided_slice %324 {offsets = [0, 0], sizes = [2, 16], strides = [1, 1]} : vector<2x48xf32> to vector<2x16xf32>
    %329 = vector.extract_strided_slice %327 {offsets = [0, 0], sizes = [2, 16], strides = [1, 1]} : vector<2x48xf32> to vector<2x16xf32>
    %330 = arith.addf %328, %329 : vector<2x16xf32>
    %331 = arith.negf %330 : vector<2x16xf32>
    %332 = math.exp %331 : vector<2x16xf32>
    %cst_88 = arith.constant 1.000000e+00 : f32
    %333 = vector.broadcast %cst_88 : f32 to vector<2x16xf32>
    %334 = arith.addf %333, %332 : vector<2x16xf32>
    %335 = arith.divf %333, %334 : vector<2x16xf32>
    %336 = vector.extract_strided_slice %324 {offsets = [0, 16], sizes = [2, 16], strides = [1, 1]} : vector<2x48xf32> to vector<2x16xf32>
    %337 = vector.extract_strided_slice %327 {offsets = [0, 16], sizes = [2, 16], strides = [1, 1]} : vector<2x48xf32> to vector<2x16xf32>
    %338 = arith.addf %336, %337 : vector<2x16xf32>
    %339 = arith.negf %338 : vector<2x16xf32>
    %340 = math.exp %339 : vector<2x16xf32>
    %cst_89 = arith.constant 1.000000e+00 : f32
    %341 = vector.broadcast %cst_89 : f32 to vector<2x16xf32>
    %342 = arith.addf %341, %340 : vector<2x16xf32>
    %343 = arith.divf %341, %342 : vector<2x16xf32>
    %344 = vector.extract_strided_slice %324 {offsets = [0, 32], sizes = [2, 16], strides = [1, 1]} : vector<2x48xf32> to vector<2x16xf32>
    %345 = vector.extract_strided_slice %327 {offsets = [0, 32], sizes = [2, 16], strides = [1, 1]} : vector<2x48xf32> to vector<2x16xf32>
    %346 = arith.mulf %335, %345 : vector<2x16xf32>
    %347 = arith.addf %344, %346 : vector<2x16xf32>
    %348 = math.tanh %347 : vector<2x16xf32>
    %cst_90 = arith.constant 1.000000e+00 : f32
    %349 = vector.broadcast %cst_90 : f32 to vector<2x16xf32>
    %350 = arith.subf %349, %343 : vector<2x16xf32>
    %351 = arith.mulf %350, %348 : vector<2x16xf32>
    %352 = arith.mulf %343, %291 : vector<2x16xf32>
    %353 = arith.addf %351, %352 : vector<2x16xf32>
    %354 = vector.extract_strided_slice %97 {offsets = [0, 192], sizes = [2, 48], strides = [1, 1]} : vector<2x768xf32> to vector<2x48xf32>
    %cst_91 = arith.constant dense<0.000000e+00> : vector<2x48xf32>
    %355 = tpu.matmul %321, %98, %cst_91 {dimension_numbers = #tpu.dot_dimension_numbers<[1], [0], [0], [1], [0, 0, 1, 1], [], []>} : vector<2x16xf32>, vector<16x48xf32>, vector<2x48xf32> -> vector<2x48xf32>
    %356 = vector.broadcast %99 : vector<1x48xf32> to vector<2x48xf32>
    %357 = arith.addf %355, %356 : vector<2x48xf32>
    %358 = vector.extract_strided_slice %354 {offsets = [0, 0], sizes = [2, 16], strides = [1, 1]} : vector<2x48xf32> to vector<2x16xf32>
    %359 = vector.extract_strided_slice %357 {offsets = [0, 0], sizes = [2, 16], strides = [1, 1]} : vector<2x48xf32> to vector<2x16xf32>
    %360 = arith.addf %358, %359 : vector<2x16xf32>
    %361 = arith.negf %360 : vector<2x16xf32>
    %362 = math.exp %361 : vector<2x16xf32>
    %cst_92 = arith.constant 1.000000e+00 : f32
    %363 = vector.broadcast %cst_92 : f32 to vector<2x16xf32>
    %364 = arith.addf %363, %362 : vector<2x16xf32>
    %365 = arith.divf %363, %364 : vector<2x16xf32>
    %366 = vector.extract_strided_slice %354 {offsets = [0, 16], sizes = [2, 16], strides = [1, 1]} : vector<2x48xf32> to vector<2x16xf32>
    %367 = vector.extract_strided_slice %357 {offsets = [0, 16], sizes = [2, 16], strides = [1, 1]} : vector<2x48xf32> to vector<2x16xf32>
    %368 = arith.addf %366, %367 : vector<2x16xf32>
    %369 = arith.negf %368 : vector<2x16xf32>
    %370 = math.exp %369 : vector<2x16xf32>
    %cst_93 = arith.constant 1.000000e+00 : f32
    %371 = vector.broadcast %cst_93 : f32 to vector<2x16xf32>
    %372 = arith.addf %371, %370 : vector<2x16xf32>
    %373 = arith.divf %371, %372 : vector<2x16xf32>
    %374 = vector.extract_strided_slice %354 {offsets = [0, 32], sizes = [2, 16], strides = [1, 1]} : vector<2x48xf32> to vector<2x16xf32>
    %375 = vector.extract_strided_slice %357 {offsets = [0, 32], sizes = [2, 16], strides = [1, 1]} : vector<2x48xf32> to vector<2x16xf32>
    %376 = arith.mulf %365, %375 : vector<2x16xf32>
    %377 = arith.addf %374, %376 : vector<2x16xf32>
    %378 = math.tanh %377 : vector<2x16xf32>
    %cst_94 = arith.constant 1.000000e+00 : f32
    %379 = vector.broadcast %cst_94 : f32 to vector<2x16xf32>
    %380 = arith.subf %379, %373 : vector<2x16xf32>
    %381 = arith.mulf %380, %378 : vector<2x16xf32>
    %382 = arith.mulf %373, %321 : vector<2x16xf32>
    %383 = arith.addf %381, %382 : vector<2x16xf32>
    %cst_95 = arith.constant dense<0.000000e+00> : vector<2x48xf32>
    %384 = tpu.matmul %383, %100, %cst_95 {dimension_numbers = #tpu.dot_dimension_numbers<[1], [0], [0], [1], [0, 0, 1, 1], [], []>} : vector<2x16xf32>, vector<16x48xf32>, vector<2x48xf32> -> vector<2x48xf32>
    %385 = vector.broadcast %101 : vector<1x48xf32> to vector<2x48xf32>
    %386 = arith.addf %384, %385 : vector<2x48xf32>
    %cst_96 = arith.constant dense<0.000000e+00> : vector<2x48xf32>
    %387 = tpu.matmul %353, %102, %cst_96 {dimension_numbers = #tpu.dot_dimension_numbers<[1], [0], [0], [1], [0, 0, 1, 1], [], []>} : vector<2x16xf32>, vector<16x48xf32>, vector<2x48xf32> -> vector<2x48xf32>
    %388 = vector.broadcast %103 : vector<1x48xf32> to vector<2x48xf32>
    %389 = arith.addf %387, %388 : vector<2x48xf32>
    %390 = vector.extract_strided_slice %386 {offsets = [0, 0], sizes = [2, 16], strides = [1, 1]} : vector<2x48xf32> to vector<2x16xf32>
    %391 = vector.extract_strided_slice %389 {offsets = [0, 0], sizes = [2, 16], strides = [1, 1]} : vector<2x48xf32> to vector<2x16xf32>
    %392 = arith.addf %390, %391 : vector<2x16xf32>
    %393 = arith.negf %392 : vector<2x16xf32>
    %394 = math.exp %393 : vector<2x16xf32>
    %cst_97 = arith.constant 1.000000e+00 : f32
    %395 = vector.broadcast %cst_97 : f32 to vector<2x16xf32>
    %396 = arith.addf %395, %394 : vector<2x16xf32>
    %397 = arith.divf %395, %396 : vector<2x16xf32>
    %398 = vector.extract_strided_slice %386 {offsets = [0, 16], sizes = [2, 16], strides = [1, 1]} : vector<2x48xf32> to vector<2x16xf32>
    %399 = vector.extract_strided_slice %389 {offsets = [0, 16], sizes = [2, 16], strides = [1, 1]} : vector<2x48xf32> to vector<2x16xf32>
    %400 = arith.addf %398, %399 : vector<2x16xf32>
    %401 = arith.negf %400 : vector<2x16xf32>
    %402 = math.exp %401 : vector<2x16xf32>
    %cst_98 = arith.constant 1.000000e+00 : f32
    %403 = vector.broadcast %cst_98 : f32 to vector<2x16xf32>
    %404 = arith.addf %403, %402 : vector<2x16xf32>
    %405 = arith.divf %403, %404 : vector<2x16xf32>
    %406 = vector.extract_strided_slice %386 {offsets = [0, 32], sizes = [2, 16], strides = [1, 1]} : vector<2x48xf32> to vector<2x16xf32>
    %407 = vector.extract_strided_slice %389 {offsets = [0, 32], sizes = [2, 16], strides = [1, 1]} : vector<2x48xf32> to vector<2x16xf32>
    %408 = arith.mulf %397, %407 : vector<2x16xf32>
    %409 = arith.addf %406, %408 : vector<2x16xf32>
    %410 = math.tanh %409 : vector<2x16xf32>
    %cst_99 = arith.constant 1.000000e+00 : f32
    %411 = vector.broadcast %cst_99 : f32 to vector<2x16xf32>
    %412 = arith.subf %411, %405 : vector<2x16xf32>
    %413 = arith.mulf %412, %410 : vector<2x16xf32>
    %414 = arith.mulf %405, %353 : vector<2x16xf32>
    %415 = arith.addf %413, %414 : vector<2x16xf32>
    %416 = vector.extract_strided_slice %97 {offsets = [0, 240], sizes = [2, 48], strides = [1, 1]} : vector<2x768xf32> to vector<2x48xf32>
    %cst_100 = arith.constant dense<0.000000e+00> : vector<2x48xf32>
    %417 = tpu.matmul %383, %98, %cst_100 {dimension_numbers = #tpu.dot_dimension_numbers<[1], [0], [0], [1], [0, 0, 1, 1], [], []>} : vector<2x16xf32>, vector<16x48xf32>, vector<2x48xf32> -> vector<2x48xf32>
    %418 = vector.broadcast %99 : vector<1x48xf32> to vector<2x48xf32>
    %419 = arith.addf %417, %418 : vector<2x48xf32>
    %420 = vector.extract_strided_slice %416 {offsets = [0, 0], sizes = [2, 16], strides = [1, 1]} : vector<2x48xf32> to vector<2x16xf32>
    %421 = vector.extract_strided_slice %419 {offsets = [0, 0], sizes = [2, 16], strides = [1, 1]} : vector<2x48xf32> to vector<2x16xf32>
    %422 = arith.addf %420, %421 : vector<2x16xf32>
    %423 = arith.negf %422 : vector<2x16xf32>
    %424 = math.exp %423 : vector<2x16xf32>
    %cst_101 = arith.constant 1.000000e+00 : f32
    %425 = vector.broadcast %cst_101 : f32 to vector<2x16xf32>
    %426 = arith.addf %425, %424 : vector<2x16xf32>
    %427 = arith.divf %425, %426 : vector<2x16xf32>
    %428 = vector.extract_strided_slice %416 {offsets = [0, 16], sizes = [2, 16], strides = [1, 1]} : vector<2x48xf32> to vector<2x16xf32>
    %429 = vector.extract_strided_slice %419 {offsets = [0, 16], sizes = [2, 16], strides = [1, 1]} : vector<2x48xf32> to vector<2x16xf32>
    %430 = arith.addf %428, %429 : vector<2x16xf32>
    %431 = arith.negf %430 : vector<2x16xf32>
    %432 = math.exp %431 : vector<2x16xf32>
    %cst_102 = arith.constant 1.000000e+00 : f32
    %433 = vector.broadcast %cst_102 : f32 to vector<2x16xf32>
    %434 = arith.addf %433, %432 : vector<2x16xf32>
    %435 = arith.divf %433, %434 : vector<2x16xf32>
    %436 = vector.extract_strided_slice %416 {offsets = [0, 32], sizes = [2, 16], strides = [1, 1]} : vector<2x48xf32> to vector<2x16xf32>
    %437 = vector.extract_strided_slice %419 {offsets = [0, 32], sizes = [2, 16], strides = [1, 1]} : vector<2x48xf32> to vector<2x16xf32>
    %438 = arith.mulf %427, %437 : vector<2x16xf32>
    %439 = arith.addf %436, %438 : vector<2x16xf32>
    %440 = math.tanh %439 : vector<2x16xf32>
    %cst_103 = arith.constant 1.000000e+00 : f32
    %441 = vector.broadcast %cst_103 : f32 to vector<2x16xf32>
    %442 = arith.subf %441, %435 : vector<2x16xf32>
    %443 = arith.mulf %442, %440 : vector<2x16xf32>
    %444 = arith.mulf %435, %383 : vector<2x16xf32>
    %445 = arith.addf %443, %444 : vector<2x16xf32>
    %cst_104 = arith.constant dense<0.000000e+00> : vector<2x48xf32>
    %446 = tpu.matmul %445, %100, %cst_104 {dimension_numbers = #tpu.dot_dimension_numbers<[1], [0], [0], [1], [0, 0, 1, 1], [], []>} : vector<2x16xf32>, vector<16x48xf32>, vector<2x48xf32> -> vector<2x48xf32>
    %447 = vector.broadcast %101 : vector<1x48xf32> to vector<2x48xf32>
    %448 = arith.addf %446, %447 : vector<2x48xf32>
    %cst_105 = arith.constant dense<0.000000e+00> : vector<2x48xf32>
    %449 = tpu.matmul %415, %102, %cst_105 {dimension_numbers = #tpu.dot_dimension_numbers<[1], [0], [0], [1], [0, 0, 1, 1], [], []>} : vector<2x16xf32>, vector<16x48xf32>, vector<2x48xf32> -> vector<2x48xf32>
    %450 = vector.broadcast %103 : vector<1x48xf32> to vector<2x48xf32>
    %451 = arith.addf %449, %450 : vector<2x48xf32>
    %452 = vector.extract_strided_slice %448 {offsets = [0, 0], sizes = [2, 16], strides = [1, 1]} : vector<2x48xf32> to vector<2x16xf32>
    %453 = vector.extract_strided_slice %451 {offsets = [0, 0], sizes = [2, 16], strides = [1, 1]} : vector<2x48xf32> to vector<2x16xf32>
    %454 = arith.addf %452, %453 : vector<2x16xf32>
    %455 = arith.negf %454 : vector<2x16xf32>
    %456 = math.exp %455 : vector<2x16xf32>
    %cst_106 = arith.constant 1.000000e+00 : f32
    %457 = vector.broadcast %cst_106 : f32 to vector<2x16xf32>
    %458 = arith.addf %457, %456 : vector<2x16xf32>
    %459 = arith.divf %457, %458 : vector<2x16xf32>
    %460 = vector.extract_strided_slice %448 {offsets = [0, 16], sizes = [2, 16], strides = [1, 1]} : vector<2x48xf32> to vector<2x16xf32>
    %461 = vector.extract_strided_slice %451 {offsets = [0, 16], sizes = [2, 16], strides = [1, 1]} : vector<2x48xf32> to vector<2x16xf32>
    %462 = arith.addf %460, %461 : vector<2x16xf32>
    %463 = arith.negf %462 : vector<2x16xf32>
    %464 = math.exp %463 : vector<2x16xf32>
    %cst_107 = arith.constant 1.000000e+00 : f32
    %465 = vector.broadcast %cst_107 : f32 to vector<2x16xf32>
    %466 = arith.addf %465, %464 : vector<2x16xf32>
    %467 = arith.divf %465, %466 : vector<2x16xf32>
    %468 = vector.extract_strided_slice %448 {offsets = [0, 32], sizes = [2, 16], strides = [1, 1]} : vector<2x48xf32> to vector<2x16xf32>
    %469 = vector.extract_strided_slice %451 {offsets = [0, 32], sizes = [2, 16], strides = [1, 1]} : vector<2x48xf32> to vector<2x16xf32>
    %470 = arith.mulf %459, %469 : vector<2x16xf32>
    %471 = arith.addf %468, %470 : vector<2x16xf32>
    %472 = math.tanh %471 : vector<2x16xf32>
    %cst_108 = arith.constant 1.000000e+00 : f32
    %473 = vector.broadcast %cst_108 : f32 to vector<2x16xf32>
    %474 = arith.subf %473, %467 : vector<2x16xf32>
    %475 = arith.mulf %474, %472 : vector<2x16xf32>
    %476 = arith.mulf %467, %415 : vector<2x16xf32>
    %477 = arith.addf %475, %476 : vector<2x16xf32>
    %478 = vector.extract_strided_slice %97 {offsets = [0, 288], sizes = [2, 48], strides = [1, 1]} : vector<2x768xf32> to vector<2x48xf32>
    %cst_109 = arith.constant dense<0.000000e+00> : vector<2x48xf32>
    %479 = tpu.matmul %445, %98, %cst_109 {dimension_numbers = #tpu.dot_dimension_numbers<[1], [0], [0], [1], [0, 0, 1, 1], [], []>} : vector<2x16xf32>, vector<16x48xf32>, vector<2x48xf32> -> vector<2x48xf32>
    %480 = vector.broadcast %99 : vector<1x48xf32> to vector<2x48xf32>
    %481 = arith.addf %479, %480 : vector<2x48xf32>
    %482 = vector.extract_strided_slice %478 {offsets = [0, 0], sizes = [2, 16], strides = [1, 1]} : vector<2x48xf32> to vector<2x16xf32>
    %483 = vector.extract_strided_slice %481 {offsets = [0, 0], sizes = [2, 16], strides = [1, 1]} : vector<2x48xf32> to vector<2x16xf32>
    %484 = arith.addf %482, %483 : vector<2x16xf32>
    %485 = arith.negf %484 : vector<2x16xf32>
    %486 = math.exp %485 : vector<2x16xf32>
    %cst_110 = arith.constant 1.000000e+00 : f32
    %487 = vector.broadcast %cst_110 : f32 to vector<2x16xf32>
    %488 = arith.addf %487, %486 : vector<2x16xf32>
    %489 = arith.divf %487, %488 : vector<2x16xf32>
    %490 = vector.extract_strided_slice %478 {offsets = [0, 16], sizes = [2, 16], strides = [1, 1]} : vector<2x48xf32> to vector<2x16xf32>
    %491 = vector.extract_strided_slice %481 {offsets = [0, 16], sizes = [2, 16], strides = [1, 1]} : vector<2x48xf32> to vector<2x16xf32>
    %492 = arith.addf %490, %491 : vector<2x16xf32>
    %493 = arith.negf %492 : vector<2x16xf32>
    %494 = math.exp %493 : vector<2x16xf32>
    %cst_111 = arith.constant 1.000000e+00 : f32
    %495 = vector.broadcast %cst_111 : f32 to vector<2x16xf32>
    %496 = arith.addf %495, %494 : vector<2x16xf32>
    %497 = arith.divf %495, %496 : vector<2x16xf32>
    %498 = vector.extract_strided_slice %478 {offsets = [0, 32], sizes = [2, 16], strides = [1, 1]} : vector<2x48xf32> to vector<2x16xf32>
    %499 = vector.extract_strided_slice %481 {offsets = [0, 32], sizes = [2, 16], strides = [1, 1]} : vector<2x48xf32> to vector<2x16xf32>
    %500 = arith.mulf %489, %499 : vector<2x16xf32>
    %501 = arith.addf %498, %500 : vector<2x16xf32>
    %502 = math.tanh %501 : vector<2x16xf32>
    %cst_112 = arith.constant 1.000000e+00 : f32
    %503 = vector.broadcast %cst_112 : f32 to vector<2x16xf32>
    %504 = arith.subf %503, %497 : vector<2x16xf32>
    %505 = arith.mulf %504, %502 : vector<2x16xf32>
    %506 = arith.mulf %497, %445 : vector<2x16xf32>
    %507 = arith.addf %505, %506 : vector<2x16xf32>
    %cst_113 = arith.constant dense<0.000000e+00> : vector<2x48xf32>
    %508 = tpu.matmul %507, %100, %cst_113 {dimension_numbers = #tpu.dot_dimension_numbers<[1], [0], [0], [1], [0, 0, 1, 1], [], []>} : vector<2x16xf32>, vector<16x48xf32>, vector<2x48xf32> -> vector<2x48xf32>
    %509 = vector.broadcast %101 : vector<1x48xf32> to vector<2x48xf32>
    %510 = arith.addf %508, %509 : vector<2x48xf32>
    %cst_114 = arith.constant dense<0.000000e+00> : vector<2x48xf32>
    %511 = tpu.matmul %477, %102, %cst_114 {dimension_numbers = #tpu.dot_dimension_numbers<[1], [0], [0], [1], [0, 0, 1, 1], [], []>} : vector<2x16xf32>, vector<16x48xf32>, vector<2x48xf32> -> vector<2x48xf32>
    %512 = vector.broadcast %103 : vector<1x48xf32> to vector<2x48xf32>
    %513 = arith.addf %511, %512 : vector<2x48xf32>
    %514 = vector.extract_strided_slice %510 {offsets = [0, 0], sizes = [2, 16], strides = [1, 1]} : vector<2x48xf32> to vector<2x16xf32>
    %515 = vector.extract_strided_slice %513 {offsets = [0, 0], sizes = [2, 16], strides = [1, 1]} : vector<2x48xf32> to vector<2x16xf32>
    %516 = arith.addf %514, %515 : vector<2x16xf32>
    %517 = arith.negf %516 : vector<2x16xf32>
    %518 = math.exp %517 : vector<2x16xf32>
    %cst_115 = arith.constant 1.000000e+00 : f32
    %519 = vector.broadcast %cst_115 : f32 to vector<2x16xf32>
    %520 = arith.addf %519, %518 : vector<2x16xf32>
    %521 = arith.divf %519, %520 : vector<2x16xf32>
    %522 = vector.extract_strided_slice %510 {offsets = [0, 16], sizes = [2, 16], strides = [1, 1]} : vector<2x48xf32> to vector<2x16xf32>
    %523 = vector.extract_strided_slice %513 {offsets = [0, 16], sizes = [2, 16], strides = [1, 1]} : vector<2x48xf32> to vector<2x16xf32>
    %524 = arith.addf %522, %523 : vector<2x16xf32>
    %525 = arith.negf %524 : vector<2x16xf32>
    %526 = math.exp %525 : vector<2x16xf32>
    %cst_116 = arith.constant 1.000000e+00 : f32
    %527 = vector.broadcast %cst_116 : f32 to vector<2x16xf32>
    %528 = arith.addf %527, %526 : vector<2x16xf32>
    %529 = arith.divf %527, %528 : vector<2x16xf32>
    %530 = vector.extract_strided_slice %510 {offsets = [0, 32], sizes = [2, 16], strides = [1, 1]} : vector<2x48xf32> to vector<2x16xf32>
    %531 = vector.extract_strided_slice %513 {offsets = [0, 32], sizes = [2, 16], strides = [1, 1]} : vector<2x48xf32> to vector<2x16xf32>
    %532 = arith.mulf %521, %531 : vector<2x16xf32>
    %533 = arith.addf %530, %532 : vector<2x16xf32>
    %534 = math.tanh %533 : vector<2x16xf32>
    %cst_117 = arith.constant 1.000000e+00 : f32
    %535 = vector.broadcast %cst_117 : f32 to vector<2x16xf32>
    %536 = arith.subf %535, %529 : vector<2x16xf32>
    %537 = arith.mulf %536, %534 : vector<2x16xf32>
    %538 = arith.mulf %529, %477 : vector<2x16xf32>
    %539 = arith.addf %537, %538 : vector<2x16xf32>
    %540 = vector.extract_strided_slice %97 {offsets = [0, 336], sizes = [2, 48], strides = [1, 1]} : vector<2x768xf32> to vector<2x48xf32>
    %cst_118 = arith.constant dense<0.000000e+00> : vector<2x48xf32>
    %541 = tpu.matmul %507, %98, %cst_118 {dimension_numbers = #tpu.dot_dimension_numbers<[1], [0], [0], [1], [0, 0, 1, 1], [], []>} : vector<2x16xf32>, vector<16x48xf32>, vector<2x48xf32> -> vector<2x48xf32>
    %542 = vector.broadcast %99 : vector<1x48xf32> to vector<2x48xf32>
    %543 = arith.addf %541, %542 : vector<2x48xf32>
    %544 = vector.extract_strided_slice %540 {offsets = [0, 0], sizes = [2, 16], strides = [1, 1]} : vector<2x48xf32> to vector<2x16xf32>
    %545 = vector.extract_strided_slice %543 {offsets = [0, 0], sizes = [2, 16], strides = [1, 1]} : vector<2x48xf32> to vector<2x16xf32>
    %546 = arith.addf %544, %545 : vector<2x16xf32>
    %547 = arith.negf %546 : vector<2x16xf32>
    %548 = math.exp %547 : vector<2x16xf32>
    %cst_119 = arith.constant 1.000000e+00 : f32
    %549 = vector.broadcast %cst_119 : f32 to vector<2x16xf32>
    %550 = arith.addf %549, %548 : vector<2x16xf32>
    %551 = arith.divf %549, %550 : vector<2x16xf32>
    %552 = vector.extract_strided_slice %540 {offsets = [0, 16], sizes = [2, 16], strides = [1, 1]} : vector<2x48xf32> to vector<2x16xf32>
    %553 = vector.extract_strided_slice %543 {offsets = [0, 16], sizes = [2, 16], strides = [1, 1]} : vector<2x48xf32> to vector<2x16xf32>
    %554 = arith.addf %552, %553 : vector<2x16xf32>
    %555 = arith.negf %554 : vector<2x16xf32>
    %556 = math.exp %555 : vector<2x16xf32>
    %cst_120 = arith.constant 1.000000e+00 : f32
    %557 = vector.broadcast %cst_120 : f32 to vector<2x16xf32>
    %558 = arith.addf %557, %556 : vector<2x16xf32>
    %559 = arith.divf %557, %558 : vector<2x16xf32>
    %560 = vector.extract_strided_slice %540 {offsets = [0, 32], sizes = [2, 16], strides = [1, 1]} : vector<2x48xf32> to vector<2x16xf32>
    %561 = vector.extract_strided_slice %543 {offsets = [0, 32], sizes = [2, 16], strides = [1, 1]} : vector<2x48xf32> to vector<2x16xf32>
    %562 = arith.mulf %551, %561 : vector<2x16xf32>
    %563 = arith.addf %560, %562 : vector<2x16xf32>
    %564 = math.tanh %563 : vector<2x16xf32>
    %cst_121 = arith.constant 1.000000e+00 : f32
    %565 = vector.broadcast %cst_121 : f32 to vector<2x16xf32>
    %566 = arith.subf %565, %559 : vector<2x16xf32>
    %567 = arith.mulf %566, %564 : vector<2x16xf32>
    %568 = arith.mulf %559, %507 : vector<2x16xf32>
    %569 = arith.addf %567, %568 : vector<2x16xf32>
    %cst_122 = arith.constant dense<0.000000e+00> : vector<2x48xf32>
    %570 = tpu.matmul %569, %100, %cst_122 {dimension_numbers = #tpu.dot_dimension_numbers<[1], [0], [0], [1], [0, 0, 1, 1], [], []>} : vector<2x16xf32>, vector<16x48xf32>, vector<2x48xf32> -> vector<2x48xf32>
    %571 = vector.broadcast %101 : vector<1x48xf32> to vector<2x48xf32>
    %572 = arith.addf %570, %571 : vector<2x48xf32>
    %cst_123 = arith.constant dense<0.000000e+00> : vector<2x48xf32>
    %573 = tpu.matmul %539, %102, %cst_123 {dimension_numbers = #tpu.dot_dimension_numbers<[1], [0], [0], [1], [0, 0, 1, 1], [], []>} : vector<2x16xf32>, vector<16x48xf32>, vector<2x48xf32> -> vector<2x48xf32>
    %574 = vector.broadcast %103 : vector<1x48xf32> to vector<2x48xf32>
    %575 = arith.addf %573, %574 : vector<2x48xf32>
    %576 = vector.extract_strided_slice %572 {offsets = [0, 0], sizes = [2, 16], strides = [1, 1]} : vector<2x48xf32> to vector<2x16xf32>
    %577 = vector.extract_strided_slice %575 {offsets = [0, 0], sizes = [2, 16], strides = [1, 1]} : vector<2x48xf32> to vector<2x16xf32>
    %578 = arith.addf %576, %577 : vector<2x16xf32>
    %579 = arith.negf %578 : vector<2x16xf32>
    %580 = math.exp %579 : vector<2x16xf32>
    %cst_124 = arith.constant 1.000000e+00 : f32
    %581 = vector.broadcast %cst_124 : f32 to vector<2x16xf32>
    %582 = arith.addf %581, %580 : vector<2x16xf32>
    %583 = arith.divf %581, %582 : vector<2x16xf32>
    %584 = vector.extract_strided_slice %572 {offsets = [0, 16], sizes = [2, 16], strides = [1, 1]} : vector<2x48xf32> to vector<2x16xf32>
    %585 = vector.extract_strided_slice %575 {offsets = [0, 16], sizes = [2, 16], strides = [1, 1]} : vector<2x48xf32> to vector<2x16xf32>
    %586 = arith.addf %584, %585 : vector<2x16xf32>
    %587 = arith.negf %586 : vector<2x16xf32>
    %588 = math.exp %587 : vector<2x16xf32>
    %cst_125 = arith.constant 1.000000e+00 : f32
    %589 = vector.broadcast %cst_125 : f32 to vector<2x16xf32>
    %590 = arith.addf %589, %588 : vector<2x16xf32>
    %591 = arith.divf %589, %590 : vector<2x16xf32>
    %592 = vector.extract_strided_slice %572 {offsets = [0, 32], sizes = [2, 16], strides = [1, 1]} : vector<2x48xf32> to vector<2x16xf32>
    %593 = vector.extract_strided_slice %575 {offsets = [0, 32], sizes = [2, 16], strides = [1, 1]} : vector<2x48xf32> to vector<2x16xf32>
    %594 = arith.mulf %583, %593 : vector<2x16xf32>
    %595 = arith.addf %592, %594 : vector<2x16xf32>
    %596 = math.tanh %595 : vector<2x16xf32>
    %cst_126 = arith.constant 1.000000e+00 : f32
    %597 = vector.broadcast %cst_126 : f32 to vector<2x16xf32>
    %598 = arith.subf %597, %591 : vector<2x16xf32>
    %599 = arith.mulf %598, %596 : vector<2x16xf32>
    %600 = arith.mulf %591, %539 : vector<2x16xf32>
    %601 = arith.addf %599, %600 : vector<2x16xf32>
    %602 = vector.extract_strided_slice %97 {offsets = [0, 384], sizes = [2, 48], strides = [1, 1]} : vector<2x768xf32> to vector<2x48xf32>
    %cst_127 = arith.constant dense<0.000000e+00> : vector<2x48xf32>
    %603 = tpu.matmul %569, %98, %cst_127 {dimension_numbers = #tpu.dot_dimension_numbers<[1], [0], [0], [1], [0, 0, 1, 1], [], []>} : vector<2x16xf32>, vector<16x48xf32>, vector<2x48xf32> -> vector<2x48xf32>
    %604 = vector.broadcast %99 : vector<1x48xf32> to vector<2x48xf32>
    %605 = arith.addf %603, %604 : vector<2x48xf32>
    %606 = vector.extract_strided_slice %602 {offsets = [0, 0], sizes = [2, 16], strides = [1, 1]} : vector<2x48xf32> to vector<2x16xf32>
    %607 = vector.extract_strided_slice %605 {offsets = [0, 0], sizes = [2, 16], strides = [1, 1]} : vector<2x48xf32> to vector<2x16xf32>
    %608 = arith.addf %606, %607 : vector<2x16xf32>
    %609 = arith.negf %608 : vector<2x16xf32>
    %610 = math.exp %609 : vector<2x16xf32>
    %cst_128 = arith.constant 1.000000e+00 : f32
    %611 = vector.broadcast %cst_128 : f32 to vector<2x16xf32>
    %612 = arith.addf %611, %610 : vector<2x16xf32>
    %613 = arith.divf %611, %612 : vector<2x16xf32>
    %614 = vector.extract_strided_slice %602 {offsets = [0, 16], sizes = [2, 16], strides = [1, 1]} : vector<2x48xf32> to vector<2x16xf32>
    %615 = vector.extract_strided_slice %605 {offsets = [0, 16], sizes = [2, 16], strides = [1, 1]} : vector<2x48xf32> to vector<2x16xf32>
    %616 = arith.addf %614, %615 : vector<2x16xf32>
    %617 = arith.negf %616 : vector<2x16xf32>
    %618 = math.exp %617 : vector<2x16xf32>
    %cst_129 = arith.constant 1.000000e+00 : f32
    %619 = vector.broadcast %cst_129 : f32 to vector<2x16xf32>
    %620 = arith.addf %619, %618 : vector<2x16xf32>
    %621 = arith.divf %619, %620 : vector<2x16xf32>
    %622 = vector.extract_strided_slice %602 {offsets = [0, 32], sizes = [2, 16], strides = [1, 1]} : vector<2x48xf32> to vector<2x16xf32>
    %623 = vector.extract_strided_slice %605 {offsets = [0, 32], sizes = [2, 16], strides = [1, 1]} : vector<2x48xf32> to vector<2x16xf32>
    %624 = arith.mulf %613, %623 : vector<2x16xf32>
    %625 = arith.addf %622, %624 : vector<2x16xf32>
    %626 = math.tanh %625 : vector<2x16xf32>
    %cst_130 = arith.constant 1.000000e+00 : f32
    %627 = vector.broadcast %cst_130 : f32 to vector<2x16xf32>
    %628 = arith.subf %627, %621 : vector<2x16xf32>
    %629 = arith.mulf %628, %626 : vector<2x16xf32>
    %630 = arith.mulf %621, %569 : vector<2x16xf32>
    %631 = arith.addf %629, %630 : vector<2x16xf32>
    %cst_131 = arith.constant dense<0.000000e+00> : vector<2x48xf32>
    %632 = tpu.matmul %631, %100, %cst_131 {dimension_numbers = #tpu.dot_dimension_numbers<[1], [0], [0], [1], [0, 0, 1, 1], [], []>} : vector<2x16xf32>, vector<16x48xf32>, vector<2x48xf32> -> vector<2x48xf32>
    %633 = vector.broadcast %101 : vector<1x48xf32> to vector<2x48xf32>
    %634 = arith.addf %632, %633 : vector<2x48xf32>
    %cst_132 = arith.constant dense<0.000000e+00> : vector<2x48xf32>
    %635 = tpu.matmul %601, %102, %cst_132 {dimension_numbers = #tpu.dot_dimension_numbers<[1], [0], [0], [1], [0, 0, 1, 1], [], []>} : vector<2x16xf32>, vector<16x48xf32>, vector<2x48xf32> -> vector<2x48xf32>
    %636 = vector.broadcast %103 : vector<1x48xf32> to vector<2x48xf32>
    %637 = arith.addf %635, %636 : vector<2x48xf32>
    %638 = vector.extract_strided_slice %634 {offsets = [0, 0], sizes = [2, 16], strides = [1, 1]} : vector<2x48xf32> to vector<2x16xf32>
    %639 = vector.extract_strided_slice %637 {offsets = [0, 0], sizes = [2, 16], strides = [1, 1]} : vector<2x48xf32> to vector<2x16xf32>
    %640 = arith.addf %638, %639 : vector<2x16xf32>
    %641 = arith.negf %640 : vector<2x16xf32>
    %642 = math.exp %641 : vector<2x16xf32>
    %cst_133 = arith.constant 1.000000e+00 : f32
    %643 = vector.broadcast %cst_133 : f32 to vector<2x16xf32>
    %644 = arith.addf %643, %642 : vector<2x16xf32>
    %645 = arith.divf %643, %644 : vector<2x16xf32>
    %646 = vector.extract_strided_slice %634 {offsets = [0, 16], sizes = [2, 16], strides = [1, 1]} : vector<2x48xf32> to vector<2x16xf32>
    %647 = vector.extract_strided_slice %637 {offsets = [0, 16], sizes = [2, 16], strides = [1, 1]} : vector<2x48xf32> to vector<2x16xf32>
    %648 = arith.addf %646, %647 : vector<2x16xf32>
    %649 = arith.negf %648 : vector<2x16xf32>
    %650 = math.exp %649 : vector<2x16xf32>
    %cst_134 = arith.constant 1.000000e+00 : f32
    %651 = vector.broadcast %cst_134 : f32 to vector<2x16xf32>
    %652 = arith.addf %651, %650 : vector<2x16xf32>
    %653 = arith.divf %651, %652 : vector<2x16xf32>
    %654 = vector.extract_strided_slice %634 {offsets = [0, 32], sizes = [2, 16], strides = [1, 1]} : vector<2x48xf32> to vector<2x16xf32>
    %655 = vector.extract_strided_slice %637 {offsets = [0, 32], sizes = [2, 16], strides = [1, 1]} : vector<2x48xf32> to vector<2x16xf32>
    %656 = arith.mulf %645, %655 : vector<2x16xf32>
    %657 = arith.addf %654, %656 : vector<2x16xf32>
    %658 = math.tanh %657 : vector<2x16xf32>
    %cst_135 = arith.constant 1.000000e+00 : f32
    %659 = vector.broadcast %cst_135 : f32 to vector<2x16xf32>
    %660 = arith.subf %659, %653 : vector<2x16xf32>
    %661 = arith.mulf %660, %658 : vector<2x16xf32>
    %662 = arith.mulf %653, %601 : vector<2x16xf32>
    %663 = arith.addf %661, %662 : vector<2x16xf32>
    %664 = vector.extract_strided_slice %97 {offsets = [0, 432], sizes = [2, 48], strides = [1, 1]} : vector<2x768xf32> to vector<2x48xf32>
    %cst_136 = arith.constant dense<0.000000e+00> : vector<2x48xf32>
    %665 = tpu.matmul %631, %98, %cst_136 {dimension_numbers = #tpu.dot_dimension_numbers<[1], [0], [0], [1], [0, 0, 1, 1], [], []>} : vector<2x16xf32>, vector<16x48xf32>, vector<2x48xf32> -> vector<2x48xf32>
    %666 = vector.broadcast %99 : vector<1x48xf32> to vector<2x48xf32>
    %667 = arith.addf %665, %666 : vector<2x48xf32>
    %668 = vector.extract_strided_slice %664 {offsets = [0, 0], sizes = [2, 16], strides = [1, 1]} : vector<2x48xf32> to vector<2x16xf32>
    %669 = vector.extract_strided_slice %667 {offsets = [0, 0], sizes = [2, 16], strides = [1, 1]} : vector<2x48xf32> to vector<2x16xf32>
    %670 = arith.addf %668, %669 : vector<2x16xf32>
    %671 = arith.negf %670 : vector<2x16xf32>
    %672 = math.exp %671 : vector<2x16xf32>
    %cst_137 = arith.constant 1.000000e+00 : f32
    %673 = vector.broadcast %cst_137 : f32 to vector<2x16xf32>
    %674 = arith.addf %673, %672 : vector<2x16xf32>
    %675 = arith.divf %673, %674 : vector<2x16xf32>
    %676 = vector.extract_strided_slice %664 {offsets = [0, 16], sizes = [2, 16], strides = [1, 1]} : vector<2x48xf32> to vector<2x16xf32>
    %677 = vector.extract_strided_slice %667 {offsets = [0, 16], sizes = [2, 16], strides = [1, 1]} : vector<2x48xf32> to vector<2x16xf32>
    %678 = arith.addf %676, %677 : vector<2x16xf32>
    %679 = arith.negf %678 : vector<2x16xf32>
    %680 = math.exp %679 : vector<2x16xf32>
    %cst_138 = arith.constant 1.000000e+00 : f32
    %681 = vector.broadcast %cst_138 : f32 to vector<2x16xf32>
    %682 = arith.addf %681, %680 : vector<2x16xf32>
    %683 = arith.divf %681, %682 : vector<2x16xf32>
    %684 = vector.extract_strided_slice %664 {offsets = [0, 32], sizes = [2, 16], strides = [1, 1]} : vector<2x48xf32> to vector<2x16xf32>
    %685 = vector.extract_strided_slice %667 {offsets = [0, 32], sizes = [2, 16], strides = [1, 1]} : vector<2x48xf32> to vector<2x16xf32>
    %686 = arith.mulf %675, %685 : vector<2x16xf32>
    %687 = arith.addf %684, %686 : vector<2x16xf32>
    %688 = math.tanh %687 : vector<2x16xf32>
    %cst_139 = arith.constant 1.000000e+00 : f32
    %689 = vector.broadcast %cst_139 : f32 to vector<2x16xf32>
    %690 = arith.subf %689, %683 : vector<2x16xf32>
    %691 = arith.mulf %690, %688 : vector<2x16xf32>
    %692 = arith.mulf %683, %631 : vector<2x16xf32>
    %693 = arith.addf %691, %692 : vector<2x16xf32>
    %cst_140 = arith.constant dense<0.000000e+00> : vector<2x48xf32>
    %694 = tpu.matmul %693, %100, %cst_140 {dimension_numbers = #tpu.dot_dimension_numbers<[1], [0], [0], [1], [0, 0, 1, 1], [], []>} : vector<2x16xf32>, vector<16x48xf32>, vector<2x48xf32> -> vector<2x48xf32>
    %695 = vector.broadcast %101 : vector<1x48xf32> to vector<2x48xf32>
    %696 = arith.addf %694, %695 : vector<2x48xf32>
    %cst_141 = arith.constant dense<0.000000e+00> : vector<2x48xf32>
    %697 = tpu.matmul %663, %102, %cst_141 {dimension_numbers = #tpu.dot_dimension_numbers<[1], [0], [0], [1], [0, 0, 1, 1], [], []>} : vector<2x16xf32>, vector<16x48xf32>, vector<2x48xf32> -> vector<2x48xf32>
    %698 = vector.broadcast %103 : vector<1x48xf32> to vector<2x48xf32>
    %699 = arith.addf %697, %698 : vector<2x48xf32>
    %700 = vector.extract_strided_slice %696 {offsets = [0, 0], sizes = [2, 16], strides = [1, 1]} : vector<2x48xf32> to vector<2x16xf32>
    %701 = vector.extract_strided_slice %699 {offsets = [0, 0], sizes = [2, 16], strides = [1, 1]} : vector<2x48xf32> to vector<2x16xf32>
    %702 = arith.addf %700, %701 : vector<2x16xf32>
    %703 = arith.negf %702 : vector<2x16xf32>
    %704 = math.exp %703 : vector<2x16xf32>
    %cst_142 = arith.constant 1.000000e+00 : f32
    %705 = vector.broadcast %cst_142 : f32 to vector<2x16xf32>
    %706 = arith.addf %705, %704 : vector<2x16xf32>
    %707 = arith.divf %705, %706 : vector<2x16xf32>
    %708 = vector.extract_strided_slice %696 {offsets = [0, 16], sizes = [2, 16], strides = [1, 1]} : vector<2x48xf32> to vector<2x16xf32>
    %709 = vector.extract_strided_slice %699 {offsets = [0, 16], sizes = [2, 16], strides = [1, 1]} : vector<2x48xf32> to vector<2x16xf32>
    %710 = arith.addf %708, %709 : vector<2x16xf32>
    %711 = arith.negf %710 : vector<2x16xf32>
    %712 = math.exp %711 : vector<2x16xf32>
    %cst_143 = arith.constant 1.000000e+00 : f32
    %713 = vector.broadcast %cst_143 : f32 to vector<2x16xf32>
    %714 = arith.addf %713, %712 : vector<2x16xf32>
    %715 = arith.divf %713, %714 : vector<2x16xf32>
    %716 = vector.extract_strided_slice %696 {offsets = [0, 32], sizes = [2, 16], strides = [1, 1]} : vector<2x48xf32> to vector<2x16xf32>
    %717 = vector.extract_strided_slice %699 {offsets = [0, 32], sizes = [2, 16], strides = [1, 1]} : vector<2x48xf32> to vector<2x16xf32>
    %718 = arith.mulf %707, %717 : vector<2x16xf32>
    %719 = arith.addf %716, %718 : vector<2x16xf32>
    %720 = math.tanh %719 : vector<2x16xf32>
    %cst_144 = arith.constant 1.000000e+00 : f32
    %721 = vector.broadcast %cst_144 : f32 to vector<2x16xf32>
    %722 = arith.subf %721, %715 : vector<2x16xf32>
    %723 = arith.mulf %722, %720 : vector<2x16xf32>
    %724 = arith.mulf %715, %663 : vector<2x16xf32>
    %725 = arith.addf %723, %724 : vector<2x16xf32>
    %726 = vector.extract_strided_slice %97 {offsets = [0, 480], sizes = [2, 48], strides = [1, 1]} : vector<2x768xf32> to vector<2x48xf32>
    %cst_145 = arith.constant dense<0.000000e+00> : vector<2x48xf32>
    %727 = tpu.matmul %693, %98, %cst_145 {dimension_numbers = #tpu.dot_dimension_numbers<[1], [0], [0], [1], [0, 0, 1, 1], [], []>} : vector<2x16xf32>, vector<16x48xf32>, vector<2x48xf32> -> vector<2x48xf32>
    %728 = vector.broadcast %99 : vector<1x48xf32> to vector<2x48xf32>
    %729 = arith.addf %727, %728 : vector<2x48xf32>
    %730 = vector.extract_strided_slice %726 {offsets = [0, 0], sizes = [2, 16], strides = [1, 1]} : vector<2x48xf32> to vector<2x16xf32>
    %731 = vector.extract_strided_slice %729 {offsets = [0, 0], sizes = [2, 16], strides = [1, 1]} : vector<2x48xf32> to vector<2x16xf32>
    %732 = arith.addf %730, %731 : vector<2x16xf32>
    %733 = arith.negf %732 : vector<2x16xf32>
    %734 = math.exp %733 : vector<2x16xf32>
    %cst_146 = arith.constant 1.000000e+00 : f32
    %735 = vector.broadcast %cst_146 : f32 to vector<2x16xf32>
    %736 = arith.addf %735, %734 : vector<2x16xf32>
    %737 = arith.divf %735, %736 : vector<2x16xf32>
    %738 = vector.extract_strided_slice %726 {offsets = [0, 16], sizes = [2, 16], strides = [1, 1]} : vector<2x48xf32> to vector<2x16xf32>
    %739 = vector.extract_strided_slice %729 {offsets = [0, 16], sizes = [2, 16], strides = [1, 1]} : vector<2x48xf32> to vector<2x16xf32>
    %740 = arith.addf %738, %739 : vector<2x16xf32>
    %741 = arith.negf %740 : vector<2x16xf32>
    %742 = math.exp %741 : vector<2x16xf32>
    %cst_147 = arith.constant 1.000000e+00 : f32
    %743 = vector.broadcast %cst_147 : f32 to vector<2x16xf32>
    %744 = arith.addf %743, %742 : vector<2x16xf32>
    %745 = arith.divf %743, %744 : vector<2x16xf32>
    %746 = vector.extract_strided_slice %726 {offsets = [0, 32], sizes = [2, 16], strides = [1, 1]} : vector<2x48xf32> to vector<2x16xf32>
    %747 = vector.extract_strided_slice %729 {offsets = [0, 32], sizes = [2, 16], strides = [1, 1]} : vector<2x48xf32> to vector<2x16xf32>
    %748 = arith.mulf %737, %747 : vector<2x16xf32>
    %749 = arith.addf %746, %748 : vector<2x16xf32>
    %750 = math.tanh %749 : vector<2x16xf32>
    %cst_148 = arith.constant 1.000000e+00 : f32
    %751 = vector.broadcast %cst_148 : f32 to vector<2x16xf32>
    %752 = arith.subf %751, %745 : vector<2x16xf32>
    %753 = arith.mulf %752, %750 : vector<2x16xf32>
    %754 = arith.mulf %745, %693 : vector<2x16xf32>
    %755 = arith.addf %753, %754 : vector<2x16xf32>
    %cst_149 = arith.constant dense<0.000000e+00> : vector<2x48xf32>
    %756 = tpu.matmul %755, %100, %cst_149 {dimension_numbers = #tpu.dot_dimension_numbers<[1], [0], [0], [1], [0, 0, 1, 1], [], []>} : vector<2x16xf32>, vector<16x48xf32>, vector<2x48xf32> -> vector<2x48xf32>
    %757 = vector.broadcast %101 : vector<1x48xf32> to vector<2x48xf32>
    %758 = arith.addf %756, %757 : vector<2x48xf32>
    %cst_150 = arith.constant dense<0.000000e+00> : vector<2x48xf32>
    %759 = tpu.matmul %725, %102, %cst_150 {dimension_numbers = #tpu.dot_dimension_numbers<[1], [0], [0], [1], [0, 0, 1, 1], [], []>} : vector<2x16xf32>, vector<16x48xf32>, vector<2x48xf32> -> vector<2x48xf32>
    %760 = vector.broadcast %103 : vector<1x48xf32> to vector<2x48xf32>
    %761 = arith.addf %759, %760 : vector<2x48xf32>
    %762 = vector.extract_strided_slice %758 {offsets = [0, 0], sizes = [2, 16], strides = [1, 1]} : vector<2x48xf32> to vector<2x16xf32>
    %763 = vector.extract_strided_slice %761 {offsets = [0, 0], sizes = [2, 16], strides = [1, 1]} : vector<2x48xf32> to vector<2x16xf32>
    %764 = arith.addf %762, %763 : vector<2x16xf32>
    %765 = arith.negf %764 : vector<2x16xf32>
    %766 = math.exp %765 : vector<2x16xf32>
    %cst_151 = arith.constant 1.000000e+00 : f32
    %767 = vector.broadcast %cst_151 : f32 to vector<2x16xf32>
    %768 = arith.addf %767, %766 : vector<2x16xf32>
    %769 = arith.divf %767, %768 : vector<2x16xf32>
    %770 = vector.extract_strided_slice %758 {offsets = [0, 16], sizes = [2, 16], strides = [1, 1]} : vector<2x48xf32> to vector<2x16xf32>
    %771 = vector.extract_strided_slice %761 {offsets = [0, 16], sizes = [2, 16], strides = [1, 1]} : vector<2x48xf32> to vector<2x16xf32>
    %772 = arith.addf %770, %771 : vector<2x16xf32>
    %773 = arith.negf %772 : vector<2x16xf32>
    %774 = math.exp %773 : vector<2x16xf32>
    %cst_152 = arith.constant 1.000000e+00 : f32
    %775 = vector.broadcast %cst_152 : f32 to vector<2x16xf32>
    %776 = arith.addf %775, %774 : vector<2x16xf32>
    %777 = arith.divf %775, %776 : vector<2x16xf32>
    %778 = vector.extract_strided_slice %758 {offsets = [0, 32], sizes = [2, 16], strides = [1, 1]} : vector<2x48xf32> to vector<2x16xf32>
    %779 = vector.extract_strided_slice %761 {offsets = [0, 32], sizes = [2, 16], strides = [1, 1]} : vector<2x48xf32> to vector<2x16xf32>
    %780 = arith.mulf %769, %779 : vector<2x16xf32>
    %781 = arith.addf %778, %780 : vector<2x16xf32>
    %782 = math.tanh %781 : vector<2x16xf32>
    %cst_153 = arith.constant 1.000000e+00 : f32
    %783 = vector.broadcast %cst_153 : f32 to vector<2x16xf32>
    %784 = arith.subf %783, %777 : vector<2x16xf32>
    %785 = arith.mulf %784, %782 : vector<2x16xf32>
    %786 = arith.mulf %777, %725 : vector<2x16xf32>
    %787 = arith.addf %785, %786 : vector<2x16xf32>
    %788 = vector.extract_strided_slice %97 {offsets = [0, 528], sizes = [2, 48], strides = [1, 1]} : vector<2x768xf32> to vector<2x48xf32>
    %cst_154 = arith.constant dense<0.000000e+00> : vector<2x48xf32>
    %789 = tpu.matmul %755, %98, %cst_154 {dimension_numbers = #tpu.dot_dimension_numbers<[1], [0], [0], [1], [0, 0, 1, 1], [], []>} : vector<2x16xf32>, vector<16x48xf32>, vector<2x48xf32> -> vector<2x48xf32>
    %790 = vector.broadcast %99 : vector<1x48xf32> to vector<2x48xf32>
    %791 = arith.addf %789, %790 : vector<2x48xf32>
    %792 = vector.extract_strided_slice %788 {offsets = [0, 0], sizes = [2, 16], strides = [1, 1]} : vector<2x48xf32> to vector<2x16xf32>
    %793 = vector.extract_strided_slice %791 {offsets = [0, 0], sizes = [2, 16], strides = [1, 1]} : vector<2x48xf32> to vector<2x16xf32>
    %794 = arith.addf %792, %793 : vector<2x16xf32>
    %795 = arith.negf %794 : vector<2x16xf32>
    %796 = math.exp %795 : vector<2x16xf32>
    %cst_155 = arith.constant 1.000000e+00 : f32
    %797 = vector.broadcast %cst_155 : f32 to vector<2x16xf32>
    %798 = arith.addf %797, %796 : vector<2x16xf32>
    %799 = arith.divf %797, %798 : vector<2x16xf32>
    %800 = vector.extract_strided_slice %788 {offsets = [0, 16], sizes = [2, 16], strides = [1, 1]} : vector<2x48xf32> to vector<2x16xf32>
    %801 = vector.extract_strided_slice %791 {offsets = [0, 16], sizes = [2, 16], strides = [1, 1]} : vector<2x48xf32> to vector<2x16xf32>
    %802 = arith.addf %800, %801 : vector<2x16xf32>
    %803 = arith.negf %802 : vector<2x16xf32>
    %804 = math.exp %803 : vector<2x16xf32>
    %cst_156 = arith.constant 1.000000e+00 : f32
    %805 = vector.broadcast %cst_156 : f32 to vector<2x16xf32>
    %806 = arith.addf %805, %804 : vector<2x16xf32>
    %807 = arith.divf %805, %806 : vector<2x16xf32>
    %808 = vector.extract_strided_slice %788 {offsets = [0, 32], sizes = [2, 16], strides = [1, 1]} : vector<2x48xf32> to vector<2x16xf32>
    %809 = vector.extract_strided_slice %791 {offsets = [0, 32], sizes = [2, 16], strides = [1, 1]} : vector<2x48xf32> to vector<2x16xf32>
    %810 = arith.mulf %799, %809 : vector<2x16xf32>
    %811 = arith.addf %808, %810 : vector<2x16xf32>
    %812 = math.tanh %811 : vector<2x16xf32>
    %cst_157 = arith.constant 1.000000e+00 : f32
    %813 = vector.broadcast %cst_157 : f32 to vector<2x16xf32>
    %814 = arith.subf %813, %807 : vector<2x16xf32>
    %815 = arith.mulf %814, %812 : vector<2x16xf32>
    %816 = arith.mulf %807, %755 : vector<2x16xf32>
    %817 = arith.addf %815, %816 : vector<2x16xf32>
    %cst_158 = arith.constant dense<0.000000e+00> : vector<2x48xf32>
    %818 = tpu.matmul %817, %100, %cst_158 {dimension_numbers = #tpu.dot_dimension_numbers<[1], [0], [0], [1], [0, 0, 1, 1], [], []>} : vector<2x16xf32>, vector<16x48xf32>, vector<2x48xf32> -> vector<2x48xf32>
    %819 = vector.broadcast %101 : vector<1x48xf32> to vector<2x48xf32>
    %820 = arith.addf %818, %819 : vector<2x48xf32>
    %cst_159 = arith.constant dense<0.000000e+00> : vector<2x48xf32>
    %821 = tpu.matmul %787, %102, %cst_159 {dimension_numbers = #tpu.dot_dimension_numbers<[1], [0], [0], [1], [0, 0, 1, 1], [], []>} : vector<2x16xf32>, vector<16x48xf32>, vector<2x48xf32> -> vector<2x48xf32>
    %822 = vector.broadcast %103 : vector<1x48xf32> to vector<2x48xf32>
    %823 = arith.addf %821, %822 : vector<2x48xf32>
    %824 = vector.extract_strided_slice %820 {offsets = [0, 0], sizes = [2, 16], strides = [1, 1]} : vector<2x48xf32> to vector<2x16xf32>
    %825 = vector.extract_strided_slice %823 {offsets = [0, 0], sizes = [2, 16], strides = [1, 1]} : vector<2x48xf32> to vector<2x16xf32>
    %826 = arith.addf %824, %825 : vector<2x16xf32>
    %827 = arith.negf %826 : vector<2x16xf32>
    %828 = math.exp %827 : vector<2x16xf32>
    %cst_160 = arith.constant 1.000000e+00 : f32
    %829 = vector.broadcast %cst_160 : f32 to vector<2x16xf32>
    %830 = arith.addf %829, %828 : vector<2x16xf32>
    %831 = arith.divf %829, %830 : vector<2x16xf32>
    %832 = vector.extract_strided_slice %820 {offsets = [0, 16], sizes = [2, 16], strides = [1, 1]} : vector<2x48xf32> to vector<2x16xf32>
    %833 = vector.extract_strided_slice %823 {offsets = [0, 16], sizes = [2, 16], strides = [1, 1]} : vector<2x48xf32> to vector<2x16xf32>
    %834 = arith.addf %832, %833 : vector<2x16xf32>
    %835 = arith.negf %834 : vector<2x16xf32>
    %836 = math.exp %835 : vector<2x16xf32>
    %cst_161 = arith.constant 1.000000e+00 : f32
    %837 = vector.broadcast %cst_161 : f32 to vector<2x16xf32>
    %838 = arith.addf %837, %836 : vector<2x16xf32>
    %839 = arith.divf %837, %838 : vector<2x16xf32>
    %840 = vector.extract_strided_slice %820 {offsets = [0, 32], sizes = [2, 16], strides = [1, 1]} : vector<2x48xf32> to vector<2x16xf32>
    %841 = vector.extract_strided_slice %823 {offsets = [0, 32], sizes = [2, 16], strides = [1, 1]} : vector<2x48xf32> to vector<2x16xf32>
    %842 = arith.mulf %831, %841 : vector<2x16xf32>
    %843 = arith.addf %840, %842 : vector<2x16xf32>
    %844 = math.tanh %843 : vector<2x16xf32>
    %cst_162 = arith.constant 1.000000e+00 : f32
    %845 = vector.broadcast %cst_162 : f32 to vector<2x16xf32>
    %846 = arith.subf %845, %839 : vector<2x16xf32>
    %847 = arith.mulf %846, %844 : vector<2x16xf32>
    %848 = arith.mulf %839, %787 : vector<2x16xf32>
    %849 = arith.addf %847, %848 : vector<2x16xf32>
    %850 = vector.extract_strided_slice %97 {offsets = [0, 576], sizes = [2, 48], strides = [1, 1]} : vector<2x768xf32> to vector<2x48xf32>
    %cst_163 = arith.constant dense<0.000000e+00> : vector<2x48xf32>
    %851 = tpu.matmul %817, %98, %cst_163 {dimension_numbers = #tpu.dot_dimension_numbers<[1], [0], [0], [1], [0, 0, 1, 1], [], []>} : vector<2x16xf32>, vector<16x48xf32>, vector<2x48xf32> -> vector<2x48xf32>
    %852 = vector.broadcast %99 : vector<1x48xf32> to vector<2x48xf32>
    %853 = arith.addf %851, %852 : vector<2x48xf32>
    %854 = vector.extract_strided_slice %850 {offsets = [0, 0], sizes = [2, 16], strides = [1, 1]} : vector<2x48xf32> to vector<2x16xf32>
    %855 = vector.extract_strided_slice %853 {offsets = [0, 0], sizes = [2, 16], strides = [1, 1]} : vector<2x48xf32> to vector<2x16xf32>
    %856 = arith.addf %854, %855 : vector<2x16xf32>
    %857 = arith.negf %856 : vector<2x16xf32>
    %858 = math.exp %857 : vector<2x16xf32>
    %cst_164 = arith.constant 1.000000e+00 : f32
    %859 = vector.broadcast %cst_164 : f32 to vector<2x16xf32>
    %860 = arith.addf %859, %858 : vector<2x16xf32>
    %861 = arith.divf %859, %860 : vector<2x16xf32>
    %862 = vector.extract_strided_slice %850 {offsets = [0, 16], sizes = [2, 16], strides = [1, 1]} : vector<2x48xf32> to vector<2x16xf32>
    %863 = vector.extract_strided_slice %853 {offsets = [0, 16], sizes = [2, 16], strides = [1, 1]} : vector<2x48xf32> to vector<2x16xf32>
    %864 = arith.addf %862, %863 : vector<2x16xf32>
    %865 = arith.negf %864 : vector<2x16xf32>
    %866 = math.exp %865 : vector<2x16xf32>
    %cst_165 = arith.constant 1.000000e+00 : f32
    %867 = vector.broadcast %cst_165 : f32 to vector<2x16xf32>
    %868 = arith.addf %867, %866 : vector<2x16xf32>
    %869 = arith.divf %867, %868 : vector<2x16xf32>
    %870 = vector.extract_strided_slice %850 {offsets = [0, 32], sizes = [2, 16], strides = [1, 1]} : vector<2x48xf32> to vector<2x16xf32>
    %871 = vector.extract_strided_slice %853 {offsets = [0, 32], sizes = [2, 16], strides = [1, 1]} : vector<2x48xf32> to vector<2x16xf32>
    %872 = arith.mulf %861, %871 : vector<2x16xf32>
    %873 = arith.addf %870, %872 : vector<2x16xf32>
    %874 = math.tanh %873 : vector<2x16xf32>
    %cst_166 = arith.constant 1.000000e+00 : f32
    %875 = vector.broadcast %cst_166 : f32 to vector<2x16xf32>
    %876 = arith.subf %875, %869 : vector<2x16xf32>
    %877 = arith.mulf %876, %874 : vector<2x16xf32>
    %878 = arith.mulf %869, %817 : vector<2x16xf32>
    %879 = arith.addf %877, %878 : vector<2x16xf32>
    %cst_167 = arith.constant dense<0.000000e+00> : vector<2x48xf32>
    %880 = tpu.matmul %879, %100, %cst_167 {dimension_numbers = #tpu.dot_dimension_numbers<[1], [0], [0], [1], [0, 0, 1, 1], [], []>} : vector<2x16xf32>, vector<16x48xf32>, vector<2x48xf32> -> vector<2x48xf32>
    %881 = vector.broadcast %101 : vector<1x48xf32> to vector<2x48xf32>
    %882 = arith.addf %880, %881 : vector<2x48xf32>
    %cst_168 = arith.constant dense<0.000000e+00> : vector<2x48xf32>
    %883 = tpu.matmul %849, %102, %cst_168 {dimension_numbers = #tpu.dot_dimension_numbers<[1], [0], [0], [1], [0, 0, 1, 1], [], []>} : vector<2x16xf32>, vector<16x48xf32>, vector<2x48xf32> -> vector<2x48xf32>
    %884 = vector.broadcast %103 : vector<1x48xf32> to vector<2x48xf32>
    %885 = arith.addf %883, %884 : vector<2x48xf32>
    %886 = vector.extract_strided_slice %882 {offsets = [0, 0], sizes = [2, 16], strides = [1, 1]} : vector<2x48xf32> to vector<2x16xf32>
    %887 = vector.extract_strided_slice %885 {offsets = [0, 0], sizes = [2, 16], strides = [1, 1]} : vector<2x48xf32> to vector<2x16xf32>
    %888 = arith.addf %886, %887 : vector<2x16xf32>
    %889 = arith.negf %888 : vector<2x16xf32>
    %890 = math.exp %889 : vector<2x16xf32>
    %cst_169 = arith.constant 1.000000e+00 : f32
    %891 = vector.broadcast %cst_169 : f32 to vector<2x16xf32>
    %892 = arith.addf %891, %890 : vector<2x16xf32>
    %893 = arith.divf %891, %892 : vector<2x16xf32>
    %894 = vector.extract_strided_slice %882 {offsets = [0, 16], sizes = [2, 16], strides = [1, 1]} : vector<2x48xf32> to vector<2x16xf32>
    %895 = vector.extract_strided_slice %885 {offsets = [0, 16], sizes = [2, 16], strides = [1, 1]} : vector<2x48xf32> to vector<2x16xf32>
    %896 = arith.addf %894, %895 : vector<2x16xf32>
    %897 = arith.negf %896 : vector<2x16xf32>
    %898 = math.exp %897 : vector<2x16xf32>
    %cst_170 = arith.constant 1.000000e+00 : f32
    %899 = vector.broadcast %cst_170 : f32 to vector<2x16xf32>
    %900 = arith.addf %899, %898 : vector<2x16xf32>
    %901 = arith.divf %899, %900 : vector<2x16xf32>
    %902 = vector.extract_strided_slice %882 {offsets = [0, 32], sizes = [2, 16], strides = [1, 1]} : vector<2x48xf32> to vector<2x16xf32>
    %903 = vector.extract_strided_slice %885 {offsets = [0, 32], sizes = [2, 16], strides = [1, 1]} : vector<2x48xf32> to vector<2x16xf32>
    %904 = arith.mulf %893, %903 : vector<2x16xf32>
    %905 = arith.addf %902, %904 : vector<2x16xf32>
    %906 = math.tanh %905 : vector<2x16xf32>
    %cst_171 = arith.constant 1.000000e+00 : f32
    %907 = vector.broadcast %cst_171 : f32 to vector<2x16xf32>
    %908 = arith.subf %907, %901 : vector<2x16xf32>
    %909 = arith.mulf %908, %906 : vector<2x16xf32>
    %910 = arith.mulf %901, %849 : vector<2x16xf32>
    %911 = arith.addf %909, %910 : vector<2x16xf32>
    %912 = vector.extract_strided_slice %97 {offsets = [0, 624], sizes = [2, 48], strides = [1, 1]} : vector<2x768xf32> to vector<2x48xf32>
    %cst_172 = arith.constant dense<0.000000e+00> : vector<2x48xf32>
    %913 = tpu.matmul %879, %98, %cst_172 {dimension_numbers = #tpu.dot_dimension_numbers<[1], [0], [0], [1], [0, 0, 1, 1], [], []>} : vector<2x16xf32>, vector<16x48xf32>, vector<2x48xf32> -> vector<2x48xf32>
    %914 = vector.broadcast %99 : vector<1x48xf32> to vector<2x48xf32>
    %915 = arith.addf %913, %914 : vector<2x48xf32>
    %916 = vector.extract_strided_slice %912 {offsets = [0, 0], sizes = [2, 16], strides = [1, 1]} : vector<2x48xf32> to vector<2x16xf32>
    %917 = vector.extract_strided_slice %915 {offsets = [0, 0], sizes = [2, 16], strides = [1, 1]} : vector<2x48xf32> to vector<2x16xf32>
    %918 = arith.addf %916, %917 : vector<2x16xf32>
    %919 = arith.negf %918 : vector<2x16xf32>
    %920 = math.exp %919 : vector<2x16xf32>
    %cst_173 = arith.constant 1.000000e+00 : f32
    %921 = vector.broadcast %cst_173 : f32 to vector<2x16xf32>
    %922 = arith.addf %921, %920 : vector<2x16xf32>
    %923 = arith.divf %921, %922 : vector<2x16xf32>
    %924 = vector.extract_strided_slice %912 {offsets = [0, 16], sizes = [2, 16], strides = [1, 1]} : vector<2x48xf32> to vector<2x16xf32>
    %925 = vector.extract_strided_slice %915 {offsets = [0, 16], sizes = [2, 16], strides = [1, 1]} : vector<2x48xf32> to vector<2x16xf32>
    %926 = arith.addf %924, %925 : vector<2x16xf32>
    %927 = arith.negf %926 : vector<2x16xf32>
    %928 = math.exp %927 : vector<2x16xf32>
    %cst_174 = arith.constant 1.000000e+00 : f32
    %929 = vector.broadcast %cst_174 : f32 to vector<2x16xf32>
    %930 = arith.addf %929, %928 : vector<2x16xf32>
    %931 = arith.divf %929, %930 : vector<2x16xf32>
    %932 = vector.extract_strided_slice %912 {offsets = [0, 32], sizes = [2, 16], strides = [1, 1]} : vector<2x48xf32> to vector<2x16xf32>
    %933 = vector.extract_strided_slice %915 {offsets = [0, 32], sizes = [2, 16], strides = [1, 1]} : vector<2x48xf32> to vector<2x16xf32>
    %934 = arith.mulf %923, %933 : vector<2x16xf32>
    %935 = arith.addf %932, %934 : vector<2x16xf32>
    %936 = math.tanh %935 : vector<2x16xf32>
    %cst_175 = arith.constant 1.000000e+00 : f32
    %937 = vector.broadcast %cst_175 : f32 to vector<2x16xf32>
    %938 = arith.subf %937, %931 : vector<2x16xf32>
    %939 = arith.mulf %938, %936 : vector<2x16xf32>
    %940 = arith.mulf %931, %879 : vector<2x16xf32>
    %941 = arith.addf %939, %940 : vector<2x16xf32>
    %cst_176 = arith.constant dense<0.000000e+00> : vector<2x48xf32>
    %942 = tpu.matmul %941, %100, %cst_176 {dimension_numbers = #tpu.dot_dimension_numbers<[1], [0], [0], [1], [0, 0, 1, 1], [], []>} : vector<2x16xf32>, vector<16x48xf32>, vector<2x48xf32> -> vector<2x48xf32>
    %943 = vector.broadcast %101 : vector<1x48xf32> to vector<2x48xf32>
    %944 = arith.addf %942, %943 : vector<2x48xf32>
    %cst_177 = arith.constant dense<0.000000e+00> : vector<2x48xf32>
    %945 = tpu.matmul %911, %102, %cst_177 {dimension_numbers = #tpu.dot_dimension_numbers<[1], [0], [0], [1], [0, 0, 1, 1], [], []>} : vector<2x16xf32>, vector<16x48xf32>, vector<2x48xf32> -> vector<2x48xf32>
    %946 = vector.broadcast %103 : vector<1x48xf32> to vector<2x48xf32>
    %947 = arith.addf %945, %946 : vector<2x48xf32>
    %948 = vector.extract_strided_slice %944 {offsets = [0, 0], sizes = [2, 16], strides = [1, 1]} : vector<2x48xf32> to vector<2x16xf32>
    %949 = vector.extract_strided_slice %947 {offsets = [0, 0], sizes = [2, 16], strides = [1, 1]} : vector<2x48xf32> to vector<2x16xf32>
    %950 = arith.addf %948, %949 : vector<2x16xf32>
    %951 = arith.negf %950 : vector<2x16xf32>
    %952 = math.exp %951 : vector<2x16xf32>
    %cst_178 = arith.constant 1.000000e+00 : f32
    %953 = vector.broadcast %cst_178 : f32 to vector<2x16xf32>
    %954 = arith.addf %953, %952 : vector<2x16xf32>
    %955 = arith.divf %953, %954 : vector<2x16xf32>
    %956 = vector.extract_strided_slice %944 {offsets = [0, 16], sizes = [2, 16], strides = [1, 1]} : vector<2x48xf32> to vector<2x16xf32>
    %957 = vector.extract_strided_slice %947 {offsets = [0, 16], sizes = [2, 16], strides = [1, 1]} : vector<2x48xf32> to vector<2x16xf32>
    %958 = arith.addf %956, %957 : vector<2x16xf32>
    %959 = arith.negf %958 : vector<2x16xf32>
    %960 = math.exp %959 : vector<2x16xf32>
    %cst_179 = arith.constant 1.000000e+00 : f32
    %961 = vector.broadcast %cst_179 : f32 to vector<2x16xf32>
    %962 = arith.addf %961, %960 : vector<2x16xf32>
    %963 = arith.divf %961, %962 : vector<2x16xf32>
    %964 = vector.extract_strided_slice %944 {offsets = [0, 32], sizes = [2, 16], strides = [1, 1]} : vector<2x48xf32> to vector<2x16xf32>
    %965 = vector.extract_strided_slice %947 {offsets = [0, 32], sizes = [2, 16], strides = [1, 1]} : vector<2x48xf32> to vector<2x16xf32>
    %966 = arith.mulf %955, %965 : vector<2x16xf32>
    %967 = arith.addf %964, %966 : vector<2x16xf32>
    %968 = math.tanh %967 : vector<2x16xf32>
    %cst_180 = arith.constant 1.000000e+00 : f32
    %969 = vector.broadcast %cst_180 : f32 to vector<2x16xf32>
    %970 = arith.subf %969, %963 : vector<2x16xf32>
    %971 = arith.mulf %970, %968 : vector<2x16xf32>
    %972 = arith.mulf %963, %911 : vector<2x16xf32>
    %973 = arith.addf %971, %972 : vector<2x16xf32>
    %974 = vector.extract_strided_slice %97 {offsets = [0, 672], sizes = [2, 48], strides = [1, 1]} : vector<2x768xf32> to vector<2x48xf32>
    %cst_181 = arith.constant dense<0.000000e+00> : vector<2x48xf32>
    %975 = tpu.matmul %941, %98, %cst_181 {dimension_numbers = #tpu.dot_dimension_numbers<[1], [0], [0], [1], [0, 0, 1, 1], [], []>} : vector<2x16xf32>, vector<16x48xf32>, vector<2x48xf32> -> vector<2x48xf32>
    %976 = vector.broadcast %99 : vector<1x48xf32> to vector<2x48xf32>
    %977 = arith.addf %975, %976 : vector<2x48xf32>
    %978 = vector.extract_strided_slice %974 {offsets = [0, 0], sizes = [2, 16], strides = [1, 1]} : vector<2x48xf32> to vector<2x16xf32>
    %979 = vector.extract_strided_slice %977 {offsets = [0, 0], sizes = [2, 16], strides = [1, 1]} : vector<2x48xf32> to vector<2x16xf32>
    %980 = arith.addf %978, %979 : vector<2x16xf32>
    %981 = arith.negf %980 : vector<2x16xf32>
    %982 = math.exp %981 : vector<2x16xf32>
    %cst_182 = arith.constant 1.000000e+00 : f32
    %983 = vector.broadcast %cst_182 : f32 to vector<2x16xf32>
    %984 = arith.addf %983, %982 : vector<2x16xf32>
    %985 = arith.divf %983, %984 : vector<2x16xf32>
    %986 = vector.extract_strided_slice %974 {offsets = [0, 16], sizes = [2, 16], strides = [1, 1]} : vector<2x48xf32> to vector<2x16xf32>
    %987 = vector.extract_strided_slice %977 {offsets = [0, 16], sizes = [2, 16], strides = [1, 1]} : vector<2x48xf32> to vector<2x16xf32>
    %988 = arith.addf %986, %987 : vector<2x16xf32>
    %989 = arith.negf %988 : vector<2x16xf32>
    %990 = math.exp %989 : vector<2x16xf32>
    %cst_183 = arith.constant 1.000000e+00 : f32
    %991 = vector.broadcast %cst_183 : f32 to vector<2x16xf32>
    %992 = arith.addf %991, %990 : vector<2x16xf32>
    %993 = arith.divf %991, %992 : vector<2x16xf32>
    %994 = vector.extract_strided_slice %974 {offsets = [0, 32], sizes = [2, 16], strides = [1, 1]} : vector<2x48xf32> to vector<2x16xf32>
    %995 = vector.extract_strided_slice %977 {offsets = [0, 32], sizes = [2, 16], strides = [1, 1]} : vector<2x48xf32> to vector<2x16xf32>
    %996 = arith.mulf %985, %995 : vector<2x16xf32>
    %997 = arith.addf %994, %996 : vector<2x16xf32>
    %998 = math.tanh %997 : vector<2x16xf32>
    %cst_184 = arith.constant 1.000000e+00 : f32
    %999 = vector.broadcast %cst_184 : f32 to vector<2x16xf32>
    %1000 = arith.subf %999, %993 : vector<2x16xf32>
    %1001 = arith.mulf %1000, %998 : vector<2x16xf32>
    %1002 = arith.mulf %993, %941 : vector<2x16xf32>
    %1003 = arith.addf %1001, %1002 : vector<2x16xf32>
    %cst_185 = arith.constant dense<0.000000e+00> : vector<2x48xf32>
    %1004 = tpu.matmul %1003, %100, %cst_185 {dimension_numbers = #tpu.dot_dimension_numbers<[1], [0], [0], [1], [0, 0, 1, 1], [], []>} : vector<2x16xf32>, vector<16x48xf32>, vector<2x48xf32> -> vector<2x48xf32>
    %1005 = vector.broadcast %101 : vector<1x48xf32> to vector<2x48xf32>
    %1006 = arith.addf %1004, %1005 : vector<2x48xf32>
    %cst_186 = arith.constant dense<0.000000e+00> : vector<2x48xf32>
    %1007 = tpu.matmul %973, %102, %cst_186 {dimension_numbers = #tpu.dot_dimension_numbers<[1], [0], [0], [1], [0, 0, 1, 1], [], []>} : vector<2x16xf32>, vector<16x48xf32>, vector<2x48xf32> -> vector<2x48xf32>
    %1008 = vector.broadcast %103 : vector<1x48xf32> to vector<2x48xf32>
    %1009 = arith.addf %1007, %1008 : vector<2x48xf32>
    %1010 = vector.extract_strided_slice %1006 {offsets = [0, 0], sizes = [2, 16], strides = [1, 1]} : vector<2x48xf32> to vector<2x16xf32>
    %1011 = vector.extract_strided_slice %1009 {offsets = [0, 0], sizes = [2, 16], strides = [1, 1]} : vector<2x48xf32> to vector<2x16xf32>
    %1012 = arith.addf %1010, %1011 : vector<2x16xf32>
    %1013 = arith.negf %1012 : vector<2x16xf32>
    %1014 = math.exp %1013 : vector<2x16xf32>
    %cst_187 = arith.constant 1.000000e+00 : f32
    %1015 = vector.broadcast %cst_187 : f32 to vector<2x16xf32>
    %1016 = arith.addf %1015, %1014 : vector<2x16xf32>
    %1017 = arith.divf %1015, %1016 : vector<2x16xf32>
    %1018 = vector.extract_strided_slice %1006 {offsets = [0, 16], sizes = [2, 16], strides = [1, 1]} : vector<2x48xf32> to vector<2x16xf32>
    %1019 = vector.extract_strided_slice %1009 {offsets = [0, 16], sizes = [2, 16], strides = [1, 1]} : vector<2x48xf32> to vector<2x16xf32>
    %1020 = arith.addf %1018, %1019 : vector<2x16xf32>
    %1021 = arith.negf %1020 : vector<2x16xf32>
    %1022 = math.exp %1021 : vector<2x16xf32>
    %cst_188 = arith.constant 1.000000e+00 : f32
    %1023 = vector.broadcast %cst_188 : f32 to vector<2x16xf32>
    %1024 = arith.addf %1023, %1022 : vector<2x16xf32>
    %1025 = arith.divf %1023, %1024 : vector<2x16xf32>
    %1026 = vector.extract_strided_slice %1006 {offsets = [0, 32], sizes = [2, 16], strides = [1, 1]} : vector<2x48xf32> to vector<2x16xf32>
    %1027 = vector.extract_strided_slice %1009 {offsets = [0, 32], sizes = [2, 16], strides = [1, 1]} : vector<2x48xf32> to vector<2x16xf32>
    %1028 = arith.mulf %1017, %1027 : vector<2x16xf32>
    %1029 = arith.addf %1026, %1028 : vector<2x16xf32>
    %1030 = math.tanh %1029 : vector<2x16xf32>
    %cst_189 = arith.constant 1.000000e+00 : f32
    %1031 = vector.broadcast %cst_189 : f32 to vector<2x16xf32>
    %1032 = arith.subf %1031, %1025 : vector<2x16xf32>
    %1033 = arith.mulf %1032, %1030 : vector<2x16xf32>
    %1034 = arith.mulf %1025, %973 : vector<2x16xf32>
    %1035 = arith.addf %1033, %1034 : vector<2x16xf32>
    %1036 = vector.extract_strided_slice %97 {offsets = [0, 720], sizes = [2, 48], strides = [1, 1]} : vector<2x768xf32> to vector<2x48xf32>
    %cst_190 = arith.constant dense<0.000000e+00> : vector<2x48xf32>
    %1037 = tpu.matmul %1003, %98, %cst_190 {dimension_numbers = #tpu.dot_dimension_numbers<[1], [0], [0], [1], [0, 0, 1, 1], [], []>} : vector<2x16xf32>, vector<16x48xf32>, vector<2x48xf32> -> vector<2x48xf32>
    %1038 = vector.broadcast %99 : vector<1x48xf32> to vector<2x48xf32>
    %1039 = arith.addf %1037, %1038 : vector<2x48xf32>
    %1040 = vector.extract_strided_slice %1036 {offsets = [0, 0], sizes = [2, 16], strides = [1, 1]} : vector<2x48xf32> to vector<2x16xf32>
    %1041 = vector.extract_strided_slice %1039 {offsets = [0, 0], sizes = [2, 16], strides = [1, 1]} : vector<2x48xf32> to vector<2x16xf32>
    %1042 = arith.addf %1040, %1041 : vector<2x16xf32>
    %1043 = arith.negf %1042 : vector<2x16xf32>
    %1044 = math.exp %1043 : vector<2x16xf32>
    %cst_191 = arith.constant 1.000000e+00 : f32
    %1045 = vector.broadcast %cst_191 : f32 to vector<2x16xf32>
    %1046 = arith.addf %1045, %1044 : vector<2x16xf32>
    %1047 = arith.divf %1045, %1046 : vector<2x16xf32>
    %1048 = vector.extract_strided_slice %1036 {offsets = [0, 16], sizes = [2, 16], strides = [1, 1]} : vector<2x48xf32> to vector<2x16xf32>
    %1049 = vector.extract_strided_slice %1039 {offsets = [0, 16], sizes = [2, 16], strides = [1, 1]} : vector<2x48xf32> to vector<2x16xf32>
    %1050 = arith.addf %1048, %1049 : vector<2x16xf32>
    %1051 = arith.negf %1050 : vector<2x16xf32>
    %1052 = math.exp %1051 : vector<2x16xf32>
    %cst_192 = arith.constant 1.000000e+00 : f32
    %1053 = vector.broadcast %cst_192 : f32 to vector<2x16xf32>
    %1054 = arith.addf %1053, %1052 : vector<2x16xf32>
    %1055 = arith.divf %1053, %1054 : vector<2x16xf32>
    %1056 = vector.extract_strided_slice %1036 {offsets = [0, 32], sizes = [2, 16], strides = [1, 1]} : vector<2x48xf32> to vector<2x16xf32>
    %1057 = vector.extract_strided_slice %1039 {offsets = [0, 32], sizes = [2, 16], strides = [1, 1]} : vector<2x48xf32> to vector<2x16xf32>
    %1058 = arith.mulf %1047, %1057 : vector<2x16xf32>
    %1059 = arith.addf %1056, %1058 : vector<2x16xf32>
    %1060 = math.tanh %1059 : vector<2x16xf32>
    %cst_193 = arith.constant 1.000000e+00 : f32
    %1061 = vector.broadcast %cst_193 : f32 to vector<2x16xf32>
    %1062 = arith.subf %1061, %1055 : vector<2x16xf32>
    %1063 = arith.mulf %1062, %1060 : vector<2x16xf32>
    %1064 = arith.mulf %1055, %1003 : vector<2x16xf32>
    %1065 = arith.addf %1063, %1064 : vector<2x16xf32>
    %cst_194 = arith.constant dense<0.000000e+00> : vector<2x48xf32>
    %1066 = tpu.matmul %1065, %100, %cst_194 {dimension_numbers = #tpu.dot_dimension_numbers<[1], [0], [0], [1], [0, 0, 1, 1], [], []>} : vector<2x16xf32>, vector<16x48xf32>, vector<2x48xf32> -> vector<2x48xf32>
    %1067 = vector.broadcast %101 : vector<1x48xf32> to vector<2x48xf32>
    %1068 = arith.addf %1066, %1067 : vector<2x48xf32>
    %cst_195 = arith.constant dense<0.000000e+00> : vector<2x48xf32>
    %1069 = tpu.matmul %1035, %102, %cst_195 {dimension_numbers = #tpu.dot_dimension_numbers<[1], [0], [0], [1], [0, 0, 1, 1], [], []>} : vector<2x16xf32>, vector<16x48xf32>, vector<2x48xf32> -> vector<2x48xf32>
    %1070 = vector.broadcast %103 : vector<1x48xf32> to vector<2x48xf32>
    %1071 = arith.addf %1069, %1070 : vector<2x48xf32>
    %1072 = vector.extract_strided_slice %1068 {offsets = [0, 0], sizes = [2, 16], strides = [1, 1]} : vector<2x48xf32> to vector<2x16xf32>
    %1073 = vector.extract_strided_slice %1071 {offsets = [0, 0], sizes = [2, 16], strides = [1, 1]} : vector<2x48xf32> to vector<2x16xf32>
    %1074 = arith.addf %1072, %1073 : vector<2x16xf32>
    %1075 = arith.negf %1074 : vector<2x16xf32>
    %1076 = math.exp %1075 : vector<2x16xf32>
    %cst_196 = arith.constant 1.000000e+00 : f32
    %1077 = vector.broadcast %cst_196 : f32 to vector<2x16xf32>
    %1078 = arith.addf %1077, %1076 : vector<2x16xf32>
    %1079 = arith.divf %1077, %1078 : vector<2x16xf32>
    %1080 = vector.extract_strided_slice %1068 {offsets = [0, 16], sizes = [2, 16], strides = [1, 1]} : vector<2x48xf32> to vector<2x16xf32>
    %1081 = vector.extract_strided_slice %1071 {offsets = [0, 16], sizes = [2, 16], strides = [1, 1]} : vector<2x48xf32> to vector<2x16xf32>
    %1082 = arith.addf %1080, %1081 : vector<2x16xf32>
    %1083 = arith.negf %1082 : vector<2x16xf32>
    %1084 = math.exp %1083 : vector<2x16xf32>
    %cst_197 = arith.constant 1.000000e+00 : f32
    %1085 = vector.broadcast %cst_197 : f32 to vector<2x16xf32>
    %1086 = arith.addf %1085, %1084 : vector<2x16xf32>
    %1087 = arith.divf %1085, %1086 : vector<2x16xf32>
    %1088 = vector.extract_strided_slice %1068 {offsets = [0, 32], sizes = [2, 16], strides = [1, 1]} : vector<2x48xf32> to vector<2x16xf32>
    %1089 = vector.extract_strided_slice %1071 {offsets = [0, 32], sizes = [2, 16], strides = [1, 1]} : vector<2x48xf32> to vector<2x16xf32>
    %1090 = arith.mulf %1079, %1089 : vector<2x16xf32>
    %1091 = arith.addf %1088, %1090 : vector<2x16xf32>
    %1092 = math.tanh %1091 : vector<2x16xf32>
    %cst_198 = arith.constant 1.000000e+00 : f32
    %1093 = vector.broadcast %cst_198 : f32 to vector<2x16xf32>
    %1094 = arith.subf %1093, %1087 : vector<2x16xf32>
    %1095 = arith.mulf %1094, %1092 : vector<2x16xf32>
    %1096 = arith.mulf %1087, %1035 : vector<2x16xf32>
    %1097 = arith.addf %1095, %1096 : vector<2x16xf32>
    %1098 = tpu.concatenate %167, %229, %291, %353, %415, %477, %539, %601, %663, %725, %787, %849, %911, %973, %1035, %1097 in 1 : vector<2x16xf32>, vector<2x16xf32>, vector<2x16xf32>, vector<2x16xf32>, vector<2x16xf32>, vector<2x16xf32>, vector<2x16xf32>, vector<2x16xf32>, vector<2x16xf32>, vector<2x16xf32>, vector<2x16xf32>, vector<2x16xf32>, vector<2x16xf32>, vector<2x16xf32>, vector<2x16xf32>, vector<2x16xf32> -> vector<2x256xf32>
    %c0_199 = arith.constant 0 : index
    %c0_200 = arith.constant 0 : index
    %1099 = vector.load %arg24[%c0_199, %c0_200] : memref<2x256xf32, #tpu.memory_space<vmem>>, vector<2x256xf32>
    tpu.vector_store %arg24[%c0_199, %c0_200], %1098 {strides = array<i32>} : memref<2x256xf32, #tpu.memory_space<vmem>>, vector<2x256xf32>,
    %c0_201 = arith.constant 0 : index
    %c0_202 = arith.constant 0 : index
    %1100 = vector.load %arg22[%c0_201, %c0_202] : memref<256x27xf32, #tpu.memory_space<vmem>>, vector<256x27xf32>
    %cst_203 = arith.constant dense<0.000000e+00> : vector<2x27xf32>
    %1101 = tpu.matmul %1098, %1100, %cst_203 {dimension_numbers = #tpu.dot_dimension_numbers<[1], [0], [0], [1], [0, 0, 1, 1], [], []>} : vector<2x256xf32>, vector<256x27xf32>, vector<2x27xf32> -> vector<2x27xf32>
    %c0_204 = arith.constant 0 : index
    %c0_205 = arith.constant 0 : index
    %1102 = vector.load %arg23[%c0_204, %c0_205] : memref<1x27xf32, #tpu.memory_space<vmem>>, vector<1x27xf32>
    %1103 = vector.broadcast %1102 : vector<1x27xf32> to vector<2x27xf32>
    %1104 = arith.addf %1101, %1103 : vector<2x27xf32>
    %c0_206 = arith.constant 0 : index
    %c0_207 = arith.constant 0 : index
    %1105 = vector.load %arg25[%c0_206, %c0_207] : memref<2x27xf32, #tpu.memory_space<vmem>>, vector<2x27xf32>
    tpu.vector_store %arg25[%c0_206, %c0_207], %1104 {strides = array<i32>} : memref<2x27xf32, #tpu.memory_space<vmem>>, vector<2x27xf32>,
    return
  }
  func.func @transform_0(%arg0: i32) -> (i32, i32) {
    %c0_i32 = arith.constant 0 : i32
    %c0_i32_0 = arith.constant 0 : i32
    %c0_i32_1 = arith.constant 0 : i32
    return %c0_i32, %c0_i32_0 : i32, i32
  }
  func.func @transform_1(%arg0: i32) -> (i32, i32) {
    %c0_i32 = arith.constant 0 : i32
    %c0_i32_0 = arith.constant 0 : i32
    %c0_i32_1 = arith.constant 0 : i32
    return %c0_i32, %c0_i32_0 : i32, i32
  }
  func.func @transform_2(%arg0: i32) -> (i32, i32) {
    %c0_i32 = arith.constant 0 : i32
    %c0_i32_0 = arith.constant 0 : i32
    %c0_i32_1 = arith.constant 0 : i32
    return %c0_i32, %c0_i32_0 : i32, i32
  }
  func.func @transform_3(%arg0: i32) -> (i32, i32) {
    %c0_i32 = arith.constant 0 : i32
    %c0_i32_0 = arith.constant 0 : i32
    %c0_i32_1 = arith.constant 0 : i32
    return %c0_i32, %c0_i32_0 : i32, i32
  }
  func.func @transform_4(%arg0: i32) -> (i32, i32) {
    %c0_i32 = arith.constant 0 : i32
    %c0_i32_0 = arith.constant 0 : i32
    %c0_i32_1 = arith.constant 0 : i32
    return %c0_i32, %c0_i32_0 : i32, i32
  }
  func.func @transform_5(%arg0: i32) -> (i32, i32) {
    %c0_i32 = arith.constant 0 : i32
    %c0_i32_0 = arith.constant 0 : i32
    %c0_i32_1 = arith.constant 0 : i32
    return %c0_i32, %c0_i32_0 : i32, i32
  }
  func.func @transform_6(%arg0: i32) -> (i32, i32) {
    %c0_i32 = arith.constant 0 : i32
    %c0_i32_0 = arith.constant 0 : i32
    %c0_i32_1 = arith.constant 0 : i32
    return %c0_i32, %c0_i32_0 : i32, i32
  }
  func.func @transform_7(%arg0: i32) -> (i32, i32) {
    %c0_i32 = arith.constant 0 : i32
    %c0_i32_0 = arith.constant 0 : i32
    %c0_i32_1 = arith.constant 0 : i32
    return %c0_i32, %c0_i32_0 : i32, i32
  }
  func.func @transform_8(%arg0: i32) -> (i32, i32) {
    %c0_i32 = arith.constant 0 : i32
    %c0_i32_0 = arith.constant 0 : i32
    %c0_i32_1 = arith.constant 0 : i32
    return %c0_i32, %c0_i32_0 : i32, i32
  }
  func.func @transform_9(%arg0: i32) -> (i32, i32) {
    %c0_i32 = arith.constant 0 : i32
    %c0_i32_0 = arith.constant 0 : i32
    %c0_i32_1 = arith.constant 0 : i32
    return %c0_i32, %c0_i32_0 : i32, i32
  }
  func.func @transform_10(%arg0: i32) -> (i32, i32) {
    %c0_i32 = arith.constant 0 : i32
    %c0_i32_0 = arith.constant 0 : i32
    %c0_i32_1 = arith.constant 0 : i32
    return %c0_i32, %c0_i32_0 : i32, i32
  }
  func.func @transform_11(%arg0: i32) -> (i32, i32) {
    %c0_i32 = arith.constant 0 : i32
    %c0_i32_0 = arith.constant 0 : i32
    %c0_i32_1 = arith.constant 0 : i32
    return %c0_i32, %c0_i32_0 : i32, i32
  }
  func.func @transform_12(%arg0: i32) -> (i32, i32) {
    %c0_i32 = arith.constant 0 : i32
    %c0_i32_0 = arith.constant 0 : i32
    %c0_i32_1 = arith.constant 0 : i32
    return %c0_i32, %c0_i32_0 : i32, i32
  }
  func.func @transform_13(%arg0: i32) -> (i32, i32) {
    %c0_i32 = arith.constant 0 : i32
    %c0_i32_0 = arith.constant 0 : i32
    %c0_i32_1 = arith.constant 0 : i32
    return %c0_i32, %c0_i32_0 : i32, i32
  }
  func.func @transform_14(%arg0: i32) -> (i32, i32) {
    %c0_i32 = arith.constant 0 : i32
    %c0_i32_0 = arith.constant 0 : i32
    %c0_i32_1 = arith.constant 0 : i32
    return %c0_i32, %c0_i32_0 : i32, i32
  }
  func.func @transform_15(%arg0: i32) -> (i32, i32) {
    %c0_i32 = arith.constant 0 : i32
    %c0_i32_0 = arith.constant 0 : i32
    %c0_i32_1 = arith.constant 0 : i32
    return %c0_i32, %c0_i32_0 : i32, i32
  }
  func.func @transform_16(%arg0: i32) -> (i32, i32) {
    %c0_i32 = arith.constant 0 : i32
    %c0_i32_0 = arith.constant 0 : i32
    %c0_i32_1 = arith.constant 0 : i32
    return %c0_i32, %c0_i32_0 : i32, i32
  }
  func.func @transform_17(%arg0: i32) -> (i32, i32) {
    %c0_i32 = arith.constant 0 : i32
    %c0_i32_0 = arith.constant 0 : i32
    %c0_i32_1 = arith.constant 0 : i32
    return %c0_i32, %c0_i32_0 : i32, i32
  }
  func.func @transform_18(%arg0: i32) -> (i32, i32) {
    %c0_i32 = arith.constant 0 : i32
    %c0_i32_0 = arith.constant 0 : i32
    %c0_i32_1 = arith.constant 0 : i32
    return %c0_i32, %c0_i32_0 : i32, i32
  }
  func.func @transform_19(%arg0: i32) -> (i32, i32) {
    %c0_i32 = arith.constant 0 : i32
    %c0_i32_0 = arith.constant 0 : i32
    %c0_i32_1 = arith.constant 0 : i32
    return %c0_i32, %c0_i32_0 : i32, i32
  }
  func.func @transform_20(%arg0: i32) -> (i32, i32) {
    %c0_i32 = arith.constant 0 : i32
    %c0_i32_0 = arith.constant 0 : i32
    %c0_i32_1 = arith.constant 0 : i32
    return %c0_i32, %c0_i32_0 : i32, i32
  }
  func.func @transform_21(%arg0: i32) -> (i32, i32) {
    %c0_i32 = arith.constant 0 : i32
    %c0_i32_0 = arith.constant 0 : i32
    %c0_i32_1 = arith.constant 0 : i32
    return %c0_i32, %c0_i32_0 : i32, i32
  }
  func.func @transform_22(%arg0: i32) -> (i32, i32) {
    %c0_i32 = arith.constant 0 : i32
    %c0_i32_0 = arith.constant 0 : i32
    %c0_i32_1 = arith.constant 0 : i32
    return %c0_i32, %c0_i32_0 : i32, i32
  }
  func.func @transform_23(%arg0: i32) -> (i32, i32) {
    %c0_i32 = arith.constant 0 : i32
    %c0_i32_0 = arith.constant 0 : i32
    %c0_i32_1 = arith.constant 0 : i32
    return %c0_i32, %c0_i32_0 : i32, i32
  }
  func.func @transform_24(%arg0: i32) -> (i32, i32) {
    %c0_i32 = arith.constant 0 : i32
    %c0_i32_0 = arith.constant 0 : i32
    %c0_i32_1 = arith.constant 0 : i32
    return %c0_i32, %c0_i32_0 : i32, i32
  }
}

</mosaic_0001>

<bundles_post_ra>
// kernel: my_single_model_forward.1
= control target key start
LH: loop header
LB: loop body
LE: loop exit
PB: predicated region body
PF: predicated region fallthrough
CT: control target
= control target key end

     0   :  { %s14491_s0 = inlined_call_operand.vmem [shape: f32[120,9], index: 0, kind: input, shape index: {}]   ;;  %s14492_s1 = inlined_call_operand.hbm [shape: bf16[18,320], index: 1, kind: input, shape index: {}]   ;;  %s14493_s2 = inlined_call_operand.hbm [shape: f32[1,320], index: 2, kind: input, shape index: {}]   ;;  %s14494_s3 = inlined_call_operand.hbm [shape: f32[60,122], index: 3, kind: input, shape index: {}]   ;;  %s14495_s4 = inlined_call_operand.hbm [shape: f32[60,122], index: 4, kind: input, shape index: {}]   ;;  %s14496_s5 = inlined_call_operand.hbm [shape: bf16[320,384], index: 5, kind: input, shape index: {}]   ;;  %s14497_s6 = inlined_call_operand.hbm [shape: f32[1,384], index: 6, kind: input, shape index: {}]   ;;  %s14498_s7 = inlined_call_operand.hbm [shape: f32[30,62], index: 7, kind: input, shape index: {}]   ;;  %s14499_s8 = inlined_call_operand.hbm [shape: f32[30,62], index: 8, kind: input, shape index: {}]   ;;  %s14500_s9 = inlined_call_operand.hbm [shape: bf16[384,256], index: 9, kind: input, shape index: {}]   ;;  %s14501_s10 = inlined_call_operand.hbm [shape: f32[1,256], index: 10, kind: input, shape index: {}]   ;;  %s14502_s11 = inlined_call_operand.hbm [shape: f32[16,32], index: 11, kind: input, shape index: {}]   ;;  %s14503_s12 = inlined_call_operand.hbm [shape: f32[16,32], index: 12, kind: input, shape index: {}]   ;;  %s14504_s13 = inlined_call_operand.hbm [shape: bf16[1024,768], index: 13, kind: input, shape index: {}]   ;;  %s14505_s14 = inlined_call_operand.hbm [shape: f32[1,768], index: 14, kind: input, shape index: {}]   ;;  %s14506_s15 = inlined_call_operand.hbm [shape: f32[16,48], index: 15, kind: input, shape index: {}]   ;;  %s14507_s16 = inlined_call_operand.hbm [shape: f32[1,48], index: 16, kind: input, shape index: {}]   ;;  %s14508_s17 = inlined_call_operand.hbm [shape: f32[16,48], index: 17, kind: input, shape index: {}]   ;;  %s14509_s18 = inlined_call_operand.hbm [shape: f32[1,48], index: 18, kind: input, shape index: {}]   ;;  %s14510_s19 = inlined_call_operand.hbm [shape: f32[16,48], index: 19, kind: input, shape index: {}]   ;;  %s14511_s20 = inlined_call_operand.hbm [shape: f32[1,48], index: 20, kind: input, shape index: {}]   ;;  %s14512_s21 = inlined_call_operand.vmem [shape: f32[256,27], index: 21, kind: input, shape index: {}]   ;;  %s14513_s22 = inlined_call_operand.hbm [shape: f32[1,27], index: 22, kind: input, shape index: {}]   ;;  %s14514_s23 = inlined_call_operand.hbm [shape: f32[2,256], index: 23, kind: output, shape index: {0}]   ;;  %s14515_s24 = inlined_call_operand.hbm [shape: f32[2,27], index: 24, kind: output, shape index: {1}]  }
   0x1   :  { %14519 = sst [smem:[#allocation56_spill]] %s14491_s0 }
   0x2   :  { %14520 = sst [smem:[#allocation57_spill]] %s14492_s1 }
   0x3   :  { %14521 = sst [smem:[#allocation58_spill]] %s14493_s2 }
   0x4   :  { %14522 = sst [smem:[#allocation59_spill]] %s14494_s3 }
   0x5   :  { %14523 = sst [smem:[#allocation60_spill]] %s14495_s4 }
   0x6   :  { %14524 = sst [smem:[#allocation61_spill]] %s14496_s5 }
   0x7   :  { %14525 = sst [smem:[#allocation62_spill]] %s14497_s6 }
   0x8   :  { %14526 = sst [smem:[#allocation63_spill]] %s14498_s7 }
   0x9   :  { %14527 = sst [smem:[#allocation64_spill]] %s14499_s8 }
   0xa   :  { %14528 = sst [smem:[#allocation65_spill]] %s14515_s24 }
   0xb   :  { %30 = vsyncpa [#allocation3], 0 }
   0xc   :  { %31 = vsyncpa [#allocation6], 0 }
   0xd   :  { %32 = vsyncpa [#allocation9], 0 }
   0xe   :  { %33 = vsyncpa [#allocation12], 0 }
   0xf   :  { %34 = vsyncpa [#allocation15], 0 }
  0x10   :  { %35 = vsyncpa [#allocation18], 0 }
  0x11   :  { %36 = vsyncpa [#allocation21], 0 }
  0x12   :  { %37 = vsyncpa [#allocation24], 0 }
  0x13   :  { %38 = vsyncpa [#allocation27], 0 }
  0x14   :  { %39 = vsyncpa [#allocation30], 0 }
  0x15   :  { %40 = vsyncpa [#allocation33], 0 }
  0x16   :  { %41 = vsyncpa [#allocation4], 0  ;;  %s14529_s27 = sld [smem:[#allocation58_spill]] }
  0x1c   :  { %s63_s28 = sshll.u32 %s14529_s27, 4  ;;  %s64_s28 = int_to_ptr.hbm [resolvable:$true] %s63_s28 }
  0x1d   :  { %42 = vsyncpa [#allocation37], 0  ;;  %s12367_s6 = smov [#allocation5]   ;;  %s14530_s7 = sld [smem:[#allocation60_spill]] }
  0x1e   :  { %s65_s2 = sshll.u32 %s12367_s6, 4  ;;  %s12368_s3 = smov [#allocation8]   ;;  %s66_s2 = int_to_ptr.vmem [resolvable:$true] %s65_s2 }
  0x1f   :  { %68 = dma.hbm_to_vmem [thread:$0]  %s64_s28, 48, %s66_s2, [#allocation6]  }
  0x20   :  { %s88_s25 = sshll.u32 %s12368_s3, 4  ;;  %s14531_s1 = sld [smem:[#allocation62_spill]]  ;;  %s89_s25 = int_to_ptr.vmem [resolvable:$true] %s88_s25 }
  0x21   :  { %s12369_s5 = smov 128   ;;  %s12370_s26 = smov 8  }
  0x22   :  { %s14532_s6 = sld [smem:[#allocation64_spill]]  ;;  %s12371_s29 = smov [#allocation11]  }
  0x23   :  { %s86_s30 = sshll.u32 %s14530_s7, 4  ;;  %s115_s0 = sshll.u32 %s12371_s29, 4  ;;  %s87_s30 = int_to_ptr.hbm [resolvable:$true] %s86_s30  ;;  %s116_s0 = int_to_ptr.vmem [resolvable:$true] %s115_s0 }
  0x24   :  { %94 = dma.hbm_to_vmem [thread:$0]  %s87_s30, 1024, %s89_s25, [#allocation9], %s12369_s5, %s12369_s5, %s12370_s26  }
  0x25   :  { %s12372_s7 = smov [#allocation14]   ;;  %s186_s27 = sshll.u32 %s14503_s12, 4  ;;  %s187_s27 = int_to_ptr.hbm [resolvable:$true] %s186_s27 }
  0x26   :  { %s113_s24 = sshll.u32 %s14531_s1, 4  ;;  %s138_s3 = sshll.u32 %s12372_s7, 4  ;;  %s114_s24 = int_to_ptr.hbm [resolvable:$true] %s113_s24  ;;  %s139_s3 = int_to_ptr.vmem [resolvable:$true] %s138_s3 }
  0x27   :  { %118 = dma.hbm_to_vmem [thread:$0]  %s114_s24, 48, %s116_s0, [#allocation12]  }
  0x28   :  { %s136_s2 = sshll.u32 %s14532_s6, 4  ;;  %s163_s1 = sshll.u32 %s14501_s10, 4  ;;  %s137_s2 = int_to_ptr.hbm [resolvable:$true] %s136_s2  ;;  %s164_s1 = int_to_ptr.hbm [resolvable:$true] %s163_s1 }
  0x29   :  { %144 = dma.hbm_to_vmem [thread:$0]  %s137_s2, 512, %s139_s3, [#allocation15], %s12369_s5, %s12369_s5, %s12370_s26  }
  0x2a   :  { %s12373_s28 = smov [#allocation17]   ;;  %s12374_s24 = smov [#allocation20]  }
  0x2b   :  { %s165_s6 = sshll.u32 %s12373_s28, 4  ;;  %s188_s29 = sshll.u32 %s12374_s24, 4  ;;  %s166_s6 = int_to_ptr.vmem [resolvable:$true] %s165_s6  ;;  %s189_s29 = int_to_ptr.vmem [resolvable:$true] %s188_s29 }
  0x2c   :  { %168 = dma.hbm_to_vmem [thread:$0]  %s164_s1, 32, %s166_s6, [#allocation18]  }
  0x2d   :  { %s213_s10 = sshll.u32 %s14505_s14, 4  ;;  %s237_s12 = sshll.u32 %s14507_s16, 4  ;;  %s214_s10 = int_to_ptr.hbm [resolvable:$true] %s213_s10  ;;  %s238_s12 = int_to_ptr.hbm [resolvable:$true] %s237_s12 }
  0x2e   :  { %194 = dma.hbm_to_vmem [thread:$0]  %s187_s27, 256, %s189_s29, [#allocation21], %s12369_s5, %s12369_s5, %s12370_s26  }
  0x2f   :  { %s12375_s8 = smov [#allocation23]   ;;  %s12376_s1 = smov [#allocation26]  }
  0x30   :  { %s215_s4 = sshll.u32 %s12375_s8, 4  ;;  %s239_s30 = sshll.u32 %s12376_s1, 4  ;;  %s216_s4 = int_to_ptr.vmem [resolvable:$true] %s215_s4  ;;  %s240_s30 = int_to_ptr.vmem [resolvable:$true] %s239_s30 }
  0x31   :  { %218 = dma.hbm_to_vmem [thread:$0]  %s214_s10, 96, %s216_s4, [#allocation24]  }
  0x32   :  { %s261_s14 = sshll.u32 %s14509_s18, 4  ;;  %s285_s24 = sshll.u32 %s14511_s20, 4  ;;  %s262_s14 = int_to_ptr.hbm [resolvable:$true] %s261_s14  ;;  %s286_s24 = int_to_ptr.hbm [resolvable:$true] %s285_s24 }
  0x33   :  { %242 = dma.hbm_to_vmem [thread:$0]  %s238_s12, 16, %s240_s30, [#allocation27]  }
  0x34   :  { %s12377_s29 = smov [#allocation29]   ;;  %s12378_s0 = smov [#allocation32]  }
  0x35   :  { %s263_s16 = sshll.u32 %s12377_s29, 4  ;;  %s287_s7 = sshll.u32 %s12378_s0, 4  ;;  %s264_s16 = int_to_ptr.vmem [resolvable:$true] %s263_s16  ;;  %s288_s7 = int_to_ptr.vmem [resolvable:$true] %s287_s7 }
  0x36   :  { %266 = dma.hbm_to_vmem [thread:$0]  %s262_s14, 16, %s264_s16, [#allocation30]  }
  0x37   :  { %s14533_s3 = sld [smem:[#allocation57_spill]]  ;;  %s12379_s18 = smov [#allocation2]  }
  0x38   :  { %290 = dma.hbm_to_vmem [thread:$0]  %s286_s24, 16, %s288_s7, [#allocation33]  }
  0x39   :  { %s51_s12 = sshll.u32 %s12379_s18, 4  ;;  %s14534_s20 = sld [smem:[#allocation59_spill]]  ;;  %s52_s12 = int_to_ptr.vmem [resolvable:$true] %s51_s12 }
  0x3a   :  { %s12380_s25 = smov 192   ;;  %s12381_s28 = smov 12  }
  0x3b   :  { %s12382_s14 = smov [#allocation7]   ;;  %s14535_s16 = sld [smem:[#allocation61_spill]] }
  0x3c   :  { %s75_s6 = sshll.u32 %s12382_s14, 4  ;;  %s14536_s10 = sld [smem:[#allocation63_spill]]  ;;  %s76_s6 = int_to_ptr.vmem [resolvable:$true] %s75_s6 }
  0x3d   :  { %s49_s8 = sshll.u32 %s14533_s3, 4  ;;  %s12383_s3 = smov [#allocation10]   ;;  %s50_s8 = int_to_ptr.hbm [resolvable:$true] %s49_s8 }
  0x3e   :  { %57 = dma.hbm_to_vmem [thread:$0]  %s50_s8, 576, %s52_s12, [#allocation3], %s12380_s25, %s12380_s25, %s12381_s28  }
  0x3f   :  { %s73_s30 = sshll.u32 %s14534_s20, 4  ;;  %s101_s18 = sshll.u32 %s12383_s3, 4  ;;  %s74_s30 = int_to_ptr.hbm [resolvable:$true] %s73_s30  ;;  %s102_s18 = int_to_ptr.vmem [resolvable:$true] %s101_s18 }
  0x40   :  { %81 = dma.hbm_to_vmem [thread:$0]  %s74_s30, 1024, %s76_s6, [#allocation6], %s12369_s5, %s12369_s5, %s12370_s26  }
  0x41   :  { %s99_s0 = sshll.u32 %s14535_s16, 4  ;;  %s12384_s8 = smov [#allocation13]   ;;  %s100_s0 = int_to_ptr.hbm [resolvable:$true] %s99_s0 }
  0x42   :  { %s123_s2 = sshll.u32 %s14536_s10, 4  ;;  %s125_s12 = sshll.u32 %s12384_s8, 4  ;;  %s124_s2 = int_to_ptr.hbm [resolvable:$true] %s123_s2  ;;  %s126_s12 = int_to_ptr.vmem [resolvable:$true] %s125_s12 }
  0x43   :  { %107 = dma.hbm_to_vmem [thread:$0]  %s100_s0, 7680, %s102_s18, [#allocation9], %s12380_s25, %s12380_s25, %s12381_s28  }
  0x44   :  { %s149_s20 = sshll.u32 %s14500_s9, 4  ;;  %s173_s6 = sshll.u32 %s14502_s11, 4  ;;  %s150_s20 = int_to_ptr.hbm [resolvable:$true] %s149_s20  ;;  %s174_s6 = int_to_ptr.hbm [resolvable:$true] %s173_s6 }
  0x45   :  { %131 = dma.hbm_to_vmem [thread:$0]  %s124_s2, 512, %s126_s12, [#allocation12], %s12369_s5, %s12369_s5, %s12370_s26  }
  0x46   :  { %s12385_s27 = smov [#allocation16]   ;;  %s12386_s25 = smov [#allocation19]  }
  0x47   :  { %s151_s29 = sshll.u32 %s12385_s27, 4  ;;  %s175_s9 = sshll.u32 %s12386_s25, 4  ;;  %s152_s29 = int_to_ptr.vmem [resolvable:$true] %s151_s29  ;;  %s176_s9 = int_to_ptr.vmem [resolvable:$true] %s175_s9 }
  0x48   :  { %157 = dma.hbm_to_vmem [thread:$0]  %s150_s20, 6144, %s152_s29, [#allocation15], %s12369_s5, %s12369_s5, %s12370_s26  }
  0x49   :  { %s199_s0 = sshll.u32 %s14504_s13, 4  ;;  %s12387_s11 = smov [#allocation22]   ;;  %s200_s0 = int_to_ptr.hbm [resolvable:$true] %s199_s0 }
  0x4a   :  { %181 = dma.hbm_to_vmem [thread:$0]  %s174_s6, 256, %s176_s9, [#allocation18], %s12369_s5, %s12369_s5, %s12370_s26  }
  0x4b   :  { %s201_s24 = sshll.u32 %s12387_s11, 4  ;;  %s223_s2 = sshll.u32 %s14506_s15, 4  ;;  %s202_s24 = int_to_ptr.vmem [resolvable:$true] %s201_s24  ;;  %s224_s2 = int_to_ptr.hbm [resolvable:$true] %s223_s2 }
  0x4c   :  { %s12388_s3 = smov 384   ;;  %s12389_s18 = smov 24  }
  0x4d   :  { %207 = dma.hbm_to_vmem [thread:$0]  %s200_s0, 49152, %s202_s24, [#allocation21], %s12388_s3, %s12388_s3, %s12389_s18  }
  0x4e   :  { %s12390_s8 = smov [#allocation25]   ;;  %s247_s1 = sshll.u32 %s14508_s17, 4  ;;  %s248_s1 = int_to_ptr.hbm [resolvable:$true] %s247_s1 }
  0x4f   :  { %s225_s12 = sshll.u32 %s12390_s8, 4  ;;  %s271_s15 = sshll.u32 %s14510_s19, 4  ;;  %s226_s12 = int_to_ptr.vmem [resolvable:$true] %s225_s12  ;;  %s272_s15 = int_to_ptr.hbm [resolvable:$true] %s271_s15 }
  0x50   :  { %231 = dma.hbm_to_vmem [thread:$0]  %s224_s2, 256, %s226_s12, [#allocation24], %s12369_s5, %s12369_s5, %s12370_s26  }
  0x51   :  { %s12391_s14 = smov [#allocation28]   ;;  %s12392_s27 = smov [#allocation31]  }
  0x52   :  { %s249_s6 = sshll.u32 %s12391_s14, 4  ;;  %s273_s17 = sshll.u32 %s12392_s27, 4  ;;  %s250_s6 = int_to_ptr.vmem [resolvable:$true] %s249_s6  ;;  %s274_s17 = int_to_ptr.vmem [resolvable:$true] %s273_s17 }
  0x53   :  { %255 = dma.hbm_to_vmem [thread:$0]  %s248_s1, 256, %s250_s6, [#allocation27], %s12369_s5, %s12369_s5, %s12370_s26  }
  0x54   :  { %s298_s9 = sshll.u32 %s14513_s22, 4  ;;  %s12393_s19 = smov [#allocation34]   ;;  %s299_s9 = int_to_ptr.hbm [resolvable:$true] %s298_s9 }
  0x55   :  { %279 = dma.hbm_to_vmem [thread:$0]  %s272_s15, 256, %s274_s17, [#allocation30], %s12369_s5, %s12369_s5, %s12370_s26  }
  0x56   :  { %s300_s28 = sshll.u32 %s12393_s19, 4  ;;  %s301_s28 = int_to_ptr.vmem [resolvable:$true] %s300_s28 }
  0x57   :  { %303 = dma.hbm_to_vmem [thread:$0]  %s299_s9, 16, %s301_s28, [#allocation33]  }
  0x58   :  { %12341 = dma.done.wait [#allocation3], 576  }
  0x59   :  { %12342 = vsyncadd [#allocation3], 4294966720 }
  0x5a   :  { %12343 = dma.done.wait [#allocation6], 1072  }
  0x5b   :  { %12344 = vsyncadd [#allocation6], 4294966224 }
  0x5c   :  { %12345 = dma.done.wait [#allocation9], 8704  }
  0x5d   :  { %12346 = vsyncadd [#allocation9], 4294958592 }
  0x5e   :  { %12347 = dma.done.wait [#allocation12], 560  }
  0x5f   :  { %12348 = vsyncadd [#allocation12], 4294966736 }
  0x60   :  { %12349 = dma.done.wait [#allocation15], 6656  }
  0x61   :  { %12350 = vsyncadd [#allocation15], 4294960640 }
  0x62   :  { %12351 = dma.done.wait [#allocation18], 288  }
  0x63   :  { %12352 = vsyncadd [#allocation18], 4294967008 }
  0x64   :  { %12353 = dma.done.wait [#allocation21], 49408  }
  0x65   :  { %12354 = vsyncadd [#allocation21], 4294917888 }
  0x66   :  { %12355 = dma.done.wait [#allocation24], 352  }
  0x67   :  { %12356 = vsyncadd [#allocation24], 4294966944 }
  0x68   :  { %12357 = dma.done.wait [#allocation27], 272  }
  0x69   :  { %12358 = vsyncadd [#allocation27], 4294967024 }
  0x6a   :  { %12359 = dma.done.wait [#allocation30], 272  }
  0x6b   :  { %12360 = vsyncadd [#allocation30], 4294967024 }
  0x6c   :  { %12361 = dma.done.wait [#allocation33], 32  }
  0x6d   :  { %12362 = vsyncadd [#allocation33], 4294967264  ;;  %s14537_s26 = sld [smem:[#allocation56_spill]]  ;;  %vm460_vm0 = vcmask 1043456   ;;  %s12394_s2 = smov 9   ;;  %vm435_vm1 = vcmask 1040384  }
  0x6e   :  { %vm503_vm2 = vcmask 1044480   ;;  %v408_v47 = vld [vmem:[#allocation2 + $0x18] sm:$0x11]  ;;  %v409_v54 = vld [vmem:[#allocation2 + $0x20] sm:$0x1]  ;;  %vm487_vm3 = vcmask 72704   ;;  %vm8947_vm8 = vmneg %vm435_vm1 }
  0x6f   :  { %v638_v50 = vunpack.c.l.b16 %v408_v47  ;;  %v640_v55 = vunpack.c.l.b16 %v409_v54  ;;  %v8637_v56 = vld [vmem:[#allocation2] sm:$0xf]  ;;  %v10826_v57 = vld [vmem:[#allocation2 + $0x8] sm:$0xf0]  ;;  %vm650_vm4 = vcmask 146432   ;;  %vm1033_vm5 = vcmask 1041408  }
  0x70   :  { %v8638_v58 = vor.u32 %v10826_v57, %v8637_v56  ;;  %vm927_vm6 = vcmask 785408   ;;  %vm1008_vm7 = vcmask 998400   ;;  %s12396_s0 = smov 32   ;;  %vm12397_vm9 = vmmov 1   ;;  %s12398_s11 = smov 64  }
  0x71   :  { %v644_v51 = vpack.c.b16 %v638_v50, %v638_v50  ;;  %v646_v59 = vpack.c.b16 %v640_v55, %v640_v55  ;;  %vm13175_vm10 = vmpackc.low %vm12397_vm9, %vm8947_vm8  ;;  %vm1411_vm11 = vcmask 1042432   ;;  %vm1365_vm12 = vcmask 1045504   ;;  %s12400_s24 = smov 112   ;;  %s12401_s7 = smov 16  }
  0x72   :  { %vm1494_vm13 = vcmask 1046528   ;;  %vm1386_vm14 = vcmask 261120   ;;  %vm1873_vm15 = vcmask 523264   ;;  %s12402_s10 = smov 48   ;;  %s8599_s15 = sshll.u32 %s14514_s23, 4  ;;  %s8600_s15 = int_to_ptr.hbm [resolvable:$true] %s8599_s15 }
  0x73   :  { %v12627_v0 = vld [vmem:[%s14537_s26 + $0x10] sm:$0xff]  ;;  %v12632_v1 = vld [vmem:[%s14537_s26 + $0x18] sm:$0xff]  ;;  %v12637_v2 = vld [vmem:[%s14537_s26 + $0x68] sm:$0xff]  ;;  %v676_v53 = vsel %vm435_vm1, %v644_v51, 0  ;;  %v682_v62 = vsel %vm435_vm1, %v646_v59, 0  ;;  %s12404_s14 = smov [#allocation35]  }
  0x74   :  { %v11371_v3 = vpack.i.bf16 %v12632_v1, %v12627_v0  ;;  %v12644_v4 = vld [vmem:[%s14537_s26 + $0x70] sm:$0xff]  ;;  %v539_v5 = vrot.slane %v12637_v2, 4  ;;  %v12652_v7 = vld [vmem:[%s14537_s26 + $0x20] sm:$0xff]  ;;  %v396_v8 = vld [vmem:[%s14537_s26 + $0x38] sm:$0xff]  ;;  %v515_v49 = vrot.slane %v12637_v2, 3  ;;  %11320 = vmatpush.bf16.msra.mxu1 %v676_v53  ;;  %690 = vmatpush.bf16.msra.mxu0 %v676_v53  ;;  %s8597_s6 = sshll.u32 %s12404_s14, 4  ;;  %s8598_s6 = int_to_ptr.vmem [resolvable:$true] %s8597_s6 }
  0x75   :  { %v541_v6 = vrot.slane %v12644_v4, 4  ;;  %v12660_v9 = vld [vmem:[%s14537_s26 + $0x40] sm:$0xff]  ;;  %v12667_v12 = vld [vmem:[%s14537_s26 + $0x28] sm:$0xff]  ;;  %v12672_v13 = vld [vmem:[%s14537_s26 + $0x50] sm:$0xff]  ;;  %v504_v16 = vrot.slane %v396_v8, 3  ;;  %v528_v18 = vrot.slane %v396_v8, 4  ;;  %788 = vmatpush.bf16.msra.mxu2 %v682_v62 }
  0x76   :  { %11372 = vrot.lane.b32.xlu1 %v11371_v3, %s12394_s2  ;;  %v12677_v14 = vld [vmem:[%s14537_s26 + $0x58] sm:$0xff]  ;;  %v505_v17 = vrot.slane %v12660_v9, 3  ;;  %v12683_v19 = vld [vmem:[%s14537_s26 + $0x60] sm:$0xff]  ;;  %v461_v20 = vsel %vm460_vm0, %v396_v8, 0.0  ;;  %v529_v21 = vrot.slane %v12660_v9, 4  ;;  %v449_v22 = vrot.slane %v396_v8, 7 }
  0x77   :  { %v542_v10 = vsel %vm460_vm0, %v539_v5, %v541_v6  ;;  %v544_v11 = vsel %vm460_vm0, %v541_v6, 0.0  ;;  %v395_v23 = vld [vmem:[%s14537_s26 + $0x30] sm:$0xff]  ;;  %v11376_v24 = vpack.i.bf16 %v12667_v12, %v12652_v7  ;;  %v533_v25 = vrot.slane %v12672_v13, 4  ;;  %v12697_v27 = vld [vmem:[%s14537_s26] sm:$0xff]  ;;  %v12702_v28 = vld [vmem:[%s14537_s26 + $0x8] sm:$0xff]  ;;  %s14550_s25 = sld [smem:[#allocation65_spill]] }
  0x78   :  { %v11361_v15 = vpack.i.bf16 %v544_v11, %v542_v10  ;;  %v447_v26 = vrot.slane %v395_v23, 7  ;;  %v530_v29 = vsel %vm460_vm0, %v528_v18, %v529_v21  ;;  %v535_v30 = vrot.slane %v12677_v14, 4  ;;  %v12714_v35 = vld [vmem:[%s14537_s26 + $0x48] sm:$0xff]  ;;  %11321 = vmatpush.bf16.msra.mxu1 %v8638_v58  ;;  %691 = vmatpush.bf16.msra.mxu0 %v8638_v58  ;;  %s12395_s26 = smov 96  }
  0x79   :  { %v537_v31 = vrot.slane %v12683_v19, 4  ;;  %v506_v32 = vsel %vm503_vm2, %v504_v16, %v505_v17  ;;  %v11381_v33 = vpack.i.bf16 %v461_v20, %v530_v29  ;;  %v11366_v36 = vpack.i.bf16 %v12702_v28, %v12697_v27  ;;  %v8645_v3 = vld [vmem:[#allocation2 + $0x8] sm:$0xf] }
  0x7a   :  { %11362 = vrot.lane.b32.xlu0 %v11361_v15, %s12394_s2  ;;  %v450_v34 = vsel %vm435_vm1, %v447_v26, %v449_v22  ;;  %v536_v37 = vsel %vm460_vm0, %v533_v25, %v535_v30  ;;  %v531_v39 = vrot.slane %v12714_v35, 4  ;;  %v445_v45 = vrot.slane %v12667_v12, 7 }
  0x7b   :  { %11382 = vrot.lane.b32.xlu2 %v11381_v33, %s12394_s2  ;;  %v538_v38 = vsel %vm460_vm0, %v535_v30, %v537_v31  ;;  %v540_v44 = vsel %vm460_vm0, %v537_v31, %v539_v5  ;;  %v517_v48 = vrot.slane %v12644_v4, 3  ;;  %v437_v60 = vrot.slane %v12702_v28, 7  ;;  %v10827_v5 = vld [vmem:[#allocation2 + $0x10] sm:$0xf0] }
  0x7c   :  { %v11391_v40 = vpack.i.bf16 %v538_v38, %v536_v37  ;;  %v532_v41 = vsel %vm460_vm0, %v529_v21, %v531_v39  ;;  %v534_v42 = vsel %vm460_vm0, %v531_v39, %v533_v25  ;;  %v448_v46 = vsel %vm435_vm1, %v445_v45, %v447_v26  ;;  %v10825_v25 = vld [vmem:[#allocation2 + $0x4] sm:$0xf]  ;;  %v8639_v26 = vld [vmem:[#allocation2 + $0xc] sm:$0xf0] }
  0x7d   :  { %v11386_v43 = vpack.i.bf16 %v534_v42, %v532_v41  ;;  %v12740_v52 = vsel %vm503_vm2, %v515_v49, %v517_v48  ;;  %v436_v61 = vrot.slane %v12697_v27, 7  ;;  %v511_v63 = vrot.slane %v12677_v14, 3  ;;  %s8610_s23 = sshll.u32 %s14550_s25, 4  ;;  %s8611_s23 = int_to_ptr.hbm [resolvable:$true] %s8610_s23 }
  0x7e   :  { %11377 = vrot.lane.b32.xlu1 %v11376_v24, %s12394_s2  ;;  %v509_v2 = vrot.slane %v12672_v13, 3  ;;  %v8646_v6 = vor.u32 %v10827_v5, %v8645_v3  ;;  %v527_v11 = vsel %vm435_vm1, 0.0, %v506_v32  ;;  %v639_v20 = vunpack.c.h.b16 %v408_v47 }
  0x7f   :  { %v12758_v10 = vsel %vm435_vm1, %v436_v61, %v437_v60  ;;  %v8642_v30 = vor.u32 %v10825_v25, %v8639_v26  ;;  %v441_v32 = vrot.slane %v12632_v1, 7  ;;  %v439_v33 = vrot.slane %v12627_v0, 7 }
  0x80   :  { %v12753_v8 = vsel %vm503_vm2, %v509_v2, %v511_v63  ;;  %789 = vmatpush.bf16.msra.mxu2 %v8646_v6  ;;  %v513_v37 = vrot.slane %v12683_v19, 3  ;;  %v443_v58 = vrot.slane %v12652_v7, 7  ;;  %v459_v4 = vsel %vm435_vm1, 0.0, %v436_v61 }
  0x81   :  { %v440_v38 = vsel %vm435_vm1, %v437_v60, %v439_v33  ;;  %v442_v39 = vsel %vm435_vm1, %v439_v33, %v441_v32  ;;  %vm2235_vm0 = vcmask 506880  }
  0x82   :  { %11367 = vrot.lane.b32.xlu0 %v11366_v36, %s12394_s2  ;;  %v444_v7 = vsel %vm435_vm1, %v441_v32, %v443_v58 }
  0x83   :  { %475 = vrot.lane.b32.xlu2 %v395_v23, %s12394_s2  ;;  %v645_v23 = vpack.c.b16 %v639_v20, %v639_v20 }
  0x85   :  { %v679_v28 = vsel %vm435_vm1, %v645_v23, 0 }
  0x86   :  { %11392 = vrot.lane.b32.xlu1 %v11391_v40, %s12394_s2  ;;  %739 = vmatpush.bf16.msrb.mxu1 %v679_v28  ;;  %v516_v40 = vsel %vm503_vm2, %v513_v37, %v515_v49 }
  0x8a   :  { %11387 = vrot.lane.b32.xlu0 %v11386_v43, %s12394_s2  ;;  %740 = vmatpush.bf16.msrb.mxu1 %v8642_v30 }
  0x8b   :  { %556 = vrot.lane.b32.xlu2 %v540_v44, %s12394_s2  ;;  %s12403_s2 = smov 80  }
  0xd5   :  { %v11383_v15 = vpop.permute.xlu2 %11382 }
  0xd6   :  { %v11385_v16 = vunpack.i.h.bf16 %v11383_v15  ;;  %v11384_v18 = vunpack.i.l.bf16 %v11383_v15  ;;  %v507_v15 = vrot.slane %v12714_v35, 3 }
  0xd8   :  { %v12762_v21 = vsel %vm487_vm3, %v527_v11, %v11384_v18  ;;  %v495_v22 = vsel %vm487_vm3, %v450_v34, %v11385_v16  ;;  %v446_v11 = vsel %vm435_vm1, %v443_v58, %v445_v45  ;;  %v508_v35 = vsel %vm503_vm2, %v505_v17, %v507_v15 }
  0xd9   :  { %v586_v24 = vrot.slane %v12762_v21, 3 }
  0xdb   :  { %v610_v29 = vsel %vm503_vm2, %v495_v22, %v586_v24  ;;  %v514_v22 = vsel %vm503_vm2, %v511_v63, %v513_v37 }
  0xdd   :  { %v476_v31 = vpop.permute.xlu2 %475 }
  0xde   :  { %v494_v34 = vsel %vm487_vm3, %v448_v46, %v476_v31 }
  0xdf   :  { %v12773_v36 = vpack.c.bf16 %v610_v29, %v494_v34 }
  0xe5   :  { %v557_v42 = vpop.permute.xlu2 %556 }
  0xe6   :  { %v575_v1 = vsel %vm487_vm3, %v516_v40, %v557_v42 }
  0xe7   :  { %v595_v53 = vrot.slane %v575_v1, 3 }
  0xe8   :  { %v11373_v41 = vpop.permute.xlu1 %11372 }
  0xe9   :  { %v11375_v43 = vunpack.i.h.bf16 %v11373_v41  ;;  %v11374_v44 = vunpack.i.l.bf16 %v11373_v41 }
  0xeb   :  { %v490_v0 = vsel %vm487_vm3, %v440_v38, %v11374_v44  ;;  %v491_v46 = vsel %vm487_vm3, %v442_v39, %v11375_v43 }
  0xec   :  { %v11363_v47 = vpop.permute.xlu0 %11362  ;;  %v612_v50 = vpack.c.bf16 %v491_v46, %v490_v0 }
  0xed   :  { %v11365_v19 = vunpack.i.h.bf16 %v11363_v47  ;;  %v11364_v51 = vunpack.i.l.bf16 %v11363_v47 }
  0xef   :  { %v576_v54 = vsel %vm487_vm3, %v12740_v52, %v11364_v51  ;;  %v577_v49 = vsel %vm487_vm3, %v517_v48, %v11365_v19 }
  0xf0   :  { %v597_v55 = vrot.slane %v576_v54, 3  ;;  %v11378_v56 = vpop.permute.xlu1 %11377  ;;  %v599_v57 = vrot.slane %v577_v49, 3 }
  0xf1   :  { %v11380_v59 = vunpack.i.h.bf16 %v11378_v56  ;;  %v11379_v60 = vunpack.i.l.bf16 %v11378_v56 }
  0xf2   :  { %v600_v62 = vsel %vm503_vm2, %v597_v55, %v599_v57  ;;  %v598_v3 = vsel %vm503_vm2, %v595_v53, %v597_v55 }
  0xf3   :  { %v12790_v5 = vpack.c.bf16 %v599_v57, %v600_v62  ;;  %v492_v16 = vsel %vm487_vm3, %v444_v7, %v11379_v60  ;;  %v493_v18 = vsel %vm487_vm3, %v446_v11, %v11380_v59 }
  0xf4   :  { %v11368_v6 = vpop.permute.xlu0 %11367  ;;  %v613_v20 = vpack.c.bf16 %v493_v18, %v492_v16 }
  0xf5   :  { %v11370_v48 = vunpack.i.h.bf16 %v11368_v6  ;;  %v11369_v52 = vunpack.i.l.bf16 %v11368_v6  ;;  %8654 = vmatmul.msk.bf16.vlgmr.msra.gmra.mxu1 %vm650_vm4, %v12790_v5 }
  0xf7   :  { %v488_v27 = vsel %vm487_vm3, %v459_v4, %v11369_v52  ;;  %v489_v61 = vsel %vm487_vm3, %v12758_v10, %v11370_v48  ;;  %v510_v10 = vsel %vm503_vm2, %v507_v15, %v509_v2 }
  0xf8   :  { %v11393_v23 = vpop.permute.xlu1 %11392  ;;  %v611_v12 = vpack.c.bf16 %v489_v61, %v488_v27 }
  0xf9   :  { %v11395_v25 = vunpack.i.h.bf16 %v11393_v23  ;;  %v11394_v45 = vunpack.i.l.bf16 %v11393_v23 }
  0xfa   :  { %8647 = vmatmul.msk.bf16.vlgmr.msra.gmra.mxu0 %vm650_vm4, %v611_v12  ;;  %8663 = vmatmul.msk.bf16.vlgmr.msra.gmra.mxu2 %vm650_vm4, %v611_v12 }
  0xfb   :  { %v574_v14 = vsel %vm487_vm3, %v514_v22, %v11395_v25  ;;  %v573_v63 = vsel %vm487_vm3, %v12753_v8, %v11394_v45 }
  0xfc   :  { %v593_v26 = vrot.slane %v574_v14, 3  ;;  %v11388_v28 = vpop.permute.xlu0 %11387  ;;  %v591_v37 = vrot.slane %v573_v63, 3 }
  0xfd   :  { %v11390_v29 = vunpack.i.h.bf16 %v11388_v28  ;;  %v11389_v30 = vunpack.i.l.bf16 %v11388_v28 }
  0xfe   :  { %v596_v31 = vsel %vm503_vm2, %v593_v26, %v595_v53  ;;  %v594_v39 = vsel %vm503_vm2, %v591_v37, %v593_v26 }
  0xff   :  { %v572_v32 = vsel %vm487_vm3, %v510_v10, %v11390_v29  ;;  %v571_v9 = vsel %vm487_vm3, %v508_v35, %v11389_v30  ;;  %v617_v17 = vpack.c.bf16 %v598_v3, %v596_v31 }
 0x100   :  { %v589_v13 = vrot.slane %v572_v32, 3  ;;  %v587_v2 = vrot.slane %v571_v9, 3 }
 0x102   :  { %v588_v8 = vsel %vm503_vm2, %v586_v24, %v587_v2  ;;  %v590_v33 = vsel %vm503_vm2, %v587_v2, %v589_v13  ;;  %v592_v38 = vsel %vm503_vm2, %v589_v13, %v591_v37  ;;  %v410_v24 = vld [vmem:[#allocation5] sm:$0x7] }
 0x103   :  { %v615_v34 = vpack.c.bf16 %v590_v33, %v588_v8  ;;  %v616_v40 = vpack.c.bf16 %v594_v39, %v592_v38  ;;  %v12902_v22 = vperm.slane %v410_v24, 2  ;;  %v12904_v23 = vperm.slane %v410_v24, 1 }
 0x105   :  { %8655 = vmatmul.msk.bf16.vlgmr.msrb.gmra.mxu1 %vm650_vm4, %v611_v12 }
 0x10a   :  { %8648 = vmatmul.msk.bf16.gmra.mxu0 %vm650_vm4, %v612_v50  ;;  %8664 = vmatmul.msk.bf16.gmra.mxu2 %vm650_vm4, %v612_v50 }
 0x115   :  { %8656 = vmatmul.msk.bf16.gmra.mxu1 %vm650_vm4, %v612_v50 }
 0x11a   :  { %8649 = vmatmul.msk.bf16.gmra.mxu0 %vm650_vm4, %v613_v20  ;;  %8665 = vmatmul.msk.bf16.gmra.mxu2 %vm650_vm4, %v613_v20 }
 0x125   :  { %8657 = vmatmul.msk.bf16.gmra.mxu1 %vm650_vm4, %v613_v20 }
 0x12a   :  { %8650 = vmatmul.msk.bf16.gmra.mxu0 %vm650_vm4, %v12773_v36  ;;  %8666 = vmatmul.msk.bf16.gmra.mxu2 %vm650_vm4, %v12773_v36 }
 0x135   :  { %8658 = vmatmul.msk.bf16.gmra.mxu1 %vm650_vm4, %v12773_v36  ;;  %v12858_v36 = vperm.slane %v410_v24, 0 }
 0x13a   :  { %8651 = vmatmul.msk.bf16.gmra.mxu0 %vm650_vm4, %v615_v34  ;;  %8667 = vmatmul.msk.bf16.gmra.mxu2 %vm650_vm4, %v615_v34 }
 0x145   :  { %8659 = vmatmul.msk.bf16.gmra.mxu1 %vm650_vm4, %v615_v34 }
 0x14a   :  { %8652 = vmatmul.msk.bf16.gmra.mxu0 %vm650_vm4, %v616_v40  ;;  %8668 = vmatmul.msk.bf16.gmra.mxu2 %vm650_vm4, %v616_v40 }
 0x155   :  { %8660 = vmatmul.msk.bf16.gmra.mxu1 %vm650_vm4, %v616_v40 }
 0x15a   :  { %8653 = vmatmul.msk.bf16.gmra.mxu0 %vm650_vm4, %v617_v17  ;;  %8669 = vmatmul.msk.bf16.gmra.mxu2 %vm650_vm4, %v617_v17 }
 0x165   :  { %8661 = vmatmul.msk.bf16.gmra.mxu1 %vm650_vm4, %v617_v17 }
 0x16a   :  { %8670 = vmatmul.msk.bf16.gmra.mxu2 %vm650_vm4, %v12790_v5 }
 0x172   :  { %v12854_v21 = vpop.f32.mrf.mxu1 }
 0x175   :  { %8662 = vmatmul.msk.bf16.gmra.mxu1 %vm650_vm4, %v12790_v5 }
 0x177   :  { %v693_v41 = vpop.f32.mrf.mxu0 }
 0x178   :  { %v12861_v42 = vadd.f32 %v693_v41, %v12858_v36 }
 0x17a   :  { %v12863_v43 = vpop.f32.mrf.mxu1 }
 0x17d   :  { %v12865_v44 = vpop.f32.mrf.mxu2 }
 0x17f   :  { %v12867_v1 = vpop.f32.mrf.mxu0 }
 0x182   :  { %v12869_v0 = vpop.f32.mrf.mxu1 }
 0x185   :  { %v12871_v46 = vpop.f32.mrf.mxu2 }
 0x187   :  { %v698_v47 = vpop.f32.mrf.mxu0 }
 0x188   :  { %v12874_v50 = vadd.f32 %v698_v47, %v12858_v36 }
 0x18a   :  { %v12876_v19 = vpop.f32.mrf.mxu1 }
 0x18d   :  { %v12878_v51 = vpop.f32.mrf.mxu2 }
 0x18f   :  { %v12880_v53 = vpop.f32.mrf.mxu0 }
 0x192   :  { %v12882_v54 = vpop.f32.mrf.mxu1 }
 0x195   :  { %v12884_v49 = vpop.f32.mrf.mxu2 }
 0x197   :  { %v703_v55 = vpop.f32.mrf.mxu0 }
 0x198   :  { %v12887_v56 = vadd.f32 %v703_v55, %v12858_v36 }
 0x19a   :  { %v12889_v57 = vpop.f32.mrf.mxu1 }
 0x19d   :  { %v12891_v58 = vpop.f32.mrf.mxu2 }
 0x19f   :  { %v12893_v59 = vpop.f32.mrf.mxu0 }
 0x1a2   :  { %v12895_v60 = vpop.f32.mrf.mxu1 }
 0x1a5   :  { %v803_v62 = vpop.f32.mrf.mxu2 }
 0x1a7   :  { %v708_v3 = vpop.f32.mrf.mxu0 }
 0x1a8   :  { %v12898_v5 = vadd.f32 %v708_v3, %v12858_v36 }
 0x1aa   :  { %v754_v6 = vpop.f32.mrf.mxu1 }
 0x1ad   :  { %v806_v4 = vpop.f32.mrf.mxu2 }
 0x1b2   :  { %v757_v48 = vpop.f32.mrf.mxu1 }
 0x1b5   :  { %v12900_v52 = vpop.f32.mrf.mxu2 }
 0x1ba   :  { %v759_v7 = vpop.f32.mrf.mxu1 }
 0x1bd   :  { %v811_v11 = vpop.f32.mrf.mxu2 }
 0x1be   :  { %v812_v24 = vadd.f32 %v811_v11, %v12902_v22 }
 0x1c2   :  { %v762_v15 = vpop.f32.mrf.mxu1 }
 0x1c3   :  { %v12933_v38 = vadd.f32 %v762_v15, %v12904_v23  ;;  %v12950_v15 = vadd.f32 %v754_v6, %v12904_v23  ;;  %v12963_v6 = vadd.f32 %v759_v7, %v12904_v23 }
 0x1c5   :  { %v813_v16 = vpop.f32.mrf.mxu2  ;;  %v11426_v55 = vpack.i.bf16 %v812_v24, %v12933_v38 }
 0x1c6   :  { %v814_v47 = vadd.f32 %v813_v16, %v12902_v22  ;;  %v12954_v16 = vadd.f32 %v757_v48, %v12904_v23  ;;  %v12971_v48 = vadd.f32 %v12882_v54, %v12904_v23  ;;  %v802_v54 = vadd.f32 %v12891_v58, %v12902_v22 }
 0x1ca   :  { %v764_v18 = vpop.f32.mrf.mxu1 }
 0x1cb   :  { %v12936_v39 = vadd.f32 %v764_v18, %v12904_v23  ;;  %v804_v18 = vadd.f32 %v803_v62, %v12902_v22  ;;  %v797_v62 = vadd.f32 %v12878_v51, %v12902_v22 }
 0x1cd   :  { %v816_v27 = vpop.f32.mrf.mxu2  ;;  %v11421_v3 = vpack.i.bf16 %v814_v47, %v12936_v39 }
 0x1ce   :  { %v817_v11 = vadd.f32 %v816_v27, %v12902_v22  ;;  %v12977_v27 = vadd.f32 %v12889_v57, %v12904_v23  ;;  %v12997_v57 = vadd.f32 %v12869_v0, %v12904_v23  ;;  %v13011_v0 = vpop.f32.mrf.mxu0 }
 0x1d2   :  { %v767_v61 = vpop.f32.mrf.mxu1 }
 0x1d5   :  { %v818_v20 = vpop.f32.mrf.mxu2 }
 0x1d6   :  { %v819_v25 = vadd.f32 %v818_v20, %v12902_v22  ;;  %v12945_v20 = vadd.f32 %v767_v61, %v12904_v23  ;;  %v11441_v61 = vpack.i.bf16 %v804_v18, %v12950_v15 }
 0x1da   :  { %v769_v12 = vpop.f32.mrf.mxu1 }
 0x1db   :  { %v12908_v45 = vadd.f32 %v769_v12, %v12904_v23  ;;  %v11416_v12 = vpack.i.bf16 %v817_v11, %v12945_v20 }
 0x1dd   :  { %v11396_v35 = vpack.i.bf16 %v819_v25, %v12908_v45  ;;  %v821_v10 = vpop.f32.mrf.mxu2  ;;  %v807_v25 = vadd.f32 %v806_v4, %v12902_v22  ;;  %v809_v4 = vadd.f32 %v12900_v52, %v12902_v22  ;;  %v12989_v52 = vadd.f32 %v12895_v60, %v12904_v23 }
 0x1de   :  { %v822_v63 = vadd.f32 %v821_v10, %v12902_v22  ;;  %v799_v10 = vadd.f32 %v12884_v49, %v12902_v22  ;;  %v792_v49 = vadd.f32 %v12865_v44, %v12902_v22  ;;  %v13004_v60 = vadd.f32 %v12876_v19, %v12904_v23 }
 0x1df   :  { %11397 = vrot.lane.b32.xlu2 %v11396_v35, %s12395_s26  ;;  %v11436_v35 = vpack.i.bf16 %v807_v25, %v12954_v16  ;;  %v11431_v7 = vpack.i.bf16 %v809_v4, %v12963_v6 }
 0x1e0   :  { %v11451_v51 = vpack.i.bf16 %v799_v10, %v12977_v27  ;;  %v11466_v58 = vpack.i.bf16 %v792_v49, %v12997_v57 }
 0x1e2   :  { %v772_v14 = vpop.f32.mrf.mxu1 }
 0x1e3   :  { %v12914_v26 = vadd.f32 %v772_v14, %v12904_v23  ;;  %v11456_v14 = vpack.i.bf16 %v797_v62, %v12971_v48 }
 0x1e5   :  { %v11401_v28 = vpack.i.bf16 %v822_v63, %v12914_v26  ;;  %v823_v29 = vpop.f32.mrf.mxu2  ;;  %v11446_v63 = vpack.i.bf16 %v802_v54, %v12989_v52 }
 0x1e6   :  { %v824_v31 = vadd.f32 %v823_v29, %v12902_v22  ;;  %v13013_v29 = vpop.f32.mrf.mxu0 }
 0x1e7   :  { %11402 = vrot.lane.b32.xlu1 %v11401_v28, %s12395_s26  ;;  %v794_v28 = vadd.f32 %v12871_v46, %v12902_v22 }
 0x1e9   :  { %v11461_v44 = vpack.i.bf16 %v794_v28, %v13004_v60 }
 0x1ea   :  { %v774_v30 = vpop.f32.mrf.mxu1 }
 0x1eb   :  { %v12920_v32 = vadd.f32 %v774_v30, %v12904_v23 }
 0x1ed   :  { %v11406_v9 = vpack.i.bf16 %v824_v31, %v12920_v32  ;;  %v826_v17 = vpop.f32.mrf.mxu2 }
 0x1ee   :  { %v827_v2 = vadd.f32 %v826_v17, %v12902_v22  ;;  %v13015_v30 = vpop.f32.mrf.mxu0 }
 0x1ef   :  { %11407 = vrot.lane.b32.xlu0 %v11406_v9, %s12395_s26 }
 0x1f2   :  { %v777_v13 = vpop.f32.mrf.mxu1 }
 0x1f3   :  { %v12926_v8 = vadd.f32 %v777_v13, %v12904_v23 }
 0x1f5   :  { %v11411_v33 = vpack.i.bf16 %v827_v2, %v12926_v8  ;;  %v828_v34 = vpop.f32.mrf.mxu2 }
 0x1f6   :  { %v829_v37 = vadd.f32 %v828_v34, %v12902_v22  ;;  %v718_v31 = vpop.f32.mrf.mxu0 }
 0x1f7   :  { %11412 = vrot.lane.b32.xlu2 %v11411_v33, %s12395_s26 }
 0x1f8   :  { %925 = vrot.lane.b32.xlu1 %v829_v37, %s12395_s26 }
 0x1fa   :  { %v779_v40 = vpop.f32.mrf.mxu1 }
 0x1fb   :  { %v780_v41 = vadd.f32 %v779_v40, %v12904_v23 }
 0x1fd   :  { %923 = vrot.lane.b32.xlu0 %v780_v41, %s12395_s26 }
 0x1fe   :  { %v720_v9 = vpop.f32.mrf.mxu0 }
 0x1ff   :  { %11427 = vrot.lane.b32.xlu2 %v11426_v55, %s12395_s26  ;;  %v731_v55 = vadd.f32 %v12863_v43, %v12858_v36  ;;  %v721_v28 = vadd.f32 %v720_v9, %v12858_v36 }
 0x200   :  { %11422 = vrot.lane.b32.xlu1 %v11421_v3, %s12395_s26 }
 0x205   :  { %11417 = vrot.lane.b32.xlu0 %v11416_v12, %s12395_s26 }
 0x206   :  { %v723_v23 = vpop.f32.mrf.mxu0 }
 0x207   :  { %11442 = vrot.lane.b32.xlu2 %v11441_v61, %s12395_s26  ;;  %v729_v61 = vadd.f32 %v12854_v21, %v12858_v36  ;;  %v724_v54 = vadd.f32 %v723_v23, %v12858_v36  ;;  %v719_v23 = vadd.f32 %v718_v31, %v12858_v36 }
 0x208   :  { %11437 = vrot.lane.b32.xlu1 %v11436_v35, %s12395_s26 }
 0x20d   :  { %11432 = vrot.lane.b32.xlu0 %v11431_v7, %s12395_s26 }
 0x20f   :  { %11457 = vrot.lane.b32.xlu2 %v11456_v14, %s12395_s26 }
 0x210   :  { %11452 = vrot.lane.b32.xlu1 %v11451_v51, %s12395_s26 }
 0x215   :  { %11447 = vrot.lane.b32.xlu0 %v11446_v63, %s12395_s26 }
 0x218   :  { %11467 = vrot.lane.b32.xlu1 %v11466_v58, %s12395_s26 }
 0x21d   :  { %11462 = vrot.lane.b32.xlu0 %v11461_v44, %s12395_s26 }
 0x239   :  { %v11398_v17 = vpop.permute.xlu2 %11397 }
 0x23a   :  { %v11400_v18 = vunpack.i.h.bf16 %v11398_v17  ;;  %v11399_v62 = vunpack.i.l.bf16 %v11398_v17 }
 0x23c   :  { %v13044_v21 = vmax.f32 %v12908_v45, %v11400_v18  ;;  %v939_v58 = vsel %vm927_vm6, %v11399_v62, %v11400_v18 }
 0x251   :  { %v11413_v13 = vpop.permute.xlu2 %11412 }
 0x252   :  { %v11415_v33 = vunpack.i.h.bf16 %v11413_v13  ;;  %v11414_v37 = vunpack.i.l.bf16 %v11413_v13 }
 0x254   :  { %v13022_v40 = vmax.f32 %v12926_v8, %v11415_v33  ;;  %v942_v8 = vsel %vm927_vm6, %v11414_v37, %v11415_v33  ;;  %v998_v33 = vmax.f32 %v721_v28, %v939_v58 }
 0x255   :  { %v1004_v14 = vmax.f32 %v729_v61, %v942_v8 }
 0x259   :  { %v11403_v19 = vpop.permute.xlu1 %11402  ;;  %v11428_v35 = vpop.permute.xlu2 %11427 }
 0x25a   :  { %v11405_v24 = vunpack.i.h.bf16 %v11403_v19  ;;  %v11404_v12 = vunpack.i.l.bf16 %v11403_v19  ;;  %v11430_v17 = vunpack.i.h.bf16 %v11428_v35  ;;  %v11429_v19 = vunpack.i.l.bf16 %v11428_v35 }
 0x25c   :  { %v13036_v7 = vmax.f32 %v12914_v26, %v11405_v24  ;;  %v940_v51 = vsel %vm927_vm6, %v11404_v12, %v11405_v24  ;;  %v716_v24 = vadd.f32 %v13015_v30, %v12858_v36  ;;  %v13068_v30 = vmax.f32 %v12933_v38, %v11430_v17 }
 0x25d   :  { %v1000_v45 = vmax.f32 %v724_v54, %v940_v51 }
 0x261   :  { %v11408_v2 = vpop.permute.xlu0 %11407 }
 0x262   :  { %v11410_v46 = vunpack.i.h.bf16 %v11408_v2  ;;  %v11409_v47 = vunpack.i.l.bf16 %v11408_v2 }
 0x264   :  { %v13028_v11 = vmax.f32 %v12920_v32, %v11410_v46  ;;  %v941_v32 = vsel %vm927_vm6, %v11409_v47, %v11410_v46  ;;  %v11443_v47 = vpop.permute.xlu2 %11442 }
 0x265   :  { %v11445_v8 = vunpack.i.h.bf16 %v11443_v47  ;;  %v11444_v61 = vunpack.i.l.bf16 %v11443_v47 }
 0x267   :  { %v933_v51 = vsel %vm927_vm6, %v11444_v61, %v11445_v8  ;;  %v10849_v61 = vld [vmem:[#allocation10 + $0xac] sm:$0xf] }
 0x26a   :  { %v926_v34 = vpop.permute.xlu1 %925 }
 0x26b   :  { %v13017_v22 = vmax.f32 %v780_v41, %v926_v34  ;;  %v725_v41 = vpop.f32.mrf.mxu0 }
 0x26c   :  { %v726_v10 = vadd.f32 %v725_v41, %v12858_v36  ;;  %v11458_v54 = vpop.permute.xlu2 %11457 }
 0x26d   :  { %8698 = vmatpush.msk.msra.mxu1 %vm1033_vm5, %v13017_v22  ;;  %v11460_v28 = vunpack.i.h.bf16 %v11458_v54 }
 0x26e   :  { %v1002_v26 = vmax.f32 %v726_v10, %v941_v32 }
 0x26f   :  { %v924_v3 = vpop.permute.xlu0 %923  ;;  %1188 = vmatpush.msra.mxu1 %v13022_v40 }
 0x270   :  { %v943_v25 = vsel %vm927_vm6, %v924_v3, %v926_v34  ;;  %v936_v3 = vsel %vm927_vm6, %v11429_v19, %v11430_v17  ;;  %v701_v19 = vadd.f32 %v12880_v53, %v12858_v36 }
 0x271   :  { %1189 = vmatpush.msra.mxu1 %v13028_v11  ;;  %v1006_v43 = vmax.f32 %v731_v55, %v943_v25 }
 0x272   :  { %v11423_v4 = vpop.permute.xlu1 %11422 }
 0x273   :  { %8671 = vmatpush.msk.msra.mxu3 %vm1033_vm5, %v1006_v43  ;;  %8689 = vmatpush.msk.msrb.mxu0 %vm1033_vm5, %v1006_v43  ;;  %v11425_v49 = vunpack.i.h.bf16 %v11423_v4  ;;  %v11424_v63 = vunpack.i.l.bf16 %v11423_v4 }
 0x274   :  { %1190 = vmatpush.msra.mxu1 %v13036_v7 }
 0x275   :  { %1041 = vmatpush.msra.mxu3 %v1004_v14  ;;  %1147 = vmatpush.msrb.mxu0 %v1004_v14  ;;  %v937_v9 = vsel %vm927_vm6, %v11424_v63, %v11425_v49  ;;  %v13061_v31 = vmax.f32 %v12936_v39, %v11425_v49  ;;  %v13088_v63 = vmax.f32 %v12950_v15, %v11445_v8  ;;  %v10850_v8 = vld [vmem:[#allocation10 + $0xb0] sm:$0xf0] }
 0x276   :  { %1191 = vmatpush.msra.mxu1 %v13044_v21  ;;  %v994_v41 = vmax.f32 %v716_v24, %v937_v9  ;;  %v981_v9 = vmax.f32 %v12971_v48, %v11460_v28 }
 0x277   :  { %v11418_v44 = vpop.permute.xlu0 %11417  ;;  %1042 = vmatpush.msra.mxu3 %v1002_v26  ;;  %1148 = vmatpush.msrb.mxu0 %v1002_v26 }
 0x278   :  { %v11420_v13 = vunpack.i.h.bf16 %v11418_v44  ;;  %v11419_v2 = vunpack.i.l.bf16 %v11418_v44  ;;  %v11459_v44 = vunpack.i.l.bf16 %v11458_v54  ;;  %v10843_v54 = vld [vmem:[#allocation10 + $0x7c] sm:$0xf] }
 0x279   :  { %1043 = vmatpush.msra.mxu3 %v1000_v45  ;;  %1149 = vmatpush.msrb.mxu0 %v1000_v45 }
 0x27a   :  { %v11438_v34 = vpop.permute.xlu1 %11437  ;;  %v13053_v46 = vmax.f32 %v12945_v20, %v11420_v13  ;;  %v938_v37 = vsel %vm927_vm6, %v11419_v2, %v11420_v13  ;;  %v714_v20 = vadd.f32 %v13013_v29, %v12858_v36  ;;  %v711_v29 = vadd.f32 %v13011_v0, %v12858_v36 }
 0x27b   :  { %1044 = vmatpush.msra.mxu3 %v998_v33  ;;  %1150 = vmatpush.msrb.mxu0 %v998_v33  ;;  %v996_v55 = vmax.f32 %v719_v23, %v938_v37  ;;  %v11440_v18 = vunpack.i.h.bf16 %v11438_v34  ;;  %v11439_v12 = vunpack.i.l.bf16 %v11438_v34  ;;  %v706_v0 = vadd.f32 %v12893_v59, %v12858_v36 }
 0x27c   :  { %1192 = vmatpush.msra.mxu1 %v13053_v46  ;;  %v992_v39 = vmax.f32 %v714_v20, %v936_v3  ;;  %v930_v33 = vsel %vm927_vm6, %v11459_v44, %v11460_v28  ;;  %v8759_v28 = vld [vmem:[#allocation10 + $0x6c] sm:$0xf0] }
 0x27d   :  { %1045 = vmatpush.msra.mxu3 %v996_v55  ;;  %1151 = vmatpush.msrb.mxu0 %v996_v55  ;;  %v934_v32 = vsel %vm927_vm6, %v11439_v12, %v11440_v18  ;;  %v13080_v14 = vmax.f32 %v12954_v16, %v11440_v18  ;;  %v986_v16 = vmax.f32 %v706_v0, %v933_v51  ;;  %v411_v18 = vld [vmem:[#allocation7] sm:$0xff]  ;;  %v8769_v51 = vld [vmem:[#allocation10 + $0x78] sm:$0xf] }
 0x27e   :  { %1193 = vmatpush.msra.mxu1 %v13061_v31  ;;  %v419_v12 = vld [vmem:[#allocation8] sm:$0xff] }
 0x27f   :  { %v11433_v25 = vpop.permute.xlu0 %11432  ;;  %1046 = vmatpush.msra.mxu3 %v994_v41  ;;  %1152 = vmatpush.msrb.mxu0 %v994_v41  ;;  %v10844_v0 = vld [vmem:[#allocation10 + $0x80] sm:$0xf0] }
 0x280   :  { %v11435_v35 = vunpack.i.h.bf16 %v11433_v25  ;;  %v11434_v43 = vunpack.i.l.bf16 %v11433_v25  ;;  %1194 = vmatpush.msra.mxu1 %v13068_v30  ;;  %v426_v25 = vld [vmem:[#allocation8 + $0x38] sm:$0xf] }
 0x281   :  { %1047 = vmatpush.msra.mxu3 %v992_v39  ;;  %1153 = vmatpush.msrb.mxu0 %v992_v39  ;;  %v8793_v39 = vld [vmem:[#allocation10 + $0xa8] sm:$0xf] }
 0x282   :  { %v11453_v62 = vpop.permute.xlu1 %11452  ;;  %v13074_v4 = vmax.f32 %v12963_v6, %v11435_v35  ;;  %v935_v38 = vsel %vm927_vm6, %v11434_v43, %v11435_v35  ;;  %v988_v6 = vmax.f32 %v12898_v5, %v934_v32  ;;  %v8794_v35 = vor.u32 %v10850_v8, %v8793_v39  ;;  %v8795_v43 = vld [vmem:[#allocation10 + $0xb4] sm:$0xf0] }
 0x283   :  { %v990_v10 = vmax.f32 %v711_v29, %v935_v38  ;;  %v11455_v26 = vunpack.i.h.bf16 %v11453_v62  ;;  %v11454_v49 = vunpack.i.l.bf16 %v11453_v62  ;;  %v8798_v29 = vor.u32 %v10849_v61, %v8795_v43  ;;  %v8781_v62 = vld [vmem:[#allocation10 + $0x90] sm:$0xf]  ;;  %v10846_v38 = vld [vmem:[#allocation10 + $0x94] sm:$0xf] }
 0x284   :  { %1195 = vmatpush.msra.mxu1 %v13074_v4  ;;  %1886 = vmatpush.bf16.msrb.mxu2 %v8794_v35 }
 0x285   :  { %1048 = vmatpush.msra.mxu3 %v990_v10  ;;  %1154 = vmatpush.msrb.mxu0 %v990_v10  ;;  %v931_v15 = vsel %vm927_vm6, %v11454_v49, %v11455_v26  ;;  %v13101_v23 = vmax.f32 %v12977_v27, %v11455_v26  ;;  %v696_v27 = vadd.f32 %v12867_v1, %v12858_v36  ;;  %v412_v36 = vld [vmem:[#allocation7 + $0x8] sm:$0xff]  ;;  %v413_v1 = vld [vmem:[#allocation7 + $0x10] sm:$0xff]  ;;  %v8783_v10 = vld [vmem:[#allocation10 + $0x9c] sm:$0xf0] }
 0x286   :  { %1196 = vmatpush.msra.mxu1 %v13080_v14  ;;  %v8771_v26 = vld [vmem:[#allocation10 + $0x84] sm:$0xf0] }
 0x287   :  { %v11448_v58 = vpop.permute.xlu0 %11447  ;;  %1049 = vmatpush.msra.mxu3 %v988_v6  ;;  %1155 = vmatpush.msrb.mxu0 %v988_v6  ;;  %v8770_v6 = vor.u32 %v10844_v0, %v8769_v51  ;;  %v8774_v49 = vor.u32 %v10843_v54, %v8771_v26 }
 0x288   :  { %v11450_v45 = vunpack.i.h.bf16 %v11448_v58  ;;  %v11449_v59 = vunpack.i.l.bf16 %v11448_v58  ;;  %1197 = vmatpush.msra.mxu1 %v13088_v63  ;;  %v10841_v58 = vld [vmem:[#allocation10 + $0x68] sm:$0xf0] }
 0x289   :  { %1050 = vmatpush.msra.mxu3 %v986_v16  ;;  %1156 = vmatpush.msrb.mxu0 %v986_v16  ;;  %v10840_v16 = vld [vmem:[#allocation10 + $0x64] sm:$0xf] }
 0x28a   :  { %v13092_v5 = vmax.f32 %v12989_v52, %v11450_v45  ;;  %v932_v17 = vsel %vm927_vm6, %v11449_v59, %v11450_v45  ;;  %v11468_v13 = vpop.permute.xlu1 %11467  ;;  %v982_v52 = vmax.f32 %v701_v19, %v931_v15  ;;  %v8762_v45 = vor.u32 %v10840_v16, %v8759_v28  ;;  %v8745_v59 = vld [vmem:[#allocation10 + $0x48] sm:$0xf]  ;;  %v8747_v19 = vld [vmem:[#allocation10 + $0x54] sm:$0xf0] }
 0x28b   :  { %v984_v2 = vmax.f32 %v12887_v56, %v932_v17  ;;  %v11470_v34 = vunpack.i.h.bf16 %v11468_v13  ;;  %v11469_v37 = vunpack.i.l.bf16 %v11468_v13  ;;  %v980_v56 = vmax.f32 %v12874_v50, %v930_v33  ;;  %v10837_v17 = vld [vmem:[#allocation10 + $0x4c] sm:$0xf]  ;;  %v10834_v33 = vld [vmem:[#allocation10 + $0x34] sm:$0xf] }
 0x28c   :  { %1198 = vmatpush.msra.mxu1 %v13092_v5  ;;  %v8750_v13 = vor.u32 %v10837_v17, %v8747_v19  ;;  %v8889_v17 = vld [vmem:[#allocation10 + $0x168] sm:$0xf]  ;;  %v10873_v19 = vld [vmem:[#allocation10 + $0x16c] sm:$0xf] }
 0x28d   :  { %1051 = vmatpush.msra.mxu3 %v984_v2  ;;  %1157 = vmatpush.msrb.mxu0 %v984_v2  ;;  %v928_v20 = vsel %vm927_vm6, %v11469_v37, %v11470_v34  ;;  %v977_v41 = vmax.f32 %v12997_v57, %v11470_v34  ;;  %v421_v57 = vld [vmem:[#allocation8 + $0x10] sm:$0xff]  ;;  %v8735_v34 = vld [vmem:[#allocation10 + $0x3c] sm:$0xf0] }
 0x28e   :  { %1199 = vmatpush.msra.mxu1 %v13101_v23  ;;  %v976_v50 = vmax.f32 %v12861_v42, %v928_v20  ;;  %v420_v42 = vld [vmem:[#allocation8 + $0x8] sm:$0xff]  ;;  %v8733_v2 = vld [vmem:[#allocation10 + $0x30] sm:$0xf]  ;;  %v8738_v37 = vor.u32 %v10834_v33, %v8735_v34  ;;  %v10828_v20 = vld [vmem:[#allocation10 + $0x4] sm:$0xf] }
 0x28f   :  { %v11463_v53 = vpop.permute.xlu0 %11462  ;;  %1052 = vmatpush.msra.mxu3 %v982_v52  ;;  %1158 = vmatpush.msrb.mxu0 %v982_v52  ;;  %v10875_v33 = vld [vmem:[#allocation10 + $0x178] sm:$0xf0] }
 0x290   :  { %v11465_v24 = vunpack.i.h.bf16 %v11463_v53  ;;  %v11464_v47 = vunpack.i.l.bf16 %v11463_v53  ;;  %1200 = vmatpush.msra.mxu1 %v981_v9  ;;  %v10832_v53 = vld [vmem:[#allocation10 + $0x20] sm:$0xf0] }
 0x291   :  { %1053 = vmatpush.msra.mxu3 %v980_v56  ;;  %1159 = vmatpush.msrb.mxu0 %v980_v56  ;;  %v10831_v56 = vld [vmem:[#allocation10 + $0x1c] sm:$0xf] }
 0x292   :  { %v979_v55 = vmax.f32 %v13004_v60, %v11465_v24  ;;  %v929_v3 = vsel %vm927_vm6, %v11464_v47, %v11465_v24  ;;  %v414_v60 = vld [vmem:[#allocation7 + $0x18] sm:$0xff]  ;;  %v8723_v47 = vld [vmem:[#allocation10 + $0x24] sm:$0xf0] }
 0x293   :  { %v978_v48 = vmax.f32 %v696_v27, %v929_v3  ;;  %v8726_v27 = vor.u32 %v10831_v56, %v8723_v47  ;;  %v10829_v3 = vld [vmem:[#allocation10 + $0x8] sm:$0xf0]  ;;  %v10871_v47 = vld [vmem:[#allocation10 + $0x158] sm:$0xf0] }
 0x294   :  { %1201 = vmatpush.msra.mxu1 %v979_v55 }
 0x295   :  { %1054 = vmatpush.msra.mxu3 %v978_v48  ;;  %1160 = vmatpush.msrb.mxu0 %v978_v48 }
 0x296   :  { %1202 = vmatpush.msra.mxu1 %v977_v41 }
 0x297   :  { %1055 = vmatpush.msra.mxu3 %v976_v50  ;;  %1161 = vmatpush.msrb.mxu0 %v976_v50 }
 0x298   :  { %8672 = vmatmul.msk.f32.vlgmr.msra.gmra.mxu3 %vm1008_vm7, %v411_v18  ;;  %8690 = vmatmul.msk.f32.vlgmr.msrb.gmra.mxu0 %vm1008_vm7, %v419_v12 }
 0x299   :  { %8680 = vmatpush.msk.msrb.mxu3 %vm1033_vm5, %v13017_v22  ;;  %8699 = vmatmul.msk.f32.vlgmr.msra.gmra.mxu1 %vm1008_vm7, %v419_v12  ;;  %v422_v22 = vld [vmem:[#allocation8 + $0x18] sm:$0xff] }
 0x29a   :  { %1973 = vmatpush.bf16.msrb.mxu1 %v8798_v29 }
 0x29b   :  { %1082 = vmatpush.msrb.mxu3 %v13022_v40  ;;  %v415_v40 = vld [vmem:[#allocation7 + $0x20] sm:$0xff] }
 0x29d   :  { %1083 = vmatpush.msrb.mxu3 %v13028_v11  ;;  %v423_v11 = vld [vmem:[#allocation8 + $0x20] sm:$0xff] }
 0x29f   :  { %1084 = vmatpush.msrb.mxu3 %v13036_v7  ;;  %v13143_v7 = vld [vmem:[#allocation7 + $0x28] sm:$0xff] }
 0x2a0   :  { %8673 = vmatmul.msk.f32.gmra.mxu3 %vm1008_vm7, %v412_v36  ;;  %8691 = vmatmul.msk.f32.gmra.mxu0 %vm1008_vm7, %v420_v42 }
 0x2a1   :  { %1085 = vmatpush.msrb.mxu3 %v13044_v21  ;;  %8700 = vmatmul.msk.f32.gmra.mxu1 %vm1008_vm7, %v420_v42  ;;  %v424_v21 = vld [vmem:[#allocation8 + $0x28] sm:$0xff] }
 0x2a3   :  { %1086 = vmatpush.msrb.mxu3 %v13053_v46  ;;  %v13149_v46 = vld [vmem:[#allocation7 + $0x30] sm:$0xff] }
 0x2a5   :  { %1087 = vmatpush.msrb.mxu3 %v13061_v31  ;;  %v425_v31 = vld [vmem:[#allocation8 + $0x30] sm:$0xff] }
 0x2a7   :  { %1088 = vmatpush.msrb.mxu3 %v13068_v30  ;;  %v13155_v30 = vld [vmem:[#allocation7 + $0x38] sm:$0xf] }
 0x2a8   :  { %8674 = vmatmul.msk.f32.gmra.mxu3 %vm1008_vm7, %v413_v1  ;;  %8692 = vmatmul.msk.f32.gmra.mxu0 %vm1008_vm7, %v421_v57 }
 0x2a9   :  { %1089 = vmatpush.msrb.mxu3 %v13074_v4  ;;  %8701 = vmatmul.msk.f32.gmra.mxu1 %vm1008_vm7, %v421_v57  ;;  %v10847_v4 = vld [vmem:[#allocation10 + $0x98] sm:$0xf0] }
 0x2aa   :  { %v8782_v32 = vor.u32 %v10847_v4, %v8781_v62 }
 0x2ab   :  { %1090 = vmatpush.msrb.mxu3 %v13080_v14  ;;  %v8786_v14 = vor.u32 %v10846_v38, %v8783_v10 }
 0x2ac   :  { %1887 = vmatpush.bf16.msrb.mxu2 %v8782_v32 }
 0x2ad   :  { %1091 = vmatpush.msrb.mxu3 %v13088_v63  ;;  %1974 = vmatpush.bf16.msrb.mxu1 %v8786_v14  ;;  %v8757_v63 = vld [vmem:[#allocation10 + $0x60] sm:$0xf] }
 0x2ae   :  { %v8758_v44 = vor.u32 %v10841_v58, %v8757_v63 }
 0x2af   :  { %1092 = vmatpush.msrb.mxu3 %v13092_v5  ;;  %v10838_v5 = vld [vmem:[#allocation10 + $0x50] sm:$0xf0] }
 0x2b0   :  { %8675 = vmatmul.msk.f32.gmra.mxu3 %vm1008_vm7, %v414_v60  ;;  %8693 = vmatmul.msk.f32.gmra.mxu0 %vm1008_vm7, %v422_v22  ;;  %v8746_v15 = vor.u32 %v10838_v5, %v8745_v59 }
 0x2b1   :  { %1093 = vmatpush.msrb.mxu3 %v13101_v23  ;;  %8702 = vmatmul.msk.f32.gmra.mxu1 %vm1008_vm7, %v422_v22  ;;  %v10835_v23 = vld [vmem:[#allocation10 + $0x38] sm:$0xf0] }
 0x2b2   :  { %1888 = vmatpush.bf16.msrb.mxu2 %v8770_v6  ;;  %1975 = vmatpush.bf16.msrb.mxu1 %v8774_v49  ;;  %v8734_v52 = vor.u32 %v10835_v23, %v8733_v2  ;;  %v8891_v2 = vld [vmem:[#allocation10 + $0x174] sm:$0xf0]  ;;  %v8897_v23 = vld [vmem:[#allocation10 + $0x170] sm:$0xf] }
 0x2b3   :  { %1094 = vmatpush.msrb.mxu3 %v981_v9  ;;  %v8721_v9 = vld [vmem:[#allocation10 + $0x18] sm:$0xf]  ;;  %v8898_v34 = vor.u32 %v10875_v33, %v8897_v23 }
 0x2b4   :  { %v8722_v24 = vor.u32 %v10832_v53, %v8721_v9 }
 0x2b5   :  { %1095 = vmatpush.msrb.mxu3 %v979_v55  ;;  %v8709_v55 = vld [vmem:[#allocation10] sm:$0xf] }
 0x2b6   :  { %1889 = vmatpush.bf16.msrb.mxu2 %v8758_v44  ;;  %1976 = vmatpush.bf16.msrb.mxu1 %v8762_v45  ;;  %v8710_v48 = vor.u32 %v10829_v3, %v8709_v55 }
 0x2b7   :  { %1096 = vmatpush.msrb.mxu3 %v977_v41  ;;  %v8711_v41 = vld [vmem:[#allocation10 + $0xc] sm:$0xf0] }
 0x2b8   :  { %8676 = vmatmul.msk.f32.gmra.mxu3 %vm1008_vm7, %v415_v40  ;;  %8694 = vmatmul.msk.f32.gmra.mxu0 %vm1008_vm7, %v423_v11  ;;  %v8714_v50 = vor.u32 %v10828_v20, %v8711_v41  ;;  %v8879_v20 = vld [vmem:[#allocation10 + $0x15c] sm:$0xf0]  ;;  %v10872_v41 = vld [vmem:[#allocation10 + $0x160] sm:$0xf0] }
 0x2b9   :  { %8703 = vmatmul.msk.f32.gmra.mxu1 %vm1008_vm7, %v423_v11 }
 0x2ba   :  { %1890 = vmatpush.bf16.msrb.mxu2 %v8746_v15  ;;  %1977 = vmatpush.bf16.msrb.mxu1 %v8750_v13  ;;  %v10874_v15 = vld [vmem:[#allocation10 + $0x170] sm:$0xf0] }
 0x2bb   :  { %v8890_v13 = vor.u32 %v10874_v15, %v8889_v17  ;;  %v10861_v17 = vld [vmem:[#allocation10 + $0x10c] sm:$0xf]  ;;  %v8843_v15 = vld [vmem:[#allocation10 + $0x114] sm:$0xf0] }
 0x2bd   :  { %1915 = vmatpush.bf16.msra.mxu3 %v8890_v13  ;;  %v8846_v13 = vor.u32 %v10861_v17, %v8843_v15 }
 0x2be   :  { %1891 = vmatpush.bf16.msrb.mxu2 %v8734_v52  ;;  %1978 = vmatpush.bf16.msrb.mxu1 %v8738_v37  ;;  %v8894_v52 = vor.u32 %v10873_v19, %v8891_v2  ;;  %v8849_v19 = vld [vmem:[#allocation10 + $0x110] sm:$0xf]  ;;  %v10863_v2 = vld [vmem:[#allocation10 + $0x118] sm:$0xf0] }
 0x2bf   :  { %v8850_v23 = vor.u32 %v10863_v2, %v8849_v19 }
 0x2c0   :  { %8677 = vmatmul.msk.f32.gmra.mxu3 %vm1008_vm7, %v13143_v7  ;;  %8695 = vmatmul.msk.f32.gmra.mxu0 %vm1008_vm7, %v424_v21 }
 0x2c1   :  { %8704 = vmatmul.msk.f32.gmra.mxu1 %vm1008_vm7, %v424_v21  ;;  %v14538_v21 = vmov 0 }
 0x2c2   :  { %1892 = vmatpush.bf16.msrb.mxu2 %v8722_v24  ;;  %1979 = vmatpush.bf16.msrb.mxu1 %v8726_v27  ;;  %v14539_v21 = vsel %vm13175_vm10, 4294967295, %v14538_v21  ;;  %v8877_v24 = vld [vmem:[#allocation10 + $0x150] sm:$0xf]  ;;  %v10870_v27 = vld [vmem:[#allocation10 + $0x154] sm:$0xf] }
 0x2c3   :  { %14540 = vst [vmem:[#allocation51_spill] sm:$0xff] %v14539_v21  ;;  %v8878_v3 = vor.u32 %v10871_v47, %v8877_v24  ;;  %v8831_v24 = vld [vmem:[#allocation10 + $0xfc] sm:$0xf0]  ;;  %v8837_v47 = vld [vmem:[#allocation10 + $0xf8] sm:$0xf] }
 0x2c5   :  { %1916 = vmatpush.bf16.msra.mxu3 %v8878_v3 }
 0x2c6   :  { %1893 = vmatpush.bf16.msrb.mxu2 %v8710_v48  ;;  %1980 = vmatpush.bf16.msrb.mxu1 %v8714_v50  ;;  %v8885_v48 = vld [vmem:[#allocation10 + $0x158] sm:$0xf] }
 0x2c8   :  { %8678 = vmatmul.msk.f32.gmra.mxu3 %vm1008_vm7, %v13149_v46  ;;  %8696 = vmatmul.msk.f32.gmra.mxu0 %vm1008_vm7, %v425_v31 }
 0x2c9   :  { %8705 = vmatmul.msk.f32.gmra.mxu1 %vm1008_vm7, %v425_v31 }
 0x2ca   :  { %2002 = vmatpush.bf16.msra.mxu2 %v8894_v52  ;;  %2089 = vmatpush.bf16.msra.mxu1 %v8898_v34  ;;  %v8829_v34 = vld [vmem:[#allocation10 + $0xf0] sm:$0xf] }
 0x2d0   :  { %8679 = vmatmul.msk.f32.gmra.mxu3 %vm1008_vm7, %v13155_v30  ;;  %8697 = vmatmul.msk.f32.gmra.mxu0 %vm1008_vm7, %v426_v25 }
 0x2d1   :  { %8706 = vmatmul.msk.f32.gmra.mxu1 %vm1008_vm7, %v426_v25 }
 0x2d8   :  { %8681 = vmatmul.msk.f32.vlgmr.msrb.gmra.mxu3 %vm1008_vm7, %v411_v18 }
 0x2e0   :  { %8682 = vmatmul.msk.f32.gmra.mxu3 %vm1008_vm7, %v412_v36 }
 0x2e8   :  { %8683 = vmatmul.msk.f32.gmra.mxu3 %vm1008_vm7, %v413_v1 }
 0x2f0   :  { %8684 = vmatmul.msk.f32.gmra.mxu3 %vm1008_vm7, %v414_v60 }
 0x2f8   :  { %8685 = vmatmul.msk.f32.gmra.mxu3 %vm1008_vm7, %v415_v40 }
 0x300   :  { %8686 = vmatmul.msk.f32.gmra.mxu3 %vm1008_vm7, %v13143_v7 }
 0x308   :  { %8687 = vmatmul.msk.f32.gmra.mxu3 %vm1008_vm7, %v13149_v46 }
 0x310   :  { %8688 = vmatmul.msk.f32.gmra.mxu3 %vm1008_vm7, %v13155_v30  ;;  %vm5966_vm7 = vcmask 130048  }
 0x315   :  { %v1163_v18 = vpop.f32.mrf.mxu0 }
 0x316   :  { %v13212_v56 = vpop.f32.mrf.mxu1 }
 0x31b   :  { %v1057_v12 = vpop.f32.mrf.mxu3 }
 0x31c   :  { %v1228_v42 = vmax.f32 %v1057_v12, %v1163_v18  ;;  %v8882_v18 = vor.u32 %v10870_v27, %v8879_v20  ;;  %v8886_v12 = vor.u32 %v10872_v41, %v8885_v48  ;;  %v10860_v27 = vld [vmem:[#allocation10 + $0x100] sm:$0xf0] }
 0x31d   :  { %v1166_v36 = vpop.f32.mrf.mxu0  ;;  %v8838_v20 = vor.u32 %v10860_v27, %v8837_v47 }
 0x31e   :  { %v1341_v22 = vrot.slane %v1228_v42, 7  ;;  %2003 = vmatpush.bf16.msra.mxu2 %v8882_v18  ;;  %2090 = vmatpush.bf16.msra.mxu1 %v8886_v12  ;;  %v10856_v18 = vld [vmem:[#allocation10 + $0xe0] sm:$0xf0]  ;;  %v10855_v12 = vld [vmem:[#allocation10 + $0xdc] sm:$0xf] }
 0x323   :  { %v1060_v1 = vpop.f32.mrf.mxu3 }
 0x324   :  { %v1230_v57 = vmax.f32 %v1060_v1, %v1166_v36  ;;  %v8865_v1 = vld [vmem:[#allocation10 + $0x138] sm:$0xf] }
 0x325   :  { %v1169_v60 = vpop.f32.mrf.mxu0 }
 0x326   :  { %v11471_v40 = vpack.i.bf16 %v1230_v57, %v1228_v42  ;;  %v1343_v11 = vrot.slane %v1230_v57, 7  ;;  %v10868_v57 = vld [vmem:[#allocation10 + $0x140] sm:$0xf0] }
 0x328   :  { %v1344_v7 = vsel %vm435_vm1, %v1341_v22, %v1343_v11  ;;  %11472 = vrot.lane.b32.xlu2 %v11471_v40, %s12396_s0  ;;  %v8867_v40 = vld [vmem:[#allocation10 + $0x144] sm:$0xf0] }
 0x329   :  { %v13179_v46 = vpack.c.bf16 %v1344_v7, %v1341_v22  ;;  %v10867_v22 = vld [vmem:[#allocation10 + $0x13c] sm:$0xf] }
 0x32b   :  { %v1063_v31 = vpop.f32.mrf.mxu3  ;;  %8950 = vmatmul.msk.bf16.vlgmr.msrb.gmra.mxu2 %vm13175_vm10, %v13179_v46  ;;  %8958 = vmatmul.msk.bf16.vlgmr.msrb.gmra.mxu1 %vm13175_vm10, %v13179_v46 }
 0x32c   :  { %v13187_v35 = vmax.f32 %v1063_v31, %v1169_v60  ;;  %v8866_v60 = vor.u32 %v10868_v57, %v8865_v1  ;;  %v8819_v1 = vld [vmem:[#allocation10 + $0xe4] sm:$0xf0]  ;;  %v8825_v57 = vld [vmem:[#allocation10 + $0xe0] sm:$0xf] }
 0x32d   :  { %v1172_v30 = vpop.f32.mrf.mxu0 }
 0x32e   :  { %v1347_v14 = vrot.slane %v13187_v35, 7  ;;  %1917 = vmatpush.bf16.msra.mxu3 %v8866_v60  ;;  %v8822_v60 = vor.u32 %v10855_v12, %v8819_v1 }
 0x330   :  { %v1348_v28 = vsel %vm435_vm1, %v1343_v11, %v1347_v14  ;;  %v8873_v11 = vld [vmem:[#allocation10 + $0x140] sm:$0xf] }
 0x333   :  { %v1066_v25 = vpop.f32.mrf.mxu3 }
 0x334   :  { %v1234_v8 = vmax.f32 %v1066_v25, %v1172_v30  ;;  %v8870_v25 = vor.u32 %v10867_v22, %v8867_v40  ;;  %v10857_v22 = vld [vmem:[#allocation10 + $0xe8] sm:$0xf0] }
 0x335   :  { %v1175_v39 = vpop.f32.mrf.mxu0 }
 0x336   :  { %v1412_v62 = vrot.slane %v1234_v8, 5  ;;  %v1437_v32 = vrot.slane %v1234_v8, 6  ;;  %v1351_v10 = vrot.slane %v1234_v8, 7  ;;  %v1366_v0 = vsel %vm1365_vm12, %v1234_v8, 0.0  ;;  %2004 = vmatpush.bf16.msra.mxu2 %v8870_v25  ;;  %v10853_v25 = vld [vmem:[#allocation10 + $0xc8] sm:$0xf0] }
 0x338   :  { %v1352_v58 = vsel %vm435_vm1, %v1347_v14, %v1351_v10  ;;  %v10865_v10 = vld [vmem:[#allocation10 + $0x128] sm:$0xf0]  ;;  %v10864_v14 = vld [vmem:[#allocation10 + $0x124] sm:$0xf] }
 0x33b   :  { %v1069_v61 = vpop.f32.mrf.mxu3 }
 0x33c   :  { %v13189_v43 = vmax.f32 %v1069_v61, %v1175_v39  ;;  %v10869_v39 = vld [vmem:[#allocation10 + $0x148] sm:$0xf0] }
 0x33d   :  { %v1178_v29 = vpop.f32.mrf.mxu0 }
 0x33e   :  { %v1413_v4 = vrot.slane %v13189_v43, 5  ;;  %v1438_v38 = vrot.slane %v13189_v43, 6 }
 0x340   :  { %v1414_v51 = vsel %vm1411_vm11, %v1412_v62, %v1413_v4  ;;  %v1439_v54 = vsel %vm1033_vm5, %v1437_v32, %v1438_v38  ;;  %v8853_v32 = vld [vmem:[#allocation10 + $0x120] sm:$0xf] }
 0x341   :  { %v13198_v6 = vsel %vm435_vm1, 0.0, %v1414_v51  ;;  %v11481_v26 = vpack.i.bf16 %v1366_v0, %v1439_v54  ;;  %v8854_v54 = vor.u32 %v10865_v10, %v8853_v32 }
 0x342   :  { %v1495_v49 = vrot.slane %v13198_v6, 1  ;;  %v1207_v6 = vpop.f32.mrf.mxu1 }
 0x343   :  { %11482 = vrot.lane.b32.xlu1 %v11481_v26, %s12396_s0  ;;  %v1072_v63 = vpop.f32.mrf.mxu3  ;;  %v8855_v26 = vld [vmem:[#allocation10 + $0x12c] sm:$0xf0]  ;;  %1918 = vmatpush.bf16.msra.mxu3 %v8854_v54 }
 0x344   :  { %v1238_v16 = vmax.f32 %v1072_v63, %v1178_v29  ;;  %v1531_v44 = vsel %vm1494_vm13, %v1352_v58, %v1495_v49  ;;  %v8874_v29 = vor.u32 %v10869_v39, %v8873_v11  ;;  %v8861_v63 = vld [vmem:[#allocation10 + $0x128] sm:$0xf]  ;;  %v10866_v58 = vld [vmem:[#allocation10 + $0x130] sm:$0xf0]  ;;  %v8826_v11 = vor.u32 %v10857_v22, %v8825_v57  ;;  %v10852_v39 = vld [vmem:[#allocation10 + $0xc4] sm:$0xf] }
 0x345   :  { %v13207_v45 = vpack.c.bf16 %v1531_v44, %v1348_v28  ;;  %v1181_v5 = vpop.f32.mrf.mxu0  ;;  %v8841_v44 = vld [vmem:[#allocation10 + $0x108] sm:$0xf] }
 0x346   :  { %v1418_v59 = vrot.slane %v1238_v16, 5  ;;  %v1443_v9 = vrot.slane %v1238_v16, 6  ;;  %2091 = vmatpush.bf16.msra.mxu1 %v8874_v29  ;;  %v8858_v16 = vor.u32 %v10864_v14, %v8855_v26 }
 0x347   :  { %1899 = vmatmul.bf16.gmra.mxu2 %v13207_v45  ;;  %1986 = vmatmul.bf16.gmra.mxu1 %v13207_v45 }
 0x348   :  { %v1419_v37 = vsel %vm1411_vm11, %v1413_v4, %v1418_v59  ;;  %v1444_v31 = vsel %vm1033_vm5, %v1438_v38, %v1443_v9  ;;  %2005 = vmatpush.bf16.msra.mxu2 %v8858_v16 }
 0x349   :  { %v1498_v50 = vrot.slane %v1419_v37, 1  ;;  %v10859_v37 = vld [vmem:[#allocation10 + $0xf8] sm:$0xf0] }
 0x34a   :  { %v1210_v41 = vpop.f32.mrf.mxu1 }
 0x34b   :  { %v1075_v53 = vpop.f32.mrf.mxu3  ;;  %v1499_v4 = vsel %vm1494_vm13, %v1495_v49, %v1498_v50  ;;  %v8862_v49 = vor.u32 %v10866_v58, %v8861_v63 }
 0x34c   :  { %v13214_v55 = vmax.f32 %v1075_v53, %v1181_v5  ;;  %2006 = vmatpush.bf16.msra.mxu2 %v8846_v13  ;;  %v8830_v53 = vor.u32 %v10859_v37, %v8829_v34 }
 0x34d   :  { %v1184_v61 = vpop.f32.mrf.mxu0  ;;  %2092 = vmatpush.bf16.msra.mxu1 %v8862_v49 }
 0x34e   :  { %v1422_v36 = vrot.slane %v13214_v55, 5  ;;  %v1447_v42 = vrot.slane %v13214_v55, 6  ;;  %v10883_v55 = vld [vmem:[#allocation10 + $0x1b8] sm:$0xf0] }
 0x350   :  { %v13219_v7 = vsel %vm1411_vm11, %v1418_v59, %v1422_v36  ;;  %v1448_v30 = vsel %vm1033_vm5, %v1443_v9, %v1447_v42  ;;  %v10862_v59 = vld [vmem:[#allocation10 + $0x110] sm:$0xf0] }
 0x351   :  { %v1504_v8 = vrot.slane %v13219_v7, 1  ;;  %v11496_v43 = vpack.i.bf16 %v1448_v30, %v1444_v31  ;;  %v8842_v5 = vor.u32 %v10862_v59, %v8841_v44  ;;  %v10858_v9 = vld [vmem:[#allocation10 + $0xf4] sm:$0xf]  ;;  %2093 = vmatpush.bf16.msra.mxu1 %v8850_v23  ;;  %v8805_v30 = vld [vmem:[#allocation10 + $0xc0] sm:$0xf] }
 0x352   :  { %v8834_v3 = vor.u32 %v10858_v9, %v8831_v24  ;;  %v8806_v29 = vor.u32 %v10853_v25, %v8805_v30 }
 0x353   :  { %11497 = vrot.lane.b32.xlu1 %v11496_v43, %s12396_s0  ;;  %v1078_v62 = vpop.f32.mrf.mxu3  ;;  %v1505_v38 = vsel %vm1494_vm13, %v1498_v50, %v1504_v8  ;;  %1919 = vmatpush.bf16.msra.mxu3 %v8842_v5  ;;  %v8817_v50 = vld [vmem:[#allocation10 + $0xd8] sm:$0xf] }
 0x354   :  { %v13233_v51 = vmax.f32 %v1078_v62, %v1184_v61  ;;  %v13235_v0 = vpack.c.bf16 %v1505_v38, %v1499_v4  ;;  %2007 = vmatpush.bf16.msra.mxu2 %v8834_v3  ;;  %v8807_v62 = vld [vmem:[#allocation10 + $0xcc] sm:$0xf0]  ;;  %v8813_v4 = vld [vmem:[#allocation10 + $0xc8] sm:$0xf]  ;;  %v10854_v38 = vld [vmem:[#allocation10 + $0xd0] sm:$0xf0] }
 0x355   :  { %2094 = vmatpush.bf16.msra.mxu1 %v8838_v20  ;;  %v8810_v7 = vor.u32 %v10852_v39, %v8807_v62  ;;  %v8814_v10 = vor.u32 %v10854_v38, %v8813_v4 }
 0x356   :  { %v1426_v28 = vrot.slane %v13233_v51, 5 }
 0x357   :  { %1904 = vmatmul.bf16.gmra.mxu2 %v13235_v0  ;;  %1991 = vmatmul.bf16.gmra.mxu1 %v13235_v0 }
 0x358   :  { %v1427_v52 = vsel %vm1411_vm11, %v1422_v36, %v1426_v28  ;;  %1920 = vmatpush.bf16.msra.mxu3 %v8830_v53  ;;  %v8818_v36 = vor.u32 %v10856_v18, %v8817_v50  ;;  %2008 = vmatpush.bf16.msra.mxu2 %v8822_v60 }
 0x359   :  { %v1510_v48 = vrot.slane %v1427_v52, 1  ;;  %2095 = vmatpush.bf16.msra.mxu1 %v8826_v11 }
 0x35b   :  { %v1098_v33 = vpop.f32.mrf.mxu3  ;;  %v1511_v40 = vsel %vm1494_vm13, %v1504_v8, %v1510_v48 }
 0x35c   :  { %1921 = vmatpush.bf16.msra.mxu3 %v8818_v36  ;;  %v1229_v61 = vmax.f32 %v1098_v33, %v13212_v56  ;;  %v13245_v32 = vpack.c.bf16 %v1510_v48, %v1511_v40  ;;  %2009 = vmatpush.bf16.msra.mxu2 %v8810_v7  ;;  %v1213_v56 = vpop.f32.mrf.mxu1 }
 0x35d   :  { %2096 = vmatpush.bf16.msra.mxu1 %v8814_v10 }
 0x35e   :  { %v1342_v52 = vrot.slane %v1229_v61, 7 }
 0x360   :  { %1922 = vmatpush.bf16.msra.mxu3 %v8806_v29  ;;  %v1364_v3 = vsel %vm435_vm1, 0.0, %v1342_v52 }
 0x363   :  { %v1101_v31 = vpop.f32.mrf.mxu3 }
 0x364   :  { %v1231_v43 = vmax.f32 %v1101_v31, %v1207_v6  ;;  %v1216_v16 = vpop.f32.mrf.mxu1 }
 0x366   :  { %v11476_v8 = vpack.i.bf16 %v1231_v43, %v1229_v61  ;;  %v1345_v26 = vrot.slane %v1231_v43, 7  ;;  %v1451_v61 = vrot.slane %v13233_v51, 6 }
 0x367   :  { %1909 = vmatmul.bf16.gmra.mxu2 %v13245_v32  ;;  %1996 = vmatmul.bf16.gmra.mxu1 %v13245_v32 }
 0x368   :  { %11477 = vrot.lane.b32.xlu0 %v11476_v8, %s12396_s0  ;;  %v1346_v20 = vsel %vm435_vm1, %v1342_v52, %v1345_v26  ;;  %v1452_v38 = vsel %vm1033_vm5, %v1447_v42, %v1451_v61 }
 0x369   :  { %v1457_v8 = vsel %vm1365_vm12, %v1452_v38, 0.0 }
 0x36b   :  { %v1104_v14 = vpop.f32.mrf.mxu3 }
 0x36c   :  { %v1233_v54 = vmax.f32 %v1104_v14, %v1210_v41  ;;  %v1219_v19 = vpop.f32.mrf.mxu1  ;;  %v8937_v14 = vld [vmem:[#allocation10 + $0x1c8] sm:$0xf] }
 0x36e   :  { %v1349_v63 = vrot.slane %v1233_v54, 7 }
 0x370   :  { %v13251_v58 = vsel %vm435_vm1, %v1345_v26, %v1349_v63 }
 0x373   :  { %v1107_v6 = vpop.f32.mrf.mxu3 }
 0x374   :  { %v1235_v49 = vmax.f32 %v1107_v6, %v1213_v56  ;;  %v1222_v12 = vpop.f32.mrf.mxu1 }
 0x376   :  { %v1353_v28 = vrot.slane %v1235_v49, 7  ;;  %v1367_v44 = vsel %vm1365_vm12, %v1235_v49, 0.0  ;;  %v1415_v13 = vrot.slane %v1235_v49, 5  ;;  %v1440_v33 = vrot.slane %v1235_v49, 6  ;;  %v10880_v49 = vld [vmem:[#allocation10 + $0x1a0] sm:$0xf0] }
 0x377   :  { %v11491_v59 = vpack.i.bf16 %v1233_v54, %v1367_v44  ;;  %v10886_v54 = vld [vmem:[#allocation10 + $0x1d0] sm:$0xf0] }
 0x378   :  { %v13255_v5 = vsel %vm435_vm1, %v1349_v63, %v1353_v28  ;;  %v8938_v26 = vor.u32 %v10886_v54, %v8937_v14  ;;  %v8925_v63 = vld [vmem:[#allocation10 + $0x1b0] sm:$0xf]  ;;  %v10845_v14 = vld [vmem:[#allocation10 + $0x88] sm:$0xf0] }
 0x379   :  { %11492 = vrot.lane.b32.xlu0 %v11491_v59, %s12396_s0  ;;  %v8926_v6 = vor.u32 %v10883_v55, %v8925_v63 }
 0x37a   :  { %1948 = vmatpush.bf16.msra.mxu0 %v8938_v26 }
 0x37b   :  { %v1110_v17 = vpop.f32.mrf.mxu3 }
 0x37c   :  { %v1237_v15 = vmax.f32 %v1110_v17, %v1216_v16  ;;  %v1225_v25 = vpop.f32.mrf.mxu1  ;;  %v8913_v16 = vld [vmem:[#allocation10 + $0x198] sm:$0xf] }
 0x37d   :  { %v8914_v59 = vor.u32 %v10880_v49, %v8913_v16  ;;  %v10842_v16 = vld [vmem:[#allocation10 + $0x70] sm:$0xf0] }
 0x37e   :  { %v1416_v2 = vrot.slane %v1237_v15, 5  ;;  %v1441_v23 = vrot.slane %v1237_v15, 6  ;;  %1949 = vmatpush.bf16.msra.mxu0 %v8926_v6 }
 0x380   :  { %v1417_v34 = vsel %vm1411_vm11, %v1415_v13, %v1416_v2  ;;  %v1442_v37 = vsel %vm1033_vm5, %v1440_v33, %v1441_v23 }
 0x381   :  { %v11486_v9 = vpack.i.bf16 %v13187_v35, %v1442_v37  ;;  %v1436_v17 = vsel %vm435_vm1, 0.0, %v1417_v34 }
 0x382   :  { %v13261_v53 = vpop.permute.xlu2 %11472  ;;  %1950 = vmatpush.bf16.msra.mxu0 %v8914_v59  ;;  %v10885_v59 = vld [vmem:[#allocation10 + $0x1cc] sm:$0xf] }
 0x383   :  { %v11475_v24 = vunpack.i.h.bf16 %v13261_v53  ;;  %v11474_v47 = vunpack.i.l.bf16 %v13261_v53  ;;  %11487 = vrot.lane.b32.xlu2 %v11486_v9, %s12396_s0  ;;  %v1113_v27 = vpop.f32.mrf.mxu3  ;;  %v10851_v53 = vld [vmem:[#allocation10 + $0xb8] sm:$0xf0] }
 0x384   :  { %v1239_v48 = vmax.f32 %v1113_v27, %v1219_v19 }
 0x385   :  { %v1399_v41 = vsel %vm1386_vm14, %v1364_v3, %v11474_v47  ;;  %v1400_v35 = vsel %vm1386_vm14, %v1346_v20, %v11475_v24 }
 0x386   :  { %v1420_v50 = vrot.slane %v1239_v48, 5  ;;  %v1535_v18 = vpack.c.bf16 %v1400_v35, %v1399_v41  ;;  %v1445_v57 = vrot.slane %v1239_v48, 6 }
 0x388   :  { %v1421_v36 = vsel %vm1411_vm11, %v1416_v2, %v1420_v50  ;;  %1923 = vmatmul.bf16.vlgmr.msra.gmra.mxu3 %v1535_v18  ;;  %2010 = vmatmul.bf16.vlgmr.msra.gmra.mxu2 %v1535_v18  ;;  %v1446_v31 = vsel %vm1033_vm5, %v1441_v23, %v1445_v57  ;;  %v8901_v2 = vld [vmem:[#allocation10 + $0x180] sm:$0xf]  ;;  %v10877_v23 = vld [vmem:[#allocation10 + $0x188] sm:$0xf0] }
 0x389   :  { %2097 = vmatmul.bf16.vlgmr.msra.gmra.mxu1 %v1535_v18  ;;  %v8902_v52 = vor.u32 %v10877_v23, %v8901_v2  ;;  %v8945_v2 = vld [vmem:[#allocation10 + $0x1d0] sm:$0xf]  ;;  %v10887_v23 = vld [vmem:[#allocation10 + $0x1d8] sm:$0xf0] }
 0x38b   :  { %v1116_v1 = vpop.f32.mrf.mxu3  ;;  %1951 = vmatpush.bf16.msra.mxu0 %v8902_v52  ;;  %v8946_v52 = vor.u32 %v10887_v23, %v8945_v2 }
 0x38c   :  { %v1241_v60 = vmax.f32 %v1116_v1, %v1222_v12 }
 0x38d   :  { %2122 = vmatpush.bf16.msrb.mxu2 %v8946_v52 }
 0x38e   :  { %v1424_v22 = vrot.slane %v1241_v60, 5  ;;  %v1449_v40 = vrot.slane %v1241_v60, 6 }
 0x390   :  { %v1425_v11 = vsel %vm1411_vm11, %v1420_v50, %v1424_v22  ;;  %v1450_v30 = vsel %vm1033_vm5, %v1445_v57, %v1449_v40 }
 0x391   :  { %v11501_v39 = vpack.i.bf16 %v1450_v30, %v1446_v31  ;;  %v8801_v31 = vld [vmem:[#allocation10 + $0xb0] sm:$0xf] }
 0x392   :  { %v8802_v30 = vor.u32 %v10851_v53, %v8801_v31  ;;  %v10876_v53 = vld [vmem:[#allocation10 + $0x184] sm:$0xf] }
 0x393   :  { %11502 = vrot.lane.b32.xlu2 %v11501_v39, %s12396_s0  ;;  %v1119_v43 = vpop.f32.mrf.mxu3  ;;  %v10848_v39 = vld [vmem:[#allocation10 + $0xa0] sm:$0xf0] }
 0x394   :  { %v1243_v29 = vmax.f32 %v1119_v43, %v1225_v25  ;;  %2060 = vmatpush.bf16.msrb.mxu0 %v8802_v30  ;;  %v8789_v25 = vld [vmem:[#allocation10 + $0x98] sm:$0xf]  ;;  %v8903_v30 = vld [vmem:[#allocation10 + $0x18c] sm:$0xf0] }
 0x395   :  { %v8790_v43 = vor.u32 %v10848_v39, %v8789_v25  ;;  %v8909_v25 = vld [vmem:[#allocation10 + $0x188] sm:$0xf]  ;;  %v10878_v39 = vld [vmem:[#allocation10 + $0x190] sm:$0xf0] }
 0x396   :  { %v1428_v62 = vrot.slane %v1243_v29, 5  ;;  %v1453_v4 = vrot.slane %v1243_v29, 6 }
 0x398   :  { %v13284_v7 = vsel %vm1411_vm11, %v1424_v22, %v1428_v62  ;;  %v1454_v10 = vsel %vm1033_vm5, %v1449_v40, %v1453_v4  ;;  %2061 = vmatpush.bf16.msrb.mxu0 %v8790_v43  ;;  %v8717_v43 = vld [vmem:[#allocation10 + $0x8] sm:$0xf] }
 0x399   :  { %v1458_v56 = vsel %vm1365_vm12, %v1454_v10, 0.0 }
 0x39a   :  { %v11506_v51 = vpack.i.bf16 %v1458_v56, %v1457_v8 }
 0x39c   :  { %11507 = vrot.lane.b32.xlu0 %v11506_v51, %s12396_s0  ;;  %v8777_v51 = vld [vmem:[#allocation10 + $0x80] sm:$0xf] }
 0x39d   :  { %v8778_v26 = vor.u32 %v10845_v14, %v8777_v51 }
 0x39f   :  { %2062 = vmatpush.bf16.msrb.mxu0 %v8778_v26 }
 0x3b5   :  { %v11483_v42 = vpop.permute.xlu1 %11482 }
 0x3b6   :  { %v11485_v28 = vunpack.i.h.bf16 %v11483_v42  ;;  %v11484_v44 = vunpack.i.l.bf16 %v11483_v42  ;;  %v8765_v42 = vld [vmem:[#allocation10 + $0x68] sm:$0xf] }
 0x3b7   :  { %v8766_v49 = vor.u32 %v10842_v16, %v8765_v42 }
 0x3b8   :  { %v1485_v15 = vsel %vm1386_vm14, %v1436_v17, %v11484_v44  ;;  %v1402_v13 = vsel %vm1386_vm14, %v13255_v5, %v11485_v28  ;;  %v8939_v17 = vld [vmem:[#allocation10 + $0x1d4] sm:$0xf0] }
 0x3b9   :  { %v1496_v19 = vrot.slane %v1485_v15, 1  ;;  %2063 = vmatpush.bf16.msrb.mxu0 %v8766_v49  ;;  %v8753_v15 = vld [vmem:[#allocation10 + $0x50] sm:$0xf] }
 0x3bb   :  { %v1532_v33 = vsel %vm1494_vm13, %v1402_v13, %v1496_v19  ;;  %v10839_v13 = vld [vmem:[#allocation10 + $0x58] sm:$0xf0] }
 0x3c5   :  { %v11498_v37 = vpop.permute.xlu1 %11497 }
 0x3c6   :  { %v11500_v9 = vunpack.i.h.bf16 %v11498_v37  ;;  %v11499_v27 = vunpack.i.l.bf16 %v11498_v37  ;;  %v10882_v37 = vld [vmem:[#allocation10 + $0x1b4] sm:$0xf] }
 0x3c8   :  { %v1486_v3 = vsel %vm1386_vm14, %v1421_v36, %v11499_v27  ;;  %v13297_v34 = vsel %vm1386_vm14, %v1425_v11, %v11500_v9 }
 0x3c9   :  { %v1500_v20 = vrot.slane %v1486_v3, 1  ;;  %v1506_v48 = vrot.slane %v13297_v34, 1 }
 0x3cb   :  { %v1501_v41 = vsel %vm1494_vm13, %v1496_v19, %v1500_v20  ;;  %v1507_v5 = vsel %vm1494_vm13, %v1500_v20, %v1506_v48  ;;  %v8942_v19 = vor.u32 %v10885_v59, %v8939_v17  ;;  %v10836_v20 = vld [vmem:[#allocation10 + $0x40] sm:$0xf0] }
 0x3cc   :  { %v1541_v35 = vpack.c.bf16 %v1507_v5, %v1501_v41  ;;  %v8933_v41 = vld [vmem:[#allocation10 + $0x1b8] sm:$0xf]  ;;  %v10884_v5 = vld [vmem:[#allocation10 + $0x1c0] sm:$0xf0] }
 0x3cd   :  { %2035 = vmatpush.bf16.msrb.mxu3 %v8942_v19 }
 0x3da   :  { %v11478_v50 = vpop.permute.xlu0 %11477 }
 0x3db   :  { %v11480_v18 = vunpack.i.h.bf16 %v11478_v50  ;;  %v11479_v12 = vunpack.i.l.bf16 %v11478_v50  ;;  %v8934_v50 = vor.u32 %v10884_v5, %v8933_v41 }
 0x3dd   :  { %v1388_v36 = vsel %vm1386_vm14, %v11475_v24, %v11480_v18  ;;  %v1387_v1 = vsel %vm1386_vm14, %v11474_v47, %v11479_v12  ;;  %v11488_v57 = vpop.permute.xlu2 %11487  ;;  %v10879_v18 = vld [vmem:[#allocation10 + $0x19c] sm:$0xf]  ;;  %v8915_v12 = vld [vmem:[#allocation10 + $0x1a4] sm:$0xf0]  ;;  %2123 = vmatpush.bf16.msrb.mxu2 %v8934_v50 }
 0x3de   :  { %v13310_v60 = vpack.c.bf16 %v1388_v36, %v1387_v1  ;;  %v11490_v22 = vunpack.i.h.bf16 %v11488_v57  ;;  %v11489_v24 = vunpack.i.l.bf16 %v11488_v57  ;;  %v8921_v36 = vld [vmem:[#allocation10 + $0x1a0] sm:$0xf]  ;;  %v10881_v1 = vld [vmem:[#allocation10 + $0x1a8] sm:$0xf0] }
 0x3df   :  { %v8729_v57 = vld [vmem:[#allocation10 + $0x20] sm:$0xf]  ;;  %v8922_v31 = vor.u32 %v10881_v1, %v8921_v36 }
 0x3e0   :  { %8951 = vmatmul.msk.bf16.vlgmr.msra.gmra.mxu0 %vm1873_vm15, %v13310_v60  ;;  %v1401_v40 = vsel %vm1386_vm14, %v13251_v58, %v11490_v22  ;;  %v1477_v47 = vsel %vm1386_vm14, %v11484_v44, %v11489_v24  ;;  %v8918_v24 = vor.u32 %v10879_v18, %v8915_v12 }
 0x3e1   :  { %v1538_v11 = vpack.c.bf16 %v1532_v33, %v1401_v40  ;;  %v1497_v4 = vrot.slane %v1477_v47, 1  ;;  %v8754_v33 = vor.u32 %v10839_v13, %v8753_v15  ;;  %2124 = vmatpush.bf16.msrb.mxu2 %v8922_v31 }
 0x3e3   :  { %1928 = vmatmul.bf16.gmra.mxu3 %v1538_v11  ;;  %2015 = vmatmul.bf16.gmra.mxu2 %v1538_v11 }
 0x3e4   :  { %2102 = vmatmul.bf16.gmra.mxu1 %v1538_v11  ;;  %2064 = vmatpush.bf16.msrb.mxu0 %v8754_v33 }
 0x3eb   :  { %v11493_v61 = vpop.permute.xlu0 %11492 }
 0x3ec   :  { %v11495_v29 = vunpack.i.h.bf16 %v11493_v61  ;;  %v11494_v62 = vunpack.i.l.bf16 %v11493_v61 }
 0x3ed   :  { %v11503_v38 = vpop.permute.xlu2 %11502 }
 0x3ee   :  { %v1389_v58 = vsel %vm1386_vm14, %v11490_v22, %v11495_v29  ;;  %v1390_v10 = vsel %vm1386_vm14, %v11485_v28, %v11494_v62  ;;  %v11505_v8 = vunpack.i.h.bf16 %v11503_v38  ;;  %v11504_v56 = vunpack.i.l.bf16 %v11503_v38  ;;  %v10833_v22 = vld [vmem:[#allocation10 + $0x28] sm:$0xf0]  ;;  %v10830_v29 = vld [vmem:[#allocation10 + $0x10] sm:$0xf0] }
 0x3ef   :  { %v1533_v54 = vsel %vm1494_vm13, %v1390_v10, %v1497_v4  ;;  %v8730_v47 = vor.u32 %v10833_v22, %v8729_v57  ;;  %v8906_v62 = vor.u32 %v10876_v53, %v8903_v30  ;;  %v8718_v38 = vor.u32 %v10830_v29, %v8717_v43 }
 0x3f0   :  { %v13320_v63 = vpack.c.bf16 %v1533_v54, %v1389_v58  ;;  %v13323_v55 = vsel %vm1386_vm14, %v11500_v9, %v11505_v8  ;;  %v1478_v6 = vsel %vm1386_vm14, %v11499_v27, %v11504_v56  ;;  %v8927_v9 = vld [vmem:[#allocation10 + $0x1bc] sm:$0xf0]  ;;  %v8741_v27 = vld [vmem:[#allocation10 + $0x38] sm:$0xf]  ;;  %v1895_v8 = vpop.f32.mrf.mxu2 }
 0x3f1   :  { %v1508_v28 = vrot.slane %v13323_v55, 1  ;;  %v1502_v44 = vrot.slane %v1478_v6, 1  ;;  %v8930_v3 = vor.u32 %v10882_v37, %v8927_v9  ;;  %v13334_v58 = vld [vmem:[#allocation11] sm:$0x7] }
 0x3f2   :  { %8952 = vmatmul.msk.bf16.gmra.mxu0 %vm1873_vm15, %v13320_v63  ;;  %v13337_v10 = vperm.slane %v13334_v58, 0  ;;  %v13387_v52 = vperm.slane %v13334_v58, 1 }
 0x3f3   :  { %1933 = vmatmul.bf16.gmra.mxu3 %v1541_v35  ;;  %2020 = vmatmul.bf16.gmra.mxu2 %v1541_v35  ;;  %v1503_v40 = vsel %vm1494_vm13, %v1497_v4, %v1502_v44  ;;  %v1509_v11 = vsel %vm1494_vm13, %v1502_v44, %v1508_v28  ;;  %v8910_v4 = vor.u32 %v10878_v39, %v8909_v25 }
 0x3f4   :  { %2107 = vmatmul.bf16.gmra.mxu1 %v1541_v35  ;;  %v8742_v35 = vor.u32 %v10836_v20, %v8741_v27  ;;  %2036 = vmatpush.bf16.msrb.mxu3 %v8930_v3  ;;  %v1542_v61 = vpack.c.bf16 %v1509_v11, %v1503_v40  ;;  %v1896_v56 = vadd.f32 %v1895_v8, %v13337_v10 }
 0x3f5   :  { %2125 = vmatpush.bf16.msrb.mxu2 %v8910_v4 }
 0x3f6   :  { %2065 = vmatpush.bf16.msrb.mxu0 %v8742_v35 }
 0x3f8   :  { %2037 = vmatpush.bf16.msrb.mxu3 %v8918_v24  ;;  %v13345_v49 = vpop.f32.mrf.mxu2 }
 0x3fa   :  { %2066 = vmatpush.bf16.msrb.mxu0 %v8730_v47 }
 0x3fc   :  { %2038 = vmatpush.bf16.msrb.mxu3 %v8906_v62 }
 0x3fe   :  { %2067 = vmatpush.bf16.msrb.mxu0 %v8718_v38 }
 0x402   :  { %8953 = vmatmul.msk.bf16.gmra.mxu0 %vm1873_vm15, %v1542_v61 }
 0x40b   :  { %v1924_v51 = vpop.f32.mrf.mxu3 }
 0x40c   :  { %v13340_v14 = vadd.f32 %v1924_v51, %v1896_v56 }
 0x40e   :  { %14541 = vst [vmem:[#allocation52_spill] sm:$0xff] %v13340_v14  ;;  %v11508_v54 = vpop.permute.xlu0 %11507 }
 0x40f   :  { %v11510_v26 = vunpack.i.h.bf16 %v11508_v54  ;;  %v11509_v6 = vunpack.i.l.bf16 %v11508_v54 }
 0x411   :  { %v1480_v42 = vsel %vm1386_vm14, %v11509_v6, %v11510_v26  ;;  %v1488_v16 = vsel %vm1386_vm14, %v13284_v7, %v11509_v6  ;;  %v1900_v7 = vpop.f32.mrf.mxu2  ;;  %v13425_v6 = vperm.slane %v13334_v58, 2 }
 0x412   :  { %v1514_v44 = vrot.slane %v1480_v42, 1  ;;  %v1512_v59 = vrot.slane %v1488_v16, 1  ;;  %v1901_v9 = vadd.f32 %v1900_v7, %v13337_v10 }
 0x413   :  { %v13382_v33 = vpop.f32.mrf.mxu3 }
 0x414   :  { %v1513_v17 = vsel %vm1494_vm13, %v1506_v48, %v1512_v59  ;;  %v1515_v15 = vsel %vm1494_vm13, %v1508_v28, %v1514_v44 }
 0x415   :  { %v1544_v19 = vpack.c.bf16 %v1512_v59, %v1513_v17  ;;  %v1545_v13 = vpack.c.bf16 %v1514_v44, %v1515_v15 }
 0x417   :  { %1938 = vmatmul.bf16.gmra.mxu3 %v1544_v19  ;;  %8954 = vmatmul.msk.bf16.gmra.mxu0 %vm1873_vm15, %v1545_v13 }
 0x418   :  { %2025 = vmatmul.bf16.gmra.mxu2 %v1544_v19  ;;  %2112 = vmatmul.bf16.gmra.mxu1 %v1544_v19 }
 0x419   :  { %v13354_v2 = vpop.f32.mrf.mxu2 }
 0x421   :  { %v1905_v34 = vpop.f32.mrf.mxu2 }
 0x422   :  { %v1906_v57 = vadd.f32 %v1905_v34, %v13337_v10 }
 0x427   :  { %8959 = vmatmul.msk.bf16.vlgmr.msrb.gmra.mxu3 %vm1873_vm15, %v13310_v60  ;;  %8966 = vmatmul.msk.bf16.vlgmr.msrb.gmra.mxu0 %vm13175_vm10, %v13179_v46  ;;  %v1982_v46 = vpop.f32.mrf.mxu1 }
 0x428   :  { %8967 = vmatmul.msk.bf16.vlgmr.msrb.gmra.mxu2 %vm1873_vm15, %v13310_v60  ;;  %v1983_v17 = vadd.f32 %v1982_v46, %v13387_v52 }
 0x429   :  { %v13366_v48 = vpop.f32.mrf.mxu2 }
 0x42f   :  { %v13375_v23 = vpop.f32.mrf.mxu1 }
 0x431   :  { %v1910_v55 = vpop.f32.mrf.mxu2 }
 0x432   :  { %v1911_v4 = vadd.f32 %v1910_v55, %v13337_v10 }
 0x437   :  { %8960 = vmatmul.msk.bf16.gmra.mxu3 %vm1873_vm15, %v13320_v63  ;;  %2073 = vmatmul.bf16.gmra.mxu0 %v13207_v45  ;;  %v1987_v45 = vpop.f32.mrf.mxu1 }
 0x438   :  { %8968 = vmatmul.msk.bf16.gmra.mxu2 %vm1873_vm15, %v13320_v63  ;;  %v1988_v37 = vadd.f32 %v1987_v45, %v13387_v52 }
 0x439   :  { %v13373_v60 = vpop.f32.mrf.mxu2 }
 0x43f   :  { %v13395_v5 = vpop.f32.mrf.mxu1 }
 0x441   :  { %v2011_v28 = vpop.f32.mrf.mxu2 }
 0x442   :  { %v2012_v19 = vadd.f32 %v2011_v28, %v1983_v17 }
 0x447   :  { %8961 = vmatmul.msk.bf16.gmra.mxu3 %vm1873_vm15, %v1542_v61  ;;  %2078 = vmatmul.bf16.gmra.mxu0 %v13235_v0  ;;  %v1992_v36 = vpop.f32.mrf.mxu1 }
 0x448   :  { %8969 = vmatmul.msk.bf16.gmra.mxu2 %vm1873_vm15, %v1542_v61  ;;  %v1993_v1 = vadd.f32 %v1992_v36, %v13387_v52 }
 0x449   :  { %v13384_v0 = vpop.f32.mrf.mxu2 }
 0x44f   :  { %v13411_v47 = vpop.f32.mrf.mxu1 }
 0x457   :  { %8962 = vmatmul.msk.bf16.gmra.mxu3 %vm1873_vm15, %v1545_v13  ;;  %2083 = vmatmul.bf16.gmra.mxu0 %v13245_v32  ;;  %v1997_v39 = vpop.f32.mrf.mxu1 }
 0x458   :  { %8970 = vmatmul.msk.bf16.gmra.mxu2 %vm1873_vm15, %v1545_v13 }
 0x45d   :  { %v13380_v63 = vpop.f32.mrf.mxu0 }
 0x45e   :  { %14542 = vst [vmem:[#allocation53_spill] sm:$0xff] %v13380_v63 }
 0x45f   :  { %v1999_v62 = vpop.f32.mrf.mxu1 }
 0x465   :  { %v13391_v20 = vpop.f32.mrf.mxu0 }
 0x466   :  { %v1929_v27 = vpop.f32.mrf.mxu3  ;;  %v2016_v3 = vpop.f32.mrf.mxu2  ;;  %14543 = vst [vmem:[#allocation54_spill] sm:$0xff] %v13391_v20 }
 0x467   :  { %v1930_v32 = vadd.f32 %v1929_v27, %v1901_v9  ;;  %v13393_v41 = vadd.f32 %v2016_v3, %v1988_v37  ;;  %v2098_v26 = vpop.f32.mrf.mxu1 }
 0x46e   :  { %v13397_v35 = vpop.f32.mrf.mxu3  ;;  %v13399_v50 = vpop.f32.mrf.mxu2 }
 0x46f   :  { %v1958_v18 = vpop.f32.mrf.mxu0  ;;  %v13431_v13 = vpop.f32.mrf.mxu1 }
 0x470   :  { %v13401_v12 = vadd.f32 %v1958_v18, %v1930_v32 }
 0x472   :  { %14544 = vst [vmem:[#allocation55_spill] sm:$0xff] %v13401_v12  ;;  %v1990_v12 = vadd.f32 %v13395_v5, %v13387_v52 }
 0x476   :  { %v1934_v22 = vpop.f32.mrf.mxu3  ;;  %v2021_v40 = vpop.f32.mrf.mxu2 }
 0x477   :  { %v1935_v11 = vadd.f32 %v1934_v22, %v1906_v57  ;;  %v13405_v24 = vadd.f32 %v2021_v40, %v1993_v1  ;;  %v13407_v31 = vpop.f32.mrf.mxu0  ;;  %v13439_v37 = vpop.f32.mrf.mxu1 }
 0x47e   :  { %v13415_v61 = vpop.f32.mrf.mxu3  ;;  %v13417_v43 = vpop.f32.mrf.mxu2 }
 0x47f   :  { %v1963_v53 = vpop.f32.mrf.mxu0  ;;  %v2105_v28 = vpop.f32.mrf.mxu1 }
 0x480   :  { %v13409_v30 = vadd.f32 %v1963_v53, %v1935_v11 }
 0x487   :  { %v13413_v25 = vpop.f32.mrf.mxu0  ;;  %v2108_v22 = vpop.f32.mrf.mxu1 }
 0x494   :  { %v1968_v29 = vpop.f32.mrf.mxu0 }
 0x49a   :  { %v1939_v38 = vpop.f32.mrf.mxu3 }
 0x49b   :  { %v1940_v8 = vadd.f32 %v1939_v38, %v1911_v4  ;;  %v2026_v56 = vpop.f32.mrf.mxu2 }
 0x49c   :  { %v13420_v51 = vpop.f32.mrf.mxu0 }
 0x49d   :  { %v13422_v54 = vadd.f32 %v1968_v29, %v1940_v8  ;;  %v2110_v29 = vpop.f32.mrf.mxu1 }
 0x4a2   :  { %v13427_v42 = vpop.f32.mrf.mxu3 }
 0x4a3   :  { %v2028_v16 = vpop.f32.mrf.mxu2 }
 0x4a4   :  { %v2069_v44 = vpop.f32.mrf.mxu0 }
 0x4a5   :  { %v2070_v59 = vadd.f32 %v2069_v44, %v13425_v6  ;;  %v1998_v44 = vadd.f32 %v1997_v39, %v13387_v52  ;;  %v2000_v39 = vadd.f32 %v1999_v62, %v13387_v52 }
 0x4a7   :  { %v2099_v15 = vadd.f32 %v2098_v26, %v2070_v59  ;;  %v2113_v59 = vpop.f32.mrf.mxu1  ;;  %v2027_v17 = vadd.f32 %v2026_v56, %v1998_v44  ;;  %v2019_v56 = vadd.f32 %v13399_v50, %v1990_v12 }
 0x4aa   :  { %v2040_v7 = vpop.f32.mrf.mxu3 }
 0x4ab   :  { %v13433_v34 = vadd.f32 %v2040_v7, %v2012_v19  ;;  %v2127_v55 = vpop.f32.mrf.mxu2 }
 0x4ac   :  { %v13435_v45 = vadd.f32 %v2127_v55, %v2099_v15  ;;  %v13437_v58 = vpop.f32.mrf.mxu0 }
 0x4b2   :  { %v13441_v9 = vpop.f32.mrf.mxu3 }
 0x4b3   :  { %v13443_v27 = vpop.f32.mrf.mxu2 }
 0x4b4   :  { %v2074_v3 = vpop.f32.mrf.mxu0 }
 0x4ba   :  { %v13445_v46 = vpop.f32.mrf.mxu3 }
 0x4bb   :  { %v13447_v32 = vpop.f32.mrf.mxu2 }
 0x4bc   :  { %v2076_v18 = vpop.f32.mrf.mxu0 }
 0x4bd   :  { %v2077_v21 = vadd.f32 %v2076_v18, %v13425_v6 }
 0x4bf   :  { %v2106_v44 = vadd.f32 %v2105_v28, %v2077_v21 }
 0x4c2   :  { %v2047_v36 = vpop.f32.mrf.mxu3 }
 0x4c3   :  { %v2134_v1 = vpop.f32.mrf.mxu2 }
 0x4c4   :  { %v2079_v57 = vpop.f32.mrf.mxu0 }
 0x4c5   :  { %v2080_v5 = vadd.f32 %v2079_v57, %v13425_v6 }
 0x4c7   :  { %v2109_v28 = vadd.f32 %v2108_v22, %v2080_v5 }
 0x4ca   :  { %v2050_v40 = vpop.f32.mrf.mxu3 }
 0x4cb   :  { %v2137_v11 = vpop.f32.mrf.mxu2  ;;  %v13472_v57 = vadd.f32 %v2050_v40, %v13405_v24  ;;  %v11541_v40 = vpack.i.bf16 %v13435_v45, %v13433_v34 }
 0x4cc   :  { %v2081_v53 = vpop.f32.mrf.mxu0 }
 0x4cd   :  { %v2082_v18 = vadd.f32 %v2081_v53, %v13425_v6  ;;  %v2138_v53 = vadd.f32 %v2137_v11, %v2109_v28 }
 0x4cf   :  { %v11521_v22 = vpack.i.bf16 %v2138_v53, %v13472_v57 }
 0x4d2   :  { %v2052_v4 = vpop.f32.mrf.mxu3 }
 0x4d3   :  { %v2139_v38 = vpop.f32.mrf.mxu2 }
 0x4d4   :  { %v2084_v8 = vpop.f32.mrf.mxu0 }
 0x4d5   :  { %v2085_v26 = vadd.f32 %v2084_v8, %v13425_v6 }
 0x4d7   :  { %v2114_v19 = vadd.f32 %v2113_v59, %v2085_v26  ;;  %v2115_v26 = vpop.f32.mrf.mxu1  ;;  %v2029_v59 = vadd.f32 %v2028_v16, %v2000_v39 }
 0x4da   :  { %v2055_v15 = vpop.f32.mrf.mxu3 }
 0x4db   :  { %v13451_v7 = vadd.f32 %v2055_v15, %v2027_v17  ;;  %v2142_v55 = vpop.f32.mrf.mxu2  ;;  %v13462_v17 = vadd.f32 %v2047_v36, %v2019_v56  ;;  %v2135_v15 = vadd.f32 %v2134_v1, %v2106_v44 }
 0x4dc   :  { %v2143_v63 = vadd.f32 %v2142_v55, %v2114_v19  ;;  %v2086_v14 = vpop.f32.mrf.mxu0  ;;  %v1985_v55 = vadd.f32 %v13375_v23, %v13387_v52 }
 0x4dd   :  { %v2087_v8 = vadd.f32 %v2086_v14, %v13425_v6  ;;  %v1995_v14 = vadd.f32 %v13411_v47, %v13387_v52  ;;  %v11526_v16 = vpack.i.bf16 %v2135_v15, %v13462_v17  ;;  %v2075_v47 = vadd.f32 %v2074_v3, %v13425_v6 }
 0x4de   :  { %v11516_v20 = vpack.i.bf16 %v2143_v63, %v13451_v7  ;;  %v2014_v24 = vadd.f32 %v13384_v0, %v1985_v55 }
 0x4df   :  { %v2116_v19 = vadd.f32 %v2115_v26, %v2087_v8  ;;  %v2024_v12 = vadd.f32 %v13417_v43, %v1995_v14  ;;  %v2072_v43 = vadd.f32 %v13437_v58, %v13425_v6  ;;  %v13490_v6 = vadd.f32 %v13445_v46, %v13393_v41 }
 0x4e0   :  { %11517 = vrot.lane.b32.xlu0 %v11516_v20, %s12398_s11  ;;  %v2111_v20 = vadd.f32 %v2110_v29, %v2082_v18  ;;  %v13494_v52 = vadd.f32 %v13441_v9, %v2014_v24 }
 0x4e1   :  { %v2053_v36 = vadd.f32 %v2052_v4, %v2024_v12  ;;  %v2104_v4 = vadd.f32 %v13439_v37, %v2075_v47  ;;  %v2101_v3 = vadd.f32 %v13431_v13, %v2072_v43  ;;  %v1913_v37 = vadd.f32 %v13373_v60, %v13337_v10 }
 0x4e2   :  { %v2057_v63 = vpop.f32.mrf.mxu3  ;;  %v2140_v1 = vadd.f32 %v2139_v38, %v2111_v20 }
 0x4e3   :  { %v2058_v62 = vadd.f32 %v2057_v63, %v2029_v59  ;;  %v2144_v50 = vpop.f32.mrf.mxu2  ;;  %v2133_v23 = vadd.f32 %v13447_v32, %v2104_v4  ;;  %v2130_v58 = vadd.f32 %v13443_v27, %v2101_v3  ;;  %v1942_v27 = vadd.f32 %v13427_v42, %v1913_v37 }
 0x4e4   :  { %v2145_v21 = vadd.f32 %v2144_v50, %v2116_v19  ;;  %v11511_v29 = vpack.i.bf16 %v2140_v1, %v2053_v36 }
 0x4e5   :  { %2191 = vrot.lane.b32.xlu1 %v2058_v62, %s12398_s11  ;;  %v11531_v0 = vpack.i.bf16 %v2133_v23, %v13490_v6  ;;  %v11536_v45 = vpack.i.bf16 %v2130_v58, %v13494_v52  ;;  %v1971_v38 = vadd.f32 %v13420_v51, %v1942_v27  ;;  %v1329_v27 = vld [vmem:[#allocation14] sm:$0xff] }
 0x4e6   :  { %2193 = vrot.lane.b32.xlu2 %v2145_v21, %s12398_s11 }
 0x4e8   :  { %11527 = vrot.lane.b32.xlu0 %v11526_v16, %s12398_s11 }
 0x4ed   :  { %11512 = vrot.lane.b32.xlu1 %v11511_v29, %s12398_s11 }
 0x4ee   :  { %11522 = vrot.lane.b32.xlu2 %v11521_v22, %s12398_s11 }
 0x4f0   :  { %11542 = vrot.lane.b32.xlu0 %v11541_v40, %s12398_s11  ;;  %v14546_v40 = vld [vmem:[#allocation55_spill] sm:$0xff] }
 0x4f5   :  { %11532 = vrot.lane.b32.xlu1 %v11531_v0, %s12398_s11  ;;  %v14547_v0 = vld [vmem:[#allocation52_spill] sm:$0xff] }
 0x4f6   :  { %11537 = vrot.lane.b32.xlu2 %v11536_v45, %s12398_s11  ;;  %v14548_v45 = vld [vmem:[#allocation53_spill] sm:$0xff] }
 0x540   :  { %v2194_v13 = vpop.permute.xlu2 %2193 }
 0x541   :  { %v13502_v41 = vmax.f32 %v2058_v62, %v2194_v13  ;;  %v1903_v62 = vadd.f32 %v13354_v2, %v13337_v10 }
 0x543   :  { %8986 = vmatpush.msk.msrb.mxu1 %vm1365_vm12, %v13502_v41  ;;  %v1932_v12 = vadd.f32 %v13397_v35, %v1903_v62  ;;  %v1898_v35 = vadd.f32 %v13345_v49, %v13337_v10 }
 0x545   :  { %v1961_v1 = vadd.f32 %v13407_v31, %v1932_v12  ;;  %v1927_v4 = vadd.f32 %v13382_v33, %v1898_v35  ;;  %v1954_v33 = vadd.f32 %v14548_v45, %v14547_v0 }
 0x548   :  { %v11523_v44 = vpop.permute.xlu2 %11522 }
 0x549   :  { %v11525_v51 = vunpack.i.h.bf16 %v11523_v44  ;;  %v11524_v59 = vunpack.i.l.bf16 %v11523_v44  ;;  %v9051_v44 = vld [vmem:[#allocation16 + $0x78] sm:$0xf0] }
 0x550   :  { %v11538_v20 = vpop.permute.xlu2 %11537 }
 0x552   :  { %v11518_v9 = vpop.permute.xlu0 %11517 }
 0x553   :  { %v11520_v46 = vunpack.i.h.bf16 %v11518_v9  ;;  %v11519_v32 = vunpack.i.l.bf16 %v11518_v9  ;;  %v1325_v9 = vld [vmem:[#allocation13] sm:$0xff] }
 0x555   :  { %v13510_v11 = vmax.f32 %v13451_v7, %v11520_v46  ;;  %v2201_v56 = vsel %vm1873_vm15, %v11519_v32, %v11520_v46  ;;  %v1908_v7 = vadd.f32 %v13366_v48, %v13337_v10  ;;  %v2199_v48 = vsel %vm1873_vm15, %v11524_v59, %v11525_v51  ;;  %v14545_v10 = vld [vmem:[#allocation54_spill] sm:$0xff]  ;;  %v1327_v46 = vld [vmem:[#allocation13 + $0x10] sm:$0xff] }
 0x556   :  { %v2231_v42 = vmax.f32 %v13422_v54, %v2201_v56  ;;  %v2227_v2 = vmax.f32 %v13409_v30, %v2199_v48  ;;  %v1956_v49 = vadd.f32 %v14545_v10, %v1927_v4  ;;  %v1331_v32 = vld [vmem:[#allocation14 + $0x10] sm:$0xff]  ;;  %v9027_v48 = vld [vmem:[#allocation16 + $0x48] sm:$0xf0]  ;;  %v9003_v4 = vld [vmem:[#allocation16 + $0x18] sm:$0xf0] }
 0x557   :  { %2362 = vmatpush.msrb.mxu1 %v13510_v11  ;;  %v2192_v8 = vpop.permute.xlu1 %2191  ;;  %v1937_v18 = vadd.f32 %v13415_v61, %v1908_v7  ;;  %v2228_v61 = vmax.f32 %v13472_v57, %v11525_v51  ;;  %v10900_v7 = vld [vmem:[#allocation16 + $0x64] sm:$0xf]  ;;  %v9043_v51 = vld [vmem:[#allocation16 + $0x68] sm:$0xf0] }
 0x558   :  { %v2202_v39 = vsel %vm1873_vm15, %v2192_v8, %v2194_v13  ;;  %v10903_v8 = vld [vmem:[#allocation16 + $0x74] sm:$0xf0]  ;;  %v10888_v10 = vld [vmem:[#allocation16 + $0x4] sm:$0xf] }
 0x559   :  { %v2233_v26 = vmax.f32 %v1971_v38, %v2202_v39  ;;  %v1966_v50 = vadd.f32 %v13413_v25, %v1937_v18  ;;  %v11540_v25 = vunpack.i.h.bf16 %v11538_v20  ;;  %v9049_v38 = vld [vmem:[#allocation16 + $0x70] sm:$0xf]  ;;  %v10902_v39 = vld [vmem:[#allocation16 + $0x74] sm:$0xf]  ;;  %v9046_v18 = vor.u32 %v10900_v7, %v9043_v51 }
 0x55a   :  { %v11528_v60 = vpop.permute.xlu0 %11527  ;;  %v9050_v56 = vor.u32 %v10903_v8, %v9049_v38 }
 0x55b   :  { %8971 = vmatpush.msk.msra.mxu3 %vm1365_vm12, %v2233_v26  ;;  %8981 = vmatpush.msk.msra.mxu0 %vm1365_vm12, %v2233_v26  ;;  %v11530_v5 = vunpack.i.h.bf16 %v11528_v60  ;;  %v11529_v63 = vunpack.i.l.bf16 %v11528_v60  ;;  %v2222_v23 = vmax.f32 %v13494_v52, %v11540_v25  ;;  %v1330_v52 = vld [vmem:[#allocation14 + $0x8] sm:$0xff]  ;;  %v9041_v26 = vld [vmem:[#allocation16 + $0x60] sm:$0xf] }
 0x55c   :  { %v10901_v60 = vld [vmem:[#allocation16 + $0x64] sm:$0xf0]  ;;  %2780 = vmatpush.bf16.msra.mxu2 %v9050_v56 }
 0x55d   :  { %2263 = vmatpush.msra.mxu3 %v2231_v42  ;;  %2333 = vmatpush.msra.mxu0 %v2231_v42  ;;  %v2198_v28 = vsel %vm1873_vm15, %v11529_v63, %v11530_v5  ;;  %v2226_v47 = vmax.f32 %v13462_v17, %v11530_v5  ;;  %v9054_v42 = vor.u32 %v10902_v39, %v9051_v44  ;;  %v10899_v5 = vld [vmem:[#allocation16 + $0x54] sm:$0xf0]  ;;  %v10898_v63 = vld [vmem:[#allocation16 + $0x54] sm:$0xf] }
 0x55e   :  { %v2225_v57 = vmax.f32 %v1961_v1, %v2198_v28  ;;  %v9042_v59 = vor.u32 %v10901_v60, %v9041_v26  ;;  %v10894_v28 = vld [vmem:[#allocation16 + $0x34] sm:$0xf] }
 0x55f   :  { %v11513_v15 = vpop.permute.xlu1 %11512 }
 0x560   :  { %v11515_v19 = vunpack.i.h.bf16 %v11513_v15  ;;  %v11514_v14 = vunpack.i.l.bf16 %v11513_v15  ;;  %v9033_v15 = vld [vmem:[#allocation16 + $0x50] sm:$0xf]  ;;  %2781 = vmatpush.bf16.msra.mxu2 %v9042_v59 }
 0x562   :  { %v2230_v54 = vmax.f32 %v2053_v36, %v11515_v19  ;;  %v2200_v21 = vsel %vm1873_vm15, %v11514_v14, %v11515_v19  ;;  %v11543_v53 = vpop.permute.xlu0 %11542  ;;  %v11539_v36 = vunpack.i.l.bf16 %v11538_v20  ;;  %v9035_v19 = vld [vmem:[#allocation16 + $0x58] sm:$0xf0]  ;;  %v9034_v14 = vor.u32 %v10899_v5, %v9033_v15 }
 0x563   :  { %v2229_v16 = vmax.f32 %v1966_v50, %v2200_v21  ;;  %v11545_v29 = vunpack.i.h.bf16 %v11543_v53  ;;  %v11544_v55 = vunpack.i.l.bf16 %v11543_v53  ;;  %v9038_v62 = vor.u32 %v10898_v63, %v9035_v19  ;;  %v9025_v50 = vld [vmem:[#allocation16 + $0x40] sm:$0xf]  ;;  %v10896_v21 = vld [vmem:[#allocation16 + $0x44] sm:$0xf]  ;;  %v9019_v53 = vld [vmem:[#allocation16 + $0x38] sm:$0xf0] }
 0x564   :  { %2363 = vmatpush.msrb.mxu1 %v2230_v54  ;;  %v2196_v24 = vsel %vm1873_vm15, %v11539_v36, %v11540_v25  ;;  %2782 = vmatpush.bf16.msra.mxu2 %v9034_v14  ;;  %v9030_v20 = vor.u32 %v10896_v21, %v9027_v48  ;;  %v9009_v25 = vld [vmem:[#allocation16 + $0x20] sm:$0xf]  ;;  %v10893_v36 = vld [vmem:[#allocation16 + $0x24] sm:$0xf0] }
 0x565   :  { %2264 = vmatpush.msra.mxu3 %v2229_v16  ;;  %2334 = vmatpush.msra.mxu0 %v2229_v16  ;;  %v2195_v58 = vsel %vm1873_vm15, %v11544_v55, %v11545_v29  ;;  %v2221_v13 = vmax.f32 %v1956_v49, %v2196_v24  ;;  %v9017_v16 = vld [vmem:[#allocation16 + $0x30] sm:$0xf]  ;;  %v9010_v35 = vor.u32 %v10893_v36, %v9009_v25  ;;  %v10891_v55 = vld [vmem:[#allocation16 + $0x14] sm:$0xf0]  ;;  %v10889_v24 = vld [vmem:[#allocation16 + $0x4] sm:$0xf0] }
 0x566   :  { %2364 = vmatpush.msrb.mxu1 %v2228_v61  ;;  %v2219_v37 = vmax.f32 %v1954_v33, %v2195_v58  ;;  %v9097_v25 = vld [vmem:[#allocation16 + $0xd0] sm:$0xf]  ;;  %v10915_v36 = vld [vmem:[#allocation16 + $0xd4] sm:$0xf0] }
 0x567   :  { %v11533_v43 = vpop.permute.xlu1 %11532  ;;  %2265 = vmatpush.msra.mxu3 %v2227_v2  ;;  %2335 = vmatpush.msra.mxu0 %v2227_v2  ;;  %v9022_v2 = vor.u32 %v10894_v28, %v9019_v53  ;;  %v10916_v28 = vld [vmem:[#allocation16 + $0xe4] sm:$0xf] }
 0x568   :  { %v11535_v31 = vunpack.i.h.bf16 %v11533_v43  ;;  %v11534_v22 = vunpack.i.l.bf16 %v11533_v43  ;;  %2365 = vmatpush.msrb.mxu1 %v2226_v47  ;;  %v9011_v43 = vld [vmem:[#allocation16 + $0x28] sm:$0xf0] }
 0x569   :  { %2266 = vmatpush.msra.mxu3 %v2225_v57  ;;  %2336 = vmatpush.msra.mxu0 %v2225_v57 }
 0x56a   :  { %v2224_v30 = vmax.f32 %v13490_v6, %v11535_v31  ;;  %v2197_v17 = vsel %vm1873_vm15, %v11534_v22, %v11535_v31  ;;  %v2220_v6 = vmax.f32 %v13433_v34, %v11545_v29  ;;  %v1326_v34 = vld [vmem:[#allocation13 + $0x8] sm:$0xff]  ;;  %v9001_v29 = vld [vmem:[#allocation16 + $0x10] sm:$0xf]  ;;  %v10890_v31 = vld [vmem:[#allocation16 + $0x14] sm:$0xf] }
 0x56b   :  { %v2223_v3 = vmax.f32 %v14546_v40, %v2197_v17  ;;  %v9002_v22 = vor.u32 %v10891_v55, %v9001_v29  ;;  %v8993_v17 = vld [vmem:[#allocation16] sm:$0xf]  ;;  %v8995_v40 = vld [vmem:[#allocation16 + $0x8] sm:$0xf0]  ;;  %v9098_v29 = vor.u32 %v10915_v36, %v9097_v25  ;;  %v9179_v36 = vld [vmem:[#allocation16 + $0x178] sm:$0xf0] }
 0x56c   :  { %2366 = vmatpush.msrb.mxu1 %v2224_v30  ;;  %v8994_v49 = vor.u32 %v10889_v24, %v8993_v17  ;;  %v9091_v17 = vld [vmem:[#allocation16 + $0xc8] sm:$0xf0] }
 0x56d   :  { %2267 = vmatpush.msra.mxu3 %v2223_v3  ;;  %2337 = vmatpush.msra.mxu0 %v2223_v3  ;;  %v8998_v3 = vor.u32 %v10888_v10, %v8995_v40 }
 0x56e   :  { %2367 = vmatpush.msrb.mxu1 %v2222_v23 }
 0x56f   :  { %2268 = vmatpush.msra.mxu3 %v2221_v13  ;;  %2338 = vmatpush.msra.mxu0 %v2221_v13 }
 0x570   :  { %2368 = vmatpush.msrb.mxu1 %v2220_v6 }
 0x571   :  { %2269 = vmatpush.msra.mxu3 %v2219_v37  ;;  %2339 = vmatpush.msra.mxu0 %v2219_v37 }
 0x572   :  { %8972 = vmatmul.msk.f32.vlgmr.msra.gmra.mxu3 %vm2235_vm0, %v1325_v9  ;;  %8982 = vmatmul.msk.f32.vlgmr.msra.gmra.mxu0 %vm2235_vm0, %v1329_v27 }
 0x573   :  { %8976 = vmatpush.msk.msrb.mxu3 %vm1365_vm12, %v13502_v41  ;;  %8987 = vmatmul.msk.f32.vlgmr.msrb.gmra.mxu1 %vm2235_vm0, %v1329_v27  ;;  %v1328_v41 = vld [vmem:[#allocation13 + $0x18] sm:$0x3f] }
 0x574   :  { %2837 = vmatpush.bf16.msra.mxu1 %v9054_v42 }
 0x575   :  { %2292 = vmatpush.msrb.mxu3 %v13510_v11  ;;  %v1332_v11 = vld [vmem:[#allocation14 + $0x18] sm:$0x3f] }
 0x577   :  { %2293 = vmatpush.msrb.mxu3 %v2230_v54  ;;  %v10897_v54 = vld [vmem:[#allocation16 + $0x44] sm:$0xf0] }
 0x578   :  { %2838 = vmatpush.bf16.msra.mxu1 %v9046_v18  ;;  %v9026_v12 = vor.u32 %v10897_v54, %v9025_v50  ;;  %v10919_v50 = vld [vmem:[#allocation16 + $0xf4] sm:$0xf0]  ;;  %v10918_v54 = vld [vmem:[#allocation16 + $0xf4] sm:$0xf] }
 0x579   :  { %2294 = vmatpush.msrb.mxu3 %v2228_v61  ;;  %v10895_v61 = vld [vmem:[#allocation16 + $0x34] sm:$0xf0] }
 0x57a   :  { %8973 = vmatmul.msk.f32.gmra.mxu3 %vm2235_vm0, %v1326_v34  ;;  %8983 = vmatmul.msk.f32.gmra.mxu0 %vm2235_vm0, %v1330_v52  ;;  %v9018_v1 = vor.u32 %v10895_v61, %v9017_v16  ;;  %v10917_v16 = vld [vmem:[#allocation16 + $0xe4] sm:$0xf0] }
 0x57b   :  { %2295 = vmatpush.msrb.mxu3 %v2226_v47  ;;  %8988 = vmatmul.msk.f32.gmra.mxu1 %vm2235_vm0, %v1330_v52  ;;  %v10892_v47 = vld [vmem:[#allocation16 + $0x24] sm:$0xf] }
 0x57c   :  { %2839 = vmatpush.bf16.msra.mxu1 %v9038_v62  ;;  %2783 = vmatpush.bf16.msra.mxu2 %v9026_v12  ;;  %v9014_v57 = vor.u32 %v10892_v47, %v9011_v43  ;;  %v9113_v62 = vld [vmem:[#allocation16 + $0xf0] sm:$0xf]  ;;  %v9115_v12 = vld [vmem:[#allocation16 + $0xf8] sm:$0xf0]  ;;  %v10914_v47 = vld [vmem:[#allocation16 + $0xd4] sm:$0xf] }
 0x57d   :  { %2296 = vmatpush.msrb.mxu3 %v2224_v30  ;;  %v9006_v30 = vor.u32 %v10890_v31, %v9003_v4  ;;  %v9114_v48 = vor.u32 %v10919_v50, %v9113_v62  ;;  %v9118_v61 = vor.u32 %v10918_v54, %v9115_v12  ;;  %v10913_v4 = vld [vmem:[#allocation16 + $0xc4] sm:$0xf0]  ;;  %v10906_v62 = vld [vmem:[#allocation16 + $0x94] sm:$0xf]  ;;  %v9067_v54 = vld [vmem:[#allocation16 + $0x98] sm:$0xf0] }
 0x57e   :  { %v10905_v12 = vld [vmem:[#allocation16 + $0x84] sm:$0xf0] }
 0x57f   :  { %2297 = vmatpush.msrb.mxu3 %v2222_v23 }
 0x580   :  { %2840 = vmatpush.bf16.msra.mxu1 %v9030_v20  ;;  %2784 = vmatpush.bf16.msra.mxu2 %v9018_v1  ;;  %v9105_v20 = vld [vmem:[#allocation16 + $0xe0] sm:$0xf]  ;;  %v9107_v1 = vld [vmem:[#allocation16 + $0xe8] sm:$0xf0] }
 0x581   :  { %2298 = vmatpush.msrb.mxu3 %v2220_v6  ;;  %v9106_v53 = vor.u32 %v10917_v16, %v9105_v20  ;;  %v10904_v20 = vld [vmem:[#allocation16 + $0x84] sm:$0xf] }
 0x582   :  { %8974 = vmatmul.msk.f32.gmra.mxu3 %vm2235_vm0, %v1327_v46  ;;  %8984 = vmatmul.msk.f32.gmra.mxu0 %vm2235_vm0, %v1331_v32 }
 0x583   :  { %8989 = vmatmul.msk.f32.gmra.mxu1 %vm2235_vm0, %v1331_v32  ;;  %2799 = vmatpush.bf16.msra.mxu3 %v9114_v48  ;;  %v9057_v48 = vld [vmem:[#allocation16 + $0x80] sm:$0xf] }
 0x584   :  { %2841 = vmatpush.bf16.msra.mxu1 %v9022_v2  ;;  %2785 = vmatpush.bf16.msra.mxu2 %v9010_v35  ;;  %v9110_v2 = vor.u32 %v10916_v28, %v9107_v1  ;;  %v9099_v35 = vld [vmem:[#allocation16 + $0xd8] sm:$0xf0]  ;;  %v9058_v16 = vor.u32 %v10905_v12, %v9057_v48  ;;  %v9177_v1 = vld [vmem:[#allocation16 + $0x170] sm:$0xf]  ;;  %v10920_v48 = vld [vmem:[#allocation16 + $0x104] sm:$0xf] }
 0x585   :  { %v9102_v31 = vor.u32 %v10914_v47, %v9099_v35  ;;  %v9169_v47 = vld [vmem:[#allocation16 + $0x160] sm:$0xf]  ;;  %v10933_v35 = vld [vmem:[#allocation16 + $0x164] sm:$0xf0] }
 0x587   :  { %2800 = vmatpush.bf16.msra.mxu3 %v9106_v53  ;;  %v10935_v53 = vld [vmem:[#allocation16 + $0x174] sm:$0xf0] }
 0x588   :  { %2842 = vmatpush.bf16.msra.mxu1 %v9014_v57  ;;  %2786 = vmatpush.bf16.msra.mxu2 %v9002_v22  ;;  %v9089_v22 = vld [vmem:[#allocation16 + $0xc0] sm:$0xf]  ;;  %v9178_v25 = vor.u32 %v10935_v53, %v9177_v1 }
 0x58a   :  { %8975 = vmatmul.msk.f32.gmra.mxu3 %vm2235_vm0, %v1328_v41  ;;  %8985 = vmatmul.msk.f32.gmra.mxu0 %vm2235_vm0, %v1332_v11 }
 0x58b   :  { %8990 = vmatmul.msk.f32.gmra.mxu1 %vm2235_vm0, %v1332_v11  ;;  %2801 = vmatpush.bf16.msra.mxu3 %v9098_v29  ;;  %v10932_v29 = vld [vmem:[#allocation16 + $0x164] sm:$0xf] }
 0x58c   :  { %2843 = vmatpush.bf16.msra.mxu1 %v9006_v30  ;;  %2787 = vmatpush.bf16.msra.mxu2 %v8994_v49  ;;  %v10912_v30 = vld [vmem:[#allocation16 + $0xc4] sm:$0xf] }
 0x58d   :  { %2818 = vmatpush.bf16.msrb.mxu0 %v9178_v25 }
 0x590   :  { %2844 = vmatpush.bf16.msra.mxu1 %v8998_v3  ;;  %2856 = vmatpush.bf16.msrb.mxu2 %v9118_v61  ;;  %v9059_v61 = vld [vmem:[#allocation16 + $0x88] sm:$0xf0] }
 0x591   :  { %v9062_v28 = vor.u32 %v10904_v20, %v9059_v61 }
 0x592   :  { %8977 = vmatmul.msk.f32.vlgmr.msrb.gmra.mxu3 %vm2235_vm0, %v1325_v9 }
 0x594   :  { %2857 = vmatpush.bf16.msrb.mxu2 %v9110_v2  ;;  %v10934_v2 = vld [vmem:[#allocation16 + $0x174] sm:$0xf] }
 0x598   :  { %2858 = vmatpush.bf16.msrb.mxu2 %v9102_v31  ;;  %v9170_v31 = vor.u32 %v10933_v35, %v9169_v47 }
 0x59a   :  { %8978 = vmatmul.msk.f32.gmra.mxu3 %vm2235_vm0, %v1326_v34  ;;  %2819 = vmatpush.bf16.msrb.mxu0 %v9170_v31 }
 0x5a2   :  { %8979 = vmatmul.msk.f32.gmra.mxu3 %vm2235_vm0, %v1327_v46 }
 0x5aa   :  { %8980 = vmatmul.msk.f32.gmra.mxu3 %vm2235_vm0, %v1328_v41  ;;  %v9075_v41 = vld [vmem:[#allocation16 + $0xa8] sm:$0xf0] }
 0x5ef   :  { %v2341_v23 = vpop.f32.mrf.mxu0 }
 0x5f0   :  { %v2370_v39 = vpop.f32.mrf.mxu1 }
 0x5f5   :  { %v2271_v58 = vpop.f32.mrf.mxu3 }
 0x5f6   :  { %v2382_v45 = vmax.f32 %v2271_v58, %v2341_v23  ;;  %v9090_v23 = vor.u32 %v10913_v4, %v9089_v22  ;;  %v9094_v58 = vor.u32 %v10912_v30, %v9091_v17  ;;  %v9161_v4 = vld [vmem:[#allocation16 + $0x150] sm:$0xf]  ;;  %v10931_v30 = vld [vmem:[#allocation16 + $0x154] sm:$0xf0]  ;;  %v10930_v17 = vld [vmem:[#allocation16 + $0x154] sm:$0xf] }
 0x5f7   :  { %v2344_v0 = vpop.f32.mrf.mxu0 }
 0x5f8   :  { %v2447_v6 = vrot.slane %v2382_v45, 7  ;;  %v2373_v21 = vpop.f32.mrf.mxu1  ;;  %2802 = vmatpush.bf16.msra.mxu3 %v9090_v23  ;;  %2859 = vmatpush.bf16.msrb.mxu2 %v9094_v58  ;;  %v10929_v23 = vld [vmem:[#allocation16 + $0x144] sm:$0xf0]  ;;  %v10928_v58 = vld [vmem:[#allocation16 + $0x144] sm:$0xf] }
 0x5fd   :  { %v2274_v33 = vpop.f32.mrf.mxu3 }
 0x5fe   :  { %v2384_v13 = vmax.f32 %v2274_v33, %v2344_v0  ;;  %v9081_v0 = vld [vmem:[#allocation16 + $0xb0] sm:$0xf] }
 0x5ff   :  { %v2347_v34 = vpop.f32.mrf.mxu0 }
 0x600   :  { %v2449_v37 = vrot.slane %v2384_v13, 7  ;;  %v2459_v9 = vsel %vm1494_vm13, %v2384_v13, 0.0  ;;  %v2483_v60 = vrot.slane %v2384_v13, 6  ;;  %v2376_v3 = vpop.f32.mrf.mxu1  ;;  %v10910_v13 = vld [vmem:[#allocation16 + $0xb4] sm:$0xf] }
 0x601   :  { %v11546_v27 = vpack.i.bf16 %v2459_v9, %v2382_v45  ;;  %v10911_v45 = vld [vmem:[#allocation16 + $0xb4] sm:$0xf0] }
 0x602   :  { %v2450_v52 = vsel %vm435_vm1, %v2447_v6, %v2449_v37  ;;  %v9082_v9 = vor.u32 %v10911_v45, %v9081_v0  ;;  %v9155_v45 = vld [vmem:[#allocation16 + $0x148] sm:$0xf0] }
 0x603   :  { %v9185_v46 = vpack.c.bf16 %v2450_v52, %v2447_v6  ;;  %11547 = vrot.lane.b32.xlu1 %v11546_v27, %s12398_s11  ;;  %v9083_v6 = vld [vmem:[#allocation16 + $0xb8] sm:$0xf0]  ;;  %v9073_v52 = vld [vmem:[#allocation16 + $0xa0] sm:$0xf] }
 0x604   :  { %2803 = vmatpush.bf16.msra.mxu3 %v9082_v9  ;;  %v10926_v9 = vld [vmem:[#allocation16 + $0x134] sm:$0xf] }
 0x605   :  { %v2277_v32 = vpop.f32.mrf.mxu3  ;;  %9186 = vmatmul.msk.bf16.vlgmr.msra.gmra.mxu2 %vm13175_vm10, %v9185_v46  ;;  %9194 = vmatmul.msk.bf16.vlgmr.msra.gmra.mxu1 %vm13175_vm10, %v9185_v46  ;;  %v10909_v46 = vld [vmem:[#allocation16 + $0xa4] sm:$0xf0] }
 0x606   :  { %v2386_v11 = vmax.f32 %v2277_v32, %v2347_v34  ;;  %v9086_v34 = vor.u32 %v10910_v13, %v9083_v6  ;;  %v10908_v32 = vld [vmem:[#allocation16 + $0xa4] sm:$0xf]  ;;  %v9158_v13 = vor.u32 %v10928_v58, %v9155_v45  ;;  %v9145_v6 = vld [vmem:[#allocation16 + $0x130] sm:$0xf] }
 0x607   :  { %v2350_v38 = vpop.f32.mrf.mxu0 }
 0x608   :  { %v2484_v56 = vrot.slane %v2386_v11, 6  ;;  %v2499_v26 = vrot.slane %v2386_v11, 7  ;;  %2860 = vmatpush.bf16.msrb.mxu2 %v9086_v34  ;;  %v9147_v34 = vld [vmem:[#allocation16 + $0x138] sm:$0xf0] }
 0x60a   :  { %v2485_v51 = vsel %vm1033_vm5, %v2483_v60, %v2484_v56  ;;  %v2500_v5 = vsel %vm435_vm1, %v2449_v37, %v2499_v26 }
 0x60d   :  { %v2280_v8 = vpop.f32.mrf.mxu3 }
 0x60e   :  { %v2388_v44 = vmax.f32 %v2280_v8, %v2350_v38  ;;  %v9074_v8 = vor.u32 %v10909_v46, %v9073_v52  ;;  %v9150_v52 = vor.u32 %v10926_v9, %v9147_v34  ;;  %v9137_v46 = vld [vmem:[#allocation16 + $0x120] sm:$0xf] }
 0x610   :  { %v2489_v42 = vrot.slane %v2388_v44, 6  ;;  %v2503_v7 = vrot.slane %v2388_v44, 7  ;;  %v2379_v44 = vpop.f32.mrf.mxu1  ;;  %2804 = vmatpush.bf16.msra.mxu3 %v9074_v8 }
 0x612   :  { %v2490_v59 = vsel %vm1033_vm5, %v2484_v56, %v2489_v42  ;;  %v2504_v18 = vsel %vm435_vm1, %v2499_v26, %v2503_v7  ;;  %v9078_v56 = vor.u32 %v10908_v32, %v9075_v41  ;;  %v10925_v32 = vld [vmem:[#allocation16 + $0x124] sm:$0xf0]  ;;  %v10924_v41 = vld [vmem:[#allocation16 + $0x124] sm:$0xf] }
 0x613   :  { %v9189_v15 = vpack.c.bf16 %v2490_v59, %v2485_v51  ;;  %v2509_v63 = vsel %vm1494_vm13, %v2504_v18, 0.0 }
 0x614   :  { %v11551_v19 = vpack.i.bf16 %v2509_v63, %v2500_v5  ;;  %2861 = vmatpush.bf16.msrb.mxu2 %v9078_v56 }
 0x615   :  { %v2300_v14 = vpop.f32.mrf.mxu3  ;;  %9190 = vmatmul.msk.bf16.gmra.mxu2 %vm13175_vm10, %v9189_v15  ;;  %9198 = vmatmul.msk.bf16.gmra.mxu1 %vm13175_vm10, %v9189_v15 }
 0x616   :  { %11552 = vrot.lane.b32.xlu2 %v11551_v19, %s12398_s11  ;;  %v13582_v43 = vmax.f32 %v2300_v14, %v2370_v39  ;;  %v9065_v19 = vld [vmem:[#allocation16 + $0x90] sm:$0xf]  ;;  %v10907_v14 = vld [vmem:[#allocation16 + $0x94] sm:$0xf0] }
 0x617   :  { %v9066_v50 = vor.u32 %v10907_v14, %v9065_v19 }
 0x618   :  { %v2448_v24 = vrot.slane %v13582_v43, 7 }
 0x619   :  { %2805 = vmatpush.bf16.msra.mxu3 %v9066_v50 }
 0x61a   :  { %v2458_v12 = vsel %vm435_vm1, 0.0, %v2448_v24 }
 0x61d   :  { %v2303_v57 = vpop.f32.mrf.mxu3  ;;  %2806 = vmatpush.bf16.msra.mxu3 %v9058_v16  ;;  %v9123_v16 = vld [vmem:[#allocation16 + $0x108] sm:$0xf0] }
 0x61e   :  { %v2385_v55 = vmax.f32 %v2303_v57, %v2373_v21  ;;  %v9070_v21 = vor.u32 %v10906_v62, %v9067_v54  ;;  %v9182_v57 = vor.u32 %v10934_v2, %v9179_v36 }
 0x620   :  { %v2451_v10 = vrot.slane %v2385_v55, 7  ;;  %v2460_v49 = vsel %vm1494_vm13, %v2385_v55, 0.0  ;;  %v2486_v11 = vrot.slane %v2385_v55, 6  ;;  %2862 = vmatpush.bf16.msrb.mxu2 %v9070_v21  ;;  %v9171_v55 = vld [vmem:[#allocation16 + $0x168] sm:$0xf0] }
 0x621   :  { %v11556_v40 = vpack.i.bf16 %v2460_v49, %v13582_v43  ;;  %2875 = vmatpush.bf16.msrb.mxu3 %v9182_v57  ;;  %v9174_v22 = vor.u32 %v10932_v29, %v9171_v55  ;;  %v9163_v49 = vld [vmem:[#allocation16 + $0x158] sm:$0xf0]  ;;  %v10921_v21 = vld [vmem:[#allocation16 + $0x104] sm:$0xf0] }
 0x622   :  { %v13590_v33 = vsel %vm435_vm1, %v2448_v24, %v2451_v10 }
 0x623   :  { %11557 = vrot.lane.b32.xlu0 %v11556_v40, %s12398_s11  ;;  %v9166_v40 = vor.u32 %v10930_v17, %v9163_v49 }
 0x624   :  { %2863 = vmatpush.bf16.msrb.mxu2 %v9062_v28  ;;  %v9126_v28 = vor.u32 %v10920_v48, %v9123_v16  ;;  %v11011_v48 = vld [vmem:[#allocation22 + $0x254] sm:$0xf0] }
 0x625   :  { %v2306_v37 = vpop.f32.mrf.mxu3  ;;  %2876 = vmatpush.bf16.msrb.mxu3 %v9174_v22 }
 0x626   :  { %v2387_v27 = vmax.f32 %v2306_v37, %v2376_v3  ;;  %v9153_v3 = vld [vmem:[#allocation16 + $0x140] sm:$0xf]  ;;  %v10927_v37 = vld [vmem:[#allocation16 + $0x134] sm:$0xf0] }
 0x627   :  { %v9154_v0 = vor.u32 %v10929_v23, %v9153_v3 }
 0x628   :  { %v2487_v38 = vrot.slane %v2387_v27, 6  ;;  %v2501_v42 = vrot.slane %v2387_v27, 7  ;;  %v9146_v27 = vor.u32 %v10927_v37, %v9145_v6 }
 0x629   :  { %2877 = vmatpush.bf16.msrb.mxu3 %v9166_v40 }
 0x62a   :  { %v13594_v39 = vsel %vm1033_vm5, %v2486_v11, %v2487_v38  ;;  %v2502_v15 = vsel %vm435_vm1, %v2451_v10, %v2501_v42  ;;  %v9162_v10 = vor.u32 %v10931_v30, %v9161_v4  ;;  %v9138_v11 = vor.u32 %v10925_v32, %v9137_v46  ;;  %v11029_v46 = vld [vmem:[#allocation22 + $0x2e4] sm:$0xf0] }
 0x62c   :  { %2820 = vmatpush.bf16.msrb.mxu0 %v9162_v10 }
 0x62d   :  { %v2309_v26 = vpop.f32.mrf.mxu3  ;;  %2878 = vmatpush.bf16.msrb.mxu3 %v9158_v13 }
 0x62e   :  { %v2389_v60 = vmax.f32 %v2309_v26, %v2379_v44 }
 0x630   :  { %v2491_v7 = vrot.slane %v2389_v60, 6  ;;  %v2505_v51 = vrot.slane %v2389_v60, 7  ;;  %2821 = vmatpush.bf16.msrb.mxu0 %v9154_v0  ;;  %v2498_v60 = vsel %vm435_vm1, 0.0, %v13594_v39  ;;  %v9121_v39 = vld [vmem:[#allocation16 + $0x100] sm:$0xf] }
 0x631   :  { %2879 = vmatpush.bf16.msrb.mxu3 %v9150_v52  ;;  %v9122_v20 = vor.u32 %v10921_v21, %v9121_v39  ;;  %v9571_v52 = vld [vmem:[#allocation22 + $0x2d0] sm:$0xf]  ;;  %v9499_v21 = vld [vmem:[#allocation22 + $0x240] sm:$0xf] }
 0x632   :  { %v2506_v59 = vsel %vm435_vm1, %v2501_v42, %v2505_v51  ;;  %v13598_v18 = vsel %vm1033_vm5, %v2487_v38, %v2491_v7  ;;  %v9139_v38 = vld [vmem:[#allocation16 + $0x128] sm:$0xf0]  ;;  %v9129_v42 = vld [vmem:[#allocation16 + $0x110] sm:$0xf]  ;;  %v10923_v7 = vld [vmem:[#allocation16 + $0x114] sm:$0xf0]  ;;  %v9572_v32 = vor.u32 %v11029_v46, %v9571_v52 }
 0x633   :  { %v2510_v5 = vsel %vm1494_vm13, %v2506_v59, 0.0  ;;  %v9142_v56 = vor.u32 %v10924_v41, %v9139_v38  ;;  %v10922_v51 = vld [vmem:[#allocation16 + $0x114] sm:$0xf]  ;;  %v10957_v46 = vld [vmem:[#allocation22 + $0xa4] sm:$0xf0] }
 0x634   :  { %v11561_v63 = vpack.i.bf16 %v2510_v5, %v2502_v15  ;;  %2822 = vmatpush.bf16.msrb.mxu0 %v9146_v27  ;;  %v9130_v5 = vor.u32 %v10923_v7, %v9129_v42  ;;  %v9379_v41 = vld [vmem:[#allocation22 + $0x150] sm:$0xf]  ;;  %v10975_v7 = vld [vmem:[#allocation22 + $0x134] sm:$0xf0] }
 0x635   :  { %2880 = vmatpush.bf16.msrb.mxu3 %v9142_v56  ;;  %v11023_v56 = vld [vmem:[#allocation22 + $0x2b4] sm:$0xf0] }
 0x636   :  { %11562 = vrot.lane.b32.xlu1 %v11561_v63, %s12398_s11  ;;  %v9131_v63 = vld [vmem:[#allocation16 + $0x118] sm:$0xf0] }
 0x637   :  { %v9134_v14 = vor.u32 %v10922_v51, %v9131_v63  ;;  %v9331_v63 = vld [vmem:[#allocation22 + $0xf0] sm:$0xf] }
 0x638   :  { %2823 = vmatpush.bf16.msrb.mxu0 %v9138_v11  ;;  %v10981_v11 = vld [vmem:[#allocation22 + $0x164] sm:$0xf0] }
 0x639   :  { %2881 = vmatpush.bf16.msrb.mxu3 %v9134_v14  ;;  %v9380_v38 = vor.u32 %v10981_v11, %v9379_v41 }
 0x63b   :  { %5330 = vmatpush.bf16.msra.mxu2 %v9380_v38 }
 0x63c   :  { %2824 = vmatpush.bf16.msrb.mxu0 %v9130_v5  ;;  %v11017_v5 = vld [vmem:[#allocation22 + $0x284] sm:$0xf0] }
 0x63d   :  { %2882 = vmatpush.bf16.msrb.mxu3 %v9126_v28 }
 0x640   :  { %2825 = vmatpush.bf16.msrb.mxu0 %v9122_v20 }
 0x670   :  { %v11553_v8 = vpop.permute.xlu2 %11552 }
 0x671   :  { %v11555_v44 = vunpack.i.h.bf16 %v11553_v8  ;;  %v11554_v26 = vunpack.i.l.bf16 %v11553_v8  ;;  %v9547_v8 = vld [vmem:[#allocation22 + $0x2a0] sm:$0xf] }
 0x672   :  { %v9548_v42 = vor.u32 %v11023_v56, %v9547_v8 }
 0x673   :  { %v2527_v59 = vsel %vm1873_vm15, %v2498_v60, %v11554_v26  ;;  %v2528_v15 = vsel %vm1873_vm15, %v13598_v18, %v11555_v44 }
 0x674   :  { %v2533_v19 = vpack.c.bf16 %v2528_v15, %v2527_v59  ;;  %v9523_v59 = vld [vmem:[#allocation22 + $0x270] sm:$0xf] }
 0x675   :  { %v11548_v62 = vpop.permute.xlu1 %11547 }
 0x676   :  { %v11550_v50 = vunpack.i.h.bf16 %v11548_v62  ;;  %v11549_v54 = vunpack.i.l.bf16 %v11548_v62 }
 0x678   :  { %v2477_v18 = vsel %vm1873_vm15, %v2458_v12, %v11549_v54  ;;  %v2478_v61 = vsel %vm1873_vm15, %v13590_v33, %v11550_v50 }
 0x679   :  { %v2530_v1 = vpack.c.bf16 %v2478_v61, %v2477_v18  ;;  %v9307_v18 = vld [vmem:[#allocation22 + $0xc0] sm:$0xf]  ;;  %v10963_v61 = vld [vmem:[#allocation22 + $0xd4] sm:$0xf0] }
 0x67b   :  { %2807 = vmatmul.bf16.vlgmr.msra.gmra.mxu3 %v2530_v1  ;;  %2864 = vmatmul.bf16.vlgmr.msrb.gmra.mxu2 %v2530_v1 }
 0x67c   :  { %5343 = vmatpush.bf16.msra.mxu3 %v9572_v32 }
 0x680   :  { %5344 = vmatpush.bf16.msra.mxu3 %v9548_v42  ;;  %v10951_v42 = vld [vmem:[#allocation22 + $0x74] sm:$0xf0] }
 0x682   :  { %v2846_v40 = vpop.f32.mrf.mxu1 }
 0x688   :  { %v13618_v31 = vpop.f32.mrf.mxu2 }
 0x68a   :  { %v2848_v0 = vpop.f32.mrf.mxu1 }
 0x68b   :  { %2812 = vmatmul.bf16.gmra.mxu3 %v2533_v19  ;;  %2869 = vmatmul.bf16.gmra.mxu2 %v2533_v19  ;;  %v10969_v19 = vld [vmem:[#allocation22 + $0x104] sm:$0xf0] }
 0x68c   :  { %v9332_v39 = vor.u32 %v10969_v19, %v9331_v63  ;;  %v9931_v63 = vld [vmem:[#allocation22 + $0x5a0] sm:$0xf]  ;;  %v11119_v19 = vld [vmem:[#allocation22 + $0x5b4] sm:$0xf0] }
 0x690   :  { %v2791_v22 = vpop.f32.mrf.mxu2 }
 0x692   :  { %v2851_v37 = vpop.f32.mrf.mxu1 }
 0x695   :  { %v11558_v53 = vpop.permute.xlu0 %11557 }
 0x696   :  { %v11560_v2 = vunpack.i.h.bf16 %v11558_v53  ;;  %v11559_v43 = vunpack.i.l.bf16 %v11558_v53 }
 0x698   :  { %v2472_v24 = vsel %vm1873_vm15, %v11550_v50, %v11560_v2  ;;  %v2471_v25 = vsel %vm1873_vm15, %v11549_v54, %v11559_v43  ;;  %v2794_v30 = vpop.f32.mrf.mxu2  ;;  %v9524_v50 = vor.u32 %v11017_v5, %v9523_v59  ;;  %v11071_v5 = vld [vmem:[#allocation22 + $0x434] sm:$0xf0] }
 0x699   :  { %v2531_v36 = vpack.c.bf16 %v2472_v24, %v2471_v25  ;;  %v9500_v25 = vor.u32 %v11011_v48, %v9499_v21  ;;  %v9932_v48 = vor.u32 %v11119_v19, %v9931_v63 }
 0x69a   :  { %v2853_v15 = vpop.f32.mrf.mxu1  ;;  %5345 = vmatpush.bf16.msra.mxu3 %v9524_v50  ;;  %v10993_v50 = vld [vmem:[#allocation22 + $0x1c4] sm:$0xf0] }
 0x69b   :  { %2826 = vmatmul.bf16.vlgmr.msrb.gmra.mxu0 %v2531_v36  ;;  %2883 = vmatmul.bf16.vlgmr.msrb.gmra.mxu3 %v2531_v36 }
 0x69e   :  { %5346 = vmatpush.bf16.msra.mxu3 %v9500_v25  ;;  %v11221_v25 = vld [vmem:[#allocation22 + $0x8e4] sm:$0xf0] }
 0x6a0   :  { %v2796_v49 = vpop.f32.mrf.mxu2 }
 0x6a8   :  { %v11563_v47 = vpop.permute.xlu1 %11562 }
 0x6a9   :  { %v11565_v33 = vunpack.i.h.bf16 %v11563_v47  ;;  %v11564_v35 = vunpack.i.l.bf16 %v11563_v47 }
 0x6ab   :  { %v2521_v57 = vsel %vm1873_vm15, %v11554_v26, %v11564_v35  ;;  %v2522_v29 = vsel %vm1873_vm15, %v11555_v44, %v11565_v33  ;;  %v9355_v44 = vld [vmem:[#allocation22 + $0x120] sm:$0xf]  ;;  %v2438_v26 = vld [vmem:[#allocation17] sm:$0x3] }
 0x6ac   :  { %v2534_v55 = vpack.c.bf16 %v2522_v29, %v2521_v57  ;;  %v9356_v51 = vor.u32 %v10975_v7, %v9355_v44  ;;  %v2537_v14 = vperm.slane %v2438_v26, 1  ;;  %v2536_v62 = vperm.slane %v2438_v26, 0  ;;  %v9475_v29 = vld [vmem:[#allocation22 + $0x210] sm:$0xf]  ;;  %v11125_v44 = vld [vmem:[#allocation22 + $0x5e4] sm:$0xf0] }
 0x6ad   :  { %v9308_v57 = vor.u32 %v10963_v61, %v9307_v18  ;;  %v2439_v7 = vld [vmem:[#allocation19] sm:$0xff]  ;;  %v11113_v18 = vld [vmem:[#allocation22 + $0x584] sm:$0xf0] }
 0x6ae   :  { %2831 = vmatmul.bf16.gmra.mxu0 %v2534_v55  ;;  %2888 = vmatmul.bf16.gmra.mxu3 %v2534_v55  ;;  %v2852_v12 = vadd.f32 %v2851_v37, %v2537_v14  ;;  %v2854_v20 = vadd.f32 %v2853_v15, %v2537_v14  ;;  %v2797_v16 = vadd.f32 %v2796_v49, %v2536_v62  ;;  %v9739_v15 = vld [vmem:[#allocation22 + $0x420] sm:$0xf] }
 0x6af   :  { %5331 = vmatpush.bf16.msra.mxu2 %v9356_v51  ;;  %v2849_v28 = vadd.f32 %v2848_v0, %v2537_v14  ;;  %v2795_v1 = vadd.f32 %v2794_v30, %v2536_v62  ;;  %v2847_v36 = vadd.f32 %v2846_v40, %v2537_v14  ;;  %v2792_v47 = vadd.f32 %v2791_v22, %v2536_v62  ;;  %v11005_v0 = vld [vmem:[#allocation22 + $0x224] sm:$0xf0]  ;;  %v9283_v30 = vld [vmem:[#allocation22 + $0x90] sm:$0xf] }
 0x6b0   :  { %v9284_v11 = vor.u32 %v10957_v46, %v9283_v30  ;;  %v9740_v21 = vor.u32 %v11071_v5, %v9739_v15  ;;  %v10075_v15 = vld [vmem:[#allocation22 + $0x6c0] sm:$0xf]  ;;  %v11155_v5 = vld [vmem:[#allocation22 + $0x6d4] sm:$0xf0] }
 0x6b3   :  { %5332 = vmatpush.bf16.msra.mxu2 %v9332_v39  ;;  %v10945_v39 = vld [vmem:[#allocation22 + $0x44] sm:$0xf0] }
 0x6b7   :  { %5333 = vmatpush.bf16.msra.mxu2 %v9308_v57 }
 0x6bb   :  { %5334 = vmatpush.bf16.msra.mxu2 %v9284_v11  ;;  %v11053_v11 = vld [vmem:[#allocation22 + $0x3a4] sm:$0xf0] }
 0x6fe   :  { %v13620_v4 = vpop.f32.mrf.mxu3  ;;  %v13626_v23 = vpop.f32.mrf.mxu2 }
 0x706   :  { %v13622_v17 = vpop.f32.mrf.mxu3  ;;  %v2867_v13 = vpop.f32.mrf.mxu2 }
 0x707   :  { %v2868_v33 = vadd.f32 %v2867_v13, %v2849_v28  ;;  %v2811_v40 = vadd.f32 %v13622_v17, %v2792_v47  ;;  %v9955_v17 = vld [vmem:[#allocation22 + $0x5d0] sm:$0xf]  ;;  %v11173_v47 = vld [vmem:[#allocation22 + $0x764] sm:$0xf0] }
 0x708   :  { %v9956_v59 = vor.u32 %v11125_v44, %v9955_v17  ;;  %v11209_v17 = vld [vmem:[#allocation22 + $0x884] sm:$0xf0]  ;;  %v10099_v44 = vld [vmem:[#allocation22 + $0x6f0] sm:$0xf] }
 0x70e   :  { %v13624_v10 = vpop.f32.mrf.mxu3  ;;  %v2870_v27 = vpop.f32.mrf.mxu2 }
 0x70f   :  { %v2871_v2 = vadd.f32 %v2870_v27, %v2852_v12  ;;  %v2814_v55 = vadd.f32 %v13624_v10, %v2795_v1  ;;  %v2866_v27 = vadd.f32 %v13626_v23, %v2847_v36  ;;  %v9476_v10 = vor.u32 %v11005_v0, %v9475_v29  ;;  %v11077_v23 = vld [vmem:[#allocation22 + $0x464] sm:$0xf0]  ;;  %v9715_v12 = vld [vmem:[#allocation22 + $0x3f0] sm:$0xf]  ;;  %v9403_v1 = vld [vmem:[#allocation22 + $0x180] sm:$0xf] }
 0x710   :  { %v10147_v36 = vld [vmem:[#allocation22 + $0x750] sm:$0xf] }
 0x711   :  { %5347 = vmatpush.bf16.msra.mxu3 %v9476_v10  ;;  %v9667_v10 = vld [vmem:[#allocation22 + $0x390] sm:$0xf] }
 0x716   :  { %v2815_v3 = vpop.f32.mrf.mxu3  ;;  %v2872_v54 = vpop.f32.mrf.mxu2 }
 0x717   :  { %v2816_v43 = vadd.f32 %v2815_v3, %v2797_v16  ;;  %v2873_v24 = vadd.f32 %v2872_v54, %v2854_v20  ;;  %v2790_v3 = vadd.f32 %v13618_v31, %v2536_v62  ;;  %v9763_v31 = vld [vmem:[#allocation22 + $0x450] sm:$0xf]  ;;  %v11065_v20 = vld [vmem:[#allocation22 + $0x404] sm:$0xf0] }
 0x718   :  { %v13628_v58 = vpop.f32.mrf.mxu0  ;;  %v9764_v51 = vor.u32 %v11077_v23, %v9763_v31  ;;  %v9427_v62 = vld [vmem:[#allocation22 + $0x1b0] sm:$0xf]  ;;  %v9716_v57 = vor.u32 %v11065_v20, %v9715_v12  ;;  %v9595_v12 = vld [vmem:[#allocation22 + $0x300] sm:$0xf]  ;;  %v11035_v20 = vld [vmem:[#allocation22 + $0x314] sm:$0xf0] }
 0x719   :  { %v2809_v41 = vadd.f32 %v13620_v4, %v2790_v3  ;;  %v10999_v4 = vld [vmem:[#allocation22 + $0x1f4] sm:$0xf0]  ;;  %v9235_v54 = vld [vmem:[#allocation22 + $0x30] sm:$0xf]  ;;  %v9428_v61 = vor.u32 %v10993_v50, %v9427_v62  ;;  %v10148_v3 = vor.u32 %v11173_v47, %v10147_v36  ;;  %v11089_v50 = vld [vmem:[#allocation22 + $0x4c4] sm:$0xf0] }
 0x71a   :  { %v9907_v16 = vld [vmem:[#allocation22 + $0x570] sm:$0xf]  ;;  %v9236_v28 = vor.u32 %v10945_v39, %v9235_v54  ;;  %v10076_v39 = vor.u32 %v11155_v5, %v10075_v15  ;;  %v10507_v36 = vld [vmem:[#allocation22 + $0xa20] sm:$0xf]  ;;  %v11263_v47 = vld [vmem:[#allocation22 + $0xa34] sm:$0xf0] }
 0x71b   :  { %v9908_v29 = vor.u32 %v11113_v18, %v9907_v16  ;;  %v10291_v23 = vld [vmem:[#allocation22 + $0x870] sm:$0xf]  ;;  %v9787_v16 = vld [vmem:[#allocation22 + $0x480] sm:$0xf]  ;;  %v11083_v18 = vld [vmem:[#allocation22 + $0x494] sm:$0xf0] }
 0x71c   :  { %v9811_v62 = vld [vmem:[#allocation22 + $0x4b0] sm:$0xf]  ;;  %v11287_v15 = vld [vmem:[#allocation22 + $0xaf4] sm:$0xf0] }
 0x71e   :  { %v13630_v45 = vpop.f32.mrf.mxu3 }
 0x71f   :  { %v2885_v38 = vadd.f32 %v13630_v45, %v2866_v27  ;;  %v10315_v27 = vld [vmem:[#allocation22 + $0x8a0] sm:$0xf] }
 0x720   :  { %v13632_v6 = vpop.f32.mrf.mxu0 }
 0x721   :  { %v2830_v8 = vadd.f32 %v13632_v6, %v2811_v40  ;;  %v2441_v6 = vld [vmem:[#allocation20] sm:$0xff]  ;;  %v11215_v40 = vld [vmem:[#allocation22 + $0x8b4] sm:$0xf0] }
 0x726   :  { %v13634_v9 = vpop.f32.mrf.mxu3 }
 0x727   :  { %v2887_v22 = vadd.f32 %v13634_v9, %v2868_v33  ;;  %v9451_v9 = vld [vmem:[#allocation22 + $0x1e0] sm:$0xf]  ;;  %v2440_v33 = vld [vmem:[#allocation19 + $0x8] sm:$0xff] }
 0x729   :  { %v2895_v26 = vmax.f32 %v2830_v8, %v2887_v22  ;;  %v10123_v22 = vld [vmem:[#allocation22 + $0x720] sm:$0xf]  ;;  %v11101_v8 = vld [vmem:[#allocation22 + $0x524] sm:$0xf0] }
 0x72b   :  { %v2832_v34 = vpop.f32.mrf.mxu0 }
 0x72c   :  { %v2833_v13 = vadd.f32 %v2832_v34, %v2814_v55  ;;  %v2828_v34 = vadd.f32 %v13628_v58, %v2809_v41  ;;  %v9452_v58 = vor.u32 %v10999_v4, %v9451_v9  ;;  %v9691_v55 = vld [vmem:[#allocation22 + $0x3c0] sm:$0xf]  ;;  %v11161_v9 = vld [vmem:[#allocation22 + $0x704] sm:$0xf0] }
 0x72d   :  { %v9643_v4 = vld [vmem:[#allocation22 + $0x360] sm:$0xf] }
 0x72e   :  { %v2894_v45 = vmax.f32 %v2828_v34, %v2885_v38  ;;  %5348 = vmatpush.bf16.msra.mxu3 %v9452_v58  ;;  %v9859_v38 = vld [vmem:[#allocation22 + $0x510] sm:$0xf]  ;;  %v9668_v34 = vor.u32 %v11053_v11, %v9667_v10 }
 0x72f   :  { %v9619_v58 = vld [vmem:[#allocation22 + $0x330] sm:$0xf] }
 0x730   :  { %v10051_v11 = vld [vmem:[#allocation22 + $0x690] sm:$0xf] }
 0x731   :  { %v2889_v60 = vpop.f32.mrf.mxu3 }
 0x732   :  { %v2890_v49 = vadd.f32 %v2889_v60, %v2871_v2  ;;  %v9259_v60 = vld [vmem:[#allocation22 + $0x60] sm:$0xf]  ;;  %v10339_v2 = vld [vmem:[#allocation22 + $0x8d0] sm:$0xf]  ;;  %5349 = vmatpush.bf16.msra.mxu3 %v9428_v61 }
 0x733   :  { %v2834_v53 = vpop.f32.mrf.mxu0  ;;  %v9260_v14 = vor.u32 %v10951_v42, %v9259_v60  ;;  %v10340_v46 = vor.u32 %v11221_v25, %v10339_v2  ;;  %v11047_v60 = vld [vmem:[#allocation22 + $0x374] sm:$0xf0]  ;;  %v9835_v42 = vld [vmem:[#allocation22 + $0x4e0] sm:$0xf]  ;;  %v10531_v61 = vld [vmem:[#allocation22 + $0xa50] sm:$0xf]  ;;  %v9596_v2 = vor.u32 %v11035_v20, %v9595_v12 }
 0x734   :  { %v2835_v37 = vadd.f32 %v2834_v53, %v2816_v43  ;;  %v2896_v56 = vmax.f32 %v2833_v13, %v2890_v49  ;;  %v10987_v53 = vld [vmem:[#allocation22 + $0x194] sm:$0xf0]  ;;  %v9211_v43 = vld [vmem:[#allocation22] sm:$0xf]  ;;  %v9644_v63 = vor.u32 %v11047_v60, %v9643_v4 }
 0x735   :  { %5335 = vmatpush.bf16.msra.mxu2 %v9260_v14  ;;  %v11059_v49 = vld [vmem:[#allocation22 + $0x3d4] sm:$0xf0]  ;;  %v9404_v0 = vor.u32 %v10987_v53, %v9403_v1  ;;  %v11041_v14 = vld [vmem:[#allocation22 + $0x344] sm:$0xf0]  ;;  %v10723_v1 = vld [vmem:[#allocation22 + $0xbd0] sm:$0xf] }
 0x736   :  { %v11167_v13 = vld [vmem:[#allocation22 + $0x734] sm:$0xf0]  ;;  %v11317_v53 = vld [vmem:[#allocation22 + $0xbe4] sm:$0xf0]  ;;  %v10027_v4 = vld [vmem:[#allocation22 + $0x660] sm:$0xf] }
 0x737   :  { %5350 = vmatpush.bf16.msra.mxu3 %v9404_v0  ;;  %v10124_v31 = vor.u32 %v11167_v13, %v10123_v22  ;;  %v10724_v25 = vor.u32 %v11317_v53, %v10723_v1  ;;  %v11131_v1 = vld [vmem:[#allocation22 + $0x614] sm:$0xf0]  ;;  %v10363_v53 = vld [vmem:[#allocation22 + $0x900] sm:$0xf] }
 0x739   :  { %v2891_v35 = vpop.f32.mrf.mxu3  ;;  %5336 = vmatpush.bf16.msra.mxu2 %v9236_v28  ;;  %v11269_v28 = vld [vmem:[#allocation22 + $0xa64] sm:$0xf0] }
 0x73a   :  { %v2892_v52 = vadd.f32 %v2891_v35, %v2873_v24  ;;  %v10939_v24 = vld [vmem:[#allocation22 + $0x14] sm:$0xf0] }
 0x73b   :  { %v2442_v35 = vld [vmem:[#allocation20 + $0x8] sm:$0xff]  ;;  %v9212_v30 = vor.u32 %v10939_v24, %v9211_v43  ;;  %5395 = vmatpush.bf16.msrb.mxu3 %v10340_v46  ;;  %v9788_v43 = vor.u32 %v11083_v18, %v9787_v16  ;;  %v10532_v24 = vor.u32 %v11269_v28, %v10531_v61  ;;  %v10459_v46 = vld [vmem:[#allocation22 + $0x9c0] sm:$0xf] }
 0x73c   :  { %v2897_v32 = vmax.f32 %v2835_v37, %v2892_v52  ;;  %v9883_v37 = vld [vmem:[#allocation22 + $0x540] sm:$0xf]  ;;  %v11107_v52 = vld [vmem:[#allocation22 + $0x554] sm:$0xf0] }
 0x73d   :  { %v9884_v41 = vor.u32 %v11107_v52, %v9883_v37  ;;  %5337 = vmatpush.bf16.msra.mxu2 %v9212_v30  ;;  %v10675_v37 = vld [vmem:[#allocation22 + $0xb70] sm:$0xf]  ;;  %v11305_v52 = vld [vmem:[#allocation22 + $0xb84] sm:$0xf0]  ;;  %v10171_v16 = vld [vmem:[#allocation22 + $0x780] sm:$0xf] }
 0x73e   :  { %2916 = vmatpush.msra.mxu0 %v2897_v32  ;;  %2945 = vmatpush.msrb.mxu1 %v2897_v32  ;;  %v9692_v32 = vor.u32 %v11059_v49, %v9691_v55  ;;  %v10483_v55 = vld [vmem:[#allocation22 + $0x9f0] sm:$0xf]  ;;  %v11257_v49 = vld [vmem:[#allocation22 + $0xa04] sm:$0xf0]  ;;  %v10676_v30 = vor.u32 %v11305_v52, %v10675_v37  ;;  %v11179_v18 = vld [vmem:[#allocation22 + $0x794] sm:$0xf0] }
 0x73f   :  { %v10484_v0 = vor.u32 %v11257_v49, %v10483_v55  ;;  %v10172_v61 = vor.u32 %v11179_v18, %v10171_v16  ;;  %v9979_v28 = vld [vmem:[#allocation22 + $0x600] sm:$0xf]  ;;  %v9573_v55 = vld [vmem:[#allocation22 + $0x2e8] sm:$0xf0]  ;;  %v10978_v52 = vld [vmem:[#allocation22 + $0x154] sm:$0xf] }
 0x740   :  { %2917 = vmatpush.msra.mxu0 %v2896_v56  ;;  %2946 = vmatpush.msrb.mxu1 %v2896_v56  ;;  %v10316_v56 = vor.u32 %v11215_v40, %v10315_v27  ;;  %v10651_v27 = vld [vmem:[#allocation22 + $0xb40] sm:$0xf]  ;;  %v11299_v40 = vld [vmem:[#allocation22 + $0xb54] sm:$0xf0]  ;;  %v9909_v16 = vld [vmem:[#allocation22 + $0x588] sm:$0xf0] }
 0x741   :  { %5382 = vmatpush.bf16.msrb.mxu2 %v10148_v3  ;;  %v11251_v3 = vld [vmem:[#allocation22 + $0x9d4] sm:$0xf0]  ;;  %v10652_v13 = vor.u32 %v11299_v40, %v10651_v27  ;;  %v11008_v18 = vld [vmem:[#allocation22 + $0x244] sm:$0xf] }
 0x742   :  { %2918 = vmatpush.msra.mxu0 %v2895_v26  ;;  %2947 = vmatpush.msrb.mxu1 %v2895_v26  ;;  %v9860_v26 = vor.u32 %v11101_v8, %v9859_v38  ;;  %v10460_v22 = vor.u32 %v11251_v3, %v10459_v46  ;;  %v11149_v38 = vld [vmem:[#allocation22 + $0x6a4] sm:$0xf0]  ;;  %v10435_v8 = vld [vmem:[#allocation22 + $0x990] sm:$0xf]  ;;  %v9381_v46 = vld [vmem:[#allocation22 + $0x168] sm:$0xf0] }
 0x743   :  { %5396 = vmatpush.bf16.msrb.mxu3 %v10316_v56  ;;  %v10052_v56 = vor.u32 %v11149_v38, %v10051_v11  ;;  %v11074_v3 = vld [vmem:[#allocation22 + $0x454] sm:$0xf] }
 0x744   :  { %2919 = vmatpush.msra.mxu0 %v2894_v45  ;;  %2948 = vmatpush.msrb.mxu1 %v2894_v45  ;;  %v10292_v45 = vor.u32 %v11209_v17, %v10291_v23  ;;  %v10627_v23 = vld [vmem:[#allocation22 + $0xb10] sm:$0xf]  ;;  %v11293_v17 = vld [vmem:[#allocation22 + $0xb24] sm:$0xf0] }
 0x745   :  { %9199 = vmatmul.msk.f32.vlgmr.msra.gmra.mxu0 %vm1386_vm14, %v2439_v7  ;;  %9201 = vmatmul.msk.f32.vlgmr.msrb.gmra.mxu1 %vm1386_vm14, %v2441_v6  ;;  %v11095_v7 = vld [vmem:[#allocation22 + $0x4f4] sm:$0xf0]  ;;  %v10100_v6 = vor.u32 %v11161_v9, %v10099_v44  ;;  %v10628_v9 = vor.u32 %v11293_v17, %v10627_v23  ;;  %v11020_v23 = vld [vmem:[#allocation22 + $0x2a4] sm:$0xf]  ;;  %v9549_v17 = vld [vmem:[#allocation22 + $0x2b8] sm:$0xf0] }
 0x746   :  { %5356 = vmatpush.bf16.msrb.mxu0 %v9764_v51  ;;  %5369 = vmatpush.bf16.msra.mxu1 %v9956_v59  ;;  %v10267_v51 = vld [vmem:[#allocation22 + $0x840] sm:$0xf]  ;;  %v11203_v59 = vld [vmem:[#allocation22 + $0x854] sm:$0xf0]  ;;  %v9836_v19 = vor.u32 %v11095_v7, %v9835_v42 }
 0x747   :  { %5383 = vmatpush.bf16.msrb.mxu2 %v10124_v31  ;;  %5397 = vmatpush.bf16.msrb.mxu3 %v10292_v45  ;;  %v10268_v54 = vor.u32 %v11203_v59, %v10267_v51  ;;  %v11245_v31 = vld [vmem:[#allocation22 + $0x9a4] sm:$0xf0]  ;;  %v11143_v42 = vld [vmem:[#allocation22 + $0x674] sm:$0xf0]  ;;  %v10411_v7 = vld [vmem:[#allocation22 + $0x960] sm:$0xf] }
 0x748   :  { %v10436_v44 = vor.u32 %v11245_v31, %v10435_v8  ;;  %v11239_v45 = vld [vmem:[#allocation22 + $0x974] sm:$0xf0]  ;;  %v10603_v59 = vld [vmem:[#allocation22 + $0xae0] sm:$0xf]  ;;  %v9957_v8 = vld [vmem:[#allocation22 + $0x5e8] sm:$0xf0]  ;;  %v9384_v31 = vor.u32 %v10978_v52, %v9381_v46 }
 0x749   :  { %v10412_v51 = vor.u32 %v11239_v45, %v10411_v7  ;;  %v10604_v5 = vor.u32 %v11287_v15, %v10603_v59  ;;  %v10972_v45 = vld [vmem:[#allocation22 + $0x124] sm:$0xf]  ;;  %v9552_v59 = vor.u32 %v11020_v23, %v9549_v17  ;;  %v9741_v15 = vld [vmem:[#allocation22 + $0x438] sm:$0xf0]  ;;  %v11002_v46 = vld [vmem:[#allocation22 + $0x214] sm:$0xf] }
 0x74a   :  { %5357 = vmatpush.bf16.msrb.mxu0 %v9740_v21  ;;  %5370 = vmatpush.bf16.msra.mxu1 %v9932_v48  ;;  %v9620_v21 = vor.u32 %v11041_v14, %v9619_v58  ;;  %v9812_v48 = vor.u32 %v11089_v50, %v9811_v62  ;;  %v10003_v14 = vld [vmem:[#allocation22 + $0x630] sm:$0xf]  ;;  %v11137_v62 = vld [vmem:[#allocation22 + $0x644] sm:$0xf0]  ;;  %v11098_v17 = vld [vmem:[#allocation22 + $0x514] sm:$0xf] }
 0x74b   :  { %5384 = vmatpush.bf16.msrb.mxu2 %v10100_v6  ;;  %5398 = vmatpush.bf16.msrb.mxu3 %v10268_v54  ;;  %v10028_v6 = vor.u32 %v11143_v42, %v10027_v4  ;;  %v10387_v50 = vld [vmem:[#allocation22 + $0x930] sm:$0xf]  ;;  %v10004_v54 = vor.u32 %v11137_v62, %v10003_v14 }
 0x74d   :  { %9200 = vmatmul.msk.f32.gmra.mxu0 %vm1386_vm14, %v2440_v33  ;;  %9202 = vmatmul.msk.f32.gmra.mxu1 %vm1386_vm14, %v2442_v35  ;;  %v10699_v33 = vld [vmem:[#allocation22 + $0xba0] sm:$0xf]  ;;  %v11311_v35 = vld [vmem:[#allocation22 + $0xbb4] sm:$0xf0] }
 0x74e   :  { %5358 = vmatpush.bf16.msrb.mxu0 %v9716_v57  ;;  %5371 = vmatpush.bf16.msra.mxu1 %v9908_v29  ;;  %v10508_v57 = vor.u32 %v11263_v47, %v10507_v36  ;;  %v10700_v29 = vor.u32 %v11311_v35, %v10699_v33 }
 0x74f   :  { %5385 = vmatpush.bf16.msrb.mxu2 %v10076_v39  ;;  %v11233_v39 = vld [vmem:[#allocation22 + $0x944] sm:$0xf0] }
 0x750   :  { %v10388_v12 = vor.u32 %v11233_v39, %v10387_v50  ;;  %v9333_v39 = vld [vmem:[#allocation22 + $0x108] sm:$0xf0] }
 0x752   :  { %5359 = vmatpush.bf16.msrb.mxu0 %v9692_v32  ;;  %5372 = vmatpush.bf16.msra.mxu1 %v9884_v41  ;;  %v10243_v32 = vld [vmem:[#allocation22 + $0x810] sm:$0xf]  ;;  %v11197_v41 = vld [vmem:[#allocation22 + $0x824] sm:$0xf0] }
 0x753   :  { %v10244_v10 = vor.u32 %v11197_v41, %v10243_v32  ;;  %5386 = vmatpush.bf16.msrb.mxu2 %v10052_v56  ;;  %v11122_v32 = vld [vmem:[#allocation22 + $0x5d4] sm:$0xf] }
 0x754   :  { %v9960_v7 = vor.u32 %v11122_v32, %v9957_v8 }
 0x755   :  { %5399 = vmatpush.bf16.msrb.mxu3 %v10244_v10 }
 0x756   :  { %5360 = vmatpush.bf16.msrb.mxu0 %v9668_v34  ;;  %5373 = vmatpush.bf16.msra.mxu1 %v9860_v26  ;;  %v10219_v34 = vld [vmem:[#allocation22 + $0x7e0] sm:$0xf]  ;;  %v11191_v26 = vld [vmem:[#allocation22 + $0x7f4] sm:$0xf0] }
 0x757   :  { %v10220_v60 = vor.u32 %v11191_v26, %v10219_v34  ;;  %5387 = vmatpush.bf16.msrb.mxu2 %v10028_v6  ;;  %v9357_v6 = vld [vmem:[#allocation22 + $0x138] sm:$0xf0] }
 0x758   :  { %v9360_v14 = vor.u32 %v10972_v45, %v9357_v6  ;;  %v10948_v6 = vld [vmem:[#allocation22 + $0x64] sm:$0xf] }
 0x759   :  { %5400 = vmatpush.bf16.msrb.mxu3 %v10220_v60 }
 0x75a   :  { %5361 = vmatpush.bf16.msrb.mxu0 %v9644_v63  ;;  %5374 = vmatpush.bf16.msra.mxu1 %v9836_v19  ;;  %v10195_v63 = vld [vmem:[#allocation22 + $0x7b0] sm:$0xf]  ;;  %v11185_v19 = vld [vmem:[#allocation22 + $0x7c4] sm:$0xf0] }
 0x75b   :  { %v10196_v58 = vor.u32 %v11185_v19, %v10195_v63  ;;  %5388 = vmatpush.bf16.msrb.mxu2 %v10004_v54  ;;  %v9933_v63 = vld [vmem:[#allocation22 + $0x5b8] sm:$0xf0]  ;;  %v11014_v19 = vld [vmem:[#allocation22 + $0x274] sm:$0xf] }
 0x75c   :  { %v10966_v54 = vld [vmem:[#allocation22 + $0xf4] sm:$0xf] }
 0x75d   :  { %5401 = vmatpush.bf16.msrb.mxu3 %v10196_v58  ;;  %v9525_v58 = vld [vmem:[#allocation22 + $0x288] sm:$0xf0] }
 0x75e   :  { %5362 = vmatpush.bf16.msrb.mxu0 %v9620_v21  ;;  %5375 = vmatpush.bf16.msra.mxu1 %v9812_v48  ;;  %v10579_v21 = vld [vmem:[#allocation22 + $0xab0] sm:$0xf]  ;;  %v11281_v48 = vld [vmem:[#allocation22 + $0xac4] sm:$0xf0] }
 0x75f   :  { %v10580_v20 = vor.u32 %v11281_v48, %v10579_v21  ;;  %v11062_v21 = vld [vmem:[#allocation22 + $0x3f4] sm:$0xf]  ;;  %v9528_v48 = vor.u32 %v11014_v19, %v9525_v58  ;;  %v9645_v19 = vld [vmem:[#allocation22 + $0x378] sm:$0xf0] }
 0x761   :  { %5402 = vmatpush.bf16.msrb.mxu3 %v10172_v61  ;;  %v9501_v61 = vld [vmem:[#allocation22 + $0x258] sm:$0xf0] }
 0x762   :  { %5363 = vmatpush.bf16.msrb.mxu0 %v9596_v2  ;;  %5376 = vmatpush.bf16.msra.mxu1 %v9788_v43  ;;  %v9980_v2 = vor.u32 %v11131_v1, %v9979_v28  ;;  %v11227_v43 = vld [vmem:[#allocation22 + $0x914] sm:$0xf0]  ;;  %v9336_v28 = vor.u32 %v10966_v54, %v9333_v39  ;;  %v10960_v1 = vld [vmem:[#allocation22 + $0xc4] sm:$0xf]  ;;  %v9429_v54 = vld [vmem:[#allocation22 + $0x1c8] sm:$0xf0] }
 0x763   :  { %v10364_v36 = vor.u32 %v11227_v43, %v10363_v53  ;;  %v9309_v53 = vld [vmem:[#allocation22 + $0xd8] sm:$0xf0] }
 0x764   :  { %5389 = vmatpush.bf16.msrb.mxu2 %v9980_v2  ;;  %v9312_v52 = vor.u32 %v10960_v1, %v9309_v53  ;;  %v9813_v1 = vld [vmem:[#allocation22 + $0x4c8] sm:$0xf0]  ;;  %v10984_v53 = vld [vmem:[#allocation22 + $0x184] sm:$0xf] }
 0x766   :  { %5408 = vmatpush.bf16.msra.mxu0 %v10532_v24  ;;  %5421 = vmatpush.bf16.msrb.mxu1 %v10724_v25  ;;  %v10555_v24 = vld [vmem:[#allocation22 + $0xa80] sm:$0xf]  ;;  %v11275_v25 = vld [vmem:[#allocation22 + $0xa94] sm:$0xf0] }
 0x767   :  { %v10556_v47 = vor.u32 %v11275_v25, %v10555_v24  ;;  %v11056_v24 = vld [vmem:[#allocation22 + $0x3c4] sm:$0xf]  ;;  %v9693_v25 = vld [vmem:[#allocation22 + $0x3d8] sm:$0xf0] }
 0x76a   :  { %5409 = vmatpush.bf16.msra.mxu0 %v10508_v57  ;;  %5422 = vmatpush.bf16.msrb.mxu1 %v10700_v29  ;;  %v11026_v29 = vld [vmem:[#allocation22 + $0x2d4] sm:$0xf] }
 0x76b   :  { %v9576_v27 = vor.u32 %v11026_v29, %v9573_v55 }
 0x76e   :  { %5410 = vmatpush.bf16.msra.mxu0 %v10484_v0  ;;  %5423 = vmatpush.bf16.msrb.mxu1 %v10676_v30 }
 0x772   :  { %5411 = vmatpush.bf16.msra.mxu0 %v10460_v22  ;;  %5424 = vmatpush.bf16.msrb.mxu1 %v10652_v13  ;;  %v9765_v13 = vld [vmem:[#allocation22 + $0x468] sm:$0xf0] }
 0x773   :  { %v9768_v26 = vor.u32 %v11074_v3, %v9765_v13  ;;  %v9477_v3 = vld [vmem:[#allocation22 + $0x228] sm:$0xf0] }
 0x774   :  { %v9480_v8 = vor.u32 %v11002_v46, %v9477_v3  ;;  %v10149_v46 = vld [vmem:[#allocation22 + $0x768] sm:$0xf0]  ;;  %v11266_v3 = vld [vmem:[#allocation22 + $0xa54] sm:$0xf] }
 0x776   :  { %5412 = vmatpush.bf16.msra.mxu0 %v10436_v44  ;;  %5425 = vmatpush.bf16.msrb.mxu1 %v10628_v9 }
 0x77a   :  { %5413 = vmatpush.bf16.msra.mxu0 %v10412_v51  ;;  %5426 = vmatpush.bf16.msrb.mxu1 %v10604_v5  ;;  %v11068_v51 = vld [vmem:[#allocation22 + $0x424] sm:$0xf] }
 0x77b   :  { %v11116_v5 = vld [vmem:[#allocation22 + $0x5a4] sm:$0xf]  ;;  %v9744_v62 = vor.u32 %v11068_v51, %v9741_v15 }
 0x77c   :  { %v9936_v50 = vor.u32 %v11116_v5, %v9933_v63  ;;  %v9261_v5 = vld [vmem:[#allocation22 + $0x78] sm:$0xf0]  ;;  %v11044_v63 = vld [vmem:[#allocation22 + $0x364] sm:$0xf] }
 0x77d   :  { %v9264_v39 = vor.u32 %v10948_v6, %v9261_v5  ;;  %v10293_v5 = vld [vmem:[#allocation22 + $0x888] sm:$0xf0] }
 0x77e   :  { %5414 = vmatpush.bf16.msra.mxu0 %v10388_v12  ;;  %5427 = vmatpush.bf16.msrb.mxu1 %v10580_v20  ;;  %v9717_v12 = vld [vmem:[#allocation22 + $0x408] sm:$0xf0]  ;;  %v11110_v20 = vld [vmem:[#allocation22 + $0x574] sm:$0xf] }
 0x77f   :  { %v9720_v2 = vor.u32 %v11062_v21, %v9717_v12  ;;  %v9912_v43 = vor.u32 %v11110_v20, %v9909_v16  ;;  %v9648_v21 = vor.u32 %v11044_v63, %v9645_v19  ;;  %v9237_v20 = vld [vmem:[#allocation22 + $0x48] sm:$0xf0]  ;;  %v11038_v16 = vld [vmem:[#allocation22 + $0x334] sm:$0xf] }
 0x782   :  { %5415 = vmatpush.bf16.msra.mxu0 %v10364_v36  ;;  %5428 = vmatpush.bf16.msrb.mxu1 %v10556_v47  ;;  %v9504_v47 = vor.u32 %v11008_v18, %v9501_v61  ;;  %v9621_v18 = vld [vmem:[#allocation22 + $0x348] sm:$0xf0] }
 0x7c2   :  { %v2921_v33 = vpop.f32.mrf.mxu0  ;;  %v2950_v35 = vpop.f32.mrf.mxu1 }
 0x7c3   :  { %v13649_v57 = vmax.f32 %v2921_v33, %v2950_v35  ;;  %v11104_v33 = vld [vmem:[#allocation22 + $0x544] sm:$0xf]  ;;  %v9885_v35 = vld [vmem:[#allocation22 + $0x558] sm:$0xf0] }
 0x7c5   :  { %v2959_v30 = vrot.slane %v13649_v57, 1  ;;  %v2961_v40 = vrot.slane %v13649_v57, 2  ;;  %v2963_v22 = vrot.slane %v13649_v57, 3  ;;  %v2967_v55 = vrot.slane %v13649_v57, 5 }
 0x7c6   :  { %v2969_v13 = vrot.slane %v13649_v57, 6  ;;  %v2971_v32 = vrot.slane %v13649_v57, 7 }
 0x7ca   :  { %v2924_v49 = vpop.f32.mrf.mxu0  ;;  %v2953_v37 = vpop.f32.mrf.mxu1 }
 0x7cb   :  { %v13651_v0 = vmax.f32 %v2924_v49, %v2953_v37 }
 0x7cd   :  { %v2997_v41 = vsel %vm435_vm1, %v2959_v30, %v13651_v0  ;;  %v2980_v10 = vrot.slane %v13651_v0, 7  ;;  %v9204_v11 = vrot.slane %v13651_v0, 9  ;;  %v9205_v38 = vrot.slane %v13651_v0, 10 }
 0x7ce   :  { %v13661_v56 = vpack.c.bf16 %v2997_v41, %v2997_v41  ;;  %v9207_v36 = vrot.slane %v13651_v0, 12  ;;  %v9206_v29 = vrot.slane %v13651_v0, 11  ;;  %v9208_v49 = vrot.slane %v13651_v0, 13  ;;  %v10954_v41 = vld [vmem:[#allocation22 + $0x94] sm:$0xf] }
 0x7cf   :  { %v2996_v44 = vsel %vm435_vm1, %v13649_v57, %v2980_v10  ;;  %v2998_v9 = vsel %vm435_vm1, %v2961_v40, %v9204_v11  ;;  %v2999_v34 = vsel %vm435_vm1, %v2963_v22, %v9205_v38  ;;  %v2987_v37 = vrot.slane %v2980_v10, 7  ;;  %v9285_v10 = vld [vmem:[#allocation22 + $0xa8] sm:$0xf0]  ;;  %v11050_v11 = vld [vmem:[#allocation22 + $0x394] sm:$0xf] }
 0x7d0   :  { %5351 = vmatmul.bf16.vlgmr.msra.gmra.mxu3 %v13661_v56  ;;  %v13670_v4 = vpack.c.bf16 %v2996_v44, %v2996_v44  ;;  %v13672_v60 = vpack.c.bf16 %v2998_v9, %v2998_v9  ;;  %v13674_v42 = vpack.c.bf16 %v2999_v34, %v2999_v34  ;;  %v9696_v30 = vor.u32 %v11056_v24, %v9693_v25  ;;  %v9669_v38 = vld [vmem:[#allocation22 + $0x3a8] sm:$0xf0]  ;;  %v10996_v34 = vld [vmem:[#allocation22 + $0x1e4] sm:$0xf] }
 0x7d1   :  { %5447 = vmatpush.bf16.msra.mxu3 %v9576_v27  ;;  %v2965_v27 = vrot.slane %v13649_v57, 4  ;;  %v9888_v40 = vor.u32 %v11104_v33, %v9885_v35  ;;  %v3001_v22 = vsel %vm435_vm1, %v2967_v55, %v9207_v36  ;;  %v3003_v23 = vsel %vm435_vm1, %v2971_v32, %v2987_v37  ;;  %v9861_v44 = vld [vmem:[#allocation22 + $0x528] sm:$0xf0]  ;;  %v9213_v33 = vld [vmem:[#allocation22 + $0x18] sm:$0xf0] }
 0x7d2   :  { %5338 = vmatmul.bf16.vlgmr.msra.gmra.mxu2 %v13670_v4  ;;  %5364 = vmatmul.bf16.vlgmr.msrb.gmra.mxu0 %v13672_v60  ;;  %v13692_v9 = vpack.c.bf16 %v3001_v22, %v3001_v22  ;;  %v9672_v45 = vor.u32 %v11050_v11, %v9669_v38  ;;  %v9864_v15 = vor.u32 %v11098_v17, %v9861_v44  ;;  %v10341_v24 = vld [vmem:[#allocation22 + $0x8e8] sm:$0xf0]  ;;  %v11032_v35 = vld [vmem:[#allocation22 + $0x304] sm:$0xf]  ;;  %v9597_v55 = vld [vmem:[#allocation22 + $0x318] sm:$0xf0] }
 0x7d3   :  { %5377 = vmatmul.bf16.vlgmr.msra.gmra.mxu1 %v13674_v42  ;;  %5434 = vmatpush.bf16.msra.mxu2 %v9384_v31  ;;  %v3000_v0 = vsel %vm435_vm1, %v2965_v27, %v9206_v29  ;;  %v3002_v31 = vsel %vm435_vm1, %v2969_v13, %v9208_v49  ;;  %v9624_v36 = vor.u32 %v11038_v16, %v9621_v18  ;;  %v11080_v49 = vld [vmem:[#allocation22 + $0x484] sm:$0xf]  ;;  %v9789_v37 = vld [vmem:[#allocation22 + $0x498] sm:$0xf0]  ;;  %v11314_v22 = vld [vmem:[#allocation22 + $0xbd4] sm:$0xf] }
 0x7d4   :  { %5460 = vmatpush.bf16.msrb.mxu0 %v9768_v26  ;;  %5473 = vmatpush.bf16.msra.mxu1 %v9960_v7  ;;  %v9453_v26 = vld [vmem:[#allocation22 + $0x1f8] sm:$0xf0]  ;;  %v13694_v57 = vpack.c.bf16 %v3000_v0, %v3000_v0  ;;  %v9288_v7 = vor.u32 %v10954_v41, %v9285_v10  ;;  %v13697_v51 = vpack.c.bf16 %v3002_v31, %v3002_v31  ;;  %v10725_v13 = vld [vmem:[#allocation22 + $0xbe8] sm:$0xf0]  ;;  %v11212_v11 = vld [vmem:[#allocation22 + $0x8a4] sm:$0xf] }
 0x7d5   :  { %5448 = vmatpush.bf16.msra.mxu3 %v9552_v59  ;;  %v13699_v59 = vpack.c.bf16 %v3003_v23, %v3003_v23  ;;  %v9456_v58 = vor.u32 %v10996_v34, %v9453_v26  ;;  %v9600_v41 = vor.u32 %v11032_v35, %v9597_v55  ;;  %v9792_v0 = vor.u32 %v11080_v49, %v9789_v37  ;;  %v10317_v38 = vld [vmem:[#allocation22 + $0x8b8] sm:$0xf0]  ;;  %v11164_v23 = vld [vmem:[#allocation22 + $0x724] sm:$0xf]  ;;  %v10053_v55 = vld [vmem:[#allocation22 + $0x6a8] sm:$0xf0] }
 0x7d6   :  { %v10728_v31 = vor.u32 %v11314_v22, %v10725_v13  ;;  %v10125_v17 = vld [vmem:[#allocation22 + $0x738] sm:$0xf0]  ;;  %v11260_v44 = vld [vmem:[#allocation22 + $0xa24] sm:$0xf]  ;;  %v11242_v49 = vld [vmem:[#allocation22 + $0x994] sm:$0xf] }
 0x7d7   :  { %5435 = vmatpush.bf16.msra.mxu2 %v9360_v14  ;;  %v11092_v14 = vld [vmem:[#allocation22 + $0x4e4] sm:$0xf]  ;;  %v10509_v34 = vld [vmem:[#allocation22 + $0xa38] sm:$0xf0]  ;;  %v10128_v6 = vor.u32 %v11164_v23, %v10125_v17  ;;  %v10437_v37 = vld [vmem:[#allocation22 + $0x9a8] sm:$0xf0] }
 0x7d8   :  { %5461 = vmatpush.bf16.msrb.mxu0 %v9744_v62  ;;  %5474 = vmatpush.bf16.msra.mxu1 %v9936_v50  ;;  %v9837_v62 = vld [vmem:[#allocation22 + $0x4f8] sm:$0xf0]  ;;  %v10990_v50 = vld [vmem:[#allocation22 + $0x1b4] sm:$0xf]  ;;  %v11308_v26 = vld [vmem:[#allocation22 + $0xba4] sm:$0xf]  ;;  %v10512_v63 = vor.u32 %v11260_v44, %v10509_v34  ;;  %v10440_v22 = vor.u32 %v11242_v49, %v10437_v37 }
 0x7d9   :  { %5449 = vmatpush.bf16.msra.mxu3 %v9528_v48  ;;  %v10942_v48 = vld [vmem:[#allocation22 + $0x34] sm:$0xf]  ;;  %v9840_v12 = vor.u32 %v11092_v14, %v9837_v62  ;;  %v9432_v61 = vor.u32 %v10990_v50, %v9429_v54  ;;  %v10101_v14 = vld [vmem:[#allocation22 + $0x708] sm:$0xf0] }
 0x7da   :  { %v9240_v25 = vor.u32 %v10942_v48, %v9237_v20  ;;  %v11254_v62 = vld [vmem:[#allocation22 + $0x9f4] sm:$0xf]  ;;  %v10485_v50 = vld [vmem:[#allocation22 + $0xa08] sm:$0xf0]  ;;  %v10269_v20 = vld [vmem:[#allocation22 + $0x858] sm:$0xf0] }
 0x7db   :  { %5436 = vmatpush.bf16.msra.mxu2 %v9336_v28  ;;  %v11086_v28 = vld [vmem:[#allocation22 + $0x4b4] sm:$0xf]  ;;  %v10488_v16 = vor.u32 %v11254_v62, %v10485_v50  ;;  %v10197_v17 = vld [vmem:[#allocation22 + $0x7c8] sm:$0xf0]  ;;  %v9579_v62 = vld [vmem:[#allocation22 + $0x2d8] sm:$0xf] }
 0x7dc   :  { %5462 = vmatpush.bf16.msrb.mxu0 %v9720_v2  ;;  %5475 = vmatpush.bf16.msra.mxu1 %v9912_v43  ;;  %v9405_v2 = vld [vmem:[#allocation22 + $0x198] sm:$0xf0]  ;;  %v11218_v43 = vld [vmem:[#allocation22 + $0x8d4] sm:$0xf]  ;;  %v9816_v29 = vor.u32 %v11086_v28, %v9813_v1  ;;  %v11248_v1 = vld [vmem:[#allocation22 + $0x9c4] sm:$0xf] }
 0x7dd   :  { %5450 = vmatpush.bf16.msra.mxu3 %v9504_v47  ;;  %v10936_v47 = vld [vmem:[#allocation22 + $0x4] sm:$0xf]  ;;  %v10344_v27 = vor.u32 %v11218_v43, %v10341_v24  ;;  %v11302_v54 = vld [vmem:[#allocation22 + $0xb74] sm:$0xf]  ;;  %v10077_v28 = vld [vmem:[#allocation22 + $0x6d8] sm:$0xf0] }
 0x7de   :  { %v9216_v32 = vor.u32 %v10936_v47, %v9213_v33  ;;  %v10653_v43 = vld [vmem:[#allocation22 + $0xb58] sm:$0xf0]  ;;  %v10245_v47 = vld [vmem:[#allocation22 + $0x828] sm:$0xf0]  ;;  %v11182_v23 = vld [vmem:[#allocation22 + $0x7b4] sm:$0xf] }
 0x7df   :  { %5437 = vmatpush.bf16.msra.mxu2 %v9312_v52  ;;  %v9408_v52 = vor.u32 %v10984_v53, %v9405_v2  ;;  %v10461_v53 = vld [vmem:[#allocation22 + $0x9d8] sm:$0xf0]  ;;  %v11296_v2 = vld [vmem:[#allocation22 + $0xb44] sm:$0xf]  ;;  %v11030_v50 = vld [vmem:[#allocation22 + $0x2ec] sm:$0xf0] }
 0x7e0   :  { %5463 = vmatpush.bf16.msrb.mxu0 %v9696_v30  ;;  %5476 = vmatpush.bf16.msra.mxu1 %v9888_v40  ;;  %v11170_v30 = vld [vmem:[#allocation22 + $0x754] sm:$0xf]  ;;  %v10533_v40 = vld [vmem:[#allocation22 + $0xa68] sm:$0xf0]  ;;  %v10464_v33 = vor.u32 %v11248_v1, %v10461_v53  ;;  %v10656_v35 = vor.u32 %v11296_v2, %v10653_v43  ;;  %v10982_v1 = vld [vmem:[#allocation22 + $0x16c] sm:$0xf0]  ;;  %v9580_v2 = vor.u32 %v11030_v50, %v9579_v62 }
 0x7e1   :  { %5403 = vmatmul.bf16.vlgmr.msrb.gmra.mxu3 %v13692_v9  ;;  %v10152_v10 = vor.u32 %v11170_v30, %v10149_v46  ;;  %v10629_v30 = vld [vmem:[#allocation22 + $0xb28] sm:$0xf0]  ;;  %v9771_v53 = vld [vmem:[#allocation22 + $0x458] sm:$0xf] }
 0x7e2   :  { %5451 = vmatpush.bf16.msra.mxu3 %v9480_v8  ;;  %5390 = vmatmul.bf16.vlgmr.msrb.gmra.mxu2 %v13694_v57  ;;  %v10536_v8 = vor.u32 %v11266_v3, %v10533_v40  ;;  %v10221_v40 = vld [vmem:[#allocation22 + $0x7f8] sm:$0xf0] }
 0x7e3   :  { %5416 = vmatmul.bf16.vlgmr.msra.gmra.mxu0 %v13697_v51  ;;  %5429 = vmatmul.bf16.vlgmr.msrb.gmra.mxu1 %v13699_v59 }
 0x7e4   :  { %5438 = vmatpush.bf16.msra.mxu2 %v9288_v7  ;;  %5464 = vmatpush.bf16.msrb.mxu0 %v9672_v45  ;;  %v10701_v7 = vld [vmem:[#allocation22 + $0xbb8] sm:$0xf0]  ;;  %v10320_v45 = vor.u32 %v11212_v11, %v10317_v38  ;;  %v11284_v11 = vld [vmem:[#allocation22 + $0xae4] sm:$0xf] }
 0x7e5   :  { %5477 = vmatpush.bf16.msra.mxu1 %v9864_v15  ;;  %v11206_v15 = vld [vmem:[#allocation22 + $0x874] sm:$0xf]  ;;  %v10704_v19 = vor.u32 %v11308_v26, %v10701_v7  ;;  %v10605_v38 = vld [vmem:[#allocation22 + $0xaf8] sm:$0xf0]  ;;  %v10005_v7 = vld [vmem:[#allocation22 + $0x648] sm:$0xf0] }
 0x7e6   :  { %5452 = vmatpush.bf16.msra.mxu3 %v9456_v58  ;;  %v11158_v58 = vld [vmem:[#allocation22 + $0x6f4] sm:$0xf]  ;;  %v10608_v34 = vor.u32 %v11284_v11, %v10605_v38  ;;  %v9339_v11 = vld [vmem:[#allocation22 + $0xf8] sm:$0xf]  ;;  %v10970_v38 = vld [vmem:[#allocation22 + $0x10c] sm:$0xf0] }
 0x7e7   :  { %v10104_v48 = vor.u32 %v11158_v58, %v10101_v14  ;;  %v11134_v26 = vld [vmem:[#allocation22 + $0x634] sm:$0xf]  ;;  %v10173_v14 = vld [vmem:[#allocation22 + $0x798] sm:$0xf0] }
 0x7e8   :  { %5439 = vmatpush.bf16.msra.mxu2 %v9264_v39  ;;  %5465 = vmatpush.bf16.msrb.mxu0 %v9648_v21  ;;  %v10677_v39 = vld [vmem:[#allocation22 + $0xb88] sm:$0xf0]  ;;  %v10296_v21 = vor.u32 %v11206_v15, %v10293_v5  ;;  %v11278_v15 = vld [vmem:[#allocation22 + $0xab4] sm:$0xf]  ;;  %v10008_v58 = vor.u32 %v11134_v26, %v10005_v7  ;;  %v9507_v26 = vld [vmem:[#allocation22 + $0x248] sm:$0xf] }
 0x7e9   :  { %5478 = vmatpush.bf16.msra.mxu1 %v9840_v12  ;;  %v11200_v12 = vld [vmem:[#allocation22 + $0x844] sm:$0xf]  ;;  %v10680_v18 = vor.u32 %v11302_v54, %v10677_v39  ;;  %v10581_v5 = vld [vmem:[#allocation22 + $0xac8] sm:$0xf0]  ;;  %v11012_v7 = vld [vmem:[#allocation22 + $0x25c] sm:$0xf0] }
 0x7ea   :  { %5453 = vmatpush.bf16.msra.mxu3 %v9432_v61  ;;  %v11152_v61 = vld [vmem:[#allocation22 + $0x6c4] sm:$0xf]  ;;  %v10272_v24 = vor.u32 %v11200_v12, %v10269_v20  ;;  %v10584_v39 = vor.u32 %v11278_v15, %v10581_v5  ;;  %v10365_v20 = vld [vmem:[#allocation22 + $0x918] sm:$0xf0]  ;;  %v9315_v15 = vld [vmem:[#allocation22 + $0xc8] sm:$0xf]  ;;  %v9508_v62 = vor.u32 %v11012_v7, %v9507_v26 }
 0x7eb   :  { %v11224_v12 = vld [vmem:[#allocation22 + $0x904] sm:$0xf]  ;;  %v10964_v5 = vld [vmem:[#allocation22 + $0xdc] sm:$0xf0]  ;;  %v9603_v26 = vld [vmem:[#allocation22 + $0x308] sm:$0xf] }
 0x7ec   :  { %5440 = vmatpush.bf16.msra.mxu2 %v9240_v25  ;;  %5466 = vmatpush.bf16.msrb.mxu0 %v9624_v36  ;;  %v10080_v25 = vor.u32 %v11152_v61, %v10077_v28  ;;  %v11194_v36 = vld [vmem:[#allocation22 + $0x814] sm:$0xf]  ;;  %v9387_v28 = vld [vmem:[#allocation22 + $0x158] sm:$0xf]  ;;  %v9316_v50 = vor.u32 %v10964_v5, %v9315_v15  ;;  %v11036_v7 = vld [vmem:[#allocation22 + $0x31c] sm:$0xf0] }
 0x7ed   :  { %5479 = vmatpush.bf16.msra.mxu1 %v9816_v29  ;;  %v11146_v29 = vld [vmem:[#allocation22 + $0x694] sm:$0xf]  ;;  %v10248_v46 = vor.u32 %v11194_v36, %v10245_v47  ;;  %v11126_v36 = vld [vmem:[#allocation22 + $0x5ec] sm:$0xf0]  ;;  %v10368_v47 = vor.u32 %v11224_v12, %v10365_v20  ;;  %v9291_v12 = vld [vmem:[#allocation22 + $0x98] sm:$0xf] }
 0x7ee   :  { %5454 = vmatpush.bf16.msra.mxu3 %v9408_v52  ;;  %v11290_v52 = vld [vmem:[#allocation22 + $0xb14] sm:$0xf]  ;;  %v10056_v3 = vor.u32 %v11146_v29, %v10053_v55  ;;  %v9555_v29 = vld [vmem:[#allocation22 + $0x2a8] sm:$0xf]  ;;  %v11024_v55 = vld [vmem:[#allocation22 + $0x2bc] sm:$0xf0] }
 0x7ef   :  { %v10632_v13 = vor.u32 %v11290_v52, %v10629_v30  ;;  %v9363_v52 = vld [vmem:[#allocation22 + $0x128] sm:$0xf]  ;;  %v10976_v30 = vld [vmem:[#allocation22 + $0x13c] sm:$0xf0]  ;;  %v10958_v20 = vld [vmem:[#allocation22 + $0xac] sm:$0xf0] }
 0x7f0   :  { %5441 = vmatpush.bf16.msra.mxu2 %v9216_v32  ;;  %5467 = vmatpush.bf16.msrb.mxu0 %v9600_v41  ;;  %v11140_v32 = vld [vmem:[#allocation22 + $0x664] sm:$0xf]  ;;  %v10029_v41 = vld [vmem:[#allocation22 + $0x678] sm:$0xf0]  ;;  %v10155_v5 = vld [vmem:[#allocation22 + $0x758] sm:$0xf] }
 0x7f1   :  { %5480 = vmatpush.bf16.msra.mxu1 %v9792_v0  ;;  %5455 = vmatmul.bf16.vlgmr.msra.gmra.mxu3 %v13661_v56  ;;  %v11236_v0 = vld [vmem:[#allocation22 + $0x964] sm:$0xf] }
 0x7f2   :  { %5499 = vmatpush.bf16.msrb.mxu3 %v10344_v27  ;;  %v11188_v27 = vld [vmem:[#allocation22 + $0x7e4] sm:$0xf] }
 0x7f3   :  { %5442 = vmatmul.bf16.vlgmr.msra.gmra.mxu2 %v13670_v4  ;;  %5468 = vmatmul.bf16.vlgmr.msrb.gmra.mxu0 %v13672_v60 }
 0x7f4   :  { %5486 = vmatpush.bf16.msrb.mxu2 %v10152_v10  ;;  %5512 = vmatpush.bf16.msra.mxu0 %v10536_v8  ;;  %v10413_v10 = vld [vmem:[#allocation22 + $0x978] sm:$0xf0]  ;;  %v10224_v8 = vor.u32 %v11188_v27, %v10221_v40  ;;  %v9939_v27 = vld [vmem:[#allocation22 + $0x5a8] sm:$0xf]  ;;  %v11120_v40 = vld [vmem:[#allocation22 + $0x5bc] sm:$0xf0] }
 0x7f5   :  { %5525 = vmatpush.bf16.msrb.mxu1 %v10728_v31  ;;  %v10032_v31 = vor.u32 %v11140_v32, %v10029_v41  ;;  %v10416_v44 = vor.u32 %v11236_v0, %v10413_v10  ;;  %v9531_v32 = vld [vmem:[#allocation22 + $0x278] sm:$0xf]  ;;  %v11018_v41 = vld [vmem:[#allocation22 + $0x28c] sm:$0xf0]  ;;  %v9940_v10 = vor.u32 %v11120_v40, %v9939_v27 }
 0x7f6   :  { %5500 = vmatpush.bf16.msrb.mxu3 %v10320_v45  ;;  %5481 = vmatmul.bf16.vlgmr.msra.gmra.mxu1 %v13674_v42  ;;  %v11230_v45 = vld [vmem:[#allocation22 + $0x934] sm:$0xf]  ;;  %v9243_v27 = vld [vmem:[#allocation22 + $0x38] sm:$0xf]  ;;  %v10946_v40 = vld [vmem:[#allocation22 + $0x4c] sm:$0xf0] }
 0x7f8   :  { %5487 = vmatpush.bf16.msrb.mxu2 %v10128_v6  ;;  %5513 = vmatpush.bf16.msra.mxu0 %v10512_v63  ;;  %v10389_v6 = vld [vmem:[#allocation22 + $0x948] sm:$0xf0]  ;;  %v10200_v63 = vor.u32 %v11182_v23, %v10197_v17  ;;  %v9915_v23 = vld [vmem:[#allocation22 + $0x578] sm:$0xf]  ;;  %v11114_v17 = vld [vmem:[#allocation22 + $0x58c] sm:$0xf0] }
 0x7f9   :  { %5526 = vmatpush.bf16.msrb.mxu1 %v10704_v19  ;;  %v11176_v19 = vld [vmem:[#allocation22 + $0x784] sm:$0xf]  ;;  %v10392_v54 = vor.u32 %v11230_v45, %v10389_v6  ;;  %v9916_v6 = vor.u32 %v11114_v17, %v9915_v23 }
 0x7fa   :  { %5501 = vmatpush.bf16.msrb.mxu3 %v10296_v21  ;;  %v11128_v21 = vld [vmem:[#allocation22 + $0x604] sm:$0xf]  ;;  %v10176_v61 = vor.u32 %v11176_v19, %v10173_v14  ;;  %v11060_v19 = vld [vmem:[#allocation22 + $0x3dc] sm:$0xf0] }
 0x7fb   :  { %v11108_v14 = vld [vmem:[#allocation22 + $0x55c] sm:$0xf0] }
 0x7fc   :  { %5488 = vmatpush.bf16.msrb.mxu2 %v10104_v48  ;;  %5514 = vmatpush.bf16.msra.mxu0 %v10488_v16  ;;  %v9981_v48 = vld [vmem:[#allocation22 + $0x618] sm:$0xf0]  ;;  %v11272_v16 = vld [vmem:[#allocation22 + $0xa84] sm:$0xf] }
 0x7fd   :  { %5527 = vmatpush.bf16.msrb.mxu1 %v10680_v18  ;;  %v10557_v18 = vld [vmem:[#allocation22 + $0xa98] sm:$0xf0]  ;;  %v9984_v43 = vor.u32 %v11128_v21, %v9981_v48 }
 0x7fe   :  { %5502 = vmatpush.bf16.msrb.mxu3 %v10272_v24  ;;  %v11078_v24 = vld [vmem:[#allocation22 + $0x46c] sm:$0xf0] }
 0x7ff   :  { %v9772_v49 = vor.u32 %v11078_v24, %v9771_v53  ;;  %v9292_v53 = vor.u32 %v10958_v20, %v9291_v12  ;;  %v10323_v12 = vld [vmem:[#allocation22 + $0x8a8] sm:$0xf]  ;;  %v11216_v20 = vld [vmem:[#allocation22 + $0x8bc] sm:$0xf0] }
 0x800   :  { %5489 = vmatpush.bf16.msrb.mxu2 %v10080_v25  ;;  %5515 = vmatpush.bf16.msra.mxu0 %v10464_v33  ;;  %v9963_v25 = vld [vmem:[#allocation22 + $0x5d8] sm:$0xf]  ;;  %v10560_v33 = vor.u32 %v11272_v16, %v10557_v18  ;;  %v11054_v18 = vld [vmem:[#allocation22 + $0x3ac] sm:$0xf0] }
 0x801   :  { %5528 = vmatpush.bf16.msrb.mxu1 %v10656_v35  ;;  %v9388_v35 = vor.u32 %v10982_v1, %v9387_v28  ;;  %v9964_v37 = vor.u32 %v11126_v36, %v9963_v25  ;;  %v9675_v16 = vld [vmem:[#allocation22 + $0x398] sm:$0xf]  ;;  %v11102_v28 = vld [vmem:[#allocation22 + $0x52c] sm:$0xf0]  ;;  %v9267_v36 = vld [vmem:[#allocation22 + $0x68] sm:$0xf] }
 0x802   :  { %5503 = vmatpush.bf16.msrb.mxu3 %v10248_v46  ;;  %v9747_v46 = vld [vmem:[#allocation22 + $0x428] sm:$0xf]  ;;  %v9676_v24 = vor.u32 %v11054_v18, %v9675_v16 }
 0x804   :  { %5490 = vmatpush.bf16.msrb.mxu2 %v10056_v3  ;;  %5516 = vmatpush.bf16.msra.mxu0 %v10440_v22  ;;  %v11072_v3 = vld [vmem:[#allocation22 + $0x43c] sm:$0xf0]  ;;  %v9556_v22 = vor.u32 %v11024_v55, %v9555_v29  ;;  %v9843_v29 = vld [vmem:[#allocation22 + $0x4e8] sm:$0xf] }
 0x805   :  { %5529 = vmatpush.bf16.msrb.mxu1 %v10632_v13  ;;  %v9364_v13 = vor.u32 %v10976_v30, %v9363_v52  ;;  %v9748_v0 = vor.u32 %v11072_v3, %v9747_v46  ;;  %v11096_v55 = vld [vmem:[#allocation22 + $0x4fc] sm:$0xf0]  ;;  %v9435_v52 = vld [vmem:[#allocation22 + $0x1b8] sm:$0xf]  ;;  %v10994_v30 = vld [vmem:[#allocation22 + $0x1cc] sm:$0xf0] }
 0x806   :  { %5504 = vmatpush.bf16.msrb.mxu3 %v10224_v8  ;;  %v9723_v8 = vld [vmem:[#allocation22 + $0x3f8] sm:$0xf]  ;;  %v9844_v3 = vor.u32 %v11096_v55, %v9843_v29  ;;  %v11162_v55 = vld [vmem:[#allocation22 + $0x70c] sm:$0xf0] }
 0x807   :  { %v10107_v29 = vld [vmem:[#allocation22 + $0x6f8] sm:$0xf] }
 0x808   :  { %5491 = vmatpush.bf16.msrb.mxu2 %v10032_v31  ;;  %5517 = vmatpush.bf16.msra.mxu0 %v10416_v44  ;;  %v11066_v31 = vld [vmem:[#allocation22 + $0x40c] sm:$0xf0]  ;;  %v9532_v44 = vor.u32 %v11018_v41, %v9531_v32  ;;  %v9819_v32 = vld [vmem:[#allocation22 + $0x4b8] sm:$0xf] }
 0x809   :  { %5530 = vmatpush.bf16.msrb.mxu1 %v10608_v34  ;;  %v9340_v34 = vor.u32 %v10970_v38, %v9339_v11  ;;  %v9724_v45 = vor.u32 %v11066_v31, %v9723_v8  ;;  %v11090_v41 = vld [vmem:[#allocation22 + $0x4cc] sm:$0xf0]  ;;  %v9244_v11 = vor.u32 %v10946_v40, %v9243_v27  ;;  %v10988_v38 = vld [vmem:[#allocation22 + $0x19c] sm:$0xf0]  ;;  %v10347_v8 = vld [vmem:[#allocation22 + $0x8d8] sm:$0xf] }
 0x80a   :  { %5505 = vmatpush.bf16.msrb.mxu3 %v10200_v63  ;;  %v9699_v63 = vld [vmem:[#allocation22 + $0x3c8] sm:$0xf]  ;;  %v11222_v31 = vld [vmem:[#allocation22 + $0x8ec] sm:$0xf0]  ;;  %v9820_v17 = vor.u32 %v11090_v41, %v9819_v32  ;;  %v11204_v40 = vld [vmem:[#allocation22 + $0x85c] sm:$0xf0] }
 0x80b   :  { %v9700_v21 = vor.u32 %v11060_v19, %v9699_v63  ;;  %v11174_v63 = vld [vmem:[#allocation22 + $0x76c] sm:$0xf0]  ;;  %v10539_v19 = vld [vmem:[#allocation22 + $0xa58] sm:$0xf]  ;;  %v10275_v27 = vld [vmem:[#allocation22 + $0x848] sm:$0xf] }
 0x80c   :  { %5492 = vmatpush.bf16.msrb.mxu2 %v10008_v58  ;;  %5518 = vmatpush.bf16.msra.mxu0 %v10392_v54  ;;  %v9891_v58 = vld [vmem:[#allocation22 + $0x548] sm:$0xf]  ;;  %v9483_v54 = vld [vmem:[#allocation22 + $0x218] sm:$0xf]  ;;  %v11156_v41 = vld [vmem:[#allocation22 + $0x6dc] sm:$0xf0] }
 0x80d   :  { %5531 = vmatpush.bf16.msrb.mxu1 %v10584_v39  ;;  %v11006_v39 = vld [vmem:[#allocation22 + $0x22c] sm:$0xf0]  ;;  %v9892_v48 = vor.u32 %v11108_v14, %v9891_v58  ;;  %v10348_v58 = vor.u32 %v11222_v31, %v10347_v8  ;;  %v10083_v32 = vld [vmem:[#allocation22 + $0x6c8] sm:$0xf]  ;;  %v10276_v8 = vor.u32 %v11204_v40, %v10275_v27  ;;  %v11228_v40 = vld [vmem:[#allocation22 + $0x91c] sm:$0xf0] }
 0x80e   :  { %5506 = vmatpush.bf16.msrb.mxu3 %v10176_v61  ;;  %v9867_v61 = vld [vmem:[#allocation22 + $0x518] sm:$0xf]  ;;  %v9484_v1 = vor.u32 %v11006_v39, %v9483_v54  ;;  %v11318_v54 = vld [vmem:[#allocation22 + $0xbec] sm:$0xf0]  ;;  %v9604_v39 = vor.u32 %v11036_v7, %v9603_v26  ;;  %v10084_v31 = vor.u32 %v11156_v41, %v10083_v32  ;;  %v10371_v27 = vld [vmem:[#allocation22 + $0x908] sm:$0xf] }
 0x80f   :  { %v9868_v25 = vor.u32 %v11102_v28, %v9867_v61  ;;  %v10131_v61 = vld [vmem:[#allocation22 + $0x728] sm:$0xf]  ;;  %v11168_v28 = vld [vmem:[#allocation22 + $0x73c] sm:$0xf0]  ;;  %v10059_v26 = vld [vmem:[#allocation22 + $0x698] sm:$0xf] }
 0x810   :  { %5493 = vmatpush.bf16.msrb.mxu2 %v9984_v43  ;;  %5519 = vmatpush.bf16.msra.mxu0 %v10368_v47  ;;  %v11000_v43 = vld [vmem:[#allocation22 + $0x1fc] sm:$0xf0]  ;;  %v11150_v7 = vld [vmem:[#allocation22 + $0x6ac] sm:$0xf0]  ;;  %v10979_v41 = vld [vmem:[#allocation22 + $0x15c] sm:$0xf] }
 0x811   :  { %5532 = vmatpush.bf16.msrb.mxu1 %v10560_v33  ;;  %5507 = vmatmul.bf16.vlgmr.msrb.gmra.mxu3 %v13692_v9  ;;  %v10952_v47 = vld [vmem:[#allocation22 + $0x7c] sm:$0xf0]  ;;  %v9651_v33 = vld [vmem:[#allocation22 + $0x368] sm:$0xf] }
 0x812   :  { %5551 = vmatpush.bf16.msra.mxu3 %v9580_v2  ;;  %v9459_v2 = vld [vmem:[#allocation22 + $0x1e8] sm:$0xf] }
 0x813   :  { %5494 = vmatmul.bf16.vlgmr.msrb.gmra.mxu2 %v13694_v57  ;;  %5520 = vmatmul.bf16.vlgmr.msra.gmra.mxu0 %v13697_v51 }
 0x814   :  { %5538 = vmatpush.bf16.msra.mxu2 %v9388_v35  ;;  %5564 = vmatpush.bf16.msrb.mxu0 %v9772_v49  ;;  %v11048_v35 = vld [vmem:[#allocation22 + $0x37c] sm:$0xf0]  ;;  %v9460_v49 = vor.u32 %v11000_v43, %v9459_v2  ;;  %v10707_v2 = vld [vmem:[#allocation22 + $0xba8] sm:$0xf] }
 0x815   :  { %5577 = vmatpush.bf16.msra.mxu1 %v9964_v37  ;;  %v9268_v37 = vor.u32 %v10952_v47, %v9267_v36  ;;  %v9652_v46 = vor.u32 %v11048_v35, %v9651_v33  ;;  %v11312_v43 = vld [vmem:[#allocation22 + $0xbbc] sm:$0xf0]  ;;  %v10299_v36 = vld [vmem:[#allocation22 + $0x878] sm:$0xf]  ;;  %v11210_v47 = vld [vmem:[#allocation22 + $0x88c] sm:$0xf0] }
 0x816   :  { %5533 = vmatmul.bf16.vlgmr.msrb.gmra.mxu1 %v13699_v59  ;;  %5552 = vmatpush.bf16.msra.mxu3 %v9556_v22  ;;  %v9627_v22 = vld [vmem:[#allocation22 + $0x338] sm:$0xf]  ;;  %v10708_v35 = vor.u32 %v11312_v43, %v10707_v2  ;;  %v11138_v43 = vld [vmem:[#allocation22 + $0x64c] sm:$0xf0] }
 0x817   :  { %v10011_v2 = vld [vmem:[#allocation22 + $0x638] sm:$0xf] }
 0x818   :  { %5539 = vmatpush.bf16.msra.mxu2 %v9364_v13  ;;  %5565 = vmatpush.bf16.msrb.mxu0 %v9748_v0  ;;  %v11042_v13 = vld [vmem:[#allocation22 + $0x34c] sm:$0xf0]  ;;  %v9436_v0 = vor.u32 %v10994_v30, %v9435_v52  ;;  %v10683_v52 = vld [vmem:[#allocation22 + $0xb78] sm:$0xf] }
 0x819   :  { %5578 = vmatpush.bf16.msra.mxu1 %v9940_v10  ;;  %v9411_v10 = vld [vmem:[#allocation22 + $0x188] sm:$0xf]  ;;  %v9628_v23 = vor.u32 %v11042_v13, %v9627_v22  ;;  %v11306_v30 = vld [vmem:[#allocation22 + $0xb8c] sm:$0xf0] }
 0x81a   :  { %5553 = vmatpush.bf16.msra.mxu3 %v9532_v44  ;;  %v9219_v44 = vld [vmem:[#allocation22 + $0x8] sm:$0xf]  ;;  %v9412_v15 = vor.u32 %v10988_v38, %v9411_v10  ;;  %v10684_v13 = vor.u32 %v11306_v30, %v10683_v52  ;;  %v11252_v10 = vld [vmem:[#allocation22 + $0x9dc] sm:$0xf0] }
 0x81b   :  { %v11300_v38 = vld [vmem:[#allocation22 + $0xb5c] sm:$0xf0] }
 0x81c   :  { %5540 = vmatpush.bf16.msra.mxu2 %v9340_v34  ;;  %5566 = vmatpush.bf16.msrb.mxu0 %v9724_v45  ;;  %v10940_v34 = vld [vmem:[#allocation22 + $0x1c] sm:$0xf0]  ;;  %v9795_v45 = vld [vmem:[#allocation22 + $0x488] sm:$0xf] }
 0x81d   :  { %5579 = vmatpush.bf16.msra.mxu1 %v9916_v6  ;;  %v11084_v6 = vld [vmem:[#allocation22 + $0x49c] sm:$0xf0]  ;;  %v9220_v14 = vor.u32 %v10940_v34, %v9219_v44 }
 0x81e   :  { %5554 = vmatpush.bf16.msra.mxu3 %v9508_v62  ;;  %v11270_v62 = vld [vmem:[#allocation22 + $0xa6c] sm:$0xf0] }
 0x81f   :  { %v10540_v16 = vor.u32 %v11270_v62, %v10539_v19  ;;  %v10060_v19 = vor.u32 %v11150_v7, %v10059_v26  ;;  %v11021_v26 = vld [vmem:[#allocation22 + $0x2ac] sm:$0xf]  ;;  %v9557_v7 = vld [vmem:[#allocation22 + $0x2c0] sm:$0xf0] }
 0x820   :  { %5541 = vmatpush.bf16.msra.mxu2 %v9316_v50  ;;  %5567 = vmatpush.bf16.msrb.mxu0 %v9700_v21  ;;  %v10731_v50 = vld [vmem:[#allocation22 + $0xbd8] sm:$0xf]  ;;  %v9796_v21 = vor.u32 %v11084_v6, %v9795_v45  ;;  %v11246_v6 = vld [vmem:[#allocation22 + $0x9ac] sm:$0xf0] }
 0x821   :  { %5580 = vmatpush.bf16.msra.mxu1 %v9892_v48  ;;  %v10156_v48 = vor.u32 %v11174_v63, %v10155_v5  ;;  %v10732_v18 = vor.u32 %v11318_v54, %v10731_v50  ;;  %v10443_v45 = vld [vmem:[#allocation22 + $0x998] sm:$0xf]  ;;  %v11294_v5 = vld [vmem:[#allocation22 + $0xb2c] sm:$0xf0]  ;;  %v10035_v54 = vld [vmem:[#allocation22 + $0x668] sm:$0xf] }
 0x822   :  { %5555 = vmatpush.bf16.msra.mxu3 %v9484_v1  ;;  %v10515_v1 = vld [vmem:[#allocation22 + $0xa28] sm:$0xf]  ;;  %v10444_v62 = vor.u32 %v11246_v6, %v10443_v45 }
 0x824   :  { %5542 = vmatpush.bf16.msra.mxu2 %v9292_v53  ;;  %5568 = vmatpush.bf16.msrb.mxu0 %v9676_v24  ;;  %v11264_v53 = vld [vmem:[#allocation22 + $0xa3c] sm:$0xf0]  ;;  %v10324_v24 = vor.u32 %v11216_v20, %v10323_v12  ;;  %v10611_v12 = vld [vmem:[#allocation22 + $0xae8] sm:$0xf] }
 0x825   :  { %5581 = vmatpush.bf16.msra.mxu1 %v9868_v25  ;;  %v10132_v25 = vor.u32 %v11168_v28, %v10131_v61  ;;  %v10516_v33 = vor.u32 %v11264_v53, %v10515_v1  ;;  %v11288_v20 = vld [vmem:[#allocation22 + $0xafc] sm:$0xf0]  ;;  %v10203_v61 = vld [vmem:[#allocation22 + $0x7b8] sm:$0xf]  ;;  %v11186_v28 = vld [vmem:[#allocation22 + $0x7cc] sm:$0xf0] }
 0x826   :  { %5556 = vmatpush.bf16.msra.mxu3 %v9460_v49  ;;  %v10491_v49 = vld [vmem:[#allocation22 + $0x9f8] sm:$0xf]  ;;  %v10612_v53 = vor.u32 %v11288_v20, %v10611_v12  ;;  %v10967_v12 = vld [vmem:[#allocation22 + $0xfc] sm:$0xf]  ;;  %v9341_v20 = vld [vmem:[#allocation22 + $0x110] sm:$0xf0] }
 0x828   :  { %5543 = vmatpush.bf16.msra.mxu2 %v9268_v37  ;;  %5569 = vmatpush.bf16.msrb.mxu0 %v9652_v46  ;;  %v11258_v37 = vld [vmem:[#allocation22 + $0xa0c] sm:$0xf0]  ;;  %v10300_v46 = vor.u32 %v11210_v47, %v10299_v36  ;;  %v10587_v36 = vld [vmem:[#allocation22 + $0xab8] sm:$0xf] }
 0x829   :  { %5582 = vmatpush.bf16.msra.mxu1 %v9844_v3  ;;  %v10108_v3 = vor.u32 %v11162_v55, %v10107_v29  ;;  %v10492_v22 = vor.u32 %v11258_v37, %v10491_v49  ;;  %v11282_v47 = vld [vmem:[#allocation22 + $0xacc] sm:$0xf0]  ;;  %v10012_v29 = vor.u32 %v11138_v43, %v10011_v2  ;;  %v11180_v55 = vld [vmem:[#allocation22 + $0x79c] sm:$0xf0]  ;;  %v11027_v49 = vld [vmem:[#allocation22 + $0x2dc] sm:$0xf] }
 0x82a   :  { %5557 = vmatpush.bf16.msra.mxu3 %v9436_v0  ;;  %v10467_v0 = vld [vmem:[#allocation22 + $0x9c8] sm:$0xf]  ;;  %v9581_v37 = vld [vmem:[#allocation22 + $0x2f0] sm:$0xf0]  ;;  %v10588_v30 = vor.u32 %v11282_v47, %v10587_v36  ;;  %v11009_v43 = vld [vmem:[#allocation22 + $0x24c] sm:$0xf] }
 0x82b   :  { %v10468_v44 = vor.u32 %v11252_v10, %v10467_v0  ;;  %v9389_v0 = vld [vmem:[#allocation22 + $0x170] sm:$0xf0]  ;;  %v11075_v10 = vld [vmem:[#allocation22 + $0x45c] sm:$0xf] }
 0x82c   :  { %5544 = vmatpush.bf16.msra.mxu2 %v9244_v11  ;;  %5570 = vmatpush.bf16.msrb.mxu0 %v9628_v23  ;;  %v10659_v11 = vld [vmem:[#allocation22 + $0xb48] sm:$0xf]  ;;  %v10251_v23 = vld [vmem:[#allocation22 + $0x818] sm:$0xf] }
 0x82d   :  { %5583 = vmatpush.bf16.msra.mxu1 %v9820_v17  ;;  %v11198_v17 = vld [vmem:[#allocation22 + $0x82c] sm:$0xf0]  ;;  %v10660_v34 = vor.u32 %v11300_v38, %v10659_v11  ;;  %v9584_v11 = vor.u32 %v11027_v49, %v9581_v37  ;;  %v11105_v49 = vld [vmem:[#allocation22 + $0x54c] sm:$0xf]  ;;  %v9893_v37 = vld [vmem:[#allocation22 + $0x560] sm:$0xf0] }
 0x82e   :  { %5558 = vmatpush.bf16.msra.mxu3 %v9412_v15  ;;  %v10635_v15 = vld [vmem:[#allocation22 + $0xb18] sm:$0xf]  ;;  %v10252_v63 = vor.u32 %v11198_v17, %v10251_v23  ;;  %v9965_v23 = vld [vmem:[#allocation22 + $0x5f0] sm:$0xf0]  ;;  %v10372_v17 = vor.u32 %v11228_v40, %v10371_v27 }
 0x82f   :  { %v10636_v50 = vor.u32 %v11294_v5, %v10635_v15  ;;  %v10973_v15 = vld [vmem:[#allocation22 + $0x12c] sm:$0xf]  ;;  %v9365_v5 = vld [vmem:[#allocation22 + $0x140] sm:$0xf0]  ;;  %v9485_v27 = vld [vmem:[#allocation22 + $0x230] sm:$0xf0] }
 0x830   :  { %5545 = vmatpush.bf16.msra.mxu2 %v9220_v14  ;;  %5571 = vmatpush.bf16.msrb.mxu0 %v9604_v39  ;;  %v11192_v14 = vld [vmem:[#allocation22 + $0x7fc] sm:$0xf0] }
 0x831   :  { %5584 = vmatpush.bf16.msra.mxu1 %v9796_v21  ;;  %5559 = vmatmul.bf16.vlgmr.msra.gmra.mxu3 %v13661_v56  ;;  %v11144_v39 = vld [vmem:[#allocation22 + $0x67c] sm:$0xf0]  ;;  %v10419_v21 = vld [vmem:[#allocation22 + $0x968] sm:$0xf] }
 0x832   :  { %5603 = vmatpush.bf16.msrb.mxu3 %v10348_v58  ;;  %v10227_v58 = vld [vmem:[#allocation22 + $0x7e8] sm:$0xf] }
 0x833   :  { %5546 = vmatmul.bf16.vlgmr.msra.gmra.mxu2 %v13670_v4  ;;  %5572 = vmatmul.bf16.vlgmr.msrb.gmra.mxu0 %v13672_v60 }
 0x834   :  { %5590 = vmatpush.bf16.msrb.mxu2 %v10156_v48  ;;  %5616 = vmatpush.bf16.msra.mxu0 %v10540_v16  ;;  %v11240_v48 = vld [vmem:[#allocation22 + $0x97c] sm:$0xf0]  ;;  %v10228_v16 = vor.u32 %v11192_v14, %v10227_v58  ;;  %v11117_v58 = vld [vmem:[#allocation22 + $0x5ac] sm:$0xf]  ;;  %v9941_v14 = vld [vmem:[#allocation22 + $0x5c0] sm:$0xf0] }
 0x835   :  { %5629 = vmatpush.bf16.msrb.mxu1 %v10732_v18  ;;  %v10036_v18 = vor.u32 %v11144_v39, %v10035_v54  ;;  %v10420_v1 = vor.u32 %v11240_v48, %v10419_v21  ;;  %v11015_v54 = vld [vmem:[#allocation22 + $0x27c] sm:$0xf]  ;;  %v9533_v39 = vld [vmem:[#allocation22 + $0x290] sm:$0xf0]  ;;  %v9944_v48 = vor.u32 %v11117_v58, %v9941_v14 }
 0x836   :  { %5585 = vmatmul.bf16.vlgmr.msra.gmra.mxu1 %v13674_v42  ;;  %5604 = vmatpush.bf16.msrb.mxu3 %v10324_v24  ;;  %v10395_v24 = vld [vmem:[#allocation22 + $0x938] sm:$0xf] }
 0x838   :  { %5591 = vmatpush.bf16.msrb.mxu2 %v10132_v25  ;;  %5617 = vmatpush.bf16.msra.mxu0 %v10516_v33  ;;  %v11234_v25 = vld [vmem:[#allocation22 + $0x94c] sm:$0xf0]  ;;  %v10204_v33 = vor.u32 %v11186_v28, %v10203_v61  ;;  %v11111_v61 = vld [vmem:[#allocation22 + $0x57c] sm:$0xf]  ;;  %v9917_v28 = vld [vmem:[#allocation22 + $0x590] sm:$0xf0] }
 0x839   :  { %5630 = vmatpush.bf16.msrb.mxu1 %v10708_v35  ;;  %v10179_v35 = vld [vmem:[#allocation22 + $0x788] sm:$0xf]  ;;  %v10396_v52 = vor.u32 %v11234_v25, %v10395_v24  ;;  %v9509_v24 = vld [vmem:[#allocation22 + $0x260] sm:$0xf0]  ;;  %v9920_v36 = vor.u32 %v11111_v61, %v9917_v28  ;;  %v11087_v61 = vld [vmem:[#allocation22 + $0x4bc] sm:$0xf] }
 0x83a   :  { %5605 = vmatpush.bf16.msrb.mxu3 %v10300_v46  ;;  %v9987_v46 = vld [vmem:[#allocation22 + $0x608] sm:$0xf]  ;;  %v10180_v32 = vor.u32 %v11180_v55, %v10179_v35  ;;  %v9317_v35 = vld [vmem:[#allocation22 + $0xe0] sm:$0xf0]  ;;  %v9821_v28 = vld [vmem:[#allocation22 + $0x4d0] sm:$0xf0] }
 0x83b   :  { %v9701_v55 = vld [vmem:[#allocation22 + $0x3e0] sm:$0xf0] }
 0x83c   :  { %5592 = vmatpush.bf16.msrb.mxu2 %v10108_v3  ;;  %5618 = vmatpush.bf16.msra.mxu0 %v10492_v22  ;;  %v11132_v3 = vld [vmem:[#allocation22 + $0x61c] sm:$0xf0]  ;;  %v10563_v22 = vld [vmem:[#allocation22 + $0xa88] sm:$0xf] }
 0x83d   :  { %5631 = vmatpush.bf16.msrb.mxu1 %v10684_v13  ;;  %v11276_v13 = vld [vmem:[#allocation22 + $0xa9c] sm:$0xf0]  ;;  %v9988_v38 = vor.u32 %v11132_v3, %v9987_v46  ;;  %v11003_v3 = vld [vmem:[#allocation22 + $0x21c] sm:$0xf] }
 0x83e   :  { %5606 = vmatpush.bf16.msrb.mxu3 %v10276_v8  ;;  %v9773_v8 = vld [vmem:[#allocation22 + $0x470] sm:$0xf0] }
 0x83f   :  { %v9776_v45 = vor.u32 %v11075_v10, %v9773_v8  ;;  %v9677_v10 = vld [vmem:[#allocation22 + $0x3b0] sm:$0xf0]  ;;  %v9488_v8 = vor.u32 %v11003_v3, %v9485_v27  ;;  %v11081_v3 = vld [vmem:[#allocation22 + $0x48c] sm:$0xf]  ;;  %v9797_v27 = vld [vmem:[#allocation22 + $0x4a0] sm:$0xf0] }
 0x840   :  { %5593 = vmatpush.bf16.msrb.mxu2 %v10084_v31  ;;  %5619 = vmatpush.bf16.msra.mxu0 %v10468_v44  ;;  %v11123_v31 = vld [vmem:[#allocation22 + $0x5dc] sm:$0xf]  ;;  %v10564_v44 = vor.u32 %v11276_v13, %v10563_v22  ;;  %v9896_v22 = vor.u32 %v11105_v49, %v9893_v37  ;;  %v10937_v49 = vld [vmem:[#allocation22 + $0xc] sm:$0xf]  ;;  %v9221_v37 = vld [vmem:[#allocation22 + $0x20] sm:$0xf0] }
 0x841   :  { %5632 = vmatpush.bf16.msrb.mxu1 %v10660_v34  ;;  %v9392_v34 = vor.u32 %v10979_v41, %v9389_v0  ;;  %v9968_v6 = vor.u32 %v11123_v31, %v9965_v23  ;;  %v10955_v13 = vld [vmem:[#allocation22 + $0x9c] sm:$0xf] }
 0x842   :  { %5607 = vmatpush.bf16.msrb.mxu3 %v10252_v63  ;;  %v11069_v63 = vld [vmem:[#allocation22 + $0x42c] sm:$0xf]  ;;  %v11051_v41 = vld [vmem:[#allocation22 + $0x39c] sm:$0xf] }
 0x844   :  { %5594 = vmatpush.bf16.msrb.mxu2 %v10060_v19  ;;  %5620 = vmatpush.bf16.msra.mxu0 %v10444_v62  ;;  %v9749_v19 = vld [vmem:[#allocation22 + $0x440] sm:$0xf0]  ;;  %v9560_v62 = vor.u32 %v11021_v26, %v9557_v7 }
 0x845   :  { %5633 = vmatpush.bf16.msrb.mxu1 %v10636_v50  ;;  %v9368_v50 = vor.u32 %v10973_v15, %v9365_v5  ;;  %v9752_v21 = vor.u32 %v11069_v63, %v9749_v19  ;;  %v11045_v15 = vld [vmem:[#allocation22 + $0x36c] sm:$0xf]  ;;  %v9653_v5 = vld [vmem:[#allocation22 + $0x380] sm:$0xf0] }
 0x846   :  { %5608 = vmatpush.bf16.msrb.mxu3 %v10228_v16  ;;  %v11063_v16 = vld [vmem:[#allocation22 + $0x3fc] sm:$0xf]  ;;  %v11093_v63 = vld [vmem:[#allocation22 + $0x4ec] sm:$0xf]  ;;  %v9845_v19 = vld [vmem:[#allocation22 + $0x500] sm:$0xf0] }
 0x848   :  { %5595 = vmatpush.bf16.msrb.mxu2 %v10036_v18  ;;  %5621 = vmatpush.bf16.msra.mxu0 %v10420_v1  ;;  %v9725_v18 = vld [vmem:[#allocation22 + $0x410] sm:$0xf0]  ;;  %v9536_v1 = vor.u32 %v11015_v54, %v9533_v39  ;;  %v9656_v39 = vor.u32 %v11045_v15, %v9653_v5  ;;  %v11165_v15 = vld [vmem:[#allocation22 + $0x72c] sm:$0xf]  ;;  %v10133_v5 = vld [vmem:[#allocation22 + $0x740] sm:$0xf0] }
 0x849   :  { %5634 = vmatpush.bf16.msrb.mxu1 %v10612_v53  ;;  %v9344_v53 = vor.u32 %v10967_v12, %v9341_v20  ;;  %v9728_v25 = vor.u32 %v11063_v16, %v9725_v18  ;;  %v9437_v54 = vld [vmem:[#allocation22 + $0x1d0] sm:$0xf0]  ;;  %v11039_v20 = vld [vmem:[#allocation22 + $0x33c] sm:$0xf] }
 0x84a   :  { %5609 = vmatpush.bf16.msrb.mxu3 %v10204_v33  ;;  %v10961_v33 = vld [vmem:[#allocation22 + $0xcc] sm:$0xf]  ;;  %v9245_v12 = vld [vmem:[#allocation22 + $0x50] sm:$0xf0] }
 0x84b   :  { %v9629_v18 = vld [vmem:[#allocation22 + $0x350] sm:$0xf0] }
 0x84c   :  { %5596 = vmatpush.bf16.msrb.mxu2 %v10012_v29  ;;  %5622 = vmatpush.bf16.msra.mxu0 %v10396_v52  ;;  %v11057_v29 = vld [vmem:[#allocation22 + $0x3cc] sm:$0xf]  ;;  %v9512_v52 = vor.u32 %v11009_v43, %v9509_v24  ;;  %v9413_v24 = vld [vmem:[#allocation22 + $0x1a0] sm:$0xf0] }
 0x84d   :  { %5635 = vmatpush.bf16.msrb.mxu1 %v10588_v30  ;;  %v9320_v30 = vor.u32 %v10961_v33, %v9317_v35  ;;  %v9704_v40 = vor.u32 %v11057_v29, %v9701_v55  ;;  %v9632_v33 = vor.u32 %v11039_v20, %v9629_v18  ;;  %v9824_v35 = vor.u32 %v11087_v61, %v9821_v28  ;;  %v10109_v18 = vld [vmem:[#allocation22 + $0x710] sm:$0xf0]  ;;  %v11255_v61 = vld [vmem:[#allocation22 + $0x9fc] sm:$0xf] }
 0x84e   :  { %5610 = vmatpush.bf16.msrb.mxu3 %v10180_v32  ;;  %v9293_v32 = vld [vmem:[#allocation22 + $0xb0] sm:$0xf0] }
 0x84f   :  { %v13720_v2 = vpop.f32.mrf.mxu0  ;;  %v9296_v31 = vor.u32 %v10955_v13, %v9293_v32  ;;  %v10157_v13 = vld [vmem:[#allocation22 + $0x770] sm:$0xf0]  ;;  %v11267_v32 = vld [vmem:[#allocation22 + $0xa5c] sm:$0xf] }
 0x850   :  { %5597 = vmatpush.bf16.msrb.mxu2 %v9988_v38  ;;  %5623 = vmatpush.bf16.msra.mxu0 %v10372_v17  ;;  %v13722_v47 = vpop.f32.mrf.mxu1  ;;  %v9869_v38 = vld [vmem:[#allocation22 + $0x530] sm:$0xf0]  ;;  %v10997_v17 = vld [vmem:[#allocation22 + $0x1ec] sm:$0xf] }
 0x851   :  { %5636 = vmatpush.bf16.msrb.mxu1 %v10564_v44  ;;  %5611 = vmatmul.bf16.vlgmr.msrb.gmra.mxu3 %v13692_v9  ;;  %v9461_v44 = vld [vmem:[#allocation22 + $0x200] sm:$0xf0]  ;;  %v10493_v28 = vld [vmem:[#allocation22 + $0xa10] sm:$0xf0] }
 0x852   :  { %5655 = vmatpush.bf16.msra.mxu3 %v9584_v11  ;;  %v11099_v11 = vld [vmem:[#allocation22 + $0x51c] sm:$0xf]  ;;  %v9464_v58 = vor.u32 %v10997_v17, %v9461_v44 }
 0x853   :  { %5598 = vmatmul.bf16.vlgmr.msrb.gmra.mxu2 %v13694_v57  ;;  %5624 = vmatmul.bf16.vlgmr.msra.gmra.mxu0 %v13697_v51  ;;  %v13724_v46 = vpop.f32.mrf.mxu3  ;;  %v9872_v26 = vor.u32 %v11099_v11, %v9869_v38  ;;  %v10541_v11 = vld [vmem:[#allocation22 + $0xa70] sm:$0xf0]  ;;  %v11315_v38 = vld [vmem:[#allocation22 + $0xbdc] sm:$0xf] }
 0x854   :  { %5642 = vmatpush.bf16.msra.mxu2 %v9392_v34  ;;  %5668 = vmatpush.bf16.msrb.mxu0 %v9776_v45  ;;  %v9680_v34 = vor.u32 %v11051_v41, %v9677_v10  ;;  %v10949_v45 = vld [vmem:[#allocation22 + $0x6c] sm:$0xf]  ;;  %v9224_v10 = vor.u32 %v10937_v49, %v9221_v37  ;;  %v10496_v49 = vor.u32 %v11255_v61, %v10493_v28  ;;  %v11183_v28 = vld [vmem:[#allocation22 + $0x7bc] sm:$0xf] }
 0x855   :  { %5681 = vmatpush.bf16.msra.mxu1 %v9968_v6  ;;  %v13726_v0 = vpop.f32.mrf.mxu2  ;;  %v9269_v6 = vld [vmem:[#allocation22 + $0x80] sm:$0xf0] }
 0x856   :  { %5637 = vmatmul.bf16.vlgmr.msrb.gmra.mxu1 %v13699_v59  ;;  %5656 = vmatpush.bf16.msra.mxu3 %v9560_v62  ;;  %v9272_v14 = vor.u32 %v10949_v45, %v9269_v6  ;;  %v10544_v45 = vor.u32 %v11267_v32, %v10541_v11  ;;  %v10253_v11 = vld [vmem:[#allocation22 + $0x830] sm:$0xf0] }
 0x857   :  { %v5367_v23 = vpop.f32.mrf.mxu0 }
 0x858   :  { %5643 = vmatpush.bf16.msra.mxu2 %v9368_v50  ;;  %5669 = vmatpush.bf16.msrb.mxu0 %v9752_v21  ;;  %v5380_v7 = vpop.f32.mrf.mxu1  ;;  %v10991_v50 = vld [vmem:[#allocation22 + $0x1bc] sm:$0xf]  ;;  %v9848_v21 = vor.u32 %v11093_v63, %v9845_v19  ;;  %v9800_v23 = vor.u32 %v11081_v3, %v9797_v27  ;;  %v11261_v63 = vld [vmem:[#allocation22 + $0xa2c] sm:$0xf]  ;;  %v10517_v19 = vld [vmem:[#allocation22 + $0xa40] sm:$0xf0] }
 0x859   :  { %5682 = vmatpush.bf16.msra.mxu1 %v9944_v48  ;;  %v10943_v48 = vld [vmem:[#allocation22 + $0x3c] sm:$0xf]  ;;  %v10325_v7 = vld [vmem:[#allocation22 + $0x8c0] sm:$0xf0]  ;;  %v11249_v3 = vld [vmem:[#allocation22 + $0x9cc] sm:$0xf] }
 0x85a   :  { %5657 = vmatpush.bf16.msra.mxu3 %v9536_v1  ;;  %v9440_v1 = vor.u32 %v10991_v50, %v9437_v54  ;;  %v9248_v43 = vor.u32 %v10943_v48, %v9245_v12  ;;  %v10301_v48 = vld [vmem:[#allocation22 + $0x890] sm:$0xf0]  ;;  %v10520_v12 = vor.u32 %v11261_v63, %v10517_v19  ;;  %v10469_v27 = vld [vmem:[#allocation22 + $0x9e0] sm:$0xf0]  ;;  %v11189_v63 = vld [vmem:[#allocation22 + $0x7ec] sm:$0xf] }
 0x85b   :  { %v5354_v62 = vpop.f32.mrf.mxu3  ;;  %v10229_v19 = vld [vmem:[#allocation22 + $0x800] sm:$0xf0] }
 0x85c   :  { %5644 = vmatpush.bf16.msra.mxu2 %v9344_v53  ;;  %5670 = vmatpush.bf16.msrb.mxu0 %v9728_v25  ;;  %v10985_v53 = vld [vmem:[#allocation22 + $0x18c] sm:$0xf]  ;;  %v11219_v25 = vld [vmem:[#allocation22 + $0x8dc] sm:$0xf] }
 0x85d   :  { %5683 = vmatpush.bf16.msra.mxu1 %v9920_v36  ;;  %v5341_v16 = vpop.f32.mrf.mxu2  ;;  %v10349_v36 = vld [vmem:[#allocation22 + $0x8f0] sm:$0xf0] }
 0x85e   :  { %5658 = vmatpush.bf16.msra.mxu3 %v9512_v52  ;;  %v11033_v52 = vld [vmem:[#allocation22 + $0x30c] sm:$0xf]  ;;  %v10352_v41 = vor.u32 %v11219_v25, %v10349_v36  ;;  %v11159_v16 = vld [vmem:[#allocation22 + $0x6fc] sm:$0xf] }
 0x85f   :  { %v10112_v25 = vor.u32 %v11159_v16, %v10109_v18  ;;  %v10232_v16 = vor.u32 %v11189_v63, %v10229_v19 }
 0x860   :  { %5645 = vmatpush.bf16.msra.mxu2 %v9320_v30  ;;  %5671 = vmatpush.bf16.msrb.mxu0 %v9704_v40  ;;  %v13728_v29 = vpop.f32.mrf.mxu0  ;;  %v13730_v55 = vpop.f32.mrf.mxu1  ;;  %v9605_v30 = vld [vmem:[#allocation22 + $0x320] sm:$0xf0]  ;;  %v9416_v40 = vor.u32 %v10985_v53, %v9413_v24  ;;  %v10685_v53 = vld [vmem:[#allocation22 + $0xb90] sm:$0xf0] }
 0x861   :  { %5684 = vmatpush.bf16.msra.mxu1 %v9896_v22  ;;  %v11171_v22 = vld [vmem:[#allocation22 + $0x75c] sm:$0xf] }
 0x862   :  { %5659 = vmatpush.bf16.msra.mxu3 %v9488_v8  ;;  %v10733_v8 = vld [vmem:[#allocation22 + $0xbf0] sm:$0xf0]  ;;  %v10160_v44 = vor.u32 %v11171_v22, %v10157_v13  ;;  %v10661_v22 = vld [vmem:[#allocation22 + $0xb60] sm:$0xf0] }
 0x863   :  { %v10736_v6 = vor.u32 %v11315_v38, %v10733_v8  ;;  %v10472_v8 = vor.u32 %v11249_v3, %v10469_v27  ;;  %v10181_v27 = vld [vmem:[#allocation22 + $0x7a0] sm:$0xf0] }
 0x864   :  { %5646 = vmatpush.bf16.msra.mxu2 %v9296_v31  ;;  %5672 = vmatpush.bf16.msrb.mxu0 %v9680_v34  ;;  %v9608_v31 = vor.u32 %v11033_v52, %v9605_v30  ;;  %v13732_v17 = vpop.f32.mrf.mxu3  ;;  %v11153_v52 = vld [vmem:[#allocation22 + $0x6cc] sm:$0xf]  ;;  %v10085_v30 = vld [vmem:[#allocation22 + $0x6e0] sm:$0xf0] }
 0x865   :  { %5685 = vmatpush.bf16.msra.mxu1 %v9872_v26  ;;  %v13734_v34 = vpop.f32.mrf.mxu2  ;;  %v11213_v26 = vld [vmem:[#allocation22 + $0x8ac] sm:$0xf] }
 0x866   :  { %5660 = vmatpush.bf16.msra.mxu3 %v9464_v58  ;;  %v11309_v58 = vld [vmem:[#allocation22 + $0xbac] sm:$0xf]  ;;  %v10328_v62 = vor.u32 %v11213_v26, %v10325_v7  ;;  %v11243_v26 = vld [vmem:[#allocation22 + $0x99c] sm:$0xf]  ;;  %v10445_v7 = vld [vmem:[#allocation22 + $0x9b0] sm:$0xf0] }
 0x868   :  { %5647 = vmatpush.bf16.msra.mxu2 %v9272_v14  ;;  %5673 = vmatpush.bf16.msrb.mxu0 %v9656_v39  ;;  %v10709_v14 = vld [vmem:[#allocation22 + $0xbc0] sm:$0xf0]  ;;  %v5419_v50 = vpop.f32.mrf.mxu0  ;;  %v5432_v54 = vpop.f32.mrf.mxu1  ;;  %v10136_v39 = vor.u32 %v11165_v15, %v10133_v5 }
 0x869   :  { %5686 = vmatpush.bf16.msra.mxu1 %v9848_v21  ;;  %v11207_v21 = vld [vmem:[#allocation22 + $0x87c] sm:$0xf]  ;;  %v10712_v20 = vor.u32 %v11309_v58, %v10709_v14  ;;  %v10448_v14 = vor.u32 %v11243_v26, %v10445_v7  ;;  %v11141_v54 = vld [vmem:[#allocation22 + $0x66c] sm:$0xf]  ;;  %v10565_v7 = vld [vmem:[#allocation22 + $0xaa0] sm:$0xf0] }
 0x86a   :  { %5661 = vmatpush.bf16.msra.mxu3 %v9440_v1  ;;  %v11303_v1 = vld [vmem:[#allocation22 + $0xb7c] sm:$0xf]  ;;  %v11273_v26 = vld [vmem:[#allocation22 + $0xa8c] sm:$0xf] }
 0x86b   :  { %v10688_v37 = vor.u32 %v11303_v1, %v10685_v53  ;;  %v10205_v1 = vld [vmem:[#allocation22 + $0x7d0] sm:$0xf0] }
 0x86c   :  { %5648 = vmatpush.bf16.msra.mxu2 %v9248_v43  ;;  %5674 = vmatpush.bf16.msrb.mxu0 %v9632_v33  ;;  %v10304_v43 = vor.u32 %v11207_v21, %v10301_v48  ;;  %v5406_v24 = vpop.f32.mrf.mxu3  ;;  %v11201_v33 = vld [vmem:[#allocation22 + $0x84c] sm:$0xf]  ;;  %v10421_v48 = vld [vmem:[#allocation22 + $0x980] sm:$0xf0] }
 0x86d   :  { %5687 = vmatpush.bf16.msra.mxu1 %v9824_v35  ;;  %v5393_v36 = vpop.f32.mrf.mxu2  ;;  %v10277_v35 = vld [vmem:[#allocation22 + $0x860] sm:$0xf0]  ;;  %v11237_v21 = vld [vmem:[#allocation22 + $0x96c] sm:$0xf] }
 0x86e   :  { %5662 = vmatpush.bf16.msra.mxu3 %v9416_v40  ;;  %v11297_v40 = vld [vmem:[#allocation22 + $0xb4c] sm:$0xf]  ;;  %v10280_v13 = vor.u32 %v11201_v33, %v10277_v35  ;;  %v10013_v36 = vld [vmem:[#allocation22 + $0x650] sm:$0xf0]  ;;  %v11231_v33 = vld [vmem:[#allocation22 + $0x93c] sm:$0xf] }
 0x86f   :  { %v10397_v35 = vld [vmem:[#allocation22 + $0x950] sm:$0xf0] }
 0x870   :  { %5649 = vmatpush.bf16.msra.mxu2 %v9224_v10  ;;  %5675 = vmatpush.bf16.msrb.mxu0 %v9608_v31  ;;  %v13740_v32 = vpop.f32.mrf.mxu0  ;;  %v11195_v10 = vld [vmem:[#allocation22 + $0x81c] sm:$0xf]  ;;  %v10664_v31 = vor.u32 %v11297_v40, %v10661_v22  ;;  %v9587_v40 = vld [vmem:[#allocation22 + $0x2e0] sm:$0xf]  ;;  %v11031_v22 = vld [vmem:[#allocation22 + $0x2f4] sm:$0xf0] }
 0x871   :  { %5688 = vmatpush.bf16.msra.mxu1 %v9800_v23  ;;  %5663 = vmatmul.bf16.vlgmr.msra.gmra.mxu3 %v13661_v56  ;;  %v11147_v23 = vld [vmem:[#allocation22 + $0x69c] sm:$0xf]  ;;  %v10256_v15 = vor.u32 %v11195_v10, %v10253_v11  ;;  %v9588_v63 = vor.u32 %v11031_v22, %v9587_v40  ;;  %v9923_v40 = vld [vmem:[#allocation22 + $0x580] sm:$0xf]  ;;  %v11115_v22 = vld [vmem:[#allocation22 + $0x594] sm:$0xf0] }
 0x872   :  { %5707 = vmatpush.bf16.msrb.mxu3 %v10352_v41  ;;  %v10088_v41 = vor.u32 %v11153_v52, %v10085_v30  ;;  %v10208_v52 = vor.u32 %v11183_v28, %v10205_v1  ;;  %v11177_v30 = vld [vmem:[#allocation22 + $0x78c] sm:$0xf]  ;;  %v10977_v28 = vld [vmem:[#allocation22 + $0x144] sm:$0xf0]  ;;  %v9755_v1 = vld [vmem:[#allocation22 + $0x430] sm:$0xf] }
 0x873   :  { %5650 = vmatmul.bf16.vlgmr.msra.gmra.mxu2 %v13670_v4  ;;  %5676 = vmatmul.bf16.vlgmr.msrb.gmra.mxu0 %v13672_v60  ;;  %v13742_v38 = vpop.f32.mrf.mxu1 }
 0x874   :  { %5694 = vmatpush.bf16.msrb.mxu2 %v10160_v44  ;;  %5720 = vmatpush.bf16.msra.mxu0 %v10544_v45  ;;  %v10061_v44 = vld [vmem:[#allocation22 + $0x6b0] sm:$0xf0]  ;;  %v11291_v45 = vld [vmem:[#allocation22 + $0xb1c] sm:$0xf]  ;;  %v13744_v58 = vpop.f32.mrf.mxu3 }
 0x875   :  { %5733 = vmatpush.bf16.msrb.mxu1 %v10736_v6  ;;  %v10637_v6 = vld [vmem:[#allocation22 + $0xb30] sm:$0xf0]  ;;  %v10064_v5 = vor.u32 %v11147_v23, %v10061_v44  ;;  %v11225_v23 = vld [vmem:[#allocation22 + $0x90c] sm:$0xf]  ;;  %v10373_v44 = vld [vmem:[#allocation22 + $0x920] sm:$0xf0] }
 0x876   :  { %5689 = vmatmul.bf16.vlgmr.msra.gmra.mxu1 %v13674_v42  ;;  %5708 = vmatpush.bf16.msrb.mxu3 %v10328_v62  ;;  %v10640_v62 = vor.u32 %v11291_v45, %v10637_v6  ;;  %v13746_v50 = vpop.f32.mrf.mxu2  ;;  %v10184_v45 = vor.u32 %v11177_v30, %v10181_v27  ;;  %v9395_v6 = vld [vmem:[#allocation22 + $0x160] sm:$0xf]  ;;  %v10971_v30 = vld [vmem:[#allocation22 + $0x114] sm:$0xf0] }
 0x877   :  { %v11067_v27 = vld [vmem:[#allocation22 + $0x414] sm:$0xf0] }
 0x878   :  { %5695 = vmatpush.bf16.msrb.mxu2 %v10136_v39  ;;  %5721 = vmatpush.bf16.msra.mxu0 %v10520_v12  ;;  %v10037_v39 = vld [vmem:[#allocation22 + $0x680] sm:$0xf0]  ;;  %v11285_v12 = vld [vmem:[#allocation22 + $0xaec] sm:$0xf]  ;;  %v5471_v18 = vpop.f32.mrf.mxu0 }
 0x879   :  { %5734 = vmatpush.bf16.msrb.mxu1 %v10712_v20  ;;  %v10613_v20 = vld [vmem:[#allocation22 + $0xb00] sm:$0xf0]  ;;  %v10040_v61 = vor.u32 %v11141_v54, %v10037_v39  ;;  %v11127_v54 = vld [vmem:[#allocation22 + $0x5f4] sm:$0xf0]  ;;  %v10376_v39 = vor.u32 %v11225_v23, %v10373_v44  ;;  %v9323_v23 = vld [vmem:[#allocation22 + $0xd0] sm:$0xf] }
 0x87a   :  { %5709 = vmatpush.bf16.msrb.mxu3 %v10304_v43  ;;  %v10424_v43 = vor.u32 %v11237_v21, %v10421_v48  ;;  %v10616_v24 = vor.u32 %v11285_v12, %v10613_v20  ;;  %v10568_v21 = vor.u32 %v11273_v26, %v10565_v7  ;;  %v9563_v12 = vld [vmem:[#allocation22 + $0x2b0] sm:$0xf]  ;;  %v11025_v20 = vld [vmem:[#allocation22 + $0x2c4] sm:$0xf0] }
 0x87b   :  { %v5484_v53 = vpop.f32.mrf.mxu1  ;;  %v10965_v44 = vld [vmem:[#allocation22 + $0xe4] sm:$0xf0]  ;;  %v9707_v26 = vld [vmem:[#allocation22 + $0x3d0] sm:$0xf] }
 0x87c   :  { %5696 = vmatpush.bf16.msrb.mxu2 %v10112_v25  ;;  %5722 = vmatpush.bf16.msra.mxu0 %v10496_v49  ;;  %v11135_v25 = vld [vmem:[#allocation22 + $0x63c] sm:$0xf]  ;;  %v11073_v53 = vld [vmem:[#allocation22 + $0x444] sm:$0xf0] }
 0x87d   :  { %5735 = vmatpush.bf16.msrb.mxu1 %v10688_v37  ;;  %v11279_v49 = vld [vmem:[#allocation22 + $0xabc] sm:$0xf]  ;;  %v10589_v37 = vld [vmem:[#allocation22 + $0xad0] sm:$0xf0]  ;;  %v10016_v3 = vor.u32 %v11135_v25, %v10013_v36  ;;  %v9564_v25 = vor.u32 %v11025_v20, %v9563_v12  ;;  %v11061_v7 = vld [vmem:[#allocation22 + $0x3e4] sm:$0xf0] }
 0x87e   :  { %5710 = vmatpush.bf16.msrb.mxu3 %v10280_v13  ;;  %v5458_v13 = vpop.f32.mrf.mxu3  ;;  %v10592_v10 = vor.u32 %v11279_v49, %v10589_v37  ;;  %v5445_v11 = vpop.f32.mrf.mxu2  ;;  %v9756_v49 = vor.u32 %v11073_v53, %v9755_v1  ;;  %v9683_v12 = vld [vmem:[#allocation22 + $0x3a0] sm:$0xf]  ;;  %v11055_v20 = vld [vmem:[#allocation22 + $0x3b4] sm:$0xf0]  ;;  %v9467_v53 = vld [vmem:[#allocation22 + $0x1f0] sm:$0xf] }
 0x87f   :  { %v11013_v11 = vld [vmem:[#allocation22 + $0x264] sm:$0xf0] }
 0x880   :  { %5697 = vmatpush.bf16.msrb.mxu2 %v10088_v41  ;;  %5723 = vmatpush.bf16.msra.mxu0 %v10472_v8  ;;  %v10400_v41 = vor.u32 %v11231_v33, %v10397_v35  ;;  %v11129_v8 = vld [vmem:[#allocation22 + $0x60c] sm:$0xf]  ;;  %v9539_v33 = vld [vmem:[#allocation22 + $0x280] sm:$0xf]  ;;  %v11019_v35 = vld [vmem:[#allocation22 + $0x294] sm:$0xf0] }
 0x881   :  { %5736 = vmatpush.bf16.msrb.mxu1 %v10664_v31  ;;  %v9989_v31 = vld [vmem:[#allocation22 + $0x620] sm:$0xf0]  ;;  %v9540_v13 = vor.u32 %v11019_v35, %v9539_v33  ;;  %v9275_v33 = vld [vmem:[#allocation22 + $0x70] sm:$0xf]  ;;  %v10953_v35 = vld [vmem:[#allocation22 + $0x84] sm:$0xf0] }
 0x882   :  { %5711 = vmatpush.bf16.msrb.mxu3 %v10256_v15  ;;  %v10983_v15 = vld [vmem:[#allocation22 + $0x174] sm:$0xf0]  ;;  %v9992_v19 = vor.u32 %v11129_v8, %v9989_v31  ;;  %v9924_v31 = vor.u32 %v11115_v22, %v9923_v40  ;;  %v9276_v22 = vor.u32 %v10953_v35, %v9275_v33 }
 0x883   :  { %v9396_v48 = vor.u32 %v10983_v15, %v9395_v6  ;;  %v11109_v6 = vld [vmem:[#allocation22 + $0x564] sm:$0xf0] }
 0x884   :  { %5698 = vmatpush.bf16.msrb.mxu2 %v10064_v5  ;;  %5724 = vmatpush.bf16.msra.mxu0 %v10448_v14  ;;  %v9779_v5 = vld [vmem:[#allocation22 + $0x460] sm:$0xf]  ;;  %v11079_v14 = vld [vmem:[#allocation22 + $0x474] sm:$0xf0] }
 0x885   :  { %5737 = vmatpush.bf16.msrb.mxu1 %v10640_v62  ;;  %v9971_v62 = vld [vmem:[#allocation22 + $0x5e0] sm:$0xf] }
 0x886   :  { %5712 = vmatpush.bf16.msrb.mxu3 %v10232_v16  ;;  %v9780_v16 = vor.u32 %v11079_v14, %v9779_v5  ;;  %v9972_v18 = vor.u32 %v11127_v54, %v9971_v62  ;;  %v9491_v14 = vld [vmem:[#allocation22 + $0x220] sm:$0xf]  ;;  %v11007_v62 = vld [vmem:[#allocation22 + $0x234] sm:$0xf0]  ;;  %v9708_v54 = vor.u32 %v11061_v7, %v9707_v26 }
 0x887   :  { %v9827_v26 = vld [vmem:[#allocation22 + $0x4c0] sm:$0xf]  ;;  %v11091_v7 = vld [vmem:[#allocation22 + $0x4d4] sm:$0xf0] }
 0x888   :  { %5699 = vmatpush.bf16.msrb.mxu2 %v10040_v61  ;;  %5725 = vmatpush.bf16.msra.mxu0 %v10424_v43  ;;  %v9371_v61 = vld [vmem:[#allocation22 + $0x130] sm:$0xf] }
 0x889   :  { %5738 = vmatpush.bf16.msrb.mxu1 %v10616_v24  ;;  %v9947_v43 = vld [vmem:[#allocation22 + $0x5b0] sm:$0xf]  ;;  %v11121_v24 = vld [vmem:[#allocation22 + $0x5c4] sm:$0xf0]  ;;  %v9372_v36 = vor.u32 %v10977_v28, %v9371_v61  ;;  %v9492_v61 = vor.u32 %v11007_v62, %v9491_v14  ;;  %v10355_v62 = vld [vmem:[#allocation22 + $0x8e0] sm:$0xf] }
 0x88a   :  { %5713 = vmatpush.bf16.msrb.mxu3 %v10208_v52  ;;  %v9948_v37 = vor.u32 %v11121_v24, %v9947_v43  ;;  %v9347_v52 = vld [vmem:[#allocation22 + $0x100] sm:$0xf]  ;;  %v11001_v43 = vld [vmem:[#allocation22 + $0x204] sm:$0xf0]  ;;  %v9684_v24 = vor.u32 %v11055_v20, %v9683_v12  ;;  %v9227_v12 = vld [vmem:[#allocation22 + $0x10] sm:$0xf] }
 0x88b   :  { %v10989_v14 = vld [vmem:[#allocation22 + $0x1a4] sm:$0xf0] }
 0x88c   :  { %5700 = vmatpush.bf16.msrb.mxu2 %v10016_v3  ;;  %5726 = vmatpush.bf16.msra.mxu0 %v10400_v41  ;;  %v9731_v3 = vld [vmem:[#allocation22 + $0x400] sm:$0xf]  ;;  %v9348_v41 = vor.u32 %v10971_v30, %v9347_v52  ;;  %v9851_v52 = vld [vmem:[#allocation22 + $0x4f0] sm:$0xf]  ;;  %v11097_v30 = vld [vmem:[#allocation22 + $0x504] sm:$0xf0] }
 0x88d   :  { %5739 = vmatpush.bf16.msrb.mxu1 %v10592_v10  ;;  %v9515_v10 = vld [vmem:[#allocation22 + $0x250] sm:$0xf]  ;;  %v9732_v8 = vor.u32 %v11067_v27, %v9731_v3  ;;  %v9468_v3 = vor.u32 %v11001_v43, %v9467_v53  ;;  %v10941_v20 = vld [vmem:[#allocation22 + $0x24] sm:$0xf0]  ;;  %v10163_v43 = vld [vmem:[#allocation22 + $0x760] sm:$0xf] }
 0x88e   :  { %5714 = vmatpush.bf16.msrb.mxu3 %v10184_v45  ;;  %v9899_v45 = vld [vmem:[#allocation22 + $0x550] sm:$0xf]  ;;  %v9516_v15 = vor.u32 %v11013_v11, %v9515_v10  ;;  %v9852_v11 = vor.u32 %v11097_v30, %v9851_v52  ;;  %v9228_v35 = vor.u32 %v10941_v20, %v9227_v12  ;;  %v11319_v52 = vld [vmem:[#allocation22 + $0xbf4] sm:$0xf0] }
 0x890   :  { %5701 = vmatpush.bf16.msrb.mxu2 %v9992_v19  ;;  %5727 = vmatpush.bf16.msra.mxu0 %v10376_v39  ;;  %v13752_v5 = vpop.f32.mrf.mxu0  ;;  %v9324_v19 = vor.u32 %v10965_v44, %v9323_v23  ;;  %v9900_v39 = vor.u32 %v11109_v6, %v9899_v45  ;;  %v9635_v23 = vld [vmem:[#allocation22 + $0x340] sm:$0xf]  ;;  %v11043_v44 = vld [vmem:[#allocation22 + $0x354] sm:$0xf0] }
 0x891   :  { %5740 = vmatpush.bf16.msrb.mxu1 %v10568_v21  ;;  %5715 = vmatmul.bf16.vlgmr.msrb.gmra.mxu3 %v13692_v9  ;;  %v9299_v21 = vld [vmem:[#allocation22 + $0xa0] sm:$0xf] }
 0x892   :  { %5759 = vmatpush.bf16.msra.mxu3 %v9588_v63 }
 0x893   :  { %5702 = vmatmul.bf16.vlgmr.msrb.gmra.mxu2 %v13694_v57  ;;  %5728 = vmatmul.bf16.vlgmr.msra.gmra.mxu0 %v13697_v51  ;;  %v13754_v63 = vpop.f32.mrf.mxu1 }
 0x894   :  { %5746 = vmatpush.bf16.msra.mxu2 %v9396_v48  ;;  %5772 = vmatpush.bf16.msrb.mxu0 %v9780_v16  ;;  %v10959_v48 = vld [vmem:[#allocation22 + $0xb4] sm:$0xf0]  ;;  %v9875_v16 = vld [vmem:[#allocation22 + $0x520] sm:$0xf]  ;;  %v13756_v28 = vpop.f32.mrf.mxu3 }
 0x895   :  { %5785 = vmatpush.bf16.msra.mxu1 %v9972_v18  ;;  %v11103_v18 = vld [vmem:[#allocation22 + $0x534] sm:$0xf0]  ;;  %v9300_v1 = vor.u32 %v10959_v48, %v9299_v21  ;;  %v9828_v21 = vor.u32 %v11091_v7, %v9827_v26 }
 0x896   :  { %5741 = vmatmul.bf16.vlgmr.msrb.gmra.mxu1 %v13699_v59  ;;  %5760 = vmatpush.bf16.msra.mxu3 %v9564_v25  ;;  %v9876_v25 = vor.u32 %v11103_v18, %v9875_v16  ;;  %v9611_v16 = vld [vmem:[#allocation22 + $0x310] sm:$0xf]  ;;  %v11037_v18 = vld [vmem:[#allocation22 + $0x324] sm:$0xf0] }
 0x897   :  { %v9612_v30 = vor.u32 %v11037_v18, %v9611_v16  ;;  %v10283_v16 = vld [vmem:[#allocation22 + $0x850] sm:$0xf]  ;;  %v11205_v18 = vld [vmem:[#allocation22 + $0x864] sm:$0xf0] }
 0x898   :  { %5747 = vmatpush.bf16.msra.mxu2 %v9372_v36  ;;  %5773 = vmatpush.bf16.msrb.mxu0 %v9756_v49  ;;  %v13758_v36 = vpop.f32.mrf.mxu2  ;;  %v9659_v49 = vld [vmem:[#allocation22 + $0x370] sm:$0xf]  ;;  %v5523_v27 = vpop.f32.mrf.mxu0 }
 0x899   :  { %5786 = vmatpush.bf16.msra.mxu1 %v9948_v37  ;;  %v11049_v37 = vld [vmem:[#allocation22 + $0x384] sm:$0xf0] }
 0x89a   :  { %5761 = vmatpush.bf16.msra.mxu3 %v9540_v13  ;;  %v9443_v13 = vld [vmem:[#allocation22 + $0x1c0] sm:$0xf]  ;;  %v9660_v10 = vor.u32 %v11049_v37, %v9659_v49  ;;  %v11271_v49 = vld [vmem:[#allocation22 + $0xa74] sm:$0xf0] }
 0x89b   :  { %v5536_v40 = vpop.f32.mrf.mxu1  ;;  %v10739_v37 = vld [vmem:[#allocation22 + $0xbe0] sm:$0xf] }
 0x89c   :  { %5748 = vmatpush.bf16.msra.mxu2 %v9348_v41  ;;  %5774 = vmatpush.bf16.msrb.mxu0 %v9732_v8  ;;  %v10995_v41 = vld [vmem:[#allocation22 + $0x1d4] sm:$0xf0]  ;;  %v9251_v8 = vld [vmem:[#allocation22 + $0x40] sm:$0xf]  ;;  %v5510_v6 = vpop.f32.mrf.mxu3  ;;  %v10331_v40 = vld [vmem:[#allocation22 + $0x8b0] sm:$0xf] }
 0x89d   :  { %5787 = vmatpush.bf16.msra.mxu1 %v9924_v31  ;;  %v10947_v31 = vld [vmem:[#allocation22 + $0x54] sm:$0xf0]  ;;  %v9444_v45 = vor.u32 %v10995_v41, %v9443_v13  ;;  %v10740_v41 = vor.u32 %v11319_v52, %v10739_v37 }
 0x89e   :  { %5762 = vmatpush.bf16.msra.mxu3 %v9516_v15  ;;  %v9419_v15 = vld [vmem:[#allocation22 + $0x190] sm:$0xf]  ;;  %v11211_v6 = vld [vmem:[#allocation22 + $0x894] sm:$0xf0] }
 0x89f   :  { %v9420_v53 = vor.u32 %v10989_v14, %v9419_v15  ;;  %v10115_v14 = vld [vmem:[#allocation22 + $0x700] sm:$0xf] }
 0x8a0   :  { %5749 = vmatpush.bf16.msra.mxu2 %v9324_v19  ;;  %5775 = vmatpush.bf16.msrb.mxu0 %v9708_v54  ;;  %v9252_v19 = vor.u32 %v10947_v31, %v9251_v8  ;;  %v11223_v54 = vld [vmem:[#allocation22 + $0x8f4] sm:$0xf0]  ;;  %v5497_v48 = vpop.f32.mrf.mxu2  ;;  %v10523_v8 = vld [vmem:[#allocation22 + $0xa30] sm:$0xf]  ;;  %v11265_v31 = vld [vmem:[#allocation22 + $0xa44] sm:$0xf0] }
 0x8a1   :  { %5788 = vmatpush.bf16.msra.mxu1 %v9900_v39  ;;  %v9636_v39 = vor.u32 %v11043_v44, %v9635_v23  ;;  %v10356_v33 = vor.u32 %v11223_v54, %v10355_v62  ;;  %v10715_v23 = vld [vmem:[#allocation22 + $0xbb0] sm:$0xf]  ;;  %v11313_v44 = vld [vmem:[#allocation22 + $0xbc4] sm:$0xf0]  ;;  %v10524_v15 = vor.u32 %v11265_v31, %v10523_v8  ;;  %v11163_v62 = vld [vmem:[#allocation22 + $0x714] sm:$0xf0] }
 0x8a2   :  { %5763 = vmatpush.bf16.msra.mxu3 %v9492_v61  ;;  %v9803_v61 = vld [vmem:[#allocation22 + $0x490] sm:$0xf]  ;;  %v10499_v54 = vld [vmem:[#allocation22 + $0xa00] sm:$0xf]  ;;  %v11307_v48 = vld [vmem:[#allocation22 + $0xb94] sm:$0xf0]  ;;  %v10116_v20 = vor.u32 %v11163_v62, %v10115_v14 }
 0x8a3   :  { %v10643_v8 = vld [vmem:[#allocation22 + $0xb20] sm:$0xf]  ;;  %v11295_v31 = vld [vmem:[#allocation22 + $0xb34] sm:$0xf0]  ;;  %v10043_v14 = vld [vmem:[#allocation22 + $0x670] sm:$0xf] }
 0x8a4   :  { %5750 = vmatpush.bf16.msra.mxu2 %v9300_v1  ;;  %5776 = vmatpush.bf16.msrb.mxu0 %v9684_v24  ;;  %v11085_v1 = vld [vmem:[#allocation22 + $0x4a4] sm:$0xf0]  ;;  %v11175_v24 = vld [vmem:[#allocation22 + $0x774] sm:$0xf0] }
 0x8a5   :  { %5789 = vmatpush.bf16.msra.mxu1 %v9876_v25  ;;  %v10547_v25 = vld [vmem:[#allocation22 + $0xa60] sm:$0xf]  ;;  %v10164_v27 = vor.u32 %v11175_v24, %v10163_v43  ;;  %v11157_v43 = vld [vmem:[#allocation22 + $0x6e4] sm:$0xf0]  ;;  %v10475_v24 = vld [vmem:[#allocation22 + $0x9d0] sm:$0xf] }
 0x8a6   :  { %5764 = vmatpush.bf16.msra.mxu3 %v9468_v3  ;;  %v9804_v3 = vor.u32 %v11085_v1, %v9803_v61  ;;  %v10548_v13 = vor.u32 %v11271_v49, %v10547_v25  ;;  %v11253_v25 = vld [vmem:[#allocation22 + $0x9e4] sm:$0xf0]  ;;  %v10284_v49 = vor.u32 %v11205_v18, %v10283_v16 }
 0x8a7   :  { %v11145_v62 = vld [vmem:[#allocation22 + $0x684] sm:$0xf0] }
 0x8a8   :  { %5751 = vmatpush.bf16.msra.mxu2 %v9276_v22  ;;  %5777 = vmatpush.bf16.msrb.mxu0 %v9660_v10  ;;  %v11217_v22 = vld [vmem:[#allocation22 + $0x8c4] sm:$0xf0]  ;;  %v10139_v10 = vld [vmem:[#allocation22 + $0x730] sm:$0xf]  ;;  %v10044_v18 = vor.u32 %v11145_v62, %v10043_v14  ;;  %v10980_v62 = vld [vmem:[#allocation22 + $0x164] sm:$0xf] }
 0x8a9   :  { %5790 = vmatpush.bf16.msra.mxu1 %v9852_v11  ;;  %v11169_v11 = vld [vmem:[#allocation22 + $0x744] sm:$0xf0]  ;;  %v10332_v26 = vor.u32 %v11217_v22, %v10331_v40  ;;  %v10476_v40 = vor.u32 %v11253_v25, %v10475_v24  ;;  %v10019_v24 = vld [vmem:[#allocation22 + $0x640] sm:$0xf]  ;;  %v11139_v25 = vld [vmem:[#allocation22 + $0x654] sm:$0xf0] }
 0x8aa   :  { %5765 = vmatpush.bf16.msra.mxu3 %v9444_v45  ;;  %v10140_v7 = vor.u32 %v11169_v11, %v10139_v10  ;;  %v10307_v45 = vld [vmem:[#allocation22 + $0x880] sm:$0xf]  ;;  %v11247_v11 = vld [vmem:[#allocation22 + $0x9b4] sm:$0xf0] }
 0x8ab   :  { %v10308_v12 = vor.u32 %v11211_v6, %v10307_v45  ;;  %v10451_v10 = vld [vmem:[#allocation22 + $0x9a0] sm:$0xf]  ;;  %v11193_v45 = vld [vmem:[#allocation22 + $0x804] sm:$0xf0] }
 0x8ac   :  { %5752 = vmatpush.bf16.msra.mxu2 %v9252_v19  ;;  %5778 = vmatpush.bf16.msrb.mxu0 %v9636_v39  ;;  %v10716_v19 = vor.u32 %v11313_v44, %v10715_v23  ;;  %v11259_v39 = vld [vmem:[#allocation22 + $0xa14] sm:$0xf0]  ;;  %v10452_v6 = vor.u32 %v11247_v11, %v10451_v10  ;;  %v9589_v10 = vld [vmem:[#allocation22 + $0x2f8] sm:$0xf0] }
 0x8ad   :  { %5791 = vmatpush.bf16.msra.mxu1 %v9828_v21  ;;  %v10691_v21 = vld [vmem:[#allocation22 + $0xb80] sm:$0xf]  ;;  %v10500_v61 = vor.u32 %v11259_v39, %v10499_v54  ;;  %v10427_v54 = vld [vmem:[#allocation22 + $0x970] sm:$0xf]  ;;  %v11241_v39 = vld [vmem:[#allocation22 + $0x984] sm:$0xf0] }
 0x8ae   :  { %5766 = vmatpush.bf16.msra.mxu3 %v9420_v53  ;;  %v10692_v1 = vor.u32 %v11307_v48, %v10691_v21  ;;  %v10091_v53 = vld [vmem:[#allocation22 + $0x6d0] sm:$0xf]  ;;  %v11289_v48 = vld [vmem:[#allocation22 + $0xb04] sm:$0xf0] }
 0x8af   :  { %v10619_v21 = vld [vmem:[#allocation22 + $0xaf0] sm:$0xf] }
 0x8b0   :  { %5753 = vmatpush.bf16.msra.mxu2 %v9228_v35  ;;  %5779 = vmatpush.bf16.msrb.mxu0 %v9612_v30  ;;  %v11301_v35 = vld [vmem:[#allocation22 + $0xb64] sm:$0xf0]  ;;  %v13764_v37 = vpop.f32.mrf.mxu0  ;;  %v10092_v30 = vor.u32 %v11157_v43, %v10091_v53  ;;  %v10428_v53 = vor.u32 %v11241_v39, %v10427_v54  ;;  %v10620_v43 = vor.u32 %v11289_v48, %v10619_v21  ;;  %v9397_v54 = vld [vmem:[#allocation22 + $0x178] sm:$0xf0]  ;;  %v11076_v39 = vld [vmem:[#allocation22 + $0x464] sm:$0xf] }
 0x8b1   :  { %5792 = vmatpush.bf16.msra.mxu1 %v9804_v3  ;;  %5767 = vmatmul.bf16.vlgmr.msra.gmra.mxu3 %v13661_v56  ;;  %v10259_v3 = vld [vmem:[#allocation22 + $0x820] sm:$0xf] }
 0x8b2   :  { %5811 = vmatpush.bf16.msrb.mxu3 %v10356_v33  ;;  %v10667_v33 = vld [vmem:[#allocation22 + $0xb50] sm:$0xf] }
 0x8b3   :  { %5754 = vmatmul.bf16.vlgmr.msra.gmra.mxu2 %v13670_v4  ;;  %5780 = vmatmul.bf16.vlgmr.msrb.gmra.mxu0 %v13672_v60  ;;  %v13766_v52 = vpop.f32.mrf.mxu1  ;;  %v10668_v22 = vor.u32 %v11301_v35, %v10667_v33  ;;  %v10403_v33 = vld [vmem:[#allocation22 + $0x940] sm:$0xf]  ;;  %v11235_v35 = vld [vmem:[#allocation22 + $0x954] sm:$0xf0] }
 0x8b4   :  { %5798 = vmatpush.bf16.msrb.mxu2 %v10164_v27  ;;  %5824 = vmatpush.bf16.msra.mxu0 %v10548_v13  ;;  %v11199_v27 = vld [vmem:[#allocation22 + $0x834] sm:$0xf0]  ;;  %v10067_v13 = vld [vmem:[#allocation22 + $0x6a0] sm:$0xf]  ;;  %v13768_v44 = vpop.f32.mrf.mxu3  ;;  %v10404_v11 = vor.u32 %v11235_v35, %v10403_v33  ;;  %v10974_v33 = vld [vmem:[#allocation22 + $0x134] sm:$0xf] }
 0x8b5   :  { %5837 = vmatpush.bf16.msrb.mxu1 %v10740_v41  ;;  %v11151_v41 = vld [vmem:[#allocation22 + $0x6b4] sm:$0xf0]  ;;  %v10260_v23 = vor.u32 %v11199_v27, %v10259_v3  ;;  %v9373_v35 = vld [vmem:[#allocation22 + $0x148] sm:$0xf0] }
 0x8b6   :  { %5793 = vmatmul.bf16.vlgmr.msra.gmra.mxu1 %v13674_v42  ;;  %5812 = vmatpush.bf16.msrb.mxu3 %v10332_v26  ;;  %v10068_v26 = vor.u32 %v11151_v41, %v10067_v13  ;;  %v11181_v13 = vld [vmem:[#allocation22 + $0x7a4] sm:$0xf0]  ;;  %v11028_v41 = vld [vmem:[#allocation22 + $0x2e4] sm:$0xf] }
 0x8b7   :  { %v9592_v21 = vor.u32 %v11028_v41, %v9589_v10  ;;  %v9541_v41 = vld [vmem:[#allocation22 + $0x298] sm:$0xf0] }
 0x8b8   :  { %5799 = vmatpush.bf16.msrb.mxu2 %v10140_v7  ;;  %5825 = vmatpush.bf16.msra.mxu0 %v10524_v15  ;;  %v10235_v7 = vld [vmem:[#allocation22 + $0x7f0] sm:$0xf]  ;;  %v10644_v15 = vor.u32 %v11295_v31, %v10643_v8 }
 0x8b9   :  { %5838 = vmatpush.bf16.msrb.mxu1 %v10716_v19  ;;  %v13770_v19 = vpop.f32.mrf.mxu2 }
 0x8ba   :  { %5813 = vmatpush.bf16.msrb.mxu3 %v10308_v12  ;;  %v10236_v12 = vor.u32 %v11193_v45, %v10235_v7  ;;  %v10379_v7 = vld [vmem:[#allocation22 + $0x910] sm:$0xf]  ;;  %v11229_v45 = vld [vmem:[#allocation22 + $0x924] sm:$0xf0] }
 0x8bb   :  { %v5588_v16 = vpop.f32.mrf.mxu1 }
 0x8bc   :  { %5800 = vmatpush.bf16.msrb.mxu2 %v10116_v20  ;;  %5826 = vmatpush.bf16.msra.mxu0 %v10500_v61  ;;  %v5575_v20 = vpop.f32.mrf.mxu0  ;;  %v10211_v61 = vld [vmem:[#allocation22 + $0x7c0] sm:$0xf]  ;;  %v5562_v27 = vpop.f32.mrf.mxu3  ;;  %v9973_v16 = vld [vmem:[#allocation22 + $0x5f8] sm:$0xf0] }
 0x8bd   :  { %5839 = vmatpush.bf16.msrb.mxu1 %v10692_v1  ;;  %v11187_v1 = vld [vmem:[#allocation22 + $0x7d4] sm:$0xf0]  ;;  %v11124_v20 = vld [vmem:[#allocation22 + $0x5e4] sm:$0xf]  ;;  %v9949_v27 = vld [vmem:[#allocation22 + $0x5c8] sm:$0xf0] }
 0x8be   :  { %5814 = vmatpush.bf16.msrb.mxu3 %v10284_v49  ;;  %v10595_v49 = vld [vmem:[#allocation22 + $0xac0] sm:$0xf]  ;;  %v10212_v3 = vor.u32 %v11187_v1, %v10211_v61  ;;  %v9400_v1 = vor.u32 %v10980_v62, %v9397_v54  ;;  %v9517_v62 = vld [vmem:[#allocation22 + $0x268] sm:$0xf0] }
 0x8c0   :  { %5801 = vmatpush.bf16.msrb.mxu2 %v10092_v30  ;;  %5827 = vmatpush.bf16.msra.mxu0 %v10476_v40  ;;  %v11283_v30 = vld [vmem:[#allocation22 + $0xad4] sm:$0xf0]  ;;  %v10187_v40 = vld [vmem:[#allocation22 + $0x790] sm:$0xf] }
 0x8c1   :  { %5840 = vmatpush.bf16.msrb.mxu1 %v10668_v22  ;;  %v10020_v22 = vor.u32 %v11139_v25, %v10019_v24  ;;  %v10596_v8 = vor.u32 %v11283_v30, %v10595_v49  ;;  %v5549_v31 = vpop.f32.mrf.mxu2  ;;  %v10188_v14 = vor.u32 %v11181_v13, %v10187_v40  ;;  %v9976_v25 = vor.u32 %v11124_v20, %v9973_v16  ;;  %v11070_v49 = vld [vmem:[#allocation22 + $0x434] sm:$0xf]  ;;  %v9757_v30 = vld [vmem:[#allocation22 + $0x448] sm:$0xf0]  ;;  %v11016_v13 = vld [vmem:[#allocation22 + $0x284] sm:$0xf] }
 0x8c2   :  { %5815 = vmatpush.bf16.msrb.mxu3 %v10260_v23  ;;  %v9995_v23 = vld [vmem:[#allocation22 + $0x610] sm:$0xf]  ;;  %v9760_v10 = vor.u32 %v11070_v49, %v9757_v30  ;;  %v9349_v31 = vld [vmem:[#allocation22 + $0x118] sm:$0xf0]  ;;  %v9709_v20 = vld [vmem:[#allocation22 + $0x3e8] sm:$0xf0] }
 0x8c3   :  { %v11106_v16 = vld [vmem:[#allocation22 + $0x554] sm:$0xf]  ;;  %v10956_v49 = vld [vmem:[#allocation22 + $0xa4] sm:$0xf]  ;;  %v9301_v30 = vld [vmem:[#allocation22 + $0xb8] sm:$0xf0] }
 0x8c4   :  { %5802 = vmatpush.bf16.msrb.mxu2 %v10068_v26  ;;  %5828 = vmatpush.bf16.msra.mxu0 %v10452_v6  ;;  %v11133_v26 = vld [vmem:[#allocation22 + $0x624] sm:$0xf0]  ;;  %v10571_v6 = vld [vmem:[#allocation22 + $0xa90] sm:$0xf] }
 0x8c5   :  { %5841 = vmatpush.bf16.msrb.mxu1 %v10644_v15  ;;  %v11277_v15 = vld [vmem:[#allocation22 + $0xaa4] sm:$0xf0]  ;;  %v9996_v48 = vor.u32 %v11133_v26, %v9995_v23  ;;  %v11064_v23 = vld [vmem:[#allocation22 + $0x404] sm:$0xf]  ;;  %v9733_v26 = vld [vmem:[#allocation22 + $0x418] sm:$0xf0] }
 0x8c6   :  { %5816 = vmatpush.bf16.msrb.mxu3 %v10236_v12  ;;  %v9781_v12 = vld [vmem:[#allocation22 + $0x478] sm:$0xf0]  ;;  %v10572_v61 = vor.u32 %v11277_v15, %v10571_v6  ;;  %v9544_v6 = vor.u32 %v11016_v13, %v9541_v41  ;;  %v9736_v54 = vor.u32 %v11064_v23, %v9733_v26 }
 0x8c7   :  { %v9784_v24 = vor.u32 %v11076_v39, %v9781_v12  ;;  %v11058_v12 = vld [vmem:[#allocation22 + $0x3d4] sm:$0xf] }
 0x8c8   :  { %5803 = vmatpush.bf16.msrb.mxu2 %v10044_v18  ;;  %5829 = vmatpush.bf16.msra.mxu0 %v10428_v53  ;;  %v10380_v18 = vor.u32 %v11229_v45, %v10379_v7  ;;  %v11022_v53 = vld [vmem:[#allocation22 + $0x2b4] sm:$0xf]  ;;  %v11112_v7 = vld [vmem:[#allocation22 + $0x584] sm:$0xf]  ;;  %v9925_v45 = vld [vmem:[#allocation22 + $0x598] sm:$0xf0] }
 0x8c9   :  { %5842 = vmatpush.bf16.msrb.mxu1 %v10620_v43  ;;  %v9565_v43 = vld [vmem:[#allocation22 + $0x2c8] sm:$0xf0]  ;;  %v9928_v39 = vor.u32 %v11112_v7, %v9925_v45  ;;  %v10950_v7 = vld [vmem:[#allocation22 + $0x74] sm:$0xf] }
 0x8ca   :  { %5817 = vmatpush.bf16.msrb.mxu3 %v10212_v3  ;;  %v11118_v3 = vld [vmem:[#allocation22 + $0x5b4] sm:$0xf]  ;;  %v9568_v40 = vor.u32 %v11022_v53, %v9565_v43  ;;  %v9277_v45 = vld [vmem:[#allocation22 + $0x88] sm:$0xf0] }
 0x8cc   :  { %5804 = vmatpush.bf16.msrb.mxu2 %v10020_v22  ;;  %5830 = vmatpush.bf16.msra.mxu0 %v10404_v11  ;;  %v9376_v22 = vor.u32 %v10974_v33, %v9373_v35  ;;  %v9952_v11 = vor.u32 %v11118_v3, %v9949_v27  ;;  %v9712_v33 = vor.u32 %v11058_v12, %v9709_v20  ;;  %v11052_v3 = vld [vmem:[#allocation22 + $0x3a4] sm:$0xf]  ;;  %v9685_v27 = vld [vmem:[#allocation22 + $0x3b8] sm:$0xf0] }
 0x8cd   :  { %5843 = vmatpush.bf16.msrb.mxu1 %v10596_v8  ;;  %v10968_v8 = vld [vmem:[#allocation22 + $0x104] sm:$0xf]  ;;  %v9445_v20 = vld [vmem:[#allocation22 + $0x1d8] sm:$0xf0] }
 0x8ce   :  { %5818 = vmatpush.bf16.msrb.mxu3 %v10188_v14  ;;  %v9352_v15 = vor.u32 %v10968_v8, %v9349_v31  ;;  %v11010_v14 = vld [vmem:[#allocation22 + $0x254] sm:$0xf]  ;;  %v9469_v8 = vld [vmem:[#allocation22 + $0x208] sm:$0xf0]  ;;  %v9688_v31 = vor.u32 %v11052_v3, %v9685_v27  ;;  %v10992_v12 = vld [vmem:[#allocation22 + $0x1c4] sm:$0xf] }
 0x8cf   :  { %v10986_v3 = vld [vmem:[#allocation22 + $0x194] sm:$0xf] }
 0x8d0   :  { %5805 = vmatpush.bf16.msrb.mxu2 %v9996_v48  ;;  %5831 = vmatpush.bf16.msra.mxu0 %v10380_v18  ;;  %v9325_v48 = vld [vmem:[#allocation22 + $0xe8] sm:$0xf0] }
 0x8d1   :  { %5844 = vmatpush.bf16.msrb.mxu1 %v10572_v61  ;;  %5819 = vmatmul.bf16.vlgmr.msrb.gmra.mxu3 %v13692_v9  ;;  %v9901_v18 = vld [vmem:[#allocation22 + $0x568] sm:$0xf0]  ;;  %v9520_v61 = vor.u32 %v11010_v14, %v9517_v62  ;;  %v11094_v14 = vld [vmem:[#allocation22 + $0x4f4] sm:$0xf] }
 0x8d2   :  { %5863 = vmatpush.bf16.msra.mxu3 %v9592_v21  ;;  %v10962_v21 = vld [vmem:[#allocation22 + $0xd4] sm:$0xf]  ;;  %v9904_v35 = vor.u32 %v11106_v16, %v9901_v18  ;;  %v9853_v62 = vld [vmem:[#allocation22 + $0x508] sm:$0xf0] }
 0x8d3   :  { %5806 = vmatmul.bf16.vlgmr.msrb.gmra.mxu2 %v13694_v57  ;;  %5832 = vmatmul.bf16.vlgmr.msra.gmra.mxu0 %v13697_v51  ;;  %v13778_v53 = vpop.f32.mrf.mxu1  ;;  %v9328_v43 = vor.u32 %v10962_v21, %v9325_v48  ;;  %v9280_v48 = vor.u32 %v10950_v7, %v9277_v45  ;;  %v9856_v18 = vor.u32 %v11094_v14, %v9853_v62  ;;  %v11034_v7 = vld [vmem:[#allocation22 + $0x314] sm:$0xf]  ;;  %v9613_v45 = vld [vmem:[#allocation22 + $0x328] sm:$0xf0]  ;;  %v11172_v62 = vld [vmem:[#allocation22 + $0x764] sm:$0xf] }
 0x8d4   :  { %5850 = vmatpush.bf16.msra.mxu2 %v9400_v1  ;;  %5876 = vmatpush.bf16.msrb.mxu0 %v9784_v24  ;;  %v13776_v1 = vpop.f32.mrf.mxu0  ;;  %v11004_v24 = vld [vmem:[#allocation22 + $0x224] sm:$0xf]  ;;  %v13780_v41 = vpop.f32.mrf.mxu3 }
 0x8d5   :  { %5889 = vmatpush.bf16.msra.mxu1 %v9976_v25  ;;  %v9493_v25 = vld [vmem:[#allocation22 + $0x238] sm:$0xf0] }
 0x8d6   :  { %5845 = vmatmul.bf16.vlgmr.msrb.gmra.mxu1 %v13699_v59  ;;  %5864 = vmatpush.bf16.msra.mxu3 %v9568_v40  ;;  %v11100_v40 = vld [vmem:[#allocation22 + $0x524] sm:$0xf]  ;;  %v9496_v13 = vor.u32 %v11004_v24, %v9493_v25  ;;  %v13782_v26 = vpop.f32.mrf.mxu2  ;;  %v9637_v25 = vld [vmem:[#allocation22 + $0x358] sm:$0xf0] }
 0x8d7   :  { %v11040_v24 = vld [vmem:[#allocation22 + $0x344] sm:$0xf] }
 0x8d8   :  { %5851 = vmatpush.bf16.msra.mxu2 %v9376_v22  ;;  %5877 = vmatpush.bf16.msrb.mxu0 %v9760_v10  ;;  %v9877_v22 = vld [vmem:[#allocation22 + $0x538] sm:$0xf0]  ;;  %v9304_v10 = vor.u32 %v10956_v49, %v9301_v30  ;;  %v9448_v49 = vor.u32 %v10992_v12, %v9445_v20  ;;  %v11316_v20 = vld [vmem:[#allocation22 + $0xbe4] sm:$0xf] }
 0x8d9   :  { %5890 = vmatpush.bf16.msra.mxu1 %v9952_v11  ;;  %v10998_v11 = vld [vmem:[#allocation22 + $0x1f4] sm:$0xf]  ;;  %v9880_v23 = vor.u32 %v11100_v40, %v9877_v22  ;;  %v9421_v40 = vld [vmem:[#allocation22 + $0x1a8] sm:$0xf0]  ;;  %v11220_v22 = vld [vmem:[#allocation22 + $0x8e4] sm:$0xf] }
 0x8da   :  { %5865 = vmatpush.bf16.msra.mxu3 %v9544_v6  ;;  %v11046_v6 = vld [vmem:[#allocation22 + $0x374] sm:$0xf]  ;;  %v9424_v14 = vor.u32 %v10986_v3, %v9421_v40  ;;  %v10549_v12 = vld [vmem:[#allocation22 + $0xa78] sm:$0xf0] }
 0x8db   :  { %v5640_v21 = vpop.f32.mrf.mxu1  ;;  %v11262_v3 = vld [vmem:[#allocation22 + $0xa34] sm:$0xf] }
 0x8dc   :  { %5852 = vmatpush.bf16.msra.mxu2 %v9352_v15  ;;  %5878 = vmatpush.bf16.msrb.mxu0 %v9736_v54  ;;  %v9661_v15 = vld [vmem:[#allocation22 + $0x388] sm:$0xf0]  ;;  %v9472_v54 = vor.u32 %v10998_v11, %v9469_v8  ;;  %v5614_v30 = vpop.f32.mrf.mxu3  ;;  %v11310_v40 = vld [vmem:[#allocation22 + $0xbb4] sm:$0xf] }
 0x8dd   :  { %5891 = vmatpush.bf16.msra.mxu1 %v9928_v39  ;;  %v5627_v39 = vpop.f32.mrf.mxu0  ;;  %v9664_v16 = vor.u32 %v11046_v6, %v9661_v15  ;;  %v11082_v6 = vld [vmem:[#allocation22 + $0x494] sm:$0xf]  ;;  %v9805_v15 = vld [vmem:[#allocation22 + $0x4a8] sm:$0xf0] }
 0x8de   :  { %5866 = vmatpush.bf16.msra.mxu3 %v9520_v61  ;;  %v10944_v61 = vld [vmem:[#allocation22 + $0x44] sm:$0xf]  ;;  %v5601_v8 = vpop.f32.mrf.mxu2  ;;  %v10141_v30 = vld [vmem:[#allocation22 + $0x748] sm:$0xf0] }
 0x8df   :  { %v11268_v39 = vld [vmem:[#allocation22 + $0xa64] sm:$0xf]  ;;  %v10309_v8 = vld [vmem:[#allocation22 + $0x898] sm:$0xf0] }
 0x8e0   :  { %5853 = vmatpush.bf16.msra.mxu2 %v9328_v43  ;;  %5879 = vmatpush.bf16.msrb.mxu0 %v9712_v33  ;;  %v9253_v43 = vld [vmem:[#allocation22 + $0x58] sm:$0xf0]  ;;  %v11088_v33 = vld [vmem:[#allocation22 + $0x4c4] sm:$0xf] }
 0x8e1   :  { %5892 = vmatpush.bf16.msra.mxu1 %v9904_v35  ;;  %v9829_v35 = vld [vmem:[#allocation22 + $0x4d8] sm:$0xf0]  ;;  %v9256_v27 = vor.u32 %v10944_v61, %v9253_v43  ;;  %v9808_v61 = vor.u32 %v11082_v6, %v9805_v15  ;;  %v11256_v6 = vld [vmem:[#allocation22 + $0xa04] sm:$0xf] }
 0x8e2   :  { %5867 = vmatpush.bf16.msra.mxu3 %v9496_v13  ;;  %v10357_v13 = vld [vmem:[#allocation22 + $0x8f8] sm:$0xf0]  ;;  %v9832_v11 = vor.u32 %v11088_v33, %v9829_v35  ;;  %v10552_v33 = vor.u32 %v11268_v39, %v10549_v12  ;;  %v11202_v39 = vld [vmem:[#allocation22 + $0x854] sm:$0xf] }
 0x8e3   :  { %v10360_v21 = vor.u32 %v11220_v22, %v10357_v13  ;;  %v10717_v22 = vld [vmem:[#allocation22 + $0xbc8] sm:$0xf0]  ;;  %v10501_v15 = vld [vmem:[#allocation22 + $0xa18] sm:$0xf0] }
 0x8e4   :  { %5854 = vmatpush.bf16.msra.mxu2 %v9304_v10  ;;  %5880 = vmatpush.bf16.msrb.mxu0 %v9688_v31  ;;  %v9640_v10 = vor.u32 %v11040_v24, %v9637_v25  ;;  %v10938_v31 = vld [vmem:[#allocation22 + $0x14] sm:$0xf]  ;;  %v10333_v25 = vld [vmem:[#allocation22 + $0x8c8] sm:$0xf0] }
 0x8e5   :  { %5893 = vmatpush.bf16.msra.mxu1 %v9880_v23  ;;  %v9229_v23 = vld [vmem:[#allocation22 + $0x28] sm:$0xf0]  ;;  %v11214_v24 = vld [vmem:[#allocation22 + $0x8b4] sm:$0xf] }
 0x8e6   :  { %5868 = vmatpush.bf16.msra.mxu3 %v9472_v54  ;;  %v10165_v54 = vld [vmem:[#allocation22 + $0x778] sm:$0xf0]  ;;  %v10336_v13 = vor.u32 %v11214_v24, %v10333_v25 }
 0x8e7   :  { %v10168_v43 = vor.u32 %v11172_v62, %v10165_v54  ;;  %v10693_v62 = vld [vmem:[#allocation22 + $0xb98] sm:$0xf0] }
 0x8e8   :  { %5855 = vmatpush.bf16.msra.mxu2 %v9280_v48  ;;  %5881 = vmatpush.bf16.msrb.mxu0 %v9664_v16  ;;  %v9232_v48 = vor.u32 %v10938_v31, %v9229_v23  ;;  %v10741_v16 = vld [vmem:[#allocation22 + $0xbf8] sm:$0xf0]  ;;  %v10720_v23 = vor.u32 %v11310_v40, %v10717_v22  ;;  %v11244_v22 = vld [vmem:[#allocation22 + $0x9a4] sm:$0xf] }
 0x8e9   :  { %5894 = vmatpush.bf16.msra.mxu1 %v9856_v18  ;;  %v9616_v18 = vor.u32 %v11034_v7, %v9613_v45  ;;  %v10744_v35 = vor.u32 %v11316_v20, %v10741_v16  ;;  %v11160_v7 = vld [vmem:[#allocation22 + $0x704] sm:$0xf]  ;;  %v10117_v45 = vld [vmem:[#allocation22 + $0x718] sm:$0xf0]  ;;  %v11154_v20 = vld [vmem:[#allocation22 + $0x6d4] sm:$0xf] }
 0x8ea   :  { %5869 = vmatpush.bf16.msra.mxu3 %v9448_v49  ;;  %v11166_v49 = vld [vmem:[#allocation22 + $0x734] sm:$0xf]  ;;  %v10120_v54 = vor.u32 %v11160_v7, %v10117_v45  ;;  %v10093_v16 = vld [vmem:[#allocation22 + $0x6e8] sm:$0xf0]  ;;  %v10069_v40 = vld [vmem:[#allocation22 + $0x6b8] sm:$0xf0] }
 0x8eb   :  { %v11190_v45 = vld [vmem:[#allocation22 + $0x7f4] sm:$0xf] }
 0x8ec   :  { %5856 = vmatpush.bf16.msra.mxu2 %v9256_v27  ;;  %5882 = vmatpush.bf16.msrb.mxu0 %v9640_v10  ;;  %v10525_v27 = vld [vmem:[#allocation22 + $0xa48] sm:$0xf0]  ;;  %v10144_v10 = vor.u32 %v11166_v49, %v10141_v30  ;;  %v10261_v49 = vld [vmem:[#allocation22 + $0x838] sm:$0xf0]  ;;  %v11148_v30 = vld [vmem:[#allocation22 + $0x6a4] sm:$0xf] }
 0x8ed   :  { %5895 = vmatpush.bf16.msra.mxu1 %v9832_v11  ;;  %v11208_v11 = vld [vmem:[#allocation22 + $0x884] sm:$0xf]  ;;  %v10528_v31 = vor.u32 %v11262_v3, %v10525_v27  ;;  %v10072_v7 = vor.u32 %v11148_v30, %v10069_v40  ;;  %v10405_v40 = vld [vmem:[#allocation22 + $0x958] sm:$0xf0] }
 0x8ee   :  { %5870 = vmatpush.bf16.msra.mxu3 %v9424_v14  ;;  %v11304_v14 = vld [vmem:[#allocation22 + $0xb84] sm:$0xf] }
 0x8ef   :  { %v10696_v12 = vor.u32 %v11304_v14, %v10693_v62  ;;  %v11136_v30 = vld [vmem:[#allocation22 + $0x644] sm:$0xf] }
 0x8f0   :  { %5857 = vmatpush.bf16.msra.mxu2 %v9232_v48  ;;  %5883 = vmatpush.bf16.msrb.mxu0 %v9616_v18  ;;  %v10504_v48 = vor.u32 %v11256_v6, %v10501_v15  ;;  %v10477_v18 = vld [vmem:[#allocation22 + $0x9e8] sm:$0xf0]  ;;  %v5677_v24 = vpop.f32.mrf.mxu0 }
 0x8f1   :  { %5896 = vmatpush.bf16.msra.mxu1 %v9808_v61  ;;  %5871 = vmatmul.bf16.vlgmr.msra.gmra.mxu3 %v13661_v56  ;;  %v10312_v56 = vor.u32 %v11208_v11, %v10309_v8  ;;  %v10669_v61 = vld [vmem:[#allocation22 + $0xb68] sm:$0xf0]  ;;  %v10645_v11 = vld [vmem:[#allocation22 + $0xb38] sm:$0xf0] }
 0x8f2   :  { %5915 = vmatpush.bf16.msrb.mxu3 %v10360_v21  ;;  %v10285_v21 = vld [vmem:[#allocation22 + $0x868] sm:$0xf0] }
 0x8f3   :  { %5858 = vmatmul.bf16.vlgmr.msra.gmra.mxu2 %v13670_v4  ;;  %5884 = vmatmul.bf16.vlgmr.msrb.gmra.mxu0 %v13672_v60  ;;  %v11250_v4 = vld [vmem:[#allocation22 + $0x9d4] sm:$0xf]  ;;  %v5690_v25 = vpop.f32.mrf.mxu1  ;;  %v10237_v6 = vld [vmem:[#allocation22 + $0x808] sm:$0xf0] }
 0x8f4   :  { %5902 = vmatpush.bf16.msrb.mxu2 %v10168_v43  ;;  %5928 = vmatpush.bf16.msra.mxu0 %v10552_v33  ;;  %v11298_v60 = vld [vmem:[#allocation22 + $0xb54] sm:$0xf]  ;;  %v13788_v43 = vld [vmem:[#allocation23] sm:$0x3f]  ;;  %v10096_v33 = vor.u32 %v11154_v20, %v10093_v16  ;;  %v10480_v3 = vor.u32 %v11250_v4, %v10477_v18  ;;  %v10621_v20 = vld [vmem:[#allocation22 + $0xb08] sm:$0xf0]  ;;  %v10240_v16 = vor.u32 %v11190_v45, %v10237_v6 }
 0x8f5   :  { %5941 = vmatpush.bf16.msrb.mxu1 %v10744_v35  ;;  %v11196_v35 = vld [vmem:[#allocation22 + $0x824] sm:$0xf]  ;;  %v10672_v27 = vor.u32 %v11298_v60, %v10669_v61  ;;  %v3401_v8 = vperm.slane %v13788_v43, 3 }
 0x8f6   :  { %5897 = vmatmul.bf16.vlgmr.msra.gmra.mxu1 %v13674_v42  ;;  %5916 = vmatpush.bf16.msrb.mxu3 %v10336_v13  ;;  %v10288_v42 = vor.u32 %v11202_v39, %v10285_v21  ;;  %v10453_v13 = vld [vmem:[#allocation22 + $0x9b8] sm:$0xf0]  ;;  %v5651_v62 = vpop.f32.mrf.mxu2  ;;  %v11238_v39 = vld [vmem:[#allocation22 + $0x974] sm:$0xf] }
 0x8f7   :  { %v10456_v15 = vor.u32 %v11244_v22, %v10453_v13  ;;  %v5652_v21 = vadd.f32 %v5651_v62, %v3401_v8  ;;  %v11280_v22 = vld [vmem:[#allocation22 + $0xac4] sm:$0xf]  ;;  %v10597_v13 = vld [vmem:[#allocation22 + $0xad8] sm:$0xf0]  ;;  %v11130_v62 = vld [vmem:[#allocation22 + $0x614] sm:$0xf] }
 0x8f8   :  { %5903 = vmatpush.bf16.msrb.mxu2 %v10144_v10  ;;  %5929 = vmatpush.bf16.msra.mxu0 %v10528_v31  ;;  %v11292_v10 = vld [vmem:[#allocation22 + $0xb24] sm:$0xf]  ;;  %v10264_v31 = vor.u32 %v11196_v35, %v10261_v49  ;;  %v5679_v4 = vpop.f32.mrf.mxu0 }
 0x8f9   :  { %5942 = vmatpush.bf16.msrb.mxu1 %v10720_v23  ;;  %v5664_v23 = vpop.f32.mrf.mxu3  ;;  %v10648_v14 = vor.u32 %v11292_v10, %v10645_v11  ;;  %v13795_v4 = vld [vmem:[#allocation25] sm:$0xff] }
 0x8fa   :  { %5917 = vmatpush.bf16.msrb.mxu3 %v10312_v56  ;;  %v11142_v56 = vld [vmem:[#allocation22 + $0x674] sm:$0xf]  ;;  %v5665_v18 = vadd.f32 %v5664_v23, %v5652_v21 }
 0x8fb   :  { %v5692_v60 = vpop.f32.mrf.mxu1  ;;  %v11178_v23 = vld [vmem:[#allocation22 + $0x794] sm:$0xf] }
 0x8fc   :  { %5904 = vmatpush.bf16.msrb.mxu2 %v10120_v54  ;;  %5930 = vmatpush.bf16.msra.mxu0 %v10504_v48  ;;  %v10045_v54 = vld [vmem:[#allocation22 + $0x688] sm:$0xf0]  ;;  %v5678_v10 = vadd.f32 %v5677_v24, %v5665_v18  ;;  %v11274_v21 = vld [vmem:[#allocation22 + $0xa94] sm:$0xf] }
 0x8fd   :  { %5943 = vmatpush.bf16.msrb.mxu1 %v10696_v12  ;;  %v10429_v48 = vld [vmem:[#allocation22 + $0x988] sm:$0xf0]  ;;  %v11286_v12 = vld [vmem:[#allocation22 + $0xaf4] sm:$0xf]  ;;  %v10048_v61 = vor.u32 %v11142_v56, %v10045_v54 }
 0x8fe   :  { %5918 = vmatpush.bf16.msrb.mxu3 %v10288_v42  ;;  %v11184_v42 = vld [vmem:[#allocation22 + $0x7c4] sm:$0xf]  ;;  %v10432_v35 = vor.u32 %v11238_v39, %v10429_v48  ;;  %v10624_v49 = vor.u32 %v11286_v12, %v10621_v20  ;;  %v5691_v45 = vadd.f32 %v5690_v25, %v5678_v10  ;;  %v9997_v56 = vld [vmem:[#allocation22 + $0x628] sm:$0xf0]  ;;  %v11226_v54 = vld [vmem:[#allocation22 + $0x914] sm:$0xf] }
 0x8ff   :  { %v10381_v39 = vld [vmem:[#allocation22 + $0x928] sm:$0xf0]  ;;  %v10000_v12 = vor.u32 %v11130_v62, %v9997_v56 }
 0x900   :  { %5905 = vmatpush.bf16.msrb.mxu2 %v10096_v33  ;;  %5931 = vmatpush.bf16.msra.mxu0 %v10480_v3  ;;  %v10213_v33 = vld [vmem:[#allocation22 + $0x7d8] sm:$0xf0]  ;;  %v10573_v48 = vld [vmem:[#allocation22 + $0xaa8] sm:$0xf0]  ;;  %v10384_v20 = vor.u32 %v11226_v54, %v10381_v39 }
 0x901   :  { %5944 = vmatpush.bf16.msrb.mxu1 %v10672_v27  ;;  %v10021_v3 = vld [vmem:[#allocation22 + $0x658] sm:$0xf0]  ;;  %v11232_v27 = vld [vmem:[#allocation22 + $0x944] sm:$0xf]  ;;  %v10216_v11 = vor.u32 %v11184_v42, %v10213_v33  ;;  %v5666_v8 = vpop.f32.mrf.mxu3  ;;  %v13791_v25 = vld [vmem:[#allocation25 + $0x8] sm:$0xff] }
 0x902   :  { %5919 = vmatpush.bf16.msrb.mxu3 %v10264_v31  ;;  %v10024_v31 = vor.u32 %v11136_v30, %v10021_v3  ;;  %v10408_v6 = vor.u32 %v11232_v27, %v10405_v40  ;;  %v12399_v30 = vmov 0.0  }
 0x904   :  { %5906 = vmatpush.bf16.msrb.mxu2 %v10072_v7  ;;  %5932 = vmatpush.bf16.msra.mxu0 %v10456_v15  ;;  %v10189_v7 = vld [vmem:[#allocation22 + $0x7a8] sm:$0xf0]  ;;  %v10600_v15 = vor.u32 %v11280_v22, %v10597_v13  ;;  %v3402_v22 = vperm.slane %v13788_v43, 4 }
 0x905   :  { %5945 = vmatpush.bf16.msrb.mxu1 %v10648_v14  ;;  %v5653_v14 = vpop.f32.mrf.mxu2  ;;  %v10192_v24 = vor.u32 %v11178_v23, %v10189_v7 }
 0x906   :  { %5920 = vmatpush.bf16.msrb.mxu3 %v10240_v16  ;;  %v10576_v16 = vor.u32 %v11274_v21, %v10573_v48 }
 0x908   :  { %5907 = vmatpush.bf16.msrb.mxu2 %v10048_v61  ;;  %5933 = vmatpush.bf16.msra.mxu0 %v10432_v35 }
 0x909   :  { %5946 = vmatpush.bf16.msrb.mxu1 %v10624_v49 }
 0x90a   :  { %5921 = vmatpush.bf16.msrb.mxu3 %v10216_v11 }
 0x90c   :  { %5908 = vmatpush.bf16.msrb.mxu2 %v10024_v31  ;;  %5934 = vmatpush.bf16.msra.mxu0 %v10408_v6 }
 0x90d   :  { %5947 = vmatpush.bf16.msrb.mxu1 %v10600_v15 }
 0x90e   :  { %5922 = vmatpush.bf16.msrb.mxu3 %v10192_v24 }
 0x910   :  { %5909 = vmatpush.bf16.msrb.mxu2 %v10000_v12  ;;  %5935 = vmatpush.bf16.msra.mxu0 %v10384_v20  ;;  %v5729_v18 = vpop.f32.mrf.mxu0 }
 0x911   :  { %5948 = vmatpush.bf16.msrb.mxu1 %v10576_v16  ;;  %5923 = vmatmul.bf16.vlgmr.msrb.gmra.mxu3 %v13692_v9 }
 0x913   :  { %5910 = vmatmul.bf16.vlgmr.msrb.gmra.mxu2 %v13694_v57  ;;  %5936 = vmatmul.bf16.vlgmr.msra.gmra.mxu0 %v13697_v51  ;;  %v5742_v60 = vpop.f32.mrf.mxu1 }
 0x914   :  { %5984 = vmatpush.msra.mxu2 %v13791_v25  ;;  %5949 = vmatmul.bf16.vlgmr.msrb.gmra.mxu1 %v13699_v59  ;;  %v5716_v61 = vpop.f32.mrf.mxu3 }
 0x915   :  { %6287 = vmatpush.msra.mxu1 %v13791_v25 }
 0x916   :  { %5985 = vmatpush.msra.mxu2 %v13795_v4  ;;  %v5703_v9 = vpop.f32.mrf.mxu2 }
 0x917   :  { %6288 = vmatpush.msra.mxu1 %v13795_v4  ;;  %v5704_v42 = vadd.f32 %v5703_v9, %v5691_v45  ;;  %v3403_v9 = vperm.slane %v13788_v43, 5 }
 0x918   :  { %v5731_v33 = vpop.f32.mrf.mxu0 }
 0x919   :  { %v5717_v35 = vadd.f32 %v5716_v61, %v5704_v42 }
 0x91b   :  { %v5744_v49 = vpop.f32.mrf.mxu1  ;;  %v5730_v57 = vadd.f32 %v5729_v18, %v5717_v35 }
 0x91c   :  { %v5718_v3 = vpop.f32.mrf.mxu3 }
 0x91d   :  { %v13804_v51 = vadd.f32 %v5742_v60, %v5730_v57 }
 0x91e   :  { %v5705_v59 = vpop.f32.mrf.mxu2 }
 0x923   :  { %5986 = vmatmul.f32.vlgmr.msra.gmra.mxu2 %v12399_v30 }
 0x930   :  { %v5781_v27 = vpop.f32.mrf.mxu0 }
 0x933   :  { %v5794_v40 = vpop.f32.mrf.mxu1 }
 0x934   :  { %v5768_v13 = vpop.f32.mrf.mxu3 }
 0x936   :  { %v5755_v10 = vpop.f32.mrf.mxu2 }
 0x937   :  { %v5756_v11 = vadd.f32 %v5755_v10, %v3402_v22 }
 0x938   :  { %v5783_v8 = vpop.f32.mrf.mxu0 }
 0x939   :  { %v5769_v31 = vadd.f32 %v5768_v13, %v5756_v11 }
 0x93b   :  { %v5796_v23 = vpop.f32.mrf.mxu1  ;;  %v5782_v7 = vadd.f32 %v5781_v27, %v5769_v31 }
 0x93c   :  { %v5770_v45 = vpop.f32.mrf.mxu3 }
 0x93d   :  { %v5795_v6 = vadd.f32 %v5794_v40, %v5782_v7 }
 0x93e   :  { %v5757_v15 = vpop.f32.mrf.mxu2 }
 0x950   :  { %v5833_v14 = vpop.f32.mrf.mxu0 }
 0x953   :  { %v5846_v62 = vpop.f32.mrf.mxu1 }
 0x954   :  { %v5820_v56 = vpop.f32.mrf.mxu3 }
 0x956   :  { %v5807_v54 = vpop.f32.mrf.mxu2 }
 0x957   :  { %v5808_v39 = vadd.f32 %v5807_v54, %v5795_v6 }
 0x958   :  { %v5835_v21 = vpop.f32.mrf.mxu0 }
 0x959   :  { %v5821_v48 = vadd.f32 %v5820_v56, %v5808_v39  ;;  %v13812_v56 = vld [vmem:[#allocation26] ss:$0 sm:$0xff]  ;;  %v3398_v21 = vperm.slane %v13788_v43, 0 }
 0x95b   :  { %v5848_v24 = vpop.f32.mrf.mxu1  ;;  %v5834_v12 = vadd.f32 %v5833_v14, %v5821_v48  ;;  %v5340_v48 = vadd.f32 %v13726_v0, %v3398_v21 }
 0x95c   :  { %v5822_v20 = vpop.f32.mrf.mxu3 }
 0x95d   :  { %v13807_v16 = vadd.f32 %v5846_v62, %v5834_v12  ;;  %v5353_v24 = vadd.f32 %v13724_v46, %v5340_v48 }
 0x95e   :  { %v5809_v18 = vpop.f32.mrf.mxu2 }
 0x95f   :  { %v5366_v12 = vadd.f32 %v13720_v2, %v5353_v24 }
 0x961   :  { %v5379_v20 = vadd.f32 %v13722_v47, %v5366_v12 }
 0x963   :  { %v5392_v18 = vadd.f32 %v13734_v34, %v5379_v20 }
 0x970   :  { %v5885_v60 = vpop.f32.mrf.mxu0 }
 0x973   :  { %v5898_v61 = vpop.f32.mrf.mxu1 }
 0x974   :  { %v5872_v42 = vpop.f32.mrf.mxu3 }
 0x976   :  { %v5859_v33 = vpop.f32.mrf.mxu2 }
 0x977   :  { %v5860_v35 = vadd.f32 %v5859_v33, %v3403_v9 }
 0x978   :  { %v5887_v49 = vpop.f32.mrf.mxu0 }
 0x979   :  { %v5873_v57 = vadd.f32 %v5872_v42, %v5860_v35 }
 0x97b   :  { %v5900_v3 = vpop.f32.mrf.mxu1  ;;  %v5886_v59 = vadd.f32 %v5885_v60, %v5873_v57  ;;  %v5405_v60 = vadd.f32 %v13732_v17, %v5392_v18 }
 0x97c   :  { %v5874_v27 = vpop.f32.mrf.mxu3 }
 0x97d   :  { %v5899_v40 = vadd.f32 %v5898_v61, %v5886_v59  ;;  %v5418_v61 = vadd.f32 %v13728_v29, %v5405_v60 }
 0x97e   :  { %v5861_v22 = vpop.f32.mrf.mxu2 }
 0x97f   :  { %v13825_v9 = vadd.f32 %v13730_v55, %v5418_v61 }
 0x990   :  { %v5937_v13 = vpop.f32.mrf.mxu0 }
 0x991   :  { %v5950_v10 = vpop.f32.mrf.mxu1 }
 0x994   :  { %v5924_v11 = vpop.f32.mrf.mxu3 }
 0x996   :  { %v5911_v8 = vpop.f32.mrf.mxu2 }
 0x997   :  { %v5912_v31 = vadd.f32 %v5911_v8, %v5899_v40 }
 0x998   :  { %v5939_v7 = vpop.f32.mrf.mxu0 }
 0x999   :  { %v5925_v23 = vadd.f32 %v5924_v11, %v5912_v31  ;;  %v5952_v45 = vpop.f32.mrf.mxu1  ;;  %v13833_v11 = vld [vmem:[#allocation28] sm:$0xff] }
 0x99b   :  { %v5938_v6 = vadd.f32 %v5937_v13, %v5925_v23 }
 0x99c   :  { %v5926_v14 = vpop.f32.mrf.mxu3 }
 0x99d   :  { %v13810_v15 = vadd.f32 %v5950_v10, %v5938_v6  ;;  %v13831_v10 = vld [vmem:[#allocation28 + $0x8] sm:$0xff]  ;;  %v13840_v6 = vld [vmem:[#allocation31 + $0x8] sm:$0xff]  ;;  %v13842_v14 = vld [vmem:[#allocation31] sm:$0xff] }
 0x99e   :  { %v5913_v62 = vpop.f32.mrf.mxu2  ;;  %6051 = vmatpush.msrb.mxu2 %v13831_v10  ;;  %6511 = vmatpush.msrb.mxu1 %v13831_v10 }
 0x99f   :  { %6228 = vmatpush.msrb.mxu0 %v13840_v6  ;;  %6382 = vmatpush.msra.mxu3 %v13840_v6 }
 0x9a0   :  { %6052 = vmatpush.msrb.mxu2 %v13833_v11  ;;  %6512 = vmatpush.msrb.mxu1 %v13833_v11 }
 0x9a1   :  { %6229 = vmatpush.msrb.mxu0 %v13842_v14  ;;  %6383 = vmatpush.msra.mxu3 %v13842_v14 }
 0x9a2   :  { %6074 = vmatpush.msra.mxu2 %v13840_v6 }
 0x9a3   :  { %6441 = vmatpush.msra.mxu0 %v13791_v25  ;;  %6595 = vmatpush.msrb.mxu3 %v13791_v25 }
 0x9a4   :  { %6075 = vmatpush.msra.mxu2 %v13842_v14 }
 0x9a5   :  { %6442 = vmatpush.msra.mxu0 %v13795_v4  ;;  %6596 = vmatpush.msrb.mxu3 %v13795_v4 }
 0x9a6   :  { %v5987_v54 = vpop.f32.mrf.mxu2 }
 0x9a7   :  { %v5988_v39 = vadd.f32 %v13812_v56, %v5987_v54 }
 0x9a9   :  { %6011 = vrot.lane.b32.xlu2 %v5988_v39, %s12395_s26  ;;  %v5990_v42 = vadd.f32 %v5988_v39, %v13825_v9 }
 0x9ab   :  { %v10745_v33 = vmul.f32 -1.442695, %v5990_v42 }
 0x9ad   :  { %11570 = vpow2.f32 %v10745_v33 }
 0x9b3   :  { %v11571_v0 = vpop.eup %11570 }
 0x9b4   :  { %v5994_v35 = vadd.f32 1.0, %v11571_v0 }
 0x9b6   :  { %11572 = vrcp.f32 %v5994_v35  ;;  %v6006_v34 = vand.u32 2147483648, %v5994_v35  ;;  %vm6000_vm2 = vweird.f32 %v5994_v35  ;;  %v6004_v17 = vand.u32 2147483647, %v5994_v35 }
 0x9b8   :  { %v6007_v55 = vor.u32 1.1754944e-38, %v6006_v34  ;;  %vm6005_vm4 = vcmp.eq.f32.partialorder %v6004_v17, 8.507059e+37 }
 0x9bc   :  { %v11573_v46 = vpop.eup %11572 }
 0x9bd   :  { %v5996_v2 = vmul.f32 %v11573_v46, %v5994_v35  ;;  %vm6001_vm1 = vweird.f32 %v11573_v46 }
 0x9be   :  { %vm6002_vm3 = vmor %vm6000_vm2, %vm6001_vm1 }
 0x9bf   :  { %v5997_v49 = vsub.f32 1.0, %v5996_v2 }
 0x9c1   :  { %v5998_v47 = vmul.f32 %v11573_v46, %v5997_v49 }
 0x9c3   :  { %v5999_v57 = vadd.f32 %v11573_v46, %v5998_v47 }
 0x9c5   :  { %v6003_v29 = vsel %vm6002_vm3, %v11573_v46, %v5999_v57 }
 0x9c6   :  { %v6008_v59 = vsel %vm6005_vm4, %v6007_v55, %v6003_v29 }
 0x9c7   :  { %v6021_v8 = vsub.f32 1.0, %v6008_v59  ;;  %v6027_v23 = vmul.f32 0.0, %v6008_v59 }
 0xa03   :  { %v6012_v3 = vpop.permute.xlu2 %6011 }
 0xa04   :  { %v6014_v27 = vmul.f32 %v6012_v3, %v6008_v59  ;;  %v13871_v3 = vld [vmem:[#allocation32] ss:$0 sm:$0xff] }
 0xa06   :  { %6016 = vrot.lane.b32.xlu0 %v6014_v27, %s12396_s0  ;;  %v13875_v27 = vld [vmem:[#allocation29] ss:$0 sm:$0xff] }
 0xa78   :  { %v6017_v40 = vpop.permute.xlu0 %6016 }
 0xa79   :  { %v6019_v22 = vadd.f32 %v6017_v40, %v13825_v9 }
 0xa7b   :  { %11574 = vtanh.f32 %v6019_v22 }
 0xa81   :  { %v11575_v13 = vpop.eup %11574 }
 0xa82   :  { %6023 = vrot.lane.b32.xlu1 %v11575_v13, %s12400_s24 }
 0xaf4   :  { %v6024_v31 = vpop.permute.xlu1 %6023 }
 0xaf5   :  { %v6026_v7 = vmul.f32 %v6024_v31, %v6021_v8 }
 0xaf7   :  { %v6028_v45 = vadd.f32 %v6027_v23, %v6026_v7 }
 0xaf9   :  { %6033 = vrot.lane.b32.xlu2 %v6028_v45, %s12400_s24 }
 0xb53   :  { %v6034_v62 = vpop.permute.xlu2 %6033 }
 0xb54   :  { %10746 = vmatmul.msk.f32.vlgmr.msrb.gmra.mxu2 %vm5966_vm7, %v6034_v62 }
 0xb55   :  { %6133 = vmatpush.msrb.mxu2 %v13791_v25 }
 0xb57   :  { %6134 = vmatpush.msrb.mxu2 %v13795_v4 }
 0xb5c   :  { %6076 = vmatmul.f32.vlgmr.msra.gmra.mxu2 %v12399_v30 }
 0xb5d   :  { %6203 = vmatpush.msra.mxu2 %v13831_v10 }
 0xb5f   :  { %6204 = vmatpush.msra.mxu2 %v13833_v11 }
 0xb64   :  { %10748 = vmatmul.msk.f32.vlgmr.msrb.gmra.mxu2 %vm5966_vm7, %v6034_v62 }
 0xb65   :  { %6357 = vmatpush.msrb.mxu2 %v13831_v10 }
 0xb67   :  { %6358 = vmatpush.msrb.mxu2 %v13833_v11 }
 0xbd7   :  { %v6054_v54 = vpop.f32.mrf.mxu2 }
 0xbd8   :  { %v6055_v40 = vadd.f32 %v13875_v27, %v6054_v54 }
 0xbdf   :  { %v6077_v39 = vpop.f32.mrf.mxu2 }
 0xbe0   :  { %v6078_v59 = vadd.f32 %v13871_v3, %v6077_v39 }
 0xbe2   :  { %v6080_v22 = vadd.f32 %v6078_v59, %v6055_v40 }
 0xbe4   :  { %v10747_v13 = vmul.f32 -1.442695, %v6080_v22 }
 0xbe7   :  { %v6136_v21 = vpop.f32.mrf.mxu2 }
 0xbe8   :  { %v6137_v48 = vadd.f32 %v13812_v56, %v6136_v21 }
 0xbea   :  { %6163 = vrot.lane.b32.xlu1 %v6137_v48, %s12401_s7  ;;  %6140 = vrot.lane.b32.xlu0 %v6137_v48, %s12402_s10 }
 0xbf2   :  { %6179 = vrot.lane.b32.xlu1 %v6028_v45, %s12402_s10 }
 0xc5c   :  { %v6141_v30 = vpop.permute.xlu0 %6140  ;;  %v6164_v47 = vpop.permute.xlu1 %6163 }
 0xc5d   :  { %v6143_v24 = vadd.f32 %v6141_v30, %v13825_v9 }
 0xc5f   :  { %v10749_v12 = vmul.f32 -1.442695, %v6143_v24 }
 0xc61   :  { %11576 = vpow2.f32 %v10749_v12 }
 0xc64   :  { %v6180_v48 = vpop.permute.xlu1 %6179 }
 0xc67   :  { %v11577_v20 = vpop.eup %11576 }
 0xc68   :  { %v6147_v18 = vadd.f32 1.0, %v11577_v20 }
 0xc6a   :  { %11578 = vrcp.f32 %v6147_v18  ;;  %v6159_v33 = vand.u32 2147483648, %v6147_v18  ;;  %v6157_v35 = vand.u32 2147483647, %v6147_v18  ;;  %vm6153_vm9 = vweird.f32 %v6147_v18 }
 0xc6c   :  { %v6160_v2 = vor.u32 1.1754944e-38, %v6159_v33  ;;  %vm6158_vm11 = vcmp.eq.f32.partialorder %v6157_v35, 8.507059e+37 }
 0xc70   :  { %v11579_v60 = vpop.eup %11578 }
 0xc71   :  { %v6149_v61 = vmul.f32 %v11579_v60, %v6147_v18  ;;  %vm6154_vm8 = vweird.f32 %v11579_v60 }
 0xc72   :  { %vm6155_vm10 = vmor %vm6153_vm9, %vm6154_vm8 }
 0xc73   :  { %v6150_v42 = vsub.f32 1.0, %v6149_v61 }
 0xc75   :  { %v6151_v0 = vmul.f32 %v11579_v60, %v6150_v42 }
 0xc77   :  { %v6152_v46 = vadd.f32 %v11579_v60, %v6151_v0 }
 0xc79   :  { %v6156_v49 = vsel %vm6155_vm10, %v11579_v60, %v6152_v46 }
 0xc7a   :  { %v6161_v57 = vsel %vm6158_vm11, %v6160_v2, %v6156_v49 }
 0xc7b   :  { %v6166_v34 = vmul.f32 %v6164_v47, %v6161_v57  ;;  %v6173_v21 = vsub.f32 1.0, %v6161_v57  ;;  %v6182_v39 = vmul.f32 %v6180_v48, %v6161_v57 }
 0xc7d   :  { %6168 = vrot.lane.b32.xlu2 %v6166_v34, %s12396_s0 }
 0xcd7   :  { %v6169_v17 = vpop.permute.xlu2 %6168 }
 0xcd8   :  { %v6171_v29 = vadd.f32 %v6169_v17, %v13825_v9 }
 0xcda   :  { %11580 = vtanh.f32 %v6171_v29 }
 0xcdb   :  { %11582 = vpow2.f32 %v10747_v13 }
 0xce0   :  { %v11581_v55 = vpop.eup %11580 }
 0xce1   :  { %6175 = vrot.lane.b32.xlu0 %v11581_v55, %s12400_s24  ;;  %v11583_v8 = vpop.eup %11582 }
 0xce2   :  { %v6084_v31 = vadd.f32 1.0, %v11583_v8 }
 0xce4   :  { %11584 = vrcp.f32 %v6084_v31  ;;  %v6096_v20 = vand.u32 2147483648, %v6084_v31  ;;  %vm6090_vm13 = vweird.f32 %v6084_v31  ;;  %v6094_v54 = vand.u32 2147483647, %v6084_v31 }
 0xce6   :  { %v6097_v61 = vor.u32 1.1754944e-38, %v6096_v20  ;;  %vm6095_vm1 = vcmp.eq.f32.partialorder %v6094_v54, 8.507059e+37 }
 0xce9   :  { %6101 = vrot.lane.b32.xlu0 %v6078_v59, %s12395_s26 }
 0xcea   :  { %v11585_v23 = vpop.eup %11584 }
 0xceb   :  { %v6086_v7 = vmul.f32 %v11585_v23, %v6084_v31  ;;  %vm6091_vm12 = vweird.f32 %v11585_v23 }
 0xcec   :  { %vm6092_vm0 = vmor %vm6090_vm13, %vm6091_vm12 }
 0xced   :  { %v6087_v45 = vsub.f32 1.0, %v6086_v7 }
 0xcef   :  { %v6088_v62 = vmul.f32 %v11585_v23, %v6087_v45 }
 0xcf1   :  { %v6089_v12 = vadd.f32 %v11585_v23, %v6088_v62 }
 0xcf3   :  { %v6093_v60 = vsel %vm6092_vm0, %v11585_v23, %v6089_v12 }
 0xcf4   :  { %v6098_v33 = vsel %vm6095_vm1, %v6097_v61, %v6093_v60  ;;  %v3399_v60 = vperm.slane %v13788_v43, 1 }
 0xcf5   :  { %v6111_v17 = vsub.f32 1.0, %v6098_v33  ;;  %v6117_v55 = vmul.f32 0.0, %v6098_v33 }
 0xcf6   :  { %v5444_v61 = vadd.f32 %v13746_v50, %v3399_v60 }
 0xd53   :  { %v6176_v30 = vpop.permute.xlu0 %6175 }
 0xd54   :  { %v6178_v24 = vmul.f32 %v6176_v30, %v6173_v21 }
 0xd56   :  { %v6183_v18 = vadd.f32 %v6182_v39, %v6178_v24 }
 0xd58   :  { %6185 = vrot.lane.b32.xlu2 %v6183_v18, %s12398_s11 }
 0xd5b   :  { %v6102_v42 = vpop.permute.xlu0 %6101 }
 0xd5c   :  { %v6104_v0 = vmul.f32 %v6102_v42, %v6098_v33  ;;  %v5457_v42 = vadd.f32 %v13744_v58, %v5444_v61 }
 0xd5e   :  { %6106 = vrot.lane.b32.xlu0 %v6104_v0, %s12396_s0  ;;  %v5470_v33 = vadd.f32 %v13740_v32, %v5457_v42 }
 0xd60   :  { %v5483_v0 = vadd.f32 %v13742_v38, %v5470_v33 }
 0xdb2   :  { %v6186_v35 = vpop.permute.xlu2 %6185 }
 0xdb3   :  { %10750 = vmatmul.msk.f32.vlgmr.msra.gmra.mxu2 %vm5966_vm7, %v6186_v35  ;;  %10753 = vmatmul.msk.f32.vlgmr.msra.gmra.mxu1 %vm5966_vm7, %v6186_v35 }
 0xdb4   :  { %6536 = vmatpush.msra.mxu2 %v13840_v6  ;;  %6690 = vmatpush.msra.mxu1 %v13840_v6 }
 0xdb6   :  { %6537 = vmatpush.msra.mxu2 %v13842_v14  ;;  %6691 = vmatpush.msra.mxu1 %v13842_v14 }
 0xdd0   :  { %v6107_v46 = vpop.permute.xlu0 %6106 }
 0xdd1   :  { %v6109_v2 = vadd.f32 %v6107_v46, %v6055_v40 }
 0xdd3   :  { %11586 = vtanh.f32 %v6109_v2 }
 0xdd9   :  { %v11587_v57 = vpop.eup %11586 }
 0xe30   :  { %v6290_v49 = vpop.f32.mrf.mxu1 }
 0xe31   :  { %v6291_v47 = vadd.f32 %v13812_v56, %v6290_v49 }
 0xe33   :  { %6317 = vrot.lane.b32.xlu2 %v6291_v47, %s12398_s11  ;;  %6294 = vrot.lane.b32.xlu1 %v6291_v47, %s12395_s26 }
 0xe36   :  { %v6206_v38 = vpop.f32.mrf.mxu2 }
 0xe3b   :  { %6113 = vrot.lane.b32.xlu2 %v11587_v57, %s12400_s24 }
 0xe8d   :  { %v6318_v34 = vpop.permute.xlu2 %6317 }
 0xe95   :  { %v6114_v29 = vpop.permute.xlu2 %6113 }
 0xe96   :  { %v6116_v59 = vmul.f32 %v6114_v29, %v6111_v17 }
 0xe98   :  { %v13890_v22 = vadd.f32 %v6117_v55, %v6116_v59 }
 0xe9a   :  { %6210 = vrot.lane.b32.xlu2 %v13890_v22, %s12400_s24 }
 0xea5   :  { %v6295_v40 = vpop.permute.xlu1 %6294 }
 0xea6   :  { %v6297_v13 = vadd.f32 %v6295_v40, %v13825_v9 }
 0xea8   :  { %v10754_v8 = vmul.f32 -1.442695, %v6297_v13 }
 0xeaa   :  { %11588 = vpow2.f32 %v10754_v8 }
 0xeb0   :  { %v11589_v31 = vpop.eup %11588 }
 0xeb1   :  { %v6301_v23 = vadd.f32 1.0, %v11589_v31 }
 0xeb3   :  { %11590 = vrcp.f32 %v6301_v23  ;;  %v6313_v21 = vand.u32 2147483648, %v6301_v23  ;;  %v6311_v30 = vand.u32 2147483647, %v6301_v23  ;;  %vm6307_vm3 = vweird.f32 %v6301_v23 }
 0xeb5   :  { %v6314_v24 = vor.u32 1.1754944e-38, %v6313_v21  ;;  %vm6312_vm8 = vcmp.eq.f32.partialorder %v6311_v30, 8.507059e+37 }
 0xeb9   :  { %v11591_v7 = vpop.eup %11590 }
 0xeba   :  { %v6303_v45 = vmul.f32 %v11591_v7, %v6301_v23  ;;  %vm6308_vm2 = vweird.f32 %v11591_v7 }
 0xebb   :  { %vm6309_vm4 = vmor %vm6307_vm3, %vm6308_vm2 }
 0xebc   :  { %v6304_v62 = vsub.f32 1.0, %v6303_v45 }
 0xebe   :  { %v6305_v48 = vmul.f32 %v11591_v7, %v6304_v62 }
 0xec0   :  { %v6306_v39 = vadd.f32 %v11591_v7, %v6305_v48 }
 0xec2   :  { %v6310_v12 = vsel %vm6309_vm4, %v11591_v7, %v6306_v39 }
 0xec3   :  { %v6315_v20 = vsel %vm6312_vm8, %v6314_v24, %v6310_v12 }
 0xec4   :  { %v6320_v9 = vmul.f32 %v6318_v34, %v6315_v20 }
 0xec6   :  { %6322 = vrot.lane.b32.xlu1 %v6320_v9, %s12396_s0 }
 0xece   :  { %6333 = vrot.lane.b32.xlu1 %v6183_v18, %s12402_s10  ;;  %v5496_v18 = vadd.f32 %v13758_v36, %v5483_v0 }
 0xed0   :  { %v5509_v35 = vadd.f32 %v13756_v28, %v5496_v18  ;;  %v6327_v28 = vsub.f32 1.0, %v6315_v20 }
 0xed2   :  { %v5522_v46 = vadd.f32 %v13752_v5, %v5509_v35  ;;  %v6207_v5 = vadd.f32 %v13875_v27, %v6206_v38 }
 0xed4   :  { %v13912_v2 = vadd.f32 %v13754_v63, %v5522_v46 }
 0xef4   :  { %v13897_v54 = vpop.permute.xlu2 %6210 }
 0xef5   :  { %10751 = vmatmul.msk.f32.vlgmr.msrb.gmra.mxu0 %vm5966_vm7, %v13897_v54 }
 0xef6   :  { %6665 = vmatpush.msrb.mxu0 %v13831_v10 }
 0xef8   :  { %6666 = vmatpush.msrb.mxu0 %v13833_v11 }
 0xf38   :  { %v6323_v49 = vpop.permute.xlu1 %6322 }
 0xf39   :  { %v6325_v43 = vadd.f32 %v6323_v49, %v13912_v2 }
 0xf3b   :  { %11592 = vtanh.f32 %v6325_v43 }
 0xf40   :  { %v6334_v36 = vpop.permute.xlu1 %6333 }
 0xf41   :  { %v11593_v50 = vpop.eup %11592  ;;  %v6336_v63 = vmul.f32 %v6334_v36, %v6315_v20 }
 0xf42   :  { %6329 = vrot.lane.b32.xlu0 %v11593_v50, %s12400_s24 }
 0xf72   :  { %v6231_v58 = vpop.f32.mrf.mxu0 }
 0xf73   :  { %v6232_v32 = vadd.f32 %v13871_v3, %v6231_v58 }
 0xf75   :  { %6255 = vrot.lane.b32.xlu1 %v6232_v32, %s12395_s26  ;;  %v6234_v34 = vadd.f32 %v6232_v32, %v6207_v5 }
 0xf77   :  { %v10752_v29 = vmul.f32 -1.442695, %v6234_v34 }
 0xf79   :  { %11594 = vpow2.f32 %v10752_v29 }
 0xf7f   :  { %v11595_v55 = vpop.eup %11594 }
 0xf80   :  { %v6238_v59 = vadd.f32 1.0, %v11595_v55 }
 0xf82   :  { %11596 = vrcp.f32 %v6238_v59  ;;  %v6250_v7 = vand.u32 2147483648, %v6238_v59  ;;  %vm6244_vm10 = vweird.f32 %v6238_v59  ;;  %v6248_v45 = vand.u32 2147483647, %v6238_v59 }
 0xf84   :  { %v6251_v21 = vor.u32 1.1754944e-38, %v6250_v7  ;;  %vm6249_vm12 = vcmp.eq.f32.partialorder %v6248_v45, 8.507059e+37 }
 0xf88   :  { %v11597_v40 = vpop.eup %11596 }
 0xf89   :  { %v6240_v13 = vmul.f32 %v11597_v40, %v6238_v59  ;;  %vm6245_vm9 = vweird.f32 %v11597_v40 }
 0xf8a   :  { %vm6246_vm11 = vmor %vm6244_vm10, %vm6245_vm9 }
 0xf8b   :  { %v6241_v8 = vsub.f32 1.0, %v6240_v13 }
 0xf8d   :  { %v6242_v31 = vmul.f32 %v11597_v40, %v6241_v8 }
 0xf8f   :  { %v6243_v23 = vadd.f32 %v11597_v40, %v6242_v31 }
 0xf91   :  { %v6247_v62 = vsel %vm6246_vm11, %v11597_v40, %v6243_v23 }
 0xf92   :  { %v6252_v30 = vsel %vm6249_vm12, %v6251_v21, %v6247_v62 }
 0xf93   :  { %v6265_v18 = vsub.f32 1.0, %v6252_v30  ;;  %v6271_v46 = vmul.f32 %v6252_v30, %v13890_v22 }
 0xfb4   :  { %v6330_v47 = vpop.permute.xlu0 %6329 }
 0xfb5   :  { %v6332_v57 = vmul.f32 %v6330_v47, %v6327_v28 }
 0xfb7   :  { %v13919_v17 = vadd.f32 %v6336_v63, %v6332_v57 }
 0xfb9   :  { %6339 = vrot.lane.b32.xlu0 %v13919_v17, %s12401_s7 }
 0xfe7   :  { %v6256_v48 = vpop.permute.xlu1 %6255 }
 0xfe8   :  { %v6258_v39 = vmul.f32 %v6256_v48, %v6252_v30 }
 0xfea   :  { %6260 = vrot.lane.b32.xlu0 %v6258_v39, %s12396_s0 }
0x102b   :  { %v6340_v24 = vpop.permute.xlu0 %6339 }
0x102c   :  { %10755 = vmatmul.msk.f32.vlgmr.msrb.gmra.mxu2 %vm5966_vm7, %v6340_v24  ;;  %10758 = vmatmul.msk.f32.vlgmr.msra.gmra.mxu0 %vm5966_vm7, %v6340_v24 }
0x102d   :  { %6749 = vmatpush.msrb.mxu2 %v13791_v25  ;;  %6860 = vmatpush.msra.mxu0 %v13840_v6 }
0x102f   :  { %6750 = vmatpush.msrb.mxu2 %v13795_v4  ;;  %6861 = vmatpush.msra.mxu0 %v13842_v14 }
0x105c   :  { %v6261_v12 = vpop.permute.xlu0 %6260 }
0x105d   :  { %v6263_v20 = vadd.f32 %v6261_v12, %v6207_v5 }
0x105f   :  { %11598 = vtanh.f32 %v6263_v20 }
0x1065   :  { %v11599_v61 = vpop.eup %11598 }
0x10a9   :  { %v6444_v9 = vpop.f32.mrf.mxu0 }
0x10aa   :  { %v6445_v60 = vadd.f32 %v13812_v56, %v6444_v9 }
0x10ac   :  { %6471 = vrot.lane.b32.xlu1 %v6445_v60, %s12400_s24  ;;  %6448 = vrot.lane.b32.xlu2 %v6445_v60, %s12401_s7 }
0x10af   :  { %v6360_v30 = vpop.f32.mrf.mxu2 }
0x10b0   :  { %v6361_v39 = vadd.f32 %v13875_v27, %v6360_v30 }
0x10b4   :  { %6267 = vrot.lane.b32.xlu2 %v11599_v61, %s12400_s24 }
0x1106   :  { %v6449_v42 = vpop.permute.xlu2 %6448 }
0x1107   :  { %v6451_v33 = vadd.f32 %v6449_v42, %v13912_v2 }
0x1109   :  { %v10759_v0 = vmul.f32 -1.442695, %v6451_v33 }
0x110b   :  { %11600 = vpow2.f32 %v10759_v0 }
0x110e   :  { %v6268_v35 = vpop.permute.xlu2 %6267 }
0x110f   :  { %v6270_v49 = vmul.f32 %v6268_v35, %v6265_v18 }
0x1111   :  { %v11601_v43 = vpop.eup %11600  ;;  %v13936_v50 = vadd.f32 %v6271_v46, %v6270_v49 }
0x1112   :  { %v6455_v58 = vadd.f32 1.0, %v11601_v43 }
0x1113   :  { %6364 = vrot.lane.b32.xlu1 %v13936_v50, %s12400_s24 }
0x1114   :  { %11602 = vrcp.f32 %v6455_v58  ;;  %v6467_v28 = vand.u32 2147483648, %v6455_v58  ;;  %v6465_v47 = vand.u32 2147483647, %v6455_v58  ;;  %vm6461_vm0 = vweird.f32 %v6455_v58 }
0x1116   :  { %v6468_v22 = vor.u32 1.1754944e-38, %v6467_v28  ;;  %vm6466_vm2 = vcmp.eq.f32.partialorder %v6465_v47, 8.507059e+37 }
0x111a   :  { %v11603_v32 = vpop.eup %11602 }
0x111b   :  { %v6457_v38 = vmul.f32 %v11603_v32, %v6455_v58  ;;  %vm6462_vm13 = vweird.f32 %v11603_v32 }
0x111c   :  { %vm6463_vm1 = vmor %vm6461_vm0, %vm6462_vm13 }
0x111d   :  { %v6458_v36 = vsub.f32 1.0, %v6457_v38 }
0x111e   :  { %v6472_v34 = vpop.permute.xlu1 %6471 }
0x111f   :  { %v6459_v5 = vmul.f32 %v11603_v32, %v6458_v36 }
0x1121   :  { %v6460_v63 = vadd.f32 %v11603_v32, %v6459_v5 }
0x1123   :  { %v6464_v57 = vsel %vm6463_vm1, %v11603_v32, %v6460_v63 }
0x1124   :  { %v6469_v29 = vsel %vm6466_vm2, %v6468_v22, %v6464_v57 }
0x1125   :  { %v6474_v55 = vmul.f32 %v6472_v34, %v6469_v29  ;;  %v6481_v23 = vsub.f32 1.0, %v6469_v29 }
0x1127   :  { %6476 = vrot.lane.b32.xlu0 %v6474_v55, %s12396_s0 }
0x112f   :  { %6487 = vrot.lane.b32.xlu0 %v13919_v17, %s12402_s10 }
0x1185   :  { %v6365_v59 = vpop.permute.xlu1 %6364 }
0x1186   :  { %10756 = vmatmul.msk.f32.vlgmr.msra.gmra.mxu3 %vm5966_vm7, %v6365_v59 }
0x1187   :  { %6835 = vmatpush.msra.mxu3 %v13831_v10 }
0x1189   :  { %6836 = vmatpush.msra.mxu3 %v13833_v11 }
0x1199   :  { %v6477_v40 = vpop.permute.xlu0 %6476 }
0x119a   :  { %v6479_v13 = vadd.f32 %v6477_v40, %v13912_v2 }
0x119c   :  { %11604 = vtanh.f32 %v6479_v13 }
0x11a1   :  { %v6488_v31 = vpop.permute.xlu0 %6487 }
0x11a2   :  { %v11605_v8 = vpop.eup %11604  ;;  %v6490_v45 = vmul.f32 %v6488_v31, %v6469_v29 }
0x11a3   :  { %6483 = vrot.lane.b32.xlu2 %v11605_v8, %s12400_s24 }
0x11fd   :  { %v6484_v7 = vpop.permute.xlu2 %6483 }
0x11fe   :  { %v6486_v62 = vmul.f32 %v6484_v7, %v6481_v23 }
0x1200   :  { %v6491_v17 = vadd.f32 %v6490_v45, %v6486_v62 }
0x1202   :  { %6493 = vrot.lane.b32.xlu1 %v6491_v17, %s12395_s26 }
0x1209   :  { %v6385_v21 = vpop.f32.mrf.mxu3 }
0x120a   :  { %v6386_v48 = vadd.f32 %v13871_v3, %v6385_v21 }
0x120c   :  { %6409 = vrot.lane.b32.xlu2 %v6386_v48, %s12395_s26  ;;  %v6388_v24 = vadd.f32 %v6386_v48, %v6361_v39 }
0x120e   :  { %v10757_v12 = vmul.f32 -1.442695, %v6388_v24 }
0x1210   :  { %11606 = vpow2.f32 %v10757_v12 }
0x1216   :  { %v11607_v20 = vpop.eup %11606 }
0x1217   :  { %v6392_v9 = vadd.f32 1.0, %v11607_v20 }
0x1219   :  { %11608 = vrcp.f32 %v6392_v9  ;;  %v6404_v18 = vand.u32 2147483648, %v6392_v9  ;;  %vm6398_vm4 = vweird.f32 %v6392_v9  ;;  %v6402_v35 = vand.u32 2147483647, %v6392_v9 }
0x121b   :  { %v6405_v49 = vor.u32 1.1754944e-38, %v6404_v18  ;;  %vm6403_vm9 = vcmp.eq.f32.partialorder %v6402_v35, 8.507059e+37 }
0x121f   :  { %v11609_v60 = vpop.eup %11608 }
0x1220   :  { %v6394_v61 = vmul.f32 %v11609_v60, %v6392_v9  ;;  %vm6399_vm3 = vweird.f32 %v11609_v60 }
0x1221   :  { %vm6400_vm8 = vmor %vm6398_vm4, %vm6399_vm3 }
0x1222   :  { %v6395_v42 = vsub.f32 1.0, %v6394_v61 }
0x1224   :  { %v6396_v33 = vmul.f32 %v11609_v60, %v6395_v42 }
0x1226   :  { %v6397_v0 = vadd.f32 %v11609_v60, %v6396_v33 }
0x1228   :  { %v6401_v46 = vsel %vm6400_vm8, %v11609_v60, %v6397_v0 }
0x1229   :  { %v6406_v43 = vsel %vm6403_vm9, %v6405_v49, %v6401_v46 }
0x122a   :  { %v6425_v57 = vmul.f32 %v6406_v43, %v13936_v50 }
0x1266   :  { %v6410_v58 = vpop.permute.xlu2 %6409 }
0x1267   :  { %v6412_v32 = vmul.f32 %v6410_v58, %v6406_v43 }
0x1269   :  { %6414 = vrot.lane.b32.xlu0 %v6412_v32, %s12396_s0 }
0x1274   :  { %v6494_v38 = vpop.permute.xlu1 %6493 }
0x1275   :  { %10760 = vmatmul.msk.f32.vlgmr.msrb.gmra.mxu1 %vm5966_vm7, %v6494_v38  ;;  %10763 = vmatmul.msk.f32.vlgmr.msrb.gmra.mxu3 %vm5966_vm7, %v6494_v38 }
0x1276   :  { %6919 = vmatpush.msrb.mxu1 %v13791_v25  ;;  %7011 = vmatpush.msrb.mxu3 %v13840_v6  ;;  %v6419_v25 = vsub.f32 1.0, %v6406_v43 }
0x1278   :  { %6920 = vmatpush.msrb.mxu1 %v13795_v4  ;;  %7012 = vmatpush.msrb.mxu3 %v13842_v14 }
0x12db   :  { %v6415_v36 = vpop.permute.xlu0 %6414 }
0x12dc   :  { %v6417_v28 = vadd.f32 %v6415_v36, %v6361_v39 }
0x12de   :  { %11610 = vtanh.f32 %v6417_v28 }
0x12e4   :  { %v11611_v5 = vpop.eup %11610 }
0x12e5   :  { %6421 = vrot.lane.b32.xlu2 %v11611_v5, %s12400_s24 }
0x12f2   :  { %v6514_v58 = vpop.f32.mrf.mxu1 }
0x12f3   :  { %v6515_v32 = vadd.f32 %v13875_v27, %v6514_v58 }
0x12f8   :  { %v6598_v47 = vpop.f32.mrf.mxu3 }
0x12f9   :  { %v6599_v63 = vadd.f32 %v13812_v56, %v6598_v47 }
0x12fb   :  { %6625 = vrot.lane.b32.xlu0 %v6599_v63, %s12396_s0  ;;  %6602 = vrot.lane.b32.xlu1 %v6599_v63, %s12398_s11 }
0x133f   :  { %v6422_v22 = vpop.permute.xlu2 %6421 }
0x1340   :  { %v6424_v34 = vmul.f32 %v6422_v22, %v6419_v25 }
0x1342   :  { %v13964_v29 = vadd.f32 %v6425_v57, %v6424_v34 }
0x1344   :  { %6518 = vrot.lane.b32.xlu1 %v13964_v29, %s12400_s24 }
0x134c   :  { %6641 = vrot.lane.b32.xlu1 %v6491_v17, %s12402_s10 }
0x136d   :  { %v6603_v55 = vpop.permute.xlu1 %6602  ;;  %v6626_v24 = vpop.permute.xlu0 %6625 }
0x136e   :  { %v6605_v59 = vadd.f32 %v6603_v55, %v13912_v2 }
0x1370   :  { %v10764_v40 = vmul.f32 -1.442695, %v6605_v59 }
0x1372   :  { %11612 = vpow2.f32 %v10764_v40 }
0x1378   :  { %v11613_v13 = vpop.eup %11612 }
0x1379   :  { %v6609_v8 = vadd.f32 1.0, %v11613_v13 }
0x137b   :  { %11614 = vrcp.f32 %v6609_v8  ;;  %v6621_v45 = vand.u32 2147483648, %v6609_v8  ;;  %v6619_v21 = vand.u32 2147483647, %v6609_v8  ;;  %vm6615_vm11 = vweird.f32 %v6609_v8 }
0x137d   :  { %v6622_v30 = vor.u32 1.1754944e-38, %v6621_v45  ;;  %vm6620_vm13 = vcmp.eq.f32.partialorder %v6619_v21, 8.507059e+37 }
0x1381   :  { %v11615_v31 = vpop.eup %11614 }
0x1382   :  { %v6611_v23 = vmul.f32 %v11615_v31, %v6609_v8  ;;  %vm6616_vm10 = vweird.f32 %v11615_v31 }
0x1383   :  { %vm6617_vm12 = vmor %vm6615_vm11, %vm6616_vm10 }
0x1384   :  { %v6612_v7 = vsub.f32 1.0, %v6611_v23 }
0x1386   :  { %v6613_v62 = vmul.f32 %v11615_v31, %v6612_v7  ;;  %v13987_v7 = vld [vmem:[#allocation25 + $0x8] sm:$0xff] }
0x1388   :  { %v6614_v48 = vadd.f32 %v11615_v31, %v6613_v62 }
0x138a   :  { %v6618_v17 = vsel %vm6617_vm12, %v11615_v31, %v6614_v48 }
0x138b   :  { %v6623_v39 = vsel %vm6620_vm13, %v6622_v30, %v6618_v17 }
0x138c   :  { %v6628_v12 = vmul.f32 %v6626_v24, %v6623_v39  ;;  %v6635_v18 = vsub.f32 1.0, %v6623_v39 }
0x138e   :  { %6630 = vrot.lane.b32.xlu2 %v6628_v12, %s12396_s0 }
0x13b6   :  { %v6519_v20 = vpop.permute.xlu1 %6518 }
0x13b7   :  { %10761 = vmatmul.msk.f32.vlgmr.msra.gmra.mxu2 %vm5966_vm7, %v6519_v20 }
0x13b8   :  { %6986 = vmatpush.msra.mxu2 %v13831_v10 }
0x13ba   :  { %6987 = vmatpush.msra.mxu2 %v13833_v11 }
0x13be   :  { %v6642_v0 = vpop.permute.xlu1 %6641 }
0x13bf   :  { %v6644_v46 = vmul.f32 %v6642_v0, %v6623_v39 }
0x13e8   :  { %v6631_v9 = vpop.permute.xlu2 %6630 }
0x13e9   :  { %v6633_v60 = vadd.f32 %v6631_v9, %v13912_v2 }
0x13eb   :  { %11616 = vtanh.f32 %v6633_v60 }
0x13f1   :  { %v11617_v61 = vpop.eup %11616 }
0x13f2   :  { %6637 = vrot.lane.b32.xlu0 %v11617_v61, %s12400_s24 }
0x143a   :  { %v6539_v42 = vpop.f32.mrf.mxu2 }
0x143b   :  { %v6540_v33 = vadd.f32 %v13871_v3, %v6539_v42 }
0x143d   :  { %6563 = vrot.lane.b32.xlu0 %v6540_v33, %s12395_s26  ;;  %v6542_v38 = vadd.f32 %v6540_v33, %v6515_v32 }
0x143f   :  { %v10762_v36 = vmul.f32 -1.442695, %v6542_v38 }
0x1441   :  { %11618 = vpow2.f32 %v10762_v36 }
0x1447   :  { %v11619_v28 = vpop.eup %11618 }
0x1448   :  { %v6546_v5 = vadd.f32 1.0, %v11619_v28  ;;  %v11771_v28 = vld [vmem:[#allocation23] sm:$0x3f] }
0x144a   :  { %11620 = vrcp.f32 %v6546_v5  ;;  %v6558_v34 = vand.u32 2147483648, %v6546_v5  ;;  %vm6552_vm1 = vweird.f32 %v6546_v5  ;;  %v6556_v55 = vand.u32 2147483647, %v6546_v5 }
0x144c   :  { %v6559_v40 = vor.u32 1.1754944e-38, %v6558_v34  ;;  %vm6557_vm3 = vcmp.eq.f32.partialorder %v6556_v55, 8.507059e+37 }
0x1450   :  { %v11621_v47 = vpop.eup %11620 }
0x1451   :  { %v6548_v63 = vmul.f32 %v11621_v47, %v6546_v5  ;;  %vm6553_vm0 = vweird.f32 %v11621_v47  ;;  %v3400_v5 = vperm.slane %v11771_v28, 2 }
0x1452   :  { %vm6554_vm2 = vmor %vm6552_vm1, %vm6553_vm0 }
0x1453   :  { %v6549_v25 = vsub.f32 1.0, %v6548_v63 }
0x1455   :  { %v6550_v22 = vmul.f32 %v11621_v47, %v6549_v25 }
0x1457   :  { %v6551_v57 = vadd.f32 %v11621_v47, %v6550_v22 }
0x1459   :  { %v6555_v59 = vsel %vm6554_vm2, %v11621_v47, %v6551_v57  ;;  %v5548_v47 = vadd.f32 %v13770_v19, %v3400_v5  ;;  %v14029_v5 = vld [vmem:[#allocation25] sm:$0xff] }
0x145a   :  { %v6560_v13 = vsel %vm6557_vm3, %v6559_v40, %v6555_v59 }
0x145b   :  { %v6573_v17 = vsub.f32 1.0, %v6560_v13  ;;  %v5561_v63 = vadd.f32 %v13768_v44, %v5548_v47 }
0x145d   :  { %v5574_v25 = vadd.f32 %v13764_v37, %v5561_v63 }
0x145f   :  { %v5587_v22 = vadd.f32 %v13766_v52, %v5574_v25 }
0x1461   :  { %v5600_v57 = vadd.f32 %v13782_v26, %v5587_v22  ;;  %v14034_v22 = vld [vmem:[#allocation26] ss:$0 sm:$0xff] }
0x1463   :  { %v5613_v34 = vadd.f32 %v13780_v41, %v5600_v57 }
0x1464   :  { %v6638_v35 = vpop.permute.xlu0 %6637 }
0x1465   :  { %v6640_v49 = vmul.f32 %v6638_v35, %v6635_v18  ;;  %v5626_v55 = vadd.f32 %v13776_v1, %v5613_v34 }
0x1467   :  { %v6645_v43 = vadd.f32 %v6644_v46, %v6640_v49 }
0x1469   :  { %6647 = vrot.lane.b32.xlu2 %v6645_v43, %s12402_s10 }
0x14af   :  { %v6564_v8 = vpop.permute.xlu0 %6563 }
0x14b0   :  { %v6566_v31 = vmul.f32 %v6564_v8, %v6560_v13 }
0x14b2   :  { %6568 = vrot.lane.b32.xlu1 %v6566_v31, %s12396_s0 }
0x14c3   :  { %v13981_v23 = vpop.permute.xlu2 %6647 }
0x14c4   :  { %10765 = vmatmul.msk.f32.vlgmr.msrb.gmra.mxu0 %vm5966_vm7, %v13981_v23  ;;  %10768 = vmatmul.msk.f32.vlgmr.msrb.gmra.mxu2 %vm5966_vm7, %v13981_v23 }
0x14c5   :  { %7070 = vmatpush.msrb.mxu0 %v13987_v7  ;;  %7165 = vmatpush.msrb.mxu2 %v13840_v6 }
0x14c7   :  { %7071 = vmatpush.msrb.mxu0 %v13795_v4  ;;  %7166 = vmatpush.msrb.mxu2 %v13842_v14  ;;  %v6579_v4 = vmul.f32 %v6560_v13, %v13964_v29 }
0x1524   :  { %v6569_v45 = vpop.permute.xlu1 %6568 }
0x1525   :  { %v6571_v62 = vadd.f32 %v6569_v45, %v6515_v32 }
0x1527   :  { %11622 = vtanh.f32 %v6571_v62 }
0x152d   :  { %v11623_v21 = vpop.eup %11622 }
0x152e   :  { %6575 = vrot.lane.b32.xlu2 %v11623_v21, %s12400_s24 }
0x1541   :  { %v6668_v52 = vpop.f32.mrf.mxu0 }
0x1542   :  { %v6669_v41 = vadd.f32 %v13875_v27, %v6668_v52 }
0x1547   :  { %v6752_v48 = vpop.f32.mrf.mxu2 }
0x1548   :  { %v6753_v30 = vadd.f32 %v13812_v56, %v6752_v48 }
0x154a   :  { %6756 = vrot.lane.b32.xlu0 %v6753_v30, %s12400_s24  ;;  %6799 = vrot.lane.b32.xlu1 %v6753_v30, %s12403_s2 }
0x1588   :  { %v6576_v39 = vpop.permute.xlu2 %6575 }
0x1589   :  { %v6578_v24 = vmul.f32 %v6576_v39, %v6573_v17 }
0x158b   :  { %v13998_v12 = vadd.f32 %v6579_v4, %v6578_v24 }
0x158d   :  { %6672 = vrot.lane.b32.xlu2 %v13998_v12, %s12400_s24 }
0x15bc   :  { %v6757_v20 = vpop.permute.xlu0 %6756  ;;  %v6800_v32 = vpop.permute.xlu1 %6799 }
0x15bd   :  { %v6759_v9 = vadd.f32 %v6757_v20, %v13912_v2 }
0x15bf   :  { %v10769_v60 = vmul.f32 -1.442695, %v6759_v9 }
0x15c1   :  { %11624 = vpow2.f32 %v10769_v60 }
0x15c7   :  { %v11625_v56 = vpop.eup %11624 }
0x15c8   :  { %v6763_v61 = vadd.f32 1.0, %v11625_v56 }
0x15ca   :  { %11626 = vrcp.f32 %v6763_v61  ;;  %v6775_v18 = vand.u32 2147483648, %v6763_v61  ;;  %v6773_v46 = vand.u32 2147483647, %v6763_v61  ;;  %vm6769_vm8 = vweird.f32 %v6763_v61 }
0x15cc   :  { %v6776_v43 = vor.u32 1.1754944e-38, %v6775_v18  ;;  %vm6774_vm10 = vcmp.eq.f32.partialorder %v6773_v46, 8.507059e+37 }
0x15d0   :  { %v11627_v42 = vpop.eup %11626 }
0x15d1   :  { %v6765_v33 = vmul.f32 %v11627_v42, %v6763_v61  ;;  %vm6770_vm4 = vweird.f32 %v11627_v42 }
0x15d2   :  { %vm6771_vm9 = vmor %vm6769_vm8, %vm6770_vm4 }
0x15d3   :  { %v6766_v0 = vsub.f32 1.0, %v6765_v33 }
0x15d5   :  { %v6767_v35 = vmul.f32 %v11627_v42, %v6766_v0 }
0x15d7   :  { %v6768_v49 = vadd.f32 %v11627_v42, %v6767_v35 }
0x15d9   :  { %v6772_v58 = vsel %vm6771_vm9, %v11627_v42, %v6768_v49 }
0x15da   :  { %v6777_v2 = vsel %vm6774_vm10, %v6776_v43, %v6772_v58 }
0x15db   :  { %v6802_v38 = vmul.f32 %v6800_v32, %v6777_v2 }
0x15dd   :  { %6804 = vrot.lane.b32.xlu0 %v6802_v38, %s12396_s0 }
0x15e7   :  { %v6673_v36 = vpop.permute.xlu2 %6672 }
0x15e8   :  { %10766 = vmatmul.msk.f32.vlgmr.msra.gmra.mxu1 %vm5966_vm7, %v6673_v36 }
0x15e9   :  { %7140 = vmatpush.msra.mxu1 %v13831_v10  ;;  %v14015_v10 = vadd.f32 %v13778_v53, %v5626_v55 }
0x15eb   :  { %7141 = vmatpush.msra.mxu1 %v13833_v11  ;;  %v6779_v53 = vadd.f32 %v6757_v20, %v14015_v10 }
0x15ed   :  { %v10770_v40 = vmul.f32 -1.442695, %v6779_v53 }
0x164f   :  { %v6805_v11 = vpop.permute.xlu0 %6804 }
0x1650   :  { %v6807_v59 = vadd.f32 %v6805_v11, %v14015_v10 }
0x1652   :  { %11628 = vtanh.f32 %v6807_v59 }
0x1658   :  { %v11629_v19 = vpop.eup %11628 }
0x1659   :  { %6811 = vrot.lane.b32.xlu1 %v11629_v19, %s12400_s24 }
0x1665   :  { %v6693_v44 = vpop.f32.mrf.mxu1 }
0x1666   :  { %v6694_v37 = vadd.f32 %v13871_v3, %v6693_v44 }
0x1668   :  { %6717 = vrot.lane.b32.xlu2 %v6694_v37, %s12395_s26  ;;  %v6696_v26 = vadd.f32 %v6694_v37, %v6669_v41 }
0x166a   :  { %v10767_v1 = vmul.f32 -1.442695, %v6696_v26 }
0x166c   :  { %11630 = vpow2.f32 %v10767_v1 }
0x166d   :  { %11632 = vpow2.f32 %v10770_v40 }
0x1672   :  { %v11631_v13 = vpop.eup %11630 }
0x1673   :  { %v6700_v8 = vadd.f32 1.0, %v11631_v13  ;;  %v11633_v31 = vpop.eup %11632 }
0x1674   :  { %v6783_v45 = vadd.f32 1.0, %v11633_v31 }
0x1675   :  { %11634 = vrcp.f32 %v6700_v8  ;;  %v6712_v9 = vand.u32 2147483648, %v6700_v8  ;;  %vm6706_vm12 = vweird.f32 %v6700_v8  ;;  %v6710_v60 = vand.u32 2147483647, %v6700_v8 }
0x1676   :  { %11636 = vrcp.f32 %v6783_v45  ;;  %v6795_v33 = vand.u32 2147483648, %v6783_v45  ;;  %vm6789_vm2 = vweird.f32 %v6783_v45  ;;  %v6793_v35 = vand.u32 2147483647, %v6783_v45 }
0x1677   :  { %v6713_v61 = vor.u32 1.1754944e-38, %v6712_v9  ;;  %vm6711_vm1 = vcmp.eq.f32.partialorder %v6710_v60, 8.507059e+37 }
0x1678   :  { %v6796_v43 = vor.u32 1.1754944e-38, %v6795_v33  ;;  %vm6794_vm4 = vcmp.eq.f32.partialorder %v6793_v35, 8.507059e+37 }
0x167b   :  { %v11635_v62 = vpop.eup %11634 }
0x167c   :  { %v6702_v21 = vmul.f32 %v11635_v62, %v6700_v8  ;;  %v11637_v48 = vpop.eup %11636  ;;  %vm6707_vm11 = vweird.f32 %v11635_v62 }
0x167d   :  { %v6785_v17 = vmul.f32 %v11637_v48, %v6783_v45  ;;  %vm6708_vm13 = vmor %vm6706_vm12, %vm6707_vm11  ;;  %vm6790_vm0 = vweird.f32 %v11637_v48 }
0x167e   :  { %v6703_v30 = vsub.f32 1.0, %v6702_v21  ;;  %vm6791_vm3 = vmor %vm6789_vm2, %vm6790_vm0 }
0x167f   :  { %v6786_v4 = vsub.f32 1.0, %v6785_v17  ;;  %v14050_v17 = vld [vmem:[#allocation28] sm:$0xff] }
0x1680   :  { %v6704_v39 = vmul.f32 %v11635_v62, %v6703_v30  ;;  %v14047_v30 = vld [vmem:[#allocation28 + $0x8] sm:$0xff] }
0x1681   :  { %v6787_v20 = vmul.f32 %v11637_v48, %v6786_v4 }
0x1682   :  { %v6705_v24 = vadd.f32 %v11635_v62, %v6704_v39 }
0x1683   :  { %v6788_v42 = vadd.f32 %v11637_v48, %v6787_v20 }
0x1684   :  { %v6709_v56 = vsel %vm6708_vm13, %v11635_v62, %v6705_v24 }
0x1685   :  { %v6714_v18 = vsel %vm6711_vm1, %v6713_v61, %v6709_v56  ;;  %v6792_v49 = vsel %vm6791_vm3, %v11637_v48, %v6788_v42 }
0x1686   :  { %v6797_v58 = vsel %vm6794_vm4, %v6796_v43, %v6792_v49  ;;  %v6727_v11 = vsub.f32 1.0, %v6714_v18  ;;  %v6733_v59 = vmul.f32 %v6714_v18, %v13998_v12 }
0x1687   :  { %v6809_v32 = vsub.f32 1.0, %v6797_v58  ;;  %v6816_v38 = vmul.f32 %v6797_v58, %v13981_v23 }
0x16c2   :  { %v6718_v0 = vpop.permute.xlu2 %6717 }
0x16c3   :  { %v6720_v46 = vmul.f32 %v6718_v0, %v6714_v18 }
0x16c5   :  { %6722 = vrot.lane.b32.xlu0 %v6720_v46, %s12396_s0 }
0x16cb   :  { %v6812_v2 = vpop.permute.xlu1 %6811 }
0x16cc   :  { %v6814_v36 = vmul.f32 %v6812_v2, %v6809_v32 }
0x16ce   :  { %v6817_v28 = vadd.f32 %v6816_v38, %v6814_v36 }
0x16d0   :  { %10771 = vmatmul.msk.f32.vlgmr.msra.gmra.mxu3 %vm5966_vm7, %v6817_v28  ;;  %10774 = vmatmul.msk.f32.vlgmr.msrb.gmra.mxu1 %vm5966_vm7, %v6817_v28 }
0x16d1   :  { %7224 = vmatpush.msra.mxu3 %v13987_v7  ;;  %7316 = vmatpush.msrb.mxu1 %v13840_v6 }
0x16d3   :  { %7225 = vmatpush.msra.mxu3 %v14029_v5  ;;  %7317 = vmatpush.msrb.mxu1 %v13842_v14 }
0x1737   :  { %v6723_v47 = vpop.permute.xlu0 %6722 }
0x1738   :  { %v6725_v63 = vadd.f32 %v6723_v47, %v6669_v41 }
0x173a   :  { %11638 = vtanh.f32 %v6725_v63 }
0x1740   :  { %v11639_v23 = vpop.eup %11638 }
0x1741   :  { %6729 = vrot.lane.b32.xlu1 %v11639_v23, %s12400_s24 }
0x174d   :  { %v6922_v25 = vpop.f32.mrf.mxu1 }
0x174e   :  { %v6923_v57 = vadd.f32 %v14034_v22, %v6922_v25 }
0x1750   :  { %6926 = vrot.lane.b32.xlu2 %v6923_v57, %s12396_s0 }
0x1753   :  { %v6838_v18 = vpop.f32.mrf.mxu3 }
0x1754   :  { %v6839_v35 = vadd.f32 %v13875_v27, %v6838_v18 }
0x17aa   :  { %v6927_v6 = vpop.permute.xlu2 %6926 }
0x17ab   :  { %v6929_v34 = vadd.f32 %v6927_v6, %v14015_v10 }
0x17ad   :  { %v10775_v55 = vmul.f32 -1.442695, %v6929_v34  ;;  %v14063_v34 = vld [vmem:[#allocation31 + $0x8] sm:$0xff] }
0x17af   :  { %11640 = vpow2.f32 %v10775_v55  ;;  %v14067_v55 = vld [vmem:[#allocation31] sm:$0xff] }
0x17b3   :  { %v6730_v14 = vpop.permute.xlu1 %6729 }
0x17b4   :  { %v6732_v19 = vmul.f32 %v6730_v14, %v6727_v11 }
0x17b5   :  { %v11641_v44 = vpop.eup %11640 }
0x17b6   :  { %v6933_v37 = vadd.f32 1.0, %v11641_v44  ;;  %v14040_v52 = vadd.f32 %v6733_v59, %v6732_v19 }
0x17b8   :  { %11642 = vrcp.f32 %v6933_v37  ;;  %6842 = vrot.lane.b32.xlu0 %v14040_v52, %s12400_s24  ;;  %v6945_v53 = vand.u32 2147483648, %v6933_v37  ;;  %v6943_v13 = vand.u32 2147483647, %v6933_v37  ;;  %vm6939_vm9 = vweird.f32 %v6933_v37 }
0x17ba   :  { %v6946_v31 = vor.u32 1.1754944e-38, %v6945_v53  ;;  %vm6944_vm11 = vcmp.eq.f32.partialorder %v6943_v13, 8.507059e+37 }
0x17be   :  { %v11643_v41 = vpop.eup %11642 }
0x17bf   :  { %v6935_v26 = vmul.f32 %v11643_v41, %v6933_v37  ;;  %vm6940_vm8 = vweird.f32 %v11643_v41 }
0x17c0   :  { %6962 = vrot.lane.b32.xlu0 %v6817_v28, %s12402_s10  ;;  %vm6941_vm10 = vmor %vm6939_vm9, %vm6940_vm8 }
0x17c1   :  { %v6936_v1 = vsub.f32 1.0, %v6935_v26 }
0x17c3   :  { %v6937_v40 = vmul.f32 %v11643_v41, %v6936_v1 }
0x17c5   :  { %v6938_v8 = vadd.f32 %v11643_v41, %v6937_v40 }
0x17c7   :  { %v6942_v45 = vsel %vm6941_vm10, %v11643_v41, %v6938_v8 }
0x17c8   :  { %v6947_v62 = vsel %vm6944_vm11, %v6946_v31, %v6942_v45 }
0x17c9   :  { %v6949_v21 = vmul.f32 %v6947_v62, %v6923_v57  ;;  %v6956_v20 = vsub.f32 1.0, %v6947_v62 }
0x17cb   :  { %6951 = vrot.lane.b32.xlu1 %v6949_v21, %s12396_s0 }
0x182a   :  { %v6843_v48 = vpop.permute.xlu0 %6842 }
0x182b   :  { %10772 = vmatmul.msk.f32.vlgmr.msra.gmra.mxu0 %vm5966_vm7, %v6843_v48 }
0x182c   :  { %7291 = vmatpush.msra.mxu0 %v14047_v30 }
0x182e   :  { %7292 = vmatpush.msra.mxu0 %v14050_v17 }
0x1832   :  { %v6963_v9 = vpop.permute.xlu0 %6962 }
0x1833   :  { %v6965_v56 = vmul.f32 %v6963_v9, %v6947_v62 }
0x183d   :  { %v6952_v39 = vpop.permute.xlu1 %6951 }
0x183e   :  { %v6954_v4 = vadd.f32 %v6952_v39, %v14015_v10 }
0x1840   :  { %11644 = vtanh.f32 %v6954_v4 }
0x1846   :  { %v11645_v24 = vpop.eup %11644 }
0x1847   :  { %6958 = vrot.lane.b32.xlu2 %v11645_v24, %s12400_s24 }
0x18a1   :  { %v6959_v60 = vpop.permute.xlu2 %6958 }
0x18a2   :  { %v6961_v61 = vmul.f32 %v6959_v60, %v6956_v20 }
0x18a4   :  { %v6966_v42 = vadd.f32 %v6965_v56, %v6961_v61 }
0x18a6   :  { %6968 = vrot.lane.b32.xlu1 %v6966_v42, %s12403_s2 }
0x18a8   :  { %v6863_v33 = vpop.f32.mrf.mxu0 }
0x18a9   :  { %v6864_v0 = vadd.f32 %v13871_v3, %v6863_v33 }
0x18ab   :  { %6887 = vrot.lane.b32.xlu2 %v6864_v0, %s12395_s26  ;;  %v6866_v46 = vadd.f32 %v6864_v0, %v6839_v35 }
0x18ad   :  { %v10773_v49 = vmul.f32 -1.442695, %v6866_v46 }
0x18af   :  { %11646 = vpow2.f32 %v10773_v49 }
0x18b5   :  { %v11647_v43 = vpop.eup %11646 }
0x18b6   :  { %v6870_v58 = vadd.f32 1.0, %v11647_v43 }
0x18b8   :  { %11648 = vrcp.f32 %v6870_v58  ;;  %v6882_v47 = vand.u32 2147483648, %v6870_v58  ;;  %vm6876_vm13 = vweird.f32 %v6870_v58  ;;  %v6880_v3 = vand.u32 2147483647, %v6870_v58 }
0x18ba   :  { %v6883_v23 = vor.u32 1.1754944e-38, %v6882_v47  ;;  %vm6881_vm1 = vcmp.eq.f32.partialorder %v6880_v3, 8.507059e+37  ;;  %v14092_v47 = vld [vmem:[#allocation29] ss:$0 sm:$0xff] }
0x18be   :  { %v11649_v32 = vpop.eup %11648 }
0x18bf   :  { %v6872_v2 = vmul.f32 %v11649_v32, %v6870_v58  ;;  %vm6877_vm12 = vweird.f32 %v11649_v32 }
0x18c0   :  { %vm6878_vm0 = vmor %vm6876_vm13, %vm6877_vm12 }
0x18c1   :  { %v6873_v38 = vsub.f32 1.0, %v6872_v2 }
0x18c3   :  { %v6874_v36 = vmul.f32 %v11649_v32, %v6873_v38 }
0x18c5   :  { %v6875_v28 = vadd.f32 %v11649_v32, %v6874_v36  ;;  %v14088_v36 = vld [vmem:[#allocation32] ss:$0 sm:$0xff] }
0x18c7   :  { %v6879_v63 = vsel %vm6878_vm0, %v11649_v32, %v6875_v28 }
0x18c8   :  { %v6884_v27 = vsel %vm6881_vm1, %v6883_v23, %v6879_v63 }
0x18c9   :  { %v6897_v26 = vsub.f32 1.0, %v6884_v27  ;;  %v6903_v40 = vmul.f32 %v6884_v27, %v14040_v52 }
0x1905   :  { %v6888_v25 = vpop.permute.xlu2 %6887 }
0x1906   :  { %v6890_v57 = vmul.f32 %v6888_v25, %v6884_v27 }
0x1908   :  { %6892 = vrot.lane.b32.xlu0 %v6890_v57, %s12396_s0 }
0x1918   :  { %v6969_v6 = vpop.permute.xlu1 %6968 }
0x1919   :  { %10776 = vmatmul.msk.f32.vlgmr.msra.gmra.mxu2 %vm5966_vm7, %v6969_v6  ;;  %10779 = vmatmul.msk.f32.vlgmr.msrb.gmra.mxu0 %vm5966_vm7, %v6969_v6 }
0x191a   :  { %7375 = vmatpush.msra.mxu2 %v13987_v7  ;;  %7470 = vmatpush.msrb.mxu0 %v14063_v34 }
0x191c   :  { %7376 = vmatpush.msra.mxu2 %v14029_v5  ;;  %7471 = vmatpush.msrb.mxu0 %v14067_v55 }
0x197a   :  { %v6893_v11 = vpop.permute.xlu0 %6892 }
0x197b   :  { %v6895_v14 = vadd.f32 %v6893_v11, %v6839_v35 }
0x197d   :  { %11650 = vtanh.f32 %v6895_v14 }
0x1983   :  { %v11651_v59 = vpop.eup %11650 }
0x1984   :  { %6899 = vrot.lane.b32.xlu1 %v11651_v59, %s12400_s24 }
0x1996   :  { %v7073_v19 = vpop.f32.mrf.mxu0 }
0x1997   :  { %v7074_v44 = vadd.f32 %v14034_v22, %v7073_v19 }
0x1999   :  { %7077 = vrot.lane.b32.xlu2 %v7074_v44, %s12403_s2  ;;  %7100 = vrot.lane.b32.xlu1 %v7074_v44, %s12402_s10 }
0x199c   :  { %v6989_v28 = vpop.f32.mrf.mxu2 }
0x199d   :  { %v6990_v3 = vadd.f32 %v14092_v47, %v6989_v28 }
0x19a1   :  { %7116 = vrot.lane.b32.xlu1 %v6966_v42, %s12402_s10 }
0x19f3   :  { %v7078_v37 = vpop.permute.xlu2 %7077 }
0x19f4   :  { %v7080_v41 = vadd.f32 %v7078_v37, %v14015_v10 }
0x19f6   :  { %v10780_v1 = vmul.f32 -1.442695, %v7080_v41  ;;  %v6900_v53 = vpop.permute.xlu1 %6899 }
0x19f7   :  { %v6902_v13 = vmul.f32 %v6900_v53, %v6897_v26 }
0x19f8   :  { %11652 = vpow2.f32 %v10780_v1 }
0x19f9   :  { %v14077_v8 = vadd.f32 %v6903_v40, %v6902_v13 }
0x19fb   :  { %6993 = vrot.lane.b32.xlu0 %v14077_v8, %s12400_s24 }
0x19fe   :  { %v11653_v31 = vpop.eup %11652 }
0x19ff   :  { %v7084_v45 = vadd.f32 1.0, %v11653_v31 }
0x1a01   :  { %11654 = vrcp.f32 %v7084_v45  ;;  %v7096_v39 = vand.u32 2147483648, %v7084_v45  ;;  %v7094_v24 = vand.u32 2147483647, %v7084_v45  ;;  %vm7090_vm3 = vweird.f32 %v7084_v45 }
0x1a03   :  { %v7097_v20 = vor.u32 1.1754944e-38, %v7096_v39  ;;  %vm7095_vm8 = vcmp.eq.f32.partialorder %v7094_v24, 8.507059e+37 }
0x1a07   :  { %v11655_v62 = vpop.eup %11654 }
0x1a08   :  { %v7086_v21 = vmul.f32 %v11655_v62, %v7084_v45  ;;  %vm7091_vm2 = vweird.f32 %v11655_v62 }
0x1a09   :  { %vm7092_vm4 = vmor %vm7090_vm3, %vm7091_vm2 }
0x1a0a   :  { %v7087_v48 = vsub.f32 1.0, %v7086_v21 }
0x1a0b   :  { %v7101_v56 = vpop.permute.xlu1 %7100 }
0x1a0c   :  { %v7088_v4 = vmul.f32 %v11655_v62, %v7087_v48 }
0x1a0e   :  { %v7089_v9 = vadd.f32 %v11655_v62, %v7088_v4 }
0x1a10   :  { %v7093_v60 = vsel %vm7092_vm4, %v11655_v62, %v7089_v9 }
0x1a11   :  { %v7098_v61 = vsel %vm7095_vm8, %v7097_v20, %v7093_v60 }
0x1a12   :  { %v7103_v42 = vmul.f32 %v7101_v56, %v7098_v61  ;;  %v7110_v49 = vsub.f32 1.0, %v7098_v61 }
0x1a13   :  { %v7117_v46 = vpop.permute.xlu1 %7116 }
0x1a14   :  { %7105 = vrot.lane.b32.xlu2 %v7103_v42, %s12396_s0  ;;  %v7119_v58 = vmul.f32 %v7117_v46, %v7098_v61 }
0x1a6d   :  { %v6994_v33 = vpop.permute.xlu0 %6993 }
0x1a6e   :  { %10777 = vmatmul.msk.f32.vlgmr.msrb.gmra.mxu3 %vm5966_vm7, %v6994_v33  ;;  %v7106_v0 = vpop.permute.xlu2 %7105 }
0x1a6f   :  { %v7108_v18 = vadd.f32 %v7106_v0, %v14015_v10  ;;  %7445 = vmatpush.msrb.mxu3 %v14047_v30 }
0x1a71   :  { %11656 = vtanh.f32 %v7108_v18  ;;  %7446 = vmatpush.msrb.mxu3 %v14050_v17 }
0x1a77   :  { %v11657_v35 = vpop.eup %11656 }
0x1a78   :  { %7112 = vrot.lane.b32.xlu0 %v11657_v35, %s12400_s24 }
0x1aea   :  { %v7113_v43 = vpop.permute.xlu0 %7112 }
0x1aeb   :  { %v7115_v32 = vmul.f32 %v7113_v43, %v7110_v49 }
0x1aed   :  { %v7120_v2 = vadd.f32 %v7119_v58, %v7115_v32 }
0x1aef   :  { %7122 = vrot.lane.b32.xlu2 %v7120_v2, %s12396_s0 }
0x1af1   :  { %v7014_v38 = vpop.f32.mrf.mxu3 }
0x1af2   :  { %v7015_v10 = vadd.f32 %v14088_v36, %v7014_v38 }
0x1af4   :  { %7038 = vrot.lane.b32.xlu0 %v7015_v10, %s12395_s26  ;;  %v7017_v63 = vadd.f32 %v7015_v10, %v6990_v3 }
0x1af6   :  { %v10778_v23 = vmul.f32 -1.442695, %v7017_v63 }
0x1af8   :  { %11658 = vpow2.f32 %v10778_v23 }
0x1afe   :  { %v11659_v27 = vpop.eup %11658 }
0x1aff   :  { %v7021_v25 = vadd.f32 1.0, %v11659_v27 }
0x1b01   :  { %11660 = vrcp.f32 %v7021_v25  ;;  %v7033_v44 = vand.u32 2147483648, %v7021_v25  ;;  %vm7027_vm10 = vweird.f32 %v7021_v25  ;;  %v7031_v37 = vand.u32 2147483647, %v7021_v25 }
0x1b03   :  { %v7034_v26 = vor.u32 1.1754944e-38, %v7033_v44  ;;  %vm7032_vm12 = vcmp.eq.f32.partialorder %v7031_v37, 8.507059e+37 }
0x1b07   :  { %v11661_v6 = vpop.eup %11660 }
0x1b08   :  { %v7023_v11 = vmul.f32 %v11661_v6, %v7021_v25  ;;  %vm7028_vm9 = vweird.f32 %v11661_v6 }
0x1b09   :  { %vm7029_vm11 = vmor %vm7027_vm10, %vm7028_vm9 }
0x1b0a   :  { %v7024_v14 = vsub.f32 1.0, %v7023_v11 }
0x1b0c   :  { %v7025_v59 = vmul.f32 %v11661_v6, %v7024_v14 }
0x1b0e   :  { %v7026_v19 = vadd.f32 %v11661_v6, %v7025_v59 }
0x1b10   :  { %v7030_v41 = vsel %vm7029_vm11, %v11661_v6, %v7026_v19 }
0x1b11   :  { %v7035_v1 = vsel %vm7032_vm12, %v7034_v26, %v7030_v41 }
0x1b12   :  { %v7048_v0 = vsub.f32 1.0, %v7035_v1  ;;  %v7054_v46 = vmul.f32 %v7035_v1, %v14077_v8 }
0x1b49   :  { %v7123_v57 = vpop.permute.xlu2 %7122 }
0x1b4a   :  { %10781 = vmatmul.msk.f32.vlgmr.msra.gmra.mxu1 %vm5966_vm7, %v7123_v57  ;;  %10784 = vmatmul.msk.f32.vlgmr.msra.gmra.mxu3 %vm5966_vm7, %v7123_v57 }
0x1b4b   :  { %7529 = vmatpush.msra.mxu1 %v13987_v7  ;;  %7624 = vmatpush.msra.mxu3 %v14063_v34 }
0x1b4d   :  { %7530 = vmatpush.msra.mxu1 %v14029_v5  ;;  %7625 = vmatpush.msra.mxu3 %v14067_v55 }
0x1b66   :  { %v7039_v53 = vpop.permute.xlu0 %7038 }
0x1b67   :  { %v7041_v40 = vmul.f32 %v7039_v53, %v7035_v1 }
0x1b69   :  { %7043 = vrot.lane.b32.xlu1 %v7041_v40, %s12396_s0 }
0x1bc7   :  { %v7143_v19 = vpop.f32.mrf.mxu1 }
0x1bc8   :  { %v7144_v37 = vadd.f32 %v14092_v47, %v7143_v19 }
0x1bcd   :  { %v7227_v13 = vpop.f32.mrf.mxu3 }
0x1bce   :  { %v7228_v31 = vadd.f32 %v14034_v22, %v7227_v13 }
0x1bd0   :  { %7251 = vrot.lane.b32.xlu1 %v7228_v31, %s12395_s26  ;;  %v7230_v48 = vadd.f32 %v7228_v31, %v13804_v51 }
0x1bd2   :  { %v10785_v39 = vmul.f32 -1.442695, %v7230_v48 }
0x1bd8   :  { %7267 = vrot.lane.b32.xlu1 %v7120_v2, %s12402_s10 }
0x1bdb   :  { %v7044_v45 = vpop.permute.xlu1 %7043 }
0x1bdc   :  { %v7046_v62 = vadd.f32 %v7044_v45, %v6990_v3 }
0x1bde   :  { %11662 = vtanh.f32 %v7046_v62 }
0x1bdf   :  { %11664 = vpow2.f32 %v10785_v39 }
0x1be4   :  { %v11663_v21 = vpop.eup %11662 }
0x1be5   :  { %7050 = vrot.lane.b32.xlu2 %v11663_v21, %s12400_s24  ;;  %v11665_v4 = vpop.eup %11664 }
0x1be6   :  { %v7234_v24 = vadd.f32 1.0, %v11665_v4 }
0x1be8   :  { %11666 = vrcp.f32 %v7234_v24  ;;  %v7246_v42 = vand.u32 2147483648, %v7234_v24  ;;  %vm7240_vm0 = vweird.f32 %v7234_v24  ;;  %v7244_v33 = vand.u32 2147483647, %v7234_v24 }
0x1bea   :  { %v7247_v43 = vor.u32 1.1754944e-38, %v7246_v42  ;;  %vm7245_vm2 = vcmp.eq.f32.partialorder %v7244_v33, 8.507059e+37 }
0x1bee   :  { %v11667_v9 = vpop.eup %11666 }
0x1bef   :  { %v7236_v20 = vmul.f32 %v11667_v9, %v7234_v24  ;;  %vm7241_vm13 = vweird.f32 %v11667_v9 }
0x1bf0   :  { %vm7242_vm1 = vmor %vm7240_vm0, %vm7241_vm13 }
0x1bf1   :  { %v7237_v60 = vsub.f32 1.0, %v7236_v20 }
0x1bf3   :  { %v7238_v56 = vmul.f32 %v11667_v9, %v7237_v60 }
0x1bf5   :  { %v7239_v61 = vadd.f32 %v11667_v9, %v7238_v56 }
0x1bf7   :  { %v7243_v35 = vsel %vm7242_vm1, %v11667_v9, %v7239_v61 }
0x1bf8   :  { %v7248_v32 = vsel %vm7245_vm2, %v7247_v43, %v7243_v35 }
0x1bf9   :  { %v7261_v27 = vsub.f32 1.0, %v7248_v32 }
0x1c3f   :  { %v7051_v18 = vpop.permute.xlu2 %7050 }
0x1c40   :  { %v7053_v49 = vmul.f32 %v7051_v18, %v7048_v0 }
0x1c42   :  { %v14108_v58 = vadd.f32 %v7054_v46, %v7053_v49  ;;  %v7252_v2 = vpop.permute.xlu1 %7251 }
0x1c43   :  { %v7254_v38 = vmul.f32 %v7252_v2, %v7248_v32 }
0x1c44   :  { %7147 = vrot.lane.b32.xlu0 %v14108_v58, %s12400_s24 }
0x1c45   :  { %7256 = vrot.lane.b32.xlu2 %v7254_v38, %s12396_s0 }
0x1c4a   :  { %v7268_v23 = vpop.permute.xlu1 %7267 }
0x1c4b   :  { %v7270_v57 = vmul.f32 %v7268_v23, %v7248_v32 }
0x1c9f   :  { %v7257_v10 = vpop.permute.xlu2 %7256 }
0x1ca0   :  { %v7259_v28 = vadd.f32 %v7257_v10, %v13804_v51 }
0x1ca2   :  { %11668 = vtanh.f32 %v7259_v28 }
0x1ca8   :  { %v11669_v3 = vpop.eup %11668 }
0x1ca9   :  { %7263 = vrot.lane.b32.xlu0 %v11669_v3, %s12400_s24 }
0x1cb6   :  { %v7148_v63 = vpop.permute.xlu0 %7147 }
0x1cb7   :  { %10782 = vmatmul.msk.f32.vlgmr.msrb.gmra.mxu2 %vm5966_vm7, %v7148_v63 }
0x1cb8   :  { %7599 = vmatpush.msrb.mxu2 %v14047_v30 }
0x1cba   :  { %7600 = vmatpush.msrb.mxu2 %v14050_v17 }
0x1d1b   :  { %v7264_v25 = vpop.permute.xlu0 %7263 }
0x1d1c   :  { %v7266_v6 = vmul.f32 %v7264_v25, %v7261_v27 }
0x1d1e   :  { %v7271_v11 = vadd.f32 %v7270_v57, %v7266_v6 }
0x1d20   :  { %7273 = vrot.lane.b32.xlu2 %v7271_v11, %s12400_s24 }
0x1d3a   :  { %v7168_v14 = vpop.f32.mrf.mxu2 }
0x1d3b   :  { %v7169_v59 = vadd.f32 %v14088_v36, %v7168_v14 }
0x1d3d   :  { %7192 = vrot.lane.b32.xlu0 %v7169_v59, %s12395_s26  ;;  %v7171_v41 = vadd.f32 %v7169_v59, %v7144_v37 }
0x1d3f   :  { %v10783_v26 = vmul.f32 -1.442695, %v7171_v41 }
0x1d41   :  { %11670 = vpow2.f32 %v10783_v26 }
0x1d47   :  { %v11671_v1 = vpop.eup %11670 }
0x1d48   :  { %v7175_v53 = vadd.f32 1.0, %v11671_v1 }
0x1d4a   :  { %11672 = vrcp.f32 %v7175_v53  ;;  %v7187_v21 = vand.u32 2147483648, %v7175_v53  ;;  %vm7181_vm4 = vweird.f32 %v7175_v53  ;;  %v7185_v48 = vand.u32 2147483647, %v7175_v53 }
0x1d4c   :  { %v7188_v4 = vor.u32 1.1754944e-38, %v7187_v21  ;;  %vm7186_vm9 = vcmp.eq.f32.partialorder %v7185_v48, 8.507059e+37 }
0x1d50   :  { %v11673_v40 = vpop.eup %11672 }
0x1d51   :  { %v7177_v13 = vmul.f32 %v11673_v40, %v7175_v53  ;;  %vm7182_vm3 = vweird.f32 %v11673_v40 }
0x1d52   :  { %vm7183_vm8 = vmor %vm7181_vm4, %vm7182_vm3 }
0x1d53   :  { %v7178_v31 = vsub.f32 1.0, %v7177_v13 }
0x1d55   :  { %v7179_v45 = vmul.f32 %v11673_v40, %v7178_v31 }
0x1d57   :  { %v7180_v62 = vadd.f32 %v11673_v40, %v7179_v45 }
0x1d59   :  { %v7184_v39 = vsel %vm7183_vm8, %v11673_v40, %v7180_v62 }
0x1d5a   :  { %v7189_v24 = vsel %vm7186_vm9, %v7188_v4, %v7184_v39 }
0x1d5b   :  { %v7202_v32 = vsub.f32 1.0, %v7189_v24  ;;  %v7208_v10 = vmul.f32 %v7189_v24, %v14108_v58 }
0x1d7a   :  { %v7274_v44 = vpop.permute.xlu2 %7273 }
0x1d7b   :  { %10786 = vmatmul.msk.f32.vlgmr.msra.gmra.mxu0 %vm5966_vm7, %v7274_v44  ;;  %10789 = vmatmul.msk.f32.vlgmr.msra.gmra.mxu2 %vm5966_vm7, %v7274_v44 }
0x1d7c   :  { %7683 = vmatpush.msra.mxu0 %v13987_v7  ;;  %7778 = vmatpush.msra.mxu2 %v14063_v34 }
0x1d7e   :  { %7684 = vmatpush.msra.mxu0 %v14029_v5  ;;  %7779 = vmatpush.msra.mxu2 %v14067_v55 }
0x1daf   :  { %v7193_v9 = vpop.permute.xlu0 %7192 }
0x1db0   :  { %v7195_v20 = vmul.f32 %v7193_v9, %v7189_v24 }
0x1db2   :  { %7197 = vrot.lane.b32.xlu1 %v7195_v20, %s12396_s0 }
0x1df8   :  { %v7294_v48 = vpop.f32.mrf.mxu0 }
0x1df9   :  { %v7295_v39 = vadd.f32 %v14092_v47, %v7294_v48 }
0x1dfe   :  { %v7378_v60 = vpop.f32.mrf.mxu2 }
0x1dff   :  { %v7379_v56 = vadd.f32 %v14034_v22, %v7378_v60 }
0x1e01   :  { %7382 = vrot.lane.b32.xlu1 %v7379_v56, %s12402_s10 }
0x1e24   :  { %v7198_v61 = vpop.permute.xlu1 %7197 }
0x1e25   :  { %v7200_v42 = vadd.f32 %v7198_v61, %v7144_v37 }
0x1e27   :  { %11674 = vtanh.f32 %v7200_v42 }
0x1e2d   :  { %v11675_v33 = vpop.eup %11674 }
0x1e2e   :  { %7204 = vrot.lane.b32.xlu2 %v11675_v33, %s12400_s24 }
0x1e36   :  { %7405 = vrot.lane.b32.xlu2 %v7379_v56, %s12401_s7 }
0x1e3e   :  { %7421 = vrot.lane.b32.xlu2 %v7271_v11, %s12402_s10 }
0x1e73   :  { %v7383_v0 = vpop.permute.xlu1 %7382 }
0x1e74   :  { %v7385_v18 = vadd.f32 %v7383_v0, %v13804_v51 }
0x1e76   :  { %v10790_v35 = vmul.f32 -1.442695, %v7385_v18 }
0x1e78   :  { %11676 = vpow2.f32 %v10790_v35 }
0x1e7e   :  { %v11677_v46 = vpop.eup %11676 }
0x1e7f   :  { %v7389_v49 = vadd.f32 1.0, %v11677_v46 }
0x1e81   :  { %11678 = vrcp.f32 %v7389_v49  ;;  %v7401_v23 = vand.u32 2147483648, %v7389_v49  ;;  %v7399_v25 = vand.u32 2147483647, %v7389_v49  ;;  %vm7395_vm11 = vweird.f32 %v7389_v49 }
0x1e83   :  { %v7402_v6 = vor.u32 1.1754944e-38, %v7401_v23  ;;  %vm7400_vm13 = vcmp.eq.f32.partialorder %v7399_v25, 8.507059e+37 }
0x1e87   :  { %v11679_v43 = vpop.eup %11678 }
0x1e88   :  { %v7205_v2 = vpop.permute.xlu2 %7204  ;;  %v7391_v38 = vmul.f32 %v11679_v43, %v7389_v49  ;;  %vm7396_vm10 = vweird.f32 %v11679_v43 }
0x1e89   :  { %v7207_v28 = vmul.f32 %v7205_v2, %v7202_v32  ;;  %vm7397_vm12 = vmor %vm7395_vm11, %vm7396_vm10 }
0x1e8a   :  { %v7392_v3 = vsub.f32 1.0, %v7391_v38 }
0x1e8b   :  { %v14136_v63 = vadd.f32 %v7208_v10, %v7207_v28 }
0x1e8c   :  { %v7393_v27 = vmul.f32 %v11679_v43, %v7392_v3 }
0x1e8d   :  { %7298 = vrot.lane.b32.xlu0 %v14136_v63, %s12400_s24 }
0x1e8e   :  { %v7394_v57 = vadd.f32 %v11679_v43, %v7393_v27 }
0x1e90   :  { %v7406_v11 = vpop.permute.xlu2 %7405  ;;  %v7398_v14 = vsel %vm7397_vm12, %v11679_v43, %v7394_v57 }
0x1e91   :  { %v7403_v59 = vsel %vm7400_vm13, %v7402_v6, %v7398_v14 }
0x1e92   :  { %v7408_v19 = vmul.f32 %v7406_v11, %v7403_v59  ;;  %v7415_v13 = vsub.f32 1.0, %v7403_v59 }
0x1e95   :  { %7410 = vrot.lane.b32.xlu0 %v7408_v19, %s12396_s0 }
0x1e98   :  { %v7422_v40 = vpop.permute.xlu2 %7421 }
0x1e99   :  { %v7424_v45 = vmul.f32 %v7422_v40, %v7403_v59 }
0x1eff   :  { %v7299_v44 = vpop.permute.xlu0 %7298 }
0x1f00   :  { %10787 = vmatmul.msk.f32.vlgmr.msrb.gmra.mxu1 %vm5966_vm7, %v7299_v44 }
0x1f01   :  { %7753 = vmatpush.msrb.mxu1 %v14047_v30 }
0x1f03   :  { %7754 = vmatpush.msrb.mxu1 %v14050_v17 }
0x1f07   :  { %v7411_v37 = vpop.permute.xlu0 %7410 }
0x1f08   :  { %v7413_v41 = vadd.f32 %v7411_v37, %v13804_v51 }
0x1f0a   :  { %11680 = vtanh.f32 %v7413_v41 }
0x1f10   :  { %v11681_v26 = vpop.eup %11680 }
0x1f11   :  { %7417 = vrot.lane.b32.xlu1 %v11681_v26, %s12400_s24 }
0x1f7d   :  { %v7319_v1 = vpop.f32.mrf.mxu1 }
0x1f7e   :  { %v7320_v53 = vadd.f32 %v14088_v36, %v7319_v1 }
0x1f80   :  { %7343 = vrot.lane.b32.xlu0 %v7320_v53, %s12395_s26  ;;  %v7322_v4 = vadd.f32 %v7320_v53, %v7295_v39 }
0x1f82   :  { %v10788_v24 = vmul.f32 -1.442695, %v7322_v4 }
0x1f83   :  { %v7418_v31 = vpop.permute.xlu1 %7417 }
0x1f84   :  { %v7420_v62 = vmul.f32 %v7418_v31, %v7415_v13  ;;  %11682 = vpow2.f32 %v10788_v24 }
0x1f86   :  { %v7425_v21 = vadd.f32 %v7424_v45, %v7420_v62 }
0x1f88   :  { %7427 = vrot.lane.b32.xlu1 %v7425_v21, %s12398_s11 }
0x1f8a   :  { %v11683_v9 = vpop.eup %11682 }
0x1f8b   :  { %v7326_v20 = vadd.f32 1.0, %v11683_v9 }
0x1f8d   :  { %11684 = vrcp.f32 %v7326_v20  ;;  %v7338_v0 = vand.u32 2147483648, %v7326_v20  ;;  %vm7332_vm1 = vweird.f32 %v7326_v20  ;;  %v7336_v18 = vand.u32 2147483647, %v7326_v20 }
0x1f8f   :  { %v7339_v46 = vor.u32 1.1754944e-38, %v7338_v0  ;;  %vm7337_vm3 = vcmp.eq.f32.partialorder %v7336_v18, 8.507059e+37 }
0x1f93   :  { %v11685_v60 = vpop.eup %11684 }
0x1f94   :  { %v7328_v56 = vmul.f32 %v11685_v60, %v7326_v20  ;;  %vm7333_vm0 = vweird.f32 %v11685_v60 }
0x1f95   :  { %vm7334_vm2 = vmor %vm7332_vm1, %vm7333_vm0 }
0x1f96   :  { %v7329_v61 = vsub.f32 1.0, %v7328_v56 }
0x1f98   :  { %v7330_v42 = vmul.f32 %v11685_v60, %v7329_v61 }
0x1f9a   :  { %v7331_v33 = vadd.f32 %v11685_v60, %v7330_v42 }
0x1f9c   :  { %v7335_v35 = vsel %vm7334_vm2, %v11685_v60, %v7331_v33 }
0x1f9d   :  { %v7340_v49 = vsel %vm7337_vm3, %v7339_v46, %v7335_v35 }
0x1f9e   :  { %v7359_v25 = vmul.f32 %v7340_v49, %v14136_v63 }
0x1ff2   :  { %v7344_v43 = vpop.permute.xlu0 %7343 }
0x1ff3   :  { %v7346_v32 = vmul.f32 %v7344_v43, %v7340_v49 }
0x1ff5   :  { %7348 = vrot.lane.b32.xlu2 %v7346_v32, %s12396_s0 }
0x1ffa   :  { %v7428_v2 = vpop.permute.xlu1 %7427 }
0x1ffb   :  { %10791 = vmatmul.msk.f32.vlgmr.msrb.gmra.mxu3 %vm5966_vm7, %v7428_v2  ;;  %10794 = vmatmul.msk.f32.vlgmr.msra.gmra.mxu1 %vm5966_vm7, %v7428_v2 }
0x1ffc   :  { %7837 = vmatpush.msrb.mxu3 %v13987_v7  ;;  %7932 = vmatpush.msra.mxu1 %v14063_v34  ;;  %v7353_v7 = vsub.f32 1.0, %v7340_v49 }
0x1ffe   :  { %7838 = vmatpush.msrb.mxu3 %v14029_v5  ;;  %7933 = vmatpush.msra.mxu1 %v14067_v55 }
0x204f   :  { %v7349_v38 = vpop.permute.xlu2 %7348 }
0x2050   :  { %v7351_v10 = vadd.f32 %v7349_v38, %v7295_v39 }
0x2052   :  { %11686 = vtanh.f32 %v7351_v10 }
0x2058   :  { %v11687_v28 = vpop.eup %11686 }
0x2059   :  { %7355 = vrot.lane.b32.xlu0 %v11687_v28, %s12400_s24 }
0x2078   :  { %v7532_v3 = vpop.f32.mrf.mxu1 }
0x2079   :  { %v7533_v23 = vadd.f32 %v14034_v22, %v7532_v3 }
0x207b   :  { %7536 = vrot.lane.b32.xlu2 %v7533_v23, %s12395_s26  ;;  %7559 = vrot.lane.b32.xlu0 %v7533_v23, %s12398_s11 }
0x207e   :  { %v7448_v18 = vpop.f32.mrf.mxu3 }
0x207f   :  { %v7449_v35 = vadd.f32 %v14092_v47, %v7448_v18 }
0x2083   :  { %7575 = vrot.lane.b32.xlu0 %v7425_v21, %s12402_s10 }
0x20cb   :  { %v7356_v27 = vpop.permute.xlu0 %7355 }
0x20cc   :  { %v7358_v57 = vmul.f32 %v7356_v27, %v7353_v7 }
0x20ce   :  { %v14163_v6 = vadd.f32 %v7359_v25, %v7358_v57 }
0x20d0   :  { %7452 = vrot.lane.b32.xlu1 %v14163_v6, %s12400_s24 }
0x20d5   :  { %v7537_v11 = vpop.permute.xlu2 %7536 }
0x20d6   :  { %v7539_v14 = vadd.f32 %v7537_v11, %v13804_v51 }
0x20d8   :  { %v10795_v59 = vmul.f32 -1.442695, %v7539_v14 }
0x20da   :  { %11688 = vpow2.f32 %v10795_v59 }
0x20e0   :  { %v11689_v19 = vpop.eup %11688 }
0x20e1   :  { %v7543_v44 = vadd.f32 1.0, %v11689_v19  ;;  %v14187_v19 = vld [vmem:[#allocation25 + $0x8] sm:$0xff] }
0x20e3   :  { %11690 = vrcp.f32 %v7543_v44  ;;  %v7555_v1 = vand.u32 2147483648, %v7543_v44  ;;  %v7553_v40 = vand.u32 2147483647, %v7543_v44  ;;  %vm7549_vm8 = vweird.f32 %v7543_v44 }
0x20e5   :  { %v7556_v31 = vor.u32 1.1754944e-38, %v7555_v1  ;;  %vm7554_vm10 = vcmp.eq.f32.partialorder %v7553_v40, 8.507059e+37 }
0x20e9   :  { %v11691_v37 = vpop.eup %11690 }
0x20ea   :  { %v7545_v41 = vmul.f32 %v11691_v37, %v7543_v44  ;;  %vm7550_vm4 = vweird.f32 %v11691_v37 }
0x20eb   :  { %vm7551_vm9 = vmor %vm7549_vm8, %vm7550_vm4 }
0x20ec   :  { %v7546_v26 = vsub.f32 1.0, %v7545_v41 }
0x20ed   :  { %v7560_v62 = vpop.permute.xlu0 %7559 }
0x20ee   :  { %v7547_v53 = vmul.f32 %v11691_v37, %v7546_v26 }
0x20f0   :  { %v7548_v13 = vadd.f32 %v11691_v37, %v7547_v53 }
0x20f2   :  { %v7552_v45 = vsel %vm7551_vm9, %v11691_v37, %v7548_v13 }
0x20f3   :  { %v7557_v51 = vsel %vm7554_vm10, %v7556_v31, %v7552_v45 }
0x20f4   :  { %v7562_v21 = vmul.f32 %v7560_v62, %v7557_v51  ;;  %v7569_v56 = vsub.f32 1.0, %v7557_v51 }
0x20f5   :  { %v7576_v60 = vpop.permute.xlu0 %7575 }
0x20f6   :  { %7564 = vrot.lane.b32.xlu1 %v7562_v21, %s12396_s0  ;;  %v7578_v42 = vmul.f32 %v7576_v60, %v7557_v51 }
0x2142   :  { %v14169_v48 = vpop.permute.xlu1 %7452 }
0x2143   :  { %10792 = vmatmul.msk.f32.vlgmr.msrb.gmra.mxu0 %vm5966_vm7, %v14169_v48 }
0x2144   :  { %7907 = vmatpush.msrb.mxu0 %v14047_v30 }
0x2146   :  { %7908 = vmatpush.msrb.mxu0 %v14050_v17 }
0x2168   :  { %v7565_v39 = vpop.permute.xlu1 %7564 }
0x2169   :  { %v7567_v4 = vadd.f32 %v7565_v39, %v13807_v16 }
0x216b   :  { %11692 = vtanh.f32 %v7567_v4 }
0x2171   :  { %v11693_v24 = vpop.eup %11692 }
0x2172   :  { %7571 = vrot.lane.b32.xlu2 %v11693_v24, %s12400_s24 }
0x21c0   :  { %v7473_v9 = vpop.f32.mrf.mxu0 }
0x21c1   :  { %v7474_v20 = vadd.f32 %v14088_v36, %v7473_v9 }
0x21c3   :  { %7497 = vrot.lane.b32.xlu1 %v7474_v20, %s12395_s26  ;;  %v7476_v46 = vadd.f32 %v7474_v20, %v7449_v35 }
0x21c5   :  { %v10793_v49 = vmul.f32 -1.442695, %v7476_v46 }
0x21c7   :  { %11694 = vpow2.f32 %v10793_v49 }
0x21cc   :  { %v7572_v61 = vpop.permute.xlu2 %7571 }
0x21cd   :  { %v7574_v33 = vmul.f32 %v7572_v61, %v7569_v56  ;;  %v11695_v43 = vpop.eup %11694 }
0x21ce   :  { %v7480_v32 = vadd.f32 1.0, %v11695_v43 }
0x21cf   :  { %v14179_v0 = vadd.f32 %v7578_v42, %v7574_v33 }
0x21d0   :  { %11696 = vrcp.f32 %v7480_v32  ;;  %v7492_v23 = vand.u32 2147483648, %v7480_v32  ;;  %vm7486_vm12 = vweird.f32 %v7480_v32  ;;  %v7490_v7 = vand.u32 2147483647, %v7480_v32 }
0x21d1   :  { %7581 = vrot.lane.b32.xlu0 %v14179_v0, %s12401_s7 }
0x21d2   :  { %v7493_v25 = vor.u32 1.1754944e-38, %v7492_v23  ;;  %vm7491_vm0 = vcmp.eq.f32.partialorder %v7490_v7, 8.507059e+37 }
0x21d6   :  { %v11697_v2 = vpop.eup %11696 }
0x21d7   :  { %v7482_v38 = vmul.f32 %v11697_v2, %v7480_v32  ;;  %vm7487_vm11 = vweird.f32 %v11697_v2 }
0x21d8   :  { %vm7488_vm13 = vmor %vm7486_vm12, %vm7487_vm11 }
0x21d9   :  { %v7483_v10 = vsub.f32 1.0, %v7482_v38 }
0x21db   :  { %v7484_v28 = vmul.f32 %v11697_v2, %v7483_v10 }
0x21dd   :  { %v7485_v3 = vadd.f32 %v11697_v2, %v7484_v28 }
0x21df   :  { %v7489_v27 = vsel %vm7488_vm13, %v11697_v2, %v7485_v3 }
0x21e0   :  { %v7494_v57 = vsel %vm7491_vm0, %v7493_v25, %v7489_v27 }
0x21e1   :  { %v7507_v53 = vsub.f32 1.0, %v7494_v57  ;;  %v7513_v13 = vmul.f32 %v7494_v57, %v14163_v6 }
0x2235   :  { %v7498_v11 = vpop.permute.xlu1 %7497 }
0x2236   :  { %v7500_v14 = vmul.f32 %v7498_v11, %v7494_v57 }
0x2238   :  { %7502 = vrot.lane.b32.xlu2 %v7500_v14, %s12396_s0 }
0x2243   :  { %v7582_v59 = vpop.permute.xlu0 %7581 }
0x2244   :  { %10796 = vmatmul.msk.f32.vlgmr.msrb.gmra.mxu2 %vm5966_vm7, %v7582_v59  ;;  %10799 = vmatmul.msk.f32.vlgmr.msra.gmra.mxu0 %vm5966_vm7, %v7582_v59 }
0x2245   :  { %7991 = vmatpush.msrb.mxu2 %v14187_v19  ;;  %8102 = vmatpush.msra.mxu0 %v14063_v34 }
0x2247   :  { %7992 = vmatpush.msrb.mxu2 %v14029_v5  ;;  %8103 = vmatpush.msra.mxu0 %v14067_v55 }
0x2292   :  { %v7503_v44 = vpop.permute.xlu2 %7502 }
0x2293   :  { %v7505_v37 = vadd.f32 %v7503_v44, %v7449_v35 }
0x2295   :  { %11698 = vtanh.f32 %v7505_v37 }
0x229b   :  { %v11699_v41 = vpop.eup %11698 }
0x229c   :  { %7509 = vrot.lane.b32.xlu1 %v11699_v41, %s12400_s24 }
0x22c1   :  { %v7686_v26 = vpop.f32.mrf.mxu0 }
0x22c2   :  { %v7687_v1 = vadd.f32 %v14034_v22, %v7686_v26 }
0x22c4   :  { %7690 = vrot.lane.b32.xlu0 %v7687_v1, %s12401_s7  ;;  %7713 = vrot.lane.b32.xlu1 %v7687_v1, %s12400_s24 }
0x230e   :  { %v7510_v40 = vpop.permute.xlu1 %7509 }
0x230f   :  { %v7512_v5 = vmul.f32 %v7510_v40, %v7507_v53 }
0x2311   :  { %v14198_v31 = vadd.f32 %v7513_v13, %v7512_v5 }
0x2313   :  { %7606 = vrot.lane.b32.xlu2 %v14198_v31, %s12400_s24 }
0x2336   :  { %v7691_v45 = vpop.permute.xlu0 %7690  ;;  %v7714_v33 = vpop.permute.xlu1 %7713 }
0x2337   :  { %v7693_v62 = vadd.f32 %v7691_v45, %v13807_v16 }
0x2339   :  { %v10800_v51 = vmul.f32 -1.442695, %v7693_v62  ;;  %v14223_v62 = vld [vmem:[#allocation25] sm:$0xff] }
0x233b   :  { %11700 = vpow2.f32 %v10800_v51 }
0x2341   :  { %v11701_v22 = vpop.eup %11700 }
0x2342   :  { %v7697_v21 = vadd.f32 1.0, %v11701_v22 }
0x2344   :  { %11702 = vrcp.f32 %v7697_v21  ;;  %v7709_v9 = vand.u32 2147483648, %v7697_v21  ;;  %v7707_v6 = vand.u32 2147483647, %v7697_v21  ;;  %vm7703_vm2 = vweird.f32 %v7697_v21 }
0x2346   :  { %v7710_v56 = vor.u32 1.1754944e-38, %v7709_v9  ;;  %vm7708_vm4 = vcmp.eq.f32.partialorder %v7707_v6, 8.507059e+37 }
0x234a   :  { %v11703_v39 = vpop.eup %11702 }
0x234b   :  { %v7699_v4 = vmul.f32 %v11703_v39, %v7697_v21  ;;  %vm7704_vm1 = vweird.f32 %v11703_v39 }
0x234c   :  { %vm7705_vm3 = vmor %vm7703_vm2, %vm7704_vm1 }
0x234d   :  { %v7700_v24 = vsub.f32 1.0, %v7699_v4  ;;  %v14228_v4 = vld [vmem:[#allocation26] ss:$0 sm:$0xff] }
0x234f   :  { %v7701_v20 = vmul.f32 %v11703_v39, %v7700_v24 }
0x2351   :  { %v7702_v60 = vadd.f32 %v11703_v39, %v7701_v20 }
0x2353   :  { %v7706_v61 = vsel %vm7705_vm3, %v11703_v39, %v7702_v60 }
0x2354   :  { %v7711_v42 = vsel %vm7708_vm4, %v7710_v56, %v7706_v61 }
0x2355   :  { %v7716_v18 = vmul.f32 %v7714_v33, %v7711_v42  ;;  %v7723_v38 = vsub.f32 1.0, %v7711_v42 }
0x2357   :  { %7718 = vrot.lane.b32.xlu2 %v7716_v18, %s12396_s0 }
0x235f   :  { %7729 = vrot.lane.b32.xlu2 %v14179_v0, %s12402_s10 }
0x236d   :  { %v7607_v35 = vpop.permute.xlu2 %7606 }
0x236e   :  { %10797 = vmatmul.msk.f32.vlgmr.msra.gmra.mxu3 %vm5966_vm7, %v7607_v35 }
0x236f   :  { %8077 = vmatpush.msra.mxu3 %v14047_v30  ;;  %v7602_v30 = vpop.f32.mrf.mxu2 }
0x2371   :  { %8078 = vmatpush.msra.mxu3 %v14050_v17  ;;  %v7603_v17 = vadd.f32 %v14092_v47, %v7602_v30 }
0x23b1   :  { %v7719_v46 = vpop.permute.xlu2 %7718 }
0x23b2   :  { %v7721_v49 = vadd.f32 %v7719_v46, %v13807_v16 }
0x23b4   :  { %11704 = vtanh.f32 %v7721_v49 }
0x23b9   :  { %v7730_v0 = vpop.permute.xlu2 %7729 }
0x23ba   :  { %v11705_v43 = vpop.eup %11704  ;;  %v7732_v28 = vmul.f32 %v7730_v0, %v7711_v42 }
0x23bb   :  { %7725 = vrot.lane.b32.xlu1 %v11705_v43, %s12400_s24 }
0x23f1   :  { %v7627_v32 = vpop.f32.mrf.mxu3 }
0x23f2   :  { %v7628_v2 = vadd.f32 %v14088_v36, %v7627_v32 }
0x23f4   :  { %7651 = vrot.lane.b32.xlu0 %v7628_v2, %s12395_s26  ;;  %v7630_v7 = vadd.f32 %v7628_v2, %v7603_v17 }
0x23f6   :  { %v10798_v27 = vmul.f32 -1.442695, %v7630_v7 }
0x23f8   :  { %11706 = vpow2.f32 %v10798_v27 }
0x23fe   :  { %v11707_v25 = vpop.eup %11706 }
0x23ff   :  { %v7634_v57 = vadd.f32 1.0, %v11707_v25 }
0x2401   :  { %11708 = vrcp.f32 %v7634_v57  ;;  %v7646_v41 = vand.u32 2147483648, %v7634_v57  ;;  %vm7640_vm9 = vweird.f32 %v7634_v57  ;;  %v7644_v26 = vand.u32 2147483647, %v7634_v57 }
0x2403   :  { %v7647_v53 = vor.u32 1.1754944e-38, %v7646_v41  ;;  %vm7645_vm11 = vcmp.eq.f32.partialorder %v7644_v26, 8.507059e+37 }
0x2407   :  { %v11709_v11 = vpop.eup %11708 }
0x2408   :  { %v7636_v14 = vmul.f32 %v11709_v11, %v7634_v57  ;;  %vm7641_vm8 = vweird.f32 %v11709_v11 }
0x2409   :  { %vm7642_vm10 = vmor %vm7640_vm9, %vm7641_vm8 }
0x240a   :  { %v7637_v59 = vsub.f32 1.0, %v7636_v14 }
0x240c   :  { %v7638_v44 = vmul.f32 %v11709_v11, %v7637_v59 }
0x240e   :  { %v7639_v37 = vadd.f32 %v11709_v11, %v7638_v44 }
0x2410   :  { %v7643_v1 = vsel %vm7642_vm10, %v11709_v11, %v7639_v37 }
0x2411   :  { %v7648_v13 = vsel %vm7645_vm11, %v7647_v53, %v7643_v1 }
0x2412   :  { %v7667_v20 = vmul.f32 %v7648_v13, %v14198_v31 }
0x242d   :  { %v7726_v10 = vpop.permute.xlu1 %7725 }
0x242e   :  { %v7728_v3 = vmul.f32 %v7726_v10, %v7723_v38  ;;  %v14240_v38 = vld [vmem:[#allocation28 + $0x8] sm:$0xff] }
0x2430   :  { %v14213_v23 = vadd.f32 %v7732_v28, %v7728_v3  ;;  %v14243_v3 = vld [vmem:[#allocation28] sm:$0xff] }
0x2432   :  { %7735 = vrot.lane.b32.xlu1 %v14213_v23, %s12395_s26 }
0x2466   :  { %v7652_v40 = vpop.permute.xlu0 %7651 }
0x2467   :  { %v7654_v5 = vmul.f32 %v7652_v40, %v7648_v13 }
0x2469   :  { %7656 = vrot.lane.b32.xlu0 %v7654_v5, %s12396_s0 }
0x24a4   :  { %v7736_v45 = vpop.permute.xlu1 %7735 }
0x24a5   :  { %10801 = vmatmul.msk.f32.vlgmr.msrb.gmra.mxu1 %vm5966_vm7, %v7736_v45  ;;  %10804 = vmatmul.msk.f32.vlgmr.msrb.gmra.mxu3 %vm5966_vm7, %v7736_v45 }
0x24a6   :  { %8161 = vmatpush.msrb.mxu1 %v14187_v19  ;;  %8253 = vmatpush.msrb.mxu3 %v14063_v34  ;;  %v7661_v34 = vsub.f32 1.0, %v7648_v13 }
0x24a8   :  { %8162 = vmatpush.msrb.mxu1 %v14223_v62  ;;  %8254 = vmatpush.msrb.mxu3 %v14067_v55 }
0x24db   :  { %v7657_v51 = vpop.permute.xlu0 %7656 }
0x24dc   :  { %v7659_v22 = vadd.f32 %v7657_v51, %v7603_v17 }
0x24de   :  { %11710 = vtanh.f32 %v7659_v22 }
0x24e4   :  { %v11711_v21 = vpop.eup %11710 }
0x24e5   :  { %7663 = vrot.lane.b32.xlu2 %v11711_v21, %s12400_s24 }
0x2522   :  { %v7756_v59 = vpop.f32.mrf.mxu1 }
0x2523   :  { %v7757_v44 = vadd.f32 %v14092_v47, %v7756_v59 }
0x2528   :  { %v7840_v39 = vpop.f32.mrf.mxu3 }
0x2529   :  { %v7841_v24 = vadd.f32 %v14228_v4, %v7840_v39 }
0x252b   :  { %7867 = vrot.lane.b32.xlu2 %v7841_v24, %s12396_s0  ;;  %7844 = vrot.lane.b32.xlu1 %v7841_v24, %s12398_s11 }
0x253f   :  { %v7664_v9 = vpop.permute.xlu2 %7663 }
0x2540   :  { %v7666_v55 = vmul.f32 %v7664_v9, %v7661_v34 }
0x2542   :  { %v14234_v6 = vadd.f32 %v7667_v20, %v7666_v55 }
0x2544   :  { %7760 = vrot.lane.b32.xlu0 %v14234_v6, %s12400_s24 }
0x2585   :  { %v7868_v30 = vpop.permute.xlu2 %7867 }
0x259d   :  { %v7845_v60 = vpop.permute.xlu1 %7844 }
0x259e   :  { %v7847_v56 = vadd.f32 %v7845_v60, %v13807_v16 }
0x25a0   :  { %v10805_v61 = vmul.f32 -1.442695, %v7847_v56 }
0x25a2   :  { %11712 = vpow2.f32 %v10805_v61 }
0x25a8   :  { %v11713_v42 = vpop.eup %11712 }
0x25a9   :  { %v7851_v33 = vadd.f32 1.0, %v11713_v42 }
0x25ab   :  { %11714 = vrcp.f32 %v7851_v33  ;;  %v7863_v49 = vand.u32 2147483648, %v7851_v33  ;;  %v7861_v2 = vand.u32 2147483647, %v7851_v33  ;;  %vm7857_vm13 = vweird.f32 %v7851_v33 }
0x25ad   :  { %v7864_v10 = vor.u32 1.1754944e-38, %v7863_v49  ;;  %vm7862_vm1 = vcmp.eq.f32.partialorder %v7861_v2, 8.507059e+37 }
0x25b1   :  { %v11715_v18 = vpop.eup %11714 }
0x25b2   :  { %v7853_v35 = vmul.f32 %v11715_v18, %v7851_v33  ;;  %vm7858_vm12 = vweird.f32 %v11715_v18 }
0x25b3   :  { %vm7859_vm0 = vmor %vm7857_vm13, %vm7858_vm12 }
0x25b4   :  { %v7854_v46 = vsub.f32 1.0, %v7853_v35  ;;  %v11786_v35 = vld [vmem:[#allocation31] sm:$0xff] }
0x25b6   :  { %v7855_v43 = vmul.f32 %v11715_v18, %v7854_v46  ;;  %v7761_v32 = vpop.permute.xlu0 %7760 }
0x25b7   :  { %10802 = vmatmul.msk.f32.vlgmr.msra.gmra.mxu2 %vm5966_vm7, %v7761_v32 }
0x25b8   :  { %v7856_v0 = vadd.f32 %v11715_v18, %v7855_v43  ;;  %8228 = vmatpush.msra.mxu2 %v14240_v38 }
0x25ba   :  { %v7860_v28 = vsel %vm7859_vm0, %v11715_v18, %v7856_v0  ;;  %8229 = vmatpush.msra.mxu2 %v14243_v3  ;;  %v11785_v18 = vld [vmem:[#allocation31 + $0x8] sm:$0xff] }
0x25bb   :  { %v7865_v17 = vsel %vm7862_vm1, %v7864_v10, %v7860_v28 }
0x25bc   :  { %v7870_v7 = vmul.f32 %v7868_v30, %v7865_v17  ;;  %v7877_v34 = vsub.f32 1.0, %v7865_v17 }
0x25be   :  { %7872 = vrot.lane.b32.xlu1 %v7870_v7, %s12396_s0 }
0x25c6   :  { %7883 = vrot.lane.b32.xlu1 %v14213_v23, %s12402_s10 }
0x2630   :  { %v7873_v27 = vpop.permute.xlu1 %7872 }
0x2631   :  { %v7875_v25 = vadd.f32 %v7873_v27, %v13807_v16 }
0x2633   :  { %11716 = vtanh.f32 %v7875_v25 }
0x2638   :  { %v7884_v24 = vpop.permute.xlu1 %7883 }
0x2639   :  { %v11717_v14 = vpop.eup %11716  ;;  %v7886_v20 = vmul.f32 %v7884_v24, %v7865_v17 }
0x263a   :  { %v7781_v57 = vpop.f32.mrf.mxu2 }
0x263b   :  { %v7782_v11 = vadd.f32 %v14088_v36, %v7781_v57 }
0x263d   :  { %7805 = vrot.lane.b32.xlu0 %v7782_v11, %s12395_s26  ;;  %v7784_v37 = vadd.f32 %v7782_v11, %v7757_v44 }
0x263f   :  { %v10803_v41 = vmul.f32 -1.442695, %v7784_v37  ;;  %v14277_v37 = vld [vmem:[#allocation32] ss:$0 sm:$0xff] }
0x2641   :  { %11718 = vpow2.f32 %v10803_v41 }
0x2645   :  { %7879 = vrot.lane.b32.xlu0 %v11717_v14, %s12400_s24 }
0x2647   :  { %v11719_v26 = vpop.eup %11718 }
0x2648   :  { %v7788_v23 = vadd.f32 1.0, %v11719_v26 }
0x264a   :  { %11720 = vrcp.f32 %v7788_v23  ;;  %v7800_v5 = vand.u32 2147483648, %v7788_v23  ;;  %vm7794_vm3 = vweird.f32 %v7788_v23  ;;  %v7798_v45 = vand.u32 2147483647, %v7788_v23 }
0x264c   :  { %v7801_v22 = vor.u32 1.1754944e-38, %v7800_v5  ;;  %vm7799_vm8 = vcmp.eq.f32.partialorder %v7798_v45, 8.507059e+37 }
0x2650   :  { %v11721_v1 = vpop.eup %11720 }
0x2651   :  { %v7790_v53 = vmul.f32 %v11721_v1, %v7788_v23  ;;  %vm7795_vm2 = vweird.f32 %v11721_v1 }
0x2652   :  { %vm7796_vm4 = vmor %vm7794_vm3, %vm7795_vm2 }
0x2653   :  { %v7791_v40 = vsub.f32 1.0, %v7790_v53 }
0x2655   :  { %v7792_v13 = vmul.f32 %v11721_v1, %v7791_v40  ;;  %v14282_v40 = vld [vmem:[#allocation29] ss:$0 sm:$0xff] }
0x2657   :  { %v7793_v36 = vadd.f32 %v11721_v1, %v7792_v13 }
0x2659   :  { %v7797_v51 = vsel %vm7796_vm4, %v11721_v1, %v7793_v36 }
0x265a   :  { %v7802_v21 = vsel %vm7799_vm8, %v7801_v22, %v7797_v51 }
0x265b   :  { %v7815_v46 = vsub.f32 1.0, %v7802_v21  ;;  %v7821_v43 = vmul.f32 %v7802_v21, %v14234_v6 }
0x26af   :  { %v7806_v47 = vpop.permute.xlu0 %7805 }
0x26b0   :  { %v7808_v39 = vmul.f32 %v7806_v47, %v7802_v21 }
0x26b2   :  { %7810 = vrot.lane.b32.xlu2 %v7808_v39, %s12396_s0 }
0x26b7   :  { %v7880_v9 = vpop.permute.xlu0 %7879 }
0x26b8   :  { %v7882_v55 = vmul.f32 %v7880_v9, %v7877_v34 }
0x26ba   :  { %v7887_v60 = vadd.f32 %v7886_v20, %v7882_v55 }
0x26bc   :  { %7889 = vrot.lane.b32.xlu0 %v7887_v60, %s12402_s10 }
0x270c   :  { %v7811_v56 = vpop.permute.xlu2 %7810 }
0x270d   :  { %v7813_v61 = vadd.f32 %v7811_v56, %v7757_v44 }
0x270f   :  { %11722 = vtanh.f32 %v7813_v61 }
0x2715   :  { %v11723_v42 = vpop.eup %11722 }
0x2716   :  { %7817 = vrot.lane.b32.xlu2 %v11723_v42, %s12400_s24 }
0x272e   :  { %v14257_v33 = vpop.permute.xlu0 %7889 }
0x272f   :  { %10806 = vmatmul.msk.f32.vlgmr.msrb.gmra.mxu0 %vm5966_vm7, %v14257_v33  ;;  %10809 = vmatmul.msk.f32.vlgmr.msrb.gmra.mxu2 %vm5966_vm7, %v14257_v33 }
0x2730   :  { %8312 = vmatpush.msrb.mxu0 %v14187_v19  ;;  %8407 = vmatpush.msrb.mxu2 %v11785_v18 }
0x2732   :  { %8313 = vmatpush.msrb.mxu0 %v14223_v62  ;;  %8408 = vmatpush.msrb.mxu2 %v11786_v35 }
0x2770   :  { %v7818_v49 = vpop.permute.xlu2 %7817 }
0x2771   :  { %v7820_v32 = vmul.f32 %v7818_v49, %v7815_v46 }
0x2773   :  { %v14266_v2 = vadd.f32 %v7821_v43, %v7820_v32 }
0x2775   :  { %7914 = vrot.lane.b32.xlu1 %v14266_v2, %s12400_s24 }
0x27ac   :  { %v7910_v53 = vpop.f32.mrf.mxu0 }
0x27ad   :  { %v7911_v13 = vadd.f32 %v14282_v40, %v7910_v53 }
0x27b2   :  { %v7994_v0 = vpop.f32.mrf.mxu2 }
0x27b3   :  { %v7995_v10 = vadd.f32 %v14228_v4, %v7994_v0 }
0x27b5   :  { %7998 = vrot.lane.b32.xlu2 %v7995_v10, %s12400_s24  ;;  %8041 = vrot.lane.b32.xlu1 %v7995_v10, %s12403_s2 }
0x27e7   :  { %v7915_v19 = vpop.permute.xlu1 %7914 }
0x27e8   :  { %10807 = vmatmul.msk.f32.vlgmr.msra.gmra.mxu1 %vm5966_vm7, %v7915_v19 }
0x27e9   :  { %8382 = vmatpush.msra.mxu1 %v14240_v38 }
0x27eb   :  { %8383 = vmatpush.msra.mxu1 %v14243_v3 }
0x280f   :  { %v7999_v62 = vpop.permute.xlu2 %7998 }
0x2810   :  { %v8001_v28 = vadd.f32 %v7999_v62, %v13807_v16  ;;  %v8021_v46 = vadd.f32 %v7999_v62, %v13810_v15 }
0x2812   :  { %v10810_v30 = vmul.f32 -1.442695, %v8001_v28  ;;  %v10811_v49 = vmul.f32 -1.442695, %v8021_v46 }
0x2814   :  { %11724 = vpow2.f32 %v10810_v30 }
0x281a   :  { %v11725_v17 = vpop.eup %11724 }
0x281b   :  { %v8005_v7 = vadd.f32 1.0, %v11725_v17 }
0x281d   :  { %11726 = vrcp.f32 %v8005_v7  ;;  %v8017_v59 = vand.u32 2147483648, %v8005_v7  ;;  %vm8011_vm10 = vweird.f32 %v8005_v7  ;;  %v8015_v38 = vand.u32 2147483647, %v8005_v7 }
0x281f   :  { %v8018_v41 = vor.u32 1.1754944e-38, %v8017_v59  ;;  %vm8016_vm12 = vcmp.eq.f32.partialorder %v8015_v38, 8.507059e+37 }
0x2823   :  { %v11727_v27 = vpop.eup %11726 }
0x2824   :  { %v8007_v25 = vmul.f32 %v11727_v27, %v8005_v7  ;;  %vm8012_vm9 = vweird.f32 %v11727_v27 }
0x2825   :  { %vm8013_vm11 = vmor %vm8011_vm10, %vm8012_vm9 }
0x2826   :  { %v8008_v57 = vsub.f32 1.0, %v8007_v25 }
0x2827   :  { %v8042_v23 = vpop.permute.xlu1 %8041 }
0x2828   :  { %v8009_v11 = vmul.f32 %v11727_v27, %v8008_v57 }
0x282a   :  { %v8010_v14 = vadd.f32 %v11727_v27, %v8009_v11 }
0x282c   :  { %v8014_v16 = vsel %vm8013_vm11, %v11727_v27, %v8010_v14 }
0x282d   :  { %v8019_v26 = vsel %vm8016_vm12, %v8018_v41, %v8014_v16 }
0x282e   :  { %v8044_v1 = vmul.f32 %v8042_v23, %v8019_v26 }
0x2865   :  { %v7935_v44 = vpop.f32.mrf.mxu1 }
0x2866   :  { %v7936_v3 = vadd.f32 %v14277_v37, %v7935_v44 }
0x2868   :  { %7959 = vrot.lane.b32.xlu0 %v7936_v3, %s12395_s26  ;;  %v7938_v36 = vadd.f32 %v7936_v3, %v7911_v13 }
0x286a   :  { %v10808_v5 = vmul.f32 -1.442695, %v7938_v36 }
0x286c   :  { %11728 = vpow2.f32 %v10808_v5 }
0x2870   :  { %8046 = vrot.lane.b32.xlu0 %v8044_v1, %s12396_s0 }
0x2872   :  { %v11729_v45 = vpop.eup %11728 }
0x2873   :  { %v7942_v51 = vadd.f32 1.0, %v11729_v45 }
0x2875   :  { %11730 = vrcp.f32 %v7942_v51  ;;  %v7954_v34 = vand.u32 2147483648, %v7942_v51  ;;  %vm7948_vm0 = vweird.f32 %v7942_v51  ;;  %v7952_v9 = vand.u32 2147483647, %v7942_v51 }
0x2877   :  { %v7955_v55 = vor.u32 1.1754944e-38, %v7954_v34  ;;  %vm7953_vm2 = vcmp.eq.f32.partialorder %v7952_v9, 8.507059e+37 }
0x287b   :  { %v11731_v22 = vpop.eup %11730 }
0x287c   :  { %v7944_v47 = vmul.f32 %v11731_v22, %v7942_v51  ;;  %vm7949_vm13 = vweird.f32 %v11731_v22 }
0x287d   :  { %vm7950_vm1 = vmor %vm7948_vm0, %vm7949_vm13 }
0x287e   :  { %v7945_v21 = vsub.f32 1.0, %v7944_v47 }
0x2880   :  { %v7946_v39 = vmul.f32 %v11731_v22, %v7945_v21 }
0x2882   :  { %v7947_v24 = vadd.f32 %v11731_v22, %v7946_v39 }
0x2884   :  { %v7951_v20 = vsel %vm7950_vm1, %v11731_v22, %v7947_v24 }
0x2885   :  { %v7956_v56 = vsel %vm7953_vm2, %v7955_v55, %v7951_v20 }
0x2886   :  { %v7969_v41 = vsub.f32 1.0, %v7956_v56  ;;  %v7975_v23 = vmul.f32 %v7956_v56, %v14266_v2 }
0x28da   :  { %v7960_v60 = vpop.permute.xlu0 %7959 }
0x28db   :  { %v7962_v61 = vmul.f32 %v7960_v60, %v7956_v56 }
0x28dd   :  { %7964 = vrot.lane.b32.xlu2 %v7962_v61, %s12396_s0 }
0x28e2   :  { %v8047_v42 = vpop.permute.xlu0 %8046 }
0x28e3   :  { %v8049_v18 = vadd.f32 %v8047_v42, %v13810_v15 }
0x28e5   :  { %11732 = vtanh.f32 %v8049_v18 }
0x28e6   :  { %11734 = vpow2.f32 %v10811_v49 }
0x28eb   :  { %v11733_v35 = vpop.eup %11732 }
0x28ec   :  { %8053 = vrot.lane.b32.xlu2 %v11733_v35, %s12400_s24  ;;  %v11735_v43 = vpop.eup %11734 }
0x28ed   :  { %v8025_v32 = vadd.f32 1.0, %v11735_v43 }
0x28ef   :  { %11736 = vrcp.f32 %v8025_v32  ;;  %v8037_v27 = vand.u32 2147483648, %v8025_v32  ;;  %vm8031_vm4 = vweird.f32 %v8025_v32  ;;  %v8035_v25 = vand.u32 2147483647, %v8025_v32 }
0x28f1   :  { %v8038_v11 = vor.u32 1.1754944e-38, %v8037_v27  ;;  %vm8036_vm9 = vcmp.eq.f32.partialorder %v8035_v25, 8.507059e+37 }
0x28f5   :  { %v11737_v0 = vpop.eup %11736 }
0x28f6   :  { %v8027_v10 = vmul.f32 %v11737_v0, %v8025_v32  ;;  %vm8032_vm3 = vweird.f32 %v11737_v0 }
0x28f7   :  { %vm8033_vm8 = vmor %vm8031_vm4, %vm8032_vm3 }
0x28f8   :  { %v8028_v19 = vsub.f32 1.0, %v8027_v10 }
0x28fa   :  { %v8029_v30 = vmul.f32 %v11737_v0, %v8028_v19 }
0x28fc   :  { %v8030_v7 = vadd.f32 %v11737_v0, %v8029_v30 }
0x28fe   :  { %v8034_v57 = vsel %vm8033_vm8, %v11737_v0, %v8030_v7 }
0x28ff   :  { %v8039_v14 = vsel %vm8036_vm9, %v8038_v11, %v8034_v57 }
0x2900   :  { %v8051_v59 = vsub.f32 1.0, %v8039_v14  ;;  %v8058_v38 = vmul.f32 %v8039_v14, %v14257_v33 }
0x2937   :  { %v7965_v28 = vpop.permute.xlu2 %7964 }
0x2938   :  { %v7967_v17 = vadd.f32 %v7965_v28, %v7911_v13 }
0x293a   :  { %11738 = vtanh.f32 %v7967_v17 }
0x2940   :  { %v11739_v62 = vpop.eup %11738 }
0x2941   :  { %7971 = vrot.lane.b32.xlu1 %v11739_v62, %s12400_s24 }
0x2946   :  { %v8054_v44 = vpop.permute.xlu2 %8053 }
0x2947   :  { %v8056_v3 = vmul.f32 %v8054_v44, %v8051_v59 }
0x2949   :  { %v8059_v16 = vadd.f32 %v8058_v38, %v8056_v3 }
0x294b   :  { %10812 = vmatmul.msk.f32.vlgmr.msra.gmra.mxu3 %vm5966_vm7, %v8059_v16  ;;  %10815 = vmatmul.msk.f32.vlgmr.msrb.gmra.mxu1 %vm5966_vm7, %v8059_v16 }
0x29b3   :  { %v7972_v26 = vpop.permute.xlu1 %7971 }
0x29b4   :  { %v7974_v1 = vmul.f32 %v7972_v26, %v7969_v41 }
0x29b6   :  { %v14294_v53 = vadd.f32 %v7975_v23, %v7974_v1 }
0x29b8   :  { %8084 = vrot.lane.b32.xlu0 %v14294_v53, %s12400_s24 }
0x29c8   :  { %v8164_v13 = vpop.f32.mrf.mxu1 }
0x29c9   :  { %v8165_v36 = vadd.f32 %v14228_v4, %v8164_v13 }
0x29cb   :  { %8168 = vrot.lane.b32.xlu1 %v8165_v36, %s12396_s0 }
0x29ce   :  { %v8080_v46 = vpop.f32.mrf.mxu3 }
0x29cf   :  { %v8081_v32 = vadd.f32 %v14282_v40, %v8080_v46 }
0x2a2a   :  { %v8085_v33 = vpop.permute.xlu0 %8084 }
0x2a2b   :  { %10813 = vmatmul.msk.f32.vlgmr.msra.gmra.mxu0 %vm5966_vm7, %v8085_v33 }
0x2a3d   :  { %v8169_v5 = vpop.permute.xlu1 %8168 }
0x2a3e   :  { %v8171_v45 = vadd.f32 %v8169_v5, %v13810_v15 }
0x2a40   :  { %v10816_v51 = vmul.f32 -1.442695, %v8171_v45 }
0x2a42   :  { %11740 = vpow2.f32 %v10816_v51 }
0x2a48   :  { %v11741_v22 = vpop.eup %11740 }
0x2a49   :  { %v8175_v47 = vadd.f32 1.0, %v11741_v22 }
0x2a4b   :  { %11742 = vrcp.f32 %v8175_v47  ;;  %v8187_v34 = vand.u32 2147483648, %v8175_v47  ;;  %v8185_v20 = vand.u32 2147483647, %v8175_v47  ;;  %vm8181_vm11 = vweird.f32 %v8175_v47 }
0x2a4d   :  { %v8188_v60 = vor.u32 1.1754944e-38, %v8187_v34  ;;  %vm8186_vm13 = vcmp.eq.f32.partialorder %v8185_v20, 8.507059e+37 }
0x2a51   :  { %v11743_v21 = vpop.eup %11742 }
0x2a52   :  { %v8177_v39 = vmul.f32 %v11743_v21, %v8175_v47  ;;  %vm8182_vm10 = vweird.f32 %v11743_v21 }
0x2a53   :  { %vm8183_vm12 = vmor %vm8181_vm11, %vm8182_vm10 }
0x2a54   :  { %v8178_v24 = vsub.f32 1.0, %v8177_v39 }
0x2a56   :  { %v8179_v9 = vmul.f32 %v11743_v21, %v8178_v24 }
0x2a58   :  { %v8180_v55 = vadd.f32 %v11743_v21, %v8179_v9 }
0x2a5a   :  { %v8184_v56 = vsel %vm8183_vm12, %v11743_v21, %v8180_v55 }
0x2a5b   :  { %v8189_v61 = vsel %vm8186_vm13, %v8188_v60, %v8184_v56 }
0x2a5c   :  { %v8191_v42 = vmul.f32 %v8189_v61, %v8165_v36  ;;  %v8198_v41 = vsub.f32 1.0, %v8189_v61 }
0x2a5e   :  { %8193 = vrot.lane.b32.xlu0 %v8191_v42, %s12396_s0 }
0x2a66   :  { %8204 = vrot.lane.b32.xlu0 %v8059_v16, %s12402_s10 }
0x2aa8   :  { %v8105_v18 = vpop.f32.mrf.mxu0 }
0x2aa9   :  { %v8106_v35 = vadd.f32 %v14277_v37, %v8105_v18 }
0x2aab   :  { %8129 = vrot.lane.b32.xlu2 %v8106_v35, %s12395_s26  ;;  %v8108_v0 = vadd.f32 %v8106_v35, %v8081_v32 }
0x2aad   :  { %v10814_v10 = vmul.f32 -1.442695, %v8108_v0 }
0x2ad0   :  { %v8194_v49 = vpop.permute.xlu0 %8193 }
0x2ad1   :  { %v8196_v43 = vadd.f32 %v8194_v49, %v13810_v15 }
0x2ad3   :  { %11744 = vtanh.f32 %v8196_v43 }
0x2ad4   :  { %11746 = vpow2.f32 %v10814_v10 }
0x2ad8   :  { %v8205_v16 = vpop.permute.xlu0 %8204 }
0x2ad9   :  { %v11745_v19 = vpop.eup %11744  ;;  %v8207_v23 = vmul.f32 %v8205_v16, %v8189_v61 }
0x2ada   :  { %8200 = vrot.lane.b32.xlu2 %v11745_v19, %s12400_s24  ;;  %v11747_v28 = vpop.eup %11746 }
0x2adb   :  { %v8112_v30 = vadd.f32 1.0, %v11747_v28 }
0x2add   :  { %11748 = vrcp.f32 %v8112_v30  ;;  %v8124_v62 = vand.u32 2147483648, %v8112_v30  ;;  %vm8118_vm1 = vweird.f32 %v8112_v30  ;;  %v8122_v11 = vand.u32 2147483647, %v8112_v30 }
0x2adf   :  { %v8125_v59 = vor.u32 1.1754944e-38, %v8124_v62  ;;  %vm8123_vm3 = vcmp.eq.f32.partialorder %v8122_v11, 8.507059e+37 }
0x2ae3   :  { %v11749_v17 = vpop.eup %11748 }
0x2ae4   :  { %v8114_v7 = vmul.f32 %v11749_v17, %v8112_v30  ;;  %vm8119_vm0 = vweird.f32 %v11749_v17 }
0x2ae5   :  { %vm8120_vm2 = vmor %vm8118_vm1, %vm8119_vm0 }
0x2ae6   :  { %v8115_v27 = vsub.f32 1.0, %v8114_v7 }
0x2ae8   :  { %v8116_v25 = vmul.f32 %v11749_v17, %v8115_v27 }
0x2aea   :  { %v8117_v57 = vadd.f32 %v11749_v17, %v8116_v25 }
0x2aec   :  { %v8121_v14 = vsel %vm8120_vm2, %v11749_v17, %v8117_v57 }
0x2aed   :  { %v8126_v44 = vsel %vm8123_vm3, %v8125_v59, %v8121_v14 }
0x2aee   :  { %v8139_v51 = vsub.f32 1.0, %v8126_v44  ;;  %v8145_v47 = vmul.f32 %v8126_v44, %v14294_v53 }
0x2b05   :  { %v8130_v38 = vpop.permute.xlu2 %8129 }
0x2b06   :  { %v8132_v3 = vmul.f32 %v8130_v38, %v8126_v44 }
0x2b08   :  { %8134 = vrot.lane.b32.xlu1 %v8132_v3, %s12396_s0 }
0x2b34   :  { %v8201_v26 = vpop.permute.xlu2 %8200 }
0x2b35   :  { %v8203_v1 = vmul.f32 %v8201_v26, %v8198_v41 }
0x2b37   :  { %v8208_v13 = vadd.f32 %v8207_v23, %v8203_v1 }
0x2b39   :  { %8210 = vrot.lane.b32.xlu2 %v8208_v13, %s12403_s2 }
0x2b7a   :  { %v8135_v36 = vpop.permute.xlu1 %8134 }
0x2b7b   :  { %v8137_v33 = vadd.f32 %v8135_v36, %v8081_v32 }
0x2b7d   :  { %11750 = vtanh.f32 %v8137_v33 }
0x2b83   :  { %v11751_v5 = vpop.eup %11750 }
0x2b84   :  { %8141 = vrot.lane.b32.xlu1 %v11751_v5, %s12400_s24 }
0x2b93   :  { %v8211_v45 = vpop.permute.xlu2 %8210 }
0x2b94   :  { %10817 = vmatmul.msk.f32.vlgmr.msra.gmra.mxu2 %vm5966_vm7, %v8211_v45  ;;  %10820 = vmatmul.msk.f32.vlgmr.msrb.gmra.mxu0 %vm5966_vm7, %v8211_v45 }
0x2bf6   :  { %v8142_v22 = vpop.permute.xlu1 %8141 }
0x2bf7   :  { %v8144_v21 = vmul.f32 %v8142_v22, %v8139_v51 }
0x2bf9   :  { %v14315_v39 = vadd.f32 %v8145_v47, %v8144_v21 }
0x2bfb   :  { %8235 = vrot.lane.b32.xlu0 %v14315_v39, %s12400_s24 }
0x2c11   :  { %v8315_v24 = vpop.f32.mrf.mxu0 }
0x2c12   :  { %v8316_v34 = vadd.f32 %v14228_v4, %v8315_v24 }
0x2c14   :  { %8342 = vrot.lane.b32.xlu0 %v8316_v34, %s12402_s10  ;;  %8319 = vrot.lane.b32.xlu1 %v8316_v34, %s12403_s2 }
0x2c17   :  { %v8231_v7 = vpop.f32.mrf.mxu2 }
0x2c18   :  { %v8232_v27 = vadd.f32 %v14282_v40, %v8231_v7 }
0x2c6d   :  { %v8236_v9 = vpop.permute.xlu0 %8235 }
0x2c6e   :  { %10818 = vmatmul.msk.f32.vlgmr.msrb.gmra.mxu3 %vm5966_vm7, %v8236_v9 }
0x2c86   :  { %v8320_v20 = vpop.permute.xlu1 %8319  ;;  %v8343_v30 = vpop.permute.xlu0 %8342 }
0x2c87   :  { %v8322_v55 = vadd.f32 %v8320_v20, %v13810_v15 }
0x2c89   :  { %v10821_v60 = vmul.f32 -1.442695, %v8322_v55 }
0x2c8b   :  { %11752 = vpow2.f32 %v10821_v60 }
0x2c91   :  { %v11753_v56 = vpop.eup %11752 }
0x2c92   :  { %v8326_v61 = vadd.f32 1.0, %v11753_v56 }
0x2c94   :  { %11754 = vrcp.f32 %v8326_v61  ;;  %v8338_v43 = vand.u32 2147483648, %v8326_v61  ;;  %vm8332_vm8 = vweird.f32 %v8326_v61  ;;  %v8336_v0 = vand.u32 2147483647, %v8326_v61 }
0x2c96   :  { %v8339_v19 = vor.u32 1.1754944e-38, %v8338_v43  ;;  %vm8337_vm10 = vcmp.eq.f32.partialorder %v8336_v0, 8.507059e+37 }
0x2c9a   :  { %v11755_v42 = vpop.eup %11754 }
0x2c9b   :  { %v8328_v18 = vmul.f32 %v11755_v42, %v8326_v61  ;;  %vm8333_vm4 = vweird.f32 %v11755_v42 }
0x2c9c   :  { %vm8334_vm9 = vmor %vm8332_vm8, %vm8333_vm4  ;;  %vm8493_vm8 = vcmask 392192  }
0x2c9d   :  { %v8329_v35 = vsub.f32 1.0, %v8328_v18 }
0x2c9f   :  { %v8330_v46 = vmul.f32 %v11755_v42, %v8329_v35 }
0x2ca1   :  { %v8331_v4 = vadd.f32 %v11755_v42, %v8330_v46 }
0x2ca3   :  { %v8335_v10 = vsel %vm8334_vm9, %v11755_v42, %v8331_v4  ;;  %vm8496_vm9 = vcmask 654336  }
0x2ca4   :  { %v8340_v28 = vsel %vm8337_vm10, %v8339_v19, %v8335_v10  ;;  %vm8499_vm10 = vcmask 916480  }
0x2ca5   :  { %v8345_v17 = vmul.f32 %v8343_v30, %v8340_v28  ;;  %v8352_v24 = vsub.f32 1.0, %v8340_v28 }
0x2cf1   :  { %v8256_v49 = vpop.f32.mrf.mxu3 }
0x2cf2   :  { %v8257_v32 = vadd.f32 %v14277_v37, %v8256_v49 }
0x2cf4   :  { %8280 = vrot.lane.b32.xlu2 %v8257_v32, %s12395_s26  ;;  %v8259_v25 = vadd.f32 %v8257_v32, %v8232_v27 }
0x2cf6   :  { %v10819_v57 = vmul.f32 -1.442695, %v8259_v25 }
0x2cf8   :  { %11756 = vpow2.f32 %v10819_v57 }
0x2cfc   :  { %8347 = vrot.lane.b32.xlu2 %v8345_v17, %s12396_s0 }
0x2cfe   :  { %v11757_v62 = vpop.eup %11756 }
0x2cff   :  { %v8263_v11 = vadd.f32 1.0, %v11757_v62 }
0x2d01   :  { %11758 = vrcp.f32 %v8263_v11  ;;  %v8275_v16 = vand.u32 2147483648, %v8263_v11  ;;  %vm8269_vm12 = vweird.f32 %v8263_v11  ;;  %v8273_v41 = vand.u32 2147483647, %v8263_v11 }
0x2d03   :  { %v8276_v23 = vor.u32 1.1754944e-38, %v8275_v16  ;;  %vm8274_vm0 = vcmp.eq.f32.partialorder %v8273_v41, 8.507059e+37  ;;  %v8521_v16 = vld [vmem:[%s14512_s21 + $0x38] sm:$0xff]  ;;  %v8520_v41 = vld [vmem:[%s14512_s21 + $0x30] sm:$0xff] }
0x2d04   :  { %8358 = vrot.lane.b32.xlu2 %v8208_v13, %s12402_s10 }
0x2d07   :  { %v11759_v14 = vpop.eup %11758 }
0x2d08   :  { %v8265_v59 = vmul.f32 %v11759_v14, %v8263_v11  ;;  %vm8270_vm11 = vweird.f32 %v11759_v14  ;;  %v8529_v11 = vld [vmem:[%s14512_s21 + $0x78] sm:$0xff] }
0x2d09   :  { %vm8271_vm13 = vmor %vm8269_vm12, %vm8270_vm11  ;;  %8550 = vmatpush.msra.mxu3 %v8529_v11 }
0x2d0a   :  { %v8266_v44 = vsub.f32 1.0, %v8265_v59 }
0x2d0c   :  { %v8267_v38 = vmul.f32 %v11759_v14, %v8266_v44  ;;  %v8524_v44 = vld [vmem:[%s14512_s21 + $0x50] sm:$0xff] }
0x2d0e   :  { %v8268_v3 = vadd.f32 %v11759_v14, %v8267_v38  ;;  %v8523_v38 = vld [vmem:[%s14512_s21 + $0x48] sm:$0xff] }
0x2d10   :  { %v8272_v26 = vsel %vm8271_vm13, %v11759_v14, %v8268_v3  ;;  %v8528_v14 = vld [vmem:[%s14512_s21 + $0x70] sm:$0xff]  ;;  %v8522_v3 = vld [vmem:[%s14512_s21 + $0x40] sm:$0xff] }
0x2d11   :  { %v8277_v1 = vsel %vm8274_vm0, %v8276_v23, %v8272_v26  ;;  %8551 = vmatpush.msra.mxu3 %v8528_v14  ;;  %v8516_v26 = vld [vmem:[%s14512_s21 + $0x10] sm:$0xff]  ;;  %v8515_v23 = vld [vmem:[%s14512_s21 + $0x8] sm:$0xff] }
0x2d12   :  { %v8290_v60 = vsub.f32 1.0, %v8277_v1  ;;  %v8296_v56 = vmul.f32 %v8277_v1, %v14315_v39 }
0x2d4e   :  { %v8281_v13 = vpop.permute.xlu2 %8280 }
0x2d4f   :  { %v8283_v36 = vmul.f32 %v8281_v13, %v8277_v1  ;;  %v8514_v1 = vld [vmem:[%s14512_s21] sm:$0xff]  ;;  %v8545_v13 = vld [vmem:[%s14512_s21 + $0xf8] sm:$0xff] }
0x2d50   :  { %8570 = vmatpush.msra.mxu0 %v8545_v13 }
0x2d51   :  { %8285 = vrot.lane.b32.xlu1 %v8283_v36, %s12396_s0  ;;  %v8544_v36 = vld [vmem:[%s14512_s21 + $0xf0] sm:$0xff] }
0x2d52   :  { %8571 = vmatpush.msra.mxu0 %v8544_v36 }
0x2d56   :  { %v8348_v33 = vpop.permute.xlu2 %8347 }
0x2d57   :  { %v8350_v5 = vadd.f32 %v8348_v33, %v13810_v15 }
0x2d59   :  { %11760 = vtanh.f32 %v8350_v5  ;;  %v8543_v5 = vld [vmem:[%s14512_s21 + $0xe8] sm:$0xff] }
0x2d5a   :  { %8572 = vmatpush.msra.mxu0 %v8543_v5 }
0x2d5e   :  { %v8359_v21 = vpop.permute.xlu2 %8358 }
0x2d5f   :  { %v11761_v45 = vpop.eup %11760  ;;  %v8361_v9 = vmul.f32 %v8359_v21, %v8340_v28 }
0x2d60   :  { %8354 = vrot.lane.b32.xlu1 %v11761_v45, %s12400_s24  ;;  %v8542_v45 = vld [vmem:[%s14512_s21 + $0xe0] sm:$0xff] }
0x2d61   :  { %8573 = vmatpush.msra.mxu0 %v8542_v45 }
0x2dc3   :  { %v8286_v51 = vpop.permute.xlu1 %8285 }
0x2dc4   :  { %v8288_v22 = vadd.f32 %v8286_v51, %v8232_v27 }
0x2dc6   :  { %11762 = vtanh.f32 %v8288_v22 }
0x2dcc   :  { %v11763_v47 = vpop.eup %11762 }
0x2dcd   :  { %8292 = vrot.lane.b32.xlu0 %v11763_v47, %s12400_s24  ;;  %v8541_v47 = vld [vmem:[%s14512_s21 + $0xd8] sm:$0xff] }
0x2dce   :  { %8574 = vmatpush.msra.mxu0 %v8541_v47 }
0x2dd2   :  { %v8355_v34 = vpop.permute.xlu1 %8354 }
0x2dd3   :  { %v8357_v20 = vmul.f32 %v8355_v34, %v8352_v24 }
0x2dd5   :  { %v8362_v55 = vadd.f32 %v8361_v9, %v8357_v20  ;;  %v8540_v9 = vld [vmem:[%s14512_s21 + $0xd0] sm:$0xff] }
0x2dd6   :  { %8575 = vmatpush.msra.mxu0 %v8540_v9 }
0x2dd7   :  { %8364 = vrot.lane.b32.xlu1 %v8362_v55, %s12396_s0  ;;  %v8539_v55 = vld [vmem:[%s14512_s21 + $0xc8] sm:$0xff] }
0x2dd8   :  { %8576 = vmatpush.msra.mxu0 %v8539_v55 }
0x2e3f   :  { %v8293_v15 = vpop.permute.xlu0 %8292 }
0x2e40   :  { %v8295_v61 = vmul.f32 %v8293_v15, %v8290_v60  ;;  %v8538_v15 = vld [vmem:[%s14512_s21 + $0xc0] sm:$0xff] }
0x2e41   :  { %8577 = vmatpush.msra.mxu0 %v8538_v15 }
0x2e42   :  { %v14335_v42 = vadd.f32 %v8296_v56, %v8295_v61  ;;  %v8491_v56 = vsel %vm5966_vm7, %v13897_v54, %v13936_v50  ;;  %v8535_v54 = vld [vmem:[%s14512_s21 + $0xa8] sm:$0xff] }
0x2e44   :  { %8389 = vrot.lane.b32.xlu0 %v14335_v42, %s12400_s24 }
0x2e49   :  { %v8365_v18 = vpop.permute.xlu1 %8364 }
0x2e4a   :  { %10822 = vmatmul.msk.f32.vlgmr.msra.gmra.mxu1 %vm5966_vm7, %v8365_v18  ;;  %v8537_v18 = vld [vmem:[%s14512_s21 + $0xb8] sm:$0xff] }
0x2e4b   :  { %8578 = vmatpush.msra.mxu0 %v8537_v18 }
0x2eb6   :  { %v8390_v35 = vpop.permute.xlu0 %8389 }
0x2eb7   :  { %10823 = vmatmul.msk.f32.vlgmr.msrb.gmra.mxu2 %vm5966_vm7, %v8390_v35 }
0x2ec7   :  { %v8385_v49 = vpop.f32.mrf.mxu1 }
0x2ec8   :  { %v8386_v43 = vadd.f32 %v14282_v40, %v8385_v49 }
0x2f3a   :  { %v8410_v46 = vpop.f32.mrf.mxu2 }
0x2f3b   :  { %v8411_v4 = vadd.f32 %v14277_v37, %v8410_v46 }
0x2f3d   :  { %8434 = vrot.lane.b32.xlu2 %v8411_v4, %s12395_s26  ;;  %v8413_v32 = vadd.f32 %v8411_v4, %v8386_v43  ;;  %v8536_v4 = vld [vmem:[%s14512_s21 + $0xb0] sm:$0xff] }
0x2f3e   :  { %8579 = vmatpush.msra.mxu0 %v8536_v4 }
0x2f3f   :  { %v10824_v0 = vmul.f32 -1.442695, %v8413_v32 }
0x2f40   :  { %8580 = vmatpush.msra.mxu0 %v8535_v54 }
0x2f41   :  { %11764 = vpow2.f32 %v10824_v0 }
0x2f45   :  { %8453 = vrot.lane.b32.xlu2 %v13964_v29, %s12401_s7 }
0x2f47   :  { %v11765_v37 = vpop.eup %11764 }
0x2f48   :  { %v8417_v10 = vadd.f32 1.0, %v11765_v37 }
0x2f4a   :  { %11766 = vrcp.f32 %v8417_v10  ;;  %v8429_v17 = vand.u32 2147483648, %v8417_v10  ;;  %vm8423_vm2 = vweird.f32 %v8417_v10 }
0x2f4c   :  { %v8430_v7 = vor.u32 1.1754944e-38, %v8429_v17 }
0x2f4d   :  { %8462 = vrot.lane.b32.xlu2 %v14077_v8, %s12398_s11 }
0x2f50   :  { %v11767_v19 = vpop.eup %11766 }
0x2f51   :  { %v8419_v29 = vmul.f32 %v11767_v19, %v8417_v10  ;;  %vm8424_vm1 = vweird.f32 %v11767_v19 }
0x2f52   :  { %vm8425_vm3 = vmor %vm8423_vm2, %vm8424_vm1 }
0x2f53   :  { %v8420_v28 = vsub.f32 1.0, %v8419_v29  ;;  %v8532_v29 = vld [vmem:[%s14512_s21 + $0x90] sm:$0xff] }
0x2f55   :  { %8472 = vrot.lane.b32.xlu2 %v14234_v6, %s12401_s7  ;;  %v8421_v30 = vmul.f32 %v11767_v19, %v8420_v28  ;;  %v8427_v6 = vand.u32 2147483647, %v8417_v10  ;;  %v8533_v10 = vld [vmem:[%s14512_s21 + $0x98] sm:$0xff]  ;;  %v8531_v28 = vld [vmem:[%s14512_s21 + $0x88] sm:$0xff] }
0x2f57   :  { %v8422_v8 = vadd.f32 %v11767_v19, %v8421_v30  ;;  %vm8428_vm4 = vcmp.eq.f32.partialorder %v8427_v6, 8.507059e+37 }
0x2f5d   :  { %8481 = vrot.lane.b32.xlu2 %v14315_v39, %s12398_s11  ;;  %v8426_v39 = vsel %vm8425_vm3, %v11767_v19, %v8422_v8  ;;  %v8501_v8 = vsel %vm5966_vm7, %v14169_v48, %v14198_v31 }
0x2f5e   :  { %v8431_v40 = vsel %vm8428_vm4, %v8430_v7, %v8426_v39 }
0x2f5f   :  { %v8444_v51 = vsub.f32 1.0, %v8431_v40  ;;  %v8450_v24 = vmul.f32 %v8431_v40, %v14335_v42 }
0x2f97   :  { %v8435_v27 = vpop.permute.xlu2 %8434 }
0x2f98   :  { %v8437_v25 = vmul.f32 %v8435_v27, %v8431_v40 }
0x2f9a   :  { %8439 = vrot.lane.b32.xlu0 %v8437_v25, %s12396_s0  ;;  %v8530_v25 = vld [vmem:[%s14512_s21 + $0x80] sm:$0xff] }
0x2f9f   :  { %v8454_v33 = vpop.permute.xlu2 %8453 }
0x2fa0   :  { %v8492_v61 = vsel %vm1386_vm14, %v8491_v56, %v8454_v33 }
0x2fa2   :  { %8456 = vrot.lane.b32.xlu0 %v13998_v12, %s12396_s0  ;;  %v8527_v12 = vld [vmem:[%s14512_s21 + $0x68] sm:$0xff] }
0x2fa3   :  { %8552 = vmatpush.msra.mxu3 %v8527_v12  ;;  %v11569_v12 = vld [vmem:[#allocation34] ss:$0 sm:$0xff] }
0x2fa7   :  { %v8463_v60 = vpop.permute.xlu2 %8462 }
0x2faa   :  { %8465 = vrot.lane.b32.xlu0 %v14108_v58, %s12403_s2  ;;  %v8526_v58 = vld [vmem:[%s14512_s21 + $0x60] sm:$0xff] }
0x2fab   :  { %8553 = vmatpush.msra.mxu3 %v8526_v58 }
0x2faf   :  { %v8473_v32 = vpop.permute.xlu2 %8472 }
0x2fb0   :  { %v8502_v17 = vsel %vm1386_vm14, %v8501_v8, %v8473_v32 }
0x2fb2   :  { %8475 = vrot.lane.b32.xlu0 %v14266_v2, %s12396_s0  ;;  %v8525_v2 = vld [vmem:[%s14512_s21 + $0x58] sm:$0xff] }
0x2fb3   :  { %8554 = vmatpush.msra.mxu3 %v8525_v2 }
0x2fb5   :  { %8555 = vmatpush.msra.mxu3 %v8524_v44 }
0x2fb7   :  { %8556 = vmatpush.msra.mxu3 %v8523_v38  ;;  %v8482_v7 = vpop.permute.xlu2 %8481 }
0x2fb9   :  { %8557 = vmatpush.msra.mxu3 %v8522_v3 }
0x2fba   :  { %8484 = vrot.lane.b32.xlu0 %v14335_v42, %s12403_s2 }
0x2fbb   :  { %8558 = vmatpush.msra.mxu3 %v8521_v16 }
0x2fbd   :  { %8559 = vmatpush.msra.mxu3 %v8520_v41 }
0x300c   :  { %v8440_v57 = vpop.permute.xlu0 %8439 }
0x300d   :  { %v8442_v62 = vadd.f32 %v8440_v57, %v8386_v43  ;;  %v8534_v43 = vld [vmem:[%s14512_s21 + $0xa0] sm:$0xff] }
0x300e   :  { %8581 = vmatpush.msra.mxu0 %v8534_v43 }
0x300f   :  { %11768 = vtanh.f32 %v8442_v62 }
0x3010   :  { %8582 = vmatpush.msra.mxu0 %v8533_v10 }
0x3012   :  { %8583 = vmatpush.msra.mxu0 %v8532_v29 }
0x3014   :  { %v8457_v21 = vpop.permute.xlu0 %8456  ;;  %8584 = vmatpush.msra.mxu0 %v8531_v28 }
0x3015   :  { %v11769_v59 = vpop.eup %11768  ;;  %v8494_v35 = vsel %vm8493_vm8, %v8492_v61, %v8457_v21 }
0x3016   :  { %8446 = vrot.lane.b32.xlu1 %v11769_v59, %s12400_s24  ;;  %8585 = vmatpush.msra.mxu0 %v8530_v25 }
0x301c   :  { %v8466_v49 = vpop.permute.xlu0 %8465 }
0x301e   :  { %8459 = vrot.lane.b32.xlu1 %v14040_v52, %s12402_s10  ;;  %v8519_v52 = vld [vmem:[%s14512_s21 + $0x28] sm:$0xff] }
0x301f   :  { %8560 = vmatpush.msra.mxu3 %v8519_v52 }
0x3024   :  { %v8476_v30 = vpop.permute.xlu0 %8475 }
0x3025   :  { %v8503_v6 = vsel %vm8493_vm8, %v8502_v17, %v8476_v30 }
0x3026   :  { %8468 = vrot.lane.b32.xlu1 %v14136_v63, %s12395_s26  ;;  %v8518_v63 = vld [vmem:[%s14512_s21 + $0x20] sm:$0xff] }
0x3027   :  { %8561 = vmatpush.msra.mxu3 %v8518_v63 }
0x302c   :  { %v8485_v57 = vpop.permute.xlu0 %8484 }
0x302e   :  { %8478 = vrot.lane.b32.xlu1 %v14294_v53, %s12402_s10  ;;  %v8517_v53 = vld [vmem:[%s14512_s21 + $0x18] sm:$0xff]  ;;  %s12405_s21 = smov [#allocation36]  }
0x302f   :  { %8562 = vmatpush.msra.mxu3 %v8517_v53  ;;  %s8608_s27 = sshll.u32 %s12405_s21, 4  ;;  %s8609_s27 = int_to_ptr.vmem [resolvable:$true] %s8608_s27 }
0x3031   :  { %8563 = vmatpush.msra.mxu3 %v8516_v26 }
0x3033   :  { %8564 = vmatpush.msra.mxu3 %v8515_v23 }
0x3035   :  { %8565 = vmatpush.msra.mxu3 %v8514_v1 }
0x3088   :  { %v8447_v22 = vpop.permute.xlu1 %8446 }
0x3089   :  { %v8449_v34 = vmul.f32 %v8447_v22, %v8444_v51 }
0x308b   :  { %v8451_v20 = vadd.f32 %v8450_v24, %v8449_v34 }
0x308d   :  { %8488 = vrot.lane.b32.xlu1 %v8451_v20, %s12395_s26 }
0x3090   :  { %v8460_v42 = vpop.permute.xlu1 %8459 }
0x3091   :  { %v8495_v46 = vsel %vm1873_vm15, %v8494_v35, %v8460_v42 }
0x3092   :  { %v8497_v50 = vsel %vm8496_vm9, %v8495_v46, %v8463_v60 }
0x3093   :  { %v8498_v37 = vsel %vm927_vm6, %v8497_v50, %v8466_v49 }
0x3098   :  { %v8469_v0 = vpop.permute.xlu1 %8468 }
0x3099   :  { %v8500_v19 = vsel %vm8499_vm10, %v8498_v37, %v8469_v0 }
0x309a   :  { %8566 = vmatmul.f32.vlgmr.msra.gmra.mxu3 %v8500_v19 }
0x30a0   :  { %v8479_v39 = vpop.permute.xlu1 %8478 }
0x30a1   :  { %v8504_v40 = vsel %vm1873_vm15, %v8503_v6, %v8479_v39 }
0x30a2   :  { %v8505_v27 = vsel %vm8496_vm9, %v8504_v40, %v8482_v7 }
0x30a3   :  { %v8506_v48 = vsel %vm927_vm6, %v8505_v27, %v8485_v57  ;;  %vm8590_vm6 = vcmask 214016  }
0x30ff   :  { %v8489_v62 = vpop.permute.xlu1 %8488 }
0x3100   :  { %v8507_v31 = vsel %vm8499_vm10, %v8506_v48, %v8489_v62 }
0x3101   :  { %v8510_v11 = vrot.slane %v8507_v31, 6  ;;  %8586 = vmatmul.f32.vlgmr.msra.gmra.mxu0 %v8507_v31 }
0x3103   :  { %v8511_v14 = vsel %vm1033_vm5, %v8500_v19, %v8510_v11 }
0x3104   :  { %8513 = vst [vmem:[#allocation35] sm:$0xf] %v8511_v14 }
0x3105   :  { %8602 = dma.vmem_to_hbm [thread:$0]  %s8598_s6, 64, %s8600_s15, [#allocation4]  }
0x311d   :  { %v8567_v58 = vpop.f32.mrf.mxu3 }
0x311e   :  { %v8568_v2 = vadd.f32 %v11569_v12, %v8567_v58 }
0x317e   :  { %v8587_v59 = vpop.f32.mrf.mxu0 }
0x317f   :  { %v8588_v44 = vadd.f32 %v8587_v59, %v8568_v2 }
0x3181   :  { %8591 = vst.msk [vmem:[#allocation36] sm:$0x3] %vm8590_vm6, %v8588_v44 }
0x3182   :  { %8613 = dma.vmem_to_hbm [thread:$0]  %s8609_s27, 32, %s8611_s23, [#allocation37]  }
0x3183   :  { %12363 = dma.done.wait [#allocation4], 64  }
0x3184   :  { %12364 = vsyncadd [#allocation4], 4294967232 }
0x3185   :  { %12365 = dma.done.wait [#allocation37], 32  }
0x3186   :  { %12366 = vsyncadd [#allocation37], 4294967264 }
0x3187   :  { %8622 = vsyncpa [#allocation3], 1 }
0x3188   :  { %8623 = vsyncpa [#allocation6], 1 }
0x3189   :  { %8624 = vsyncpa [#allocation9], 1 }
0x318a   :  { %8625 = vsyncpa [#allocation12], 1 }
0x318b   :  { %8626 = vsyncpa [#allocation15], 1 }
0x318c   :  { %8627 = vsyncpa [#allocation18], 1 }
0x318d   :  { %8628 = vsyncpa [#allocation21], 1 }
0x318e   :  { %8629 = vsyncpa [#allocation24], 1 }
0x318f   :  { %8630 = vsyncpa [#allocation27], 1 }
0x3190   :  { %8631 = vsyncpa [#allocation30], 1 }
0x3191   :  { %8632 = vsyncpa [#allocation33], 1 }
0x3192   :  { %8633 = vsyncpa [#allocation4], 1 }
0x3193   :  { %8634 = vsyncpa [#allocation37], 1 }

</bundles_post_ra>
